<compile_context>
chip_gen: v5e
topology: v5e:2x2
jax: 0.10.0
libtpu: 0.0.40
codegen_flags: <defaults>
</compile_context>

<pallas_src>
import functools

import jax
import jax.numpy as jnp
from jax.experimental import pallas as pl
from jax.experimental.pallas import tpu as pltpu


TM = 32  # batch tile (sublane-aligned); 64 is also fine on 128-MiB-VMEM parts.


# ----------------------------------------------------------------------------
# Fused forward kernel — everything stays in VMEM, all heavy math on the MXU.
# ----------------------------------------------------------------------------
def _lenet5_fused_kernel(
    x_ref,      # [28, TM, 160] bf16  H-tap im2col rows: lanes = di*32 + w'
    w1_ref,     # [160, 256]    bf16  conv1 Toeplitz: cols = parity*128 + (W*6+c)
    b1_ref,     # [1, 256]      f32
    w2_ref,     # [640, 256]    bf16  conv2: K = di*128 + (w_in*6+ci), N as conv1
    b2_ref,     # [1, 256]      f32
    fc1w_ref,   # [640, 128]    bf16  fc1:   K = ho*128 + (W2*16+co)
    fc1b_ref,   # [1, 128]      f32
    fc2w_ref,   # [128, 128]    bf16
    fc2b_ref,   # [1, 128]      f32
    fc3w_ref,   # [128, 128]    bf16
    fc3b_ref,   # [1, 128]      f32
    out_ref,    # [TM, 128]     f32   logits (first 10 lanes real)
    *, tm,
):
    f32, bf16 = jnp.float32, jnp.bfloat16

    # ---- conv1 + bias + ReLU: ONE MXU matmul ---------------------------------
    lhs1 = x_ref[...].reshape(28 * tm, 160)                      # rows = (h, b)
    a1 = jnp.maximum(
        jnp.dot(lhs1, w1_ref[...], preferred_element_type=f32) + b1_ref[...],
        0.0)                                                     # [28*tm, 256]
    # 2x2 max-pool: W-pool = max(even half, odd half); H-pool over row pairs.
    pw1 = jnp.maximum(a1[:, 0:128], a1[:, 128:256])              # [28*tm, 128]
    pw1 = pw1.reshape(14, 2, tm, 128)
    p1 = jnp.maximum(pw1[:, 0], pw1[:, 1]).astype(bf16)          # [14, tm, 128]

    # ---- conv2 + bias + ReLU: pack the 5 H-taps into K (128-lane blocks) -----
    lhs2 = jnp.concatenate([p1[di:di + 10] for di in range(5)], axis=-1)
    lhs2 = lhs2.reshape(10 * tm, 640)                            # rows = (h2, b)
    a2 = jnp.maximum(
        jnp.dot(lhs2, w2_ref[...], preferred_element_type=f32) + b2_ref[...],
        0.0)                                                     # [10*tm, 256]
    pw2 = jnp.maximum(a2[:, 0:128], a2[:, 128:256])              # [10*tm, 128]
    pw2 = pw2.reshape(5, 2, tm, 128)
    p2 = jnp.maximum(pw2[:, 0], pw2[:, 1]).astype(bf16)          # [5, tm, 128]

    # ---- fc1: pack the 5 pooled rows into K -> one [tm,640]x[640,128] matmul --
    lhsf = jnp.concatenate([p2[h] for h in range(5)], axis=-1)   # [tm, 640]
    h1 = jnp.maximum(
        jnp.dot(lhsf, fc1w_ref[...], preferred_element_type=f32) + fc1b_ref[...],
        0.0)

    # ---- fc2 + fc3 ------------------------------------------------------------
    h2 = jnp.maximum(
        jnp.dot(h1.astype(bf16), fc2w_ref[...], preferred_element_type=f32)
        + fc2b_ref[...], 0.0)
    out = jnp.dot(h2.astype(bf16), fc3w_ref[...], preferred_element_type=f32) \
        + fc3b_ref[...]
    out_ref[...] = out.astype(out_ref.dtype)                     # lane-dense


# ----------------------------------------------------------------------------
# Parameters in the original PyTorch layout.
# ----------------------------------------------------------------------------
def init_params(key):
    ks = jax.random.split(key, 10)
    scale = 0.1
    return {
        "conv1_w": jax.random.normal(ks[0], (6, 1, 5, 5), jnp.float32) * scale,
        "conv1_b": jax.random.normal(ks[1], (6,), jnp.float32) * scale,
        "conv2_w": jax.random.normal(ks[2], (16, 6, 5, 5), jnp.float32) * scale,
        "conv2_b": jax.random.normal(ks[3], (16,), jnp.float32) * scale,
        "fc1_w": jax.random.normal(ks[4], (120, 400), jnp.float32) * scale,
        "fc1_b": jax.random.normal(ks[5], (120,), jnp.float32) * scale,
        "fc2_w": jax.random.normal(ks[6], (84, 120), jnp.float32) * scale,
        "fc2_b": jax.random.normal(ks[7], (84,), jnp.float32) * scale,
        "fc3_w": jax.random.normal(ks[8], (10, 84), jnp.float32) * scale,
        "fc3_b": jax.random.normal(ks[9], (10,), jnp.float32) * scale,
    }


# ----------------------------------------------------------------------------
# One-time weight packing (Toeplitz construction, flatten-fold, lane padding).
# ----------------------------------------------------------------------------
def prepare_params(params):
    f32, bf16 = jnp.float32, jnp.bfloat16

    def pad2(m, rows, cols):
        return jnp.pad(m, ((0, rows - m.shape[0]), (0, cols - m.shape[1])))

    # conv1 Toeplitz: W1T[di*32+w', parity*128 + (W*6+c)] = k1[c,0,di, w'-(2W+parity)]
    k1t = jnp.transpose(params["conv1_w"].astype(f32)[:, 0], (1, 2, 0))  # [di,dj,c]
    wprime = jnp.arange(32)[:, None, None, None]
    par = jnp.arange(2)[None, :, None, None]
    Wp = jnp.arange(14)[None, None, :, None]
    dj = jnp.arange(5)[None, None, None, :]
    sel1 = (wprime == 2 * Wp + par + dj).astype(f32)                 # [32,2,14,5]
    t1 = jnp.einsum('wpWj,ijc->iwpWc', sel1, k1t)                    # [5,32,2,14,6]
    t1 = jnp.pad(t1.reshape(5, 32, 2, 84), ((0, 0), (0, 0), (0, 0), (0, 44)))
    w1 = t1.reshape(160, 256).astype(bf16)
    b1 = jnp.pad(jnp.tile(params["conv1_b"].astype(f32), 14), (0, 44))
    b1 = jnp.concatenate([b1, b1]).reshape(1, 256)

    # conv2: W2T[di*128 + (w_in*6+ci), parity*128 + (W2*16+co)]
    #        = k2[co, ci, di, w_in - (2*W2+parity)]
    k2t = jnp.transpose(params["conv2_w"].astype(f32), (2, 3, 1, 0))  # [di,dj,ci,co]
    win = jnp.arange(14)[:, None, None, None]
    par2 = jnp.arange(2)[None, :, None, None]
    W2 = jnp.arange(5)[None, None, :, None]
    dj2 = jnp.arange(5)[None, None, None, :]
    sel2 = (win == 2 * W2 + par2 + dj2).astype(f32)                   # [14,2,5,5]
    t2 = jnp.einsum('wpWj,ijcn->iwcpWn', sel2, k2t)                   # [5,14,6,2,5,16]
    t2 = jnp.pad(t2.reshape(5, 84, 2, 80), ((0, 0), (0, 44), (0, 0), (0, 48)))
    w2 = t2.reshape(640, 256).astype(bf16)
    b2 = jnp.pad(jnp.tile(params["conv2_b"].astype(f32), 5), (0, 48))
    b2 = jnp.concatenate([b2, b2]).reshape(1, 256)

    # fc1: PyTorch flatten index = co*25 + ho*5 + wo; kernel K = ho*128 + (wo*16+co)
    f1 = params["fc1_w"].astype(f32).reshape(120, 16, 5, 5)           # [n,co,ho,wo]
    f1 = jnp.transpose(f1, (2, 3, 1, 0)).reshape(5, 80, 120)          # [ho,(wo,co),n]
    f1 = jnp.pad(f1, ((0, 0), (0, 48), (0, 8)))
    fc1w = f1.reshape(640, 128).astype(bf16)
    fc1b = jnp.pad(params["fc1_b"].astype(f32), (0, 8)).reshape(1, 128)

    # fc2 / fc3: y = x @ W.T + b  ->  store W.T zero-padded to [128,128].
    fc2w = pad2(params["fc2_w"].astype(f32).T, 128, 128).astype(bf16)
    fc2b = jnp.pad(params["fc2_b"].astype(f32), (0, 128 - 84)).reshape(1, 128)
    fc3w = pad2(params["fc3_w"].astype(f32).T, 128, 128).astype(bf16)
    fc3b = jnp.pad(params["fc3_b"].astype(f32), (0, 128 - 10)).reshape(1, 128)

    return {"w1": w1, "b1": b1, "w2": w2, "b2": b2,
            "fc1w": fc1w, "fc1b": fc1b, "fc2w": fc2w, "fc2b": fc2b,
            "fc3w": fc3w, "fc3b": fc3b}


# ----------------------------------------------------------------------------
# Forward pass (one pallas_call, batch tiled along a "parallel" grid axis).
# ----------------------------------------------------------------------------
@jax.jit
def lenet5_forward(prep, x):
    """x: [B, 1, 28, 28] float32 (NCHW, as in the PyTorch module) -> [B, 10]."""
    B = x.shape[0]
    n_tiles = max(2, -(-B // TM))          # >=2 grid steps so v7x uses both TCs
    Bp = n_tiles * TM

    # Cheap XLA prep: pad batch, apply conv1's padding=2 (28->32), build the
    # H-tap im2col (lanes = di*32 + w'), and move H to the leading axis so the
    # kernel's (28, TM, 160) block is lane-dense and batch-tiled.
    xp = jnp.pad(x.astype(jnp.float32)[:, 0], ((0, Bp - B), (2, 2), (2, 2)))
    xim = jnp.concatenate([xp[:, di:di + 28, :] for di in range(5)], axis=-1)
    xim = jnp.transpose(xim, (1, 0, 2)).astype(jnp.bfloat16)          # [28,Bp,160]

    def const(shape):
        return pl.BlockSpec(shape, lambda i: (0,) * len(shape))

    out = pl.pallas_call(
        functools.partial(_lenet5_fused_kernel, tm=TM),
        out_shape=jax.ShapeDtypeStruct((Bp, 128), jnp.float32),
        grid=(n_tiles,),
        in_specs=[
            pl.BlockSpec((28, TM, 160), lambda i: (0, i, 0)),   # x (batch tiled)
            const((160, 256)), const((1, 256)),                 # conv1
            const((640, 256)), const((1, 256)),                 # conv2
            const((640, 128)), const((1, 128)),                 # fc1
            const((128, 128)), const((1, 128)),                 # fc2
            const((128, 128)), const((1, 128)),                 # fc3
        ],
        out_specs=pl.BlockSpec((TM, 128), lambda i: (i, 0)),
        compiler_params=pltpu.CompilerParams(
            dimension_semantics=("parallel",),
        ),
    )(xim, prep["w1"], prep["b1"], prep["w2"], prep["b2"],
      prep["fc1w"], prep["fc1b"], prep["fc2w"], prep["fc2b"],
      prep["fc3w"], prep["fc3b"])
    return out[:B, :10]


# ----------------------------------------------------------------------------
# Pure-JAX reference (matches the PyTorch module) for a tolerance check.
# ----------------------------------------------------------------------------
def lenet5_reference(params, x):
    dn = ("NCHW", "OIHW", "NCHW")
    y = jax.lax.conv_general_dilated(x, params["conv1_w"], (1, 1),
                                     ((2, 2), (2, 2)), dimension_numbers=dn)
    y = jax.nn.relu(y + params["conv1_b"][None, :, None, None])
    y = jax.lax.reduce_window(y, -jnp.inf, jax.lax.max,
                              (1, 1, 2, 2), (1, 1, 2, 2), "VALID")
    y = jax.lax.conv_general_dilated(y, params["conv2_w"], (1, 1),
                                     ((0, 0), (0, 0)), dimension_numbers=dn)
    y = jax.nn.relu(y + params["conv2_b"][None, :, None, None])
    y = jax.lax.reduce_window(y, -jnp.inf, jax.lax.max,
                              (1, 1, 2, 2), (1, 1, 2, 2), "VALID")
    y = y.reshape(y.shape[0], -1)                       # channel-major flatten
    y = jax.nn.relu(y @ params["fc1_w"].T + params["fc1_b"])
    y = jax.nn.relu(y @ params["fc2_w"].T + params["fc2_b"])
    return y @ params["fc3_w"].T + params["fc3_b"]


if __name__ == "__main__":
    key = jax.random.PRNGKey(0)
    pkey, xkey = jax.random.split(key)
    params = init_params(pkey)
    prep = prepare_params(params)               # one-time weight packing
    jax.block_until_ready(prep)

    # MNIST-shaped input (LeNet5's fc1 requires 28x28 spatial), small batch.
    x = jax.random.normal(xkey, (2, 1, 28, 28), jnp.float32)
    out = lenet5_forward(prep, x)
    jax.block_until_ready(out)
    assert out.shape == (2, 10) and out.dtype == jnp.float32

    # bf16 matmuls with f32 accumulation: validate against tolerance, not bits.
    ref = lenet5_reference(params, x)
    err = float(jnp.max(jnp.abs(out - ref)))
    assert err < 0.25, f"mismatch vs reference: max abs err = {err}"
    print("KERNEL_OK")
</pallas_src>

<mosaic_0001>
module attributes {stable_mosaic.version = 11 : i64} {
  func.func @_lenet5_fused_kernel(%arg0: i32, %arg1: memref<28x32x160xbf16, #tpu.memory_space<vmem>>, %arg2: memref<160x256xbf16, #tpu.memory_space<vmem>>, %arg3: memref<1x256xf32, #tpu.memory_space<vmem>>, %arg4: memref<640x256xbf16, #tpu.memory_space<vmem>>, %arg5: memref<1x256xf32, #tpu.memory_space<vmem>>, %arg6: memref<640x128xbf16, #tpu.memory_space<vmem>>, %arg7: memref<1x128xf32, #tpu.memory_space<vmem>>, %arg8: memref<128x128xbf16, #tpu.memory_space<vmem>>, %arg9: memref<1x128xf32, #tpu.memory_space<vmem>>, %arg10: memref<128x128xbf16, #tpu.memory_space<vmem>>, %arg11: memref<1x128xf32, #tpu.memory_space<vmem>>, %arg12: memref<32x128xf32, #tpu.memory_space<vmem>>) attributes {dimension_semantics = [#tpu.dimension_semantics<parallel>], iteration_bounds = array<i64: 2>, scalar_prefetch = 0 : i64, scratch_operands = 0 : i64, tpu.core_type = #tpu.core_type<tc>, window_params = [{transform_indices = @transform_0, window_bounds = array<i64: 28, 32, 160>}, {pipeline_mode = #tpu.pipeline_mode<synchronous>, transform_indices = @transform_1, window_bounds = array<i64: 160, 256>}, {pipeline_mode = #tpu.pipeline_mode<synchronous>, transform_indices = @transform_2, window_bounds = array<i64: 1, 256>}, {pipeline_mode = #tpu.pipeline_mode<synchronous>, transform_indices = @transform_3, window_bounds = array<i64: 640, 256>}, {pipeline_mode = #tpu.pipeline_mode<synchronous>, transform_indices = @transform_4, window_bounds = array<i64: 1, 256>}, {pipeline_mode = #tpu.pipeline_mode<synchronous>, transform_indices = @transform_5, window_bounds = array<i64: 640, 128>}, {pipeline_mode = #tpu.pipeline_mode<synchronous>, transform_indices = @transform_6, window_bounds = array<i64: 1, 128>}, {pipeline_mode = #tpu.pipeline_mode<synchronous>, transform_indices = @transform_7, window_bounds = array<i64: 128, 128>}, {pipeline_mode = #tpu.pipeline_mode<synchronous>, transform_indices = @transform_8, window_bounds = array<i64: 1, 128>}, {pipeline_mode = #tpu.pipeline_mode<synchronous>, transform_indices = @transform_9, window_bounds = array<i64: 128, 128>}, {pipeline_mode = #tpu.pipeline_mode<synchronous>, transform_indices = @transform_10, window_bounds = array<i64: 1, 128>}, {transform_indices = @transform_11, window_bounds = array<i64: 32, 128>}]} {
    %c0 = arith.constant 0 : index
    %c0_0 = arith.constant 0 : index
    %c0_1 = arith.constant 0 : index
    %0 = vector.load %arg1[%c0, %c0_0, %c0_1] : memref<28x32x160xbf16, #tpu.memory_space<vmem>>, vector<28x32x160xbf16>
    %1 = vector.shape_cast %0 : vector<28x32x160xbf16> to vector<896x160xbf16>
    %c0_2 = arith.constant 0 : index
    %c0_3 = arith.constant 0 : index
    %2 = vector.load %arg2[%c0_2, %c0_3] : memref<160x256xbf16, #tpu.memory_space<vmem>>, vector<160x256xbf16>
    %cst = arith.constant dense<0.000000e+00> : vector<896x256xf32>
    %3 = tpu.matmul %1, %2, %cst {dimension_numbers = #tpu.dot_dimension_numbers<[1], [0], [0], [1], [0, 0, 1, 1], [], []>} : vector<896x160xbf16>, vector<160x256xbf16>, vector<896x256xf32> -> vector<896x256xf32>
    %c0_4 = arith.constant 0 : index
    %c0_5 = arith.constant 0 : index
    %4 = vector.load %arg3[%c0_4, %c0_5] : memref<1x256xf32, #tpu.memory_space<vmem>>, vector<1x256xf32>
    %5 = vector.broadcast %4 : vector<1x256xf32> to vector<896x256xf32>
    %6 = arith.addf %3, %5 : vector<896x256xf32>
    %cst_6 = arith.constant 0.000000e+00 : f32
    %7 = vector.broadcast %cst_6 : f32 to vector<896x256xf32>
    %8 = arith.maximumf %6, %7 : vector<896x256xf32>
    %9 = vector.extract_strided_slice %8 {offsets = [0, 0], sizes = [896, 128], strides = [1, 1]} : vector<896x256xf32> to vector<896x128xf32>
    %10 = vector.extract_strided_slice %8 {offsets = [0, 128], sizes = [896, 128], strides = [1, 1]} : vector<896x256xf32> to vector<896x128xf32>
    %11 = arith.maximumf %9, %10 : vector<896x128xf32>
    %12 = vector.shape_cast %11 : vector<896x128xf32> to vector<14x2x32x128xf32>
    %13 = vector.extract_strided_slice %12 {offsets = [0, 0, 0, 0], sizes = [14, 1, 32, 128], strides = [1, 1, 1, 1]} : vector<14x2x32x128xf32> to vector<14x1x32x128xf32>
    %14 = vector.shape_cast %13 : vector<14x1x32x128xf32> to vector<14x32x128xf32>
    %15 = vector.extract_strided_slice %12 {offsets = [0, 1, 0, 0], sizes = [14, 1, 32, 128], strides = [1, 1, 1, 1]} : vector<14x2x32x128xf32> to vector<14x1x32x128xf32>
    %16 = vector.shape_cast %15 : vector<14x1x32x128xf32> to vector<14x32x128xf32>
    %17 = arith.maximumf %14, %16 : vector<14x32x128xf32>
    %18 = arith.truncf %17 : vector<14x32x128xf32> to vector<14x32x128xbf16>
    %19 = vector.extract_strided_slice %18 {offsets = [0, 0, 0], sizes = [10, 32, 128], strides = [1, 1, 1]} : vector<14x32x128xbf16> to vector<10x32x128xbf16>
    %20 = vector.extract_strided_slice %18 {offsets = [1, 0, 0], sizes = [10, 32, 128], strides = [1, 1, 1]} : vector<14x32x128xbf16> to vector<10x32x128xbf16>
    %21 = vector.extract_strided_slice %18 {offsets = [2, 0, 0], sizes = [10, 32, 128], strides = [1, 1, 1]} : vector<14x32x128xbf16> to vector<10x32x128xbf16>
    %22 = vector.extract_strided_slice %18 {offsets = [3, 0, 0], sizes = [10, 32, 128], strides = [1, 1, 1]} : vector<14x32x128xbf16> to vector<10x32x128xbf16>
    %23 = vector.extract_strided_slice %18 {offsets = [4, 0, 0], sizes = [10, 32, 128], strides = [1, 1, 1]} : vector<14x32x128xbf16> to vector<10x32x128xbf16>
    %24 = tpu.concatenate %19, %20, %21, %22, %23 in 2 : vector<10x32x128xbf16>, vector<10x32x128xbf16>, vector<10x32x128xbf16>, vector<10x32x128xbf16>, vector<10x32x128xbf16> -> vector<10x32x640xbf16>
    %25 = vector.shape_cast %24 : vector<10x32x640xbf16> to vector<320x640xbf16>
    %c0_7 = arith.constant 0 : index
    %c0_8 = arith.constant 0 : index
    %26 = vector.load %arg4[%c0_7, %c0_8] : memref<640x256xbf16, #tpu.memory_space<vmem>>, vector<640x256xbf16>
    %cst_9 = arith.constant dense<0.000000e+00> : vector<320x256xf32>
    %27 = tpu.matmul %25, %26, %cst_9 {dimension_numbers = #tpu.dot_dimension_numbers<[1], [0], [0], [1], [0, 0, 1, 1], [], []>} : vector<320x640xbf16>, vector<640x256xbf16>, vector<320x256xf32> -> vector<320x256xf32>
    %c0_10 = arith.constant 0 : index
    %c0_11 = arith.constant 0 : index
    %28 = vector.load %arg5[%c0_10, %c0_11] : memref<1x256xf32, #tpu.memory_space<vmem>>, vector<1x256xf32>
    %29 = vector.broadcast %28 : vector<1x256xf32> to vector<320x256xf32>
    %30 = arith.addf %27, %29 : vector<320x256xf32>
    %cst_12 = arith.constant 0.000000e+00 : f32
    %31 = vector.broadcast %cst_12 : f32 to vector<320x256xf32>
    %32 = arith.maximumf %30, %31 : vector<320x256xf32>
    %33 = vector.extract_strided_slice %32 {offsets = [0, 0], sizes = [320, 128], strides = [1, 1]} : vector<320x256xf32> to vector<320x128xf32>
    %34 = vector.extract_strided_slice %32 {offsets = [0, 128], sizes = [320, 128], strides = [1, 1]} : vector<320x256xf32> to vector<320x128xf32>
    %35 = arith.maximumf %33, %34 : vector<320x128xf32>
    %36 = vector.shape_cast %35 : vector<320x128xf32> to vector<5x2x32x128xf32>
    %37 = vector.extract_strided_slice %36 {offsets = [0, 0, 0, 0], sizes = [5, 1, 32, 128], strides = [1, 1, 1, 1]} : vector<5x2x32x128xf32> to vector<5x1x32x128xf32>
    %38 = vector.shape_cast %37 : vector<5x1x32x128xf32> to vector<5x32x128xf32>
    %39 = vector.extract_strided_slice %36 {offsets = [0, 1, 0, 0], sizes = [5, 1, 32, 128], strides = [1, 1, 1, 1]} : vector<5x2x32x128xf32> to vector<5x1x32x128xf32>
    %40 = vector.shape_cast %39 : vector<5x1x32x128xf32> to vector<5x32x128xf32>
    %41 = arith.maximumf %38, %40 : vector<5x32x128xf32>
    %42 = arith.truncf %41 : vector<5x32x128xf32> to vector<5x32x128xbf16>
    %43 = vector.extract_strided_slice %42 {offsets = [0, 0, 0], sizes = [1, 32, 128], strides = [1, 1, 1]} : vector<5x32x128xbf16> to vector<1x32x128xbf16>
    %44 = vector.shape_cast %43 : vector<1x32x128xbf16> to vector<32x128xbf16>
    %45 = vector.extract_strided_slice %42 {offsets = [1, 0, 0], sizes = [1, 32, 128], strides = [1, 1, 1]} : vector<5x32x128xbf16> to vector<1x32x128xbf16>
    %46 = vector.shape_cast %45 : vector<1x32x128xbf16> to vector<32x128xbf16>
    %47 = vector.extract_strided_slice %42 {offsets = [2, 0, 0], sizes = [1, 32, 128], strides = [1, 1, 1]} : vector<5x32x128xbf16> to vector<1x32x128xbf16>
    %48 = vector.shape_cast %47 : vector<1x32x128xbf16> to vector<32x128xbf16>
    %49 = vector.extract_strided_slice %42 {offsets = [3, 0, 0], sizes = [1, 32, 128], strides = [1, 1, 1]} : vector<5x32x128xbf16> to vector<1x32x128xbf16>
    %50 = vector.shape_cast %49 : vector<1x32x128xbf16> to vector<32x128xbf16>
    %51 = vector.extract_strided_slice %42 {offsets = [4, 0, 0], sizes = [1, 32, 128], strides = [1, 1, 1]} : vector<5x32x128xbf16> to vector<1x32x128xbf16>
    %52 = vector.shape_cast %51 : vector<1x32x128xbf16> to vector<32x128xbf16>
    %53 = tpu.concatenate %44, %46, %48, %50, %52 in 1 : vector<32x128xbf16>, vector<32x128xbf16>, vector<32x128xbf16>, vector<32x128xbf16>, vector<32x128xbf16> -> vector<32x640xbf16>
    %c0_13 = arith.constant 0 : index
    %c0_14 = arith.constant 0 : index
    %54 = vector.load %arg6[%c0_13, %c0_14] : memref<640x128xbf16, #tpu.memory_space<vmem>>, vector<640x128xbf16>
    %cst_15 = arith.constant dense<0.000000e+00> : vector<32x128xf32>
    %55 = tpu.matmul %53, %54, %cst_15 {dimension_numbers = #tpu.dot_dimension_numbers<[1], [0], [0], [1], [0, 0, 1, 1], [], []>} : vector<32x640xbf16>, vector<640x128xbf16>, vector<32x128xf32> -> vector<32x128xf32>
    %c0_16 = arith.constant 0 : index
    %c0_17 = arith.constant 0 : index
    %56 = vector.load %arg7[%c0_16, %c0_17] : memref<1x128xf32, #tpu.memory_space<vmem>>, vector<1x128xf32>
    %57 = vector.broadcast %56 : vector<1x128xf32> to vector<32x128xf32>
    %58 = arith.addf %55, %57 : vector<32x128xf32>
    %cst_18 = arith.constant 0.000000e+00 : f32
    %59 = vector.broadcast %cst_18 : f32 to vector<32x128xf32>
    %60 = arith.maximumf %58, %59 : vector<32x128xf32>
    %61 = arith.truncf %60 : vector<32x128xf32> to vector<32x128xbf16>
    %c0_19 = arith.constant 0 : index
    %c0_20 = arith.constant 0 : index
    %62 = vector.load %arg8[%c0_19, %c0_20] : memref<128x128xbf16, #tpu.memory_space<vmem>>, vector<128x128xbf16>
    %cst_21 = arith.constant dense<0.000000e+00> : vector<32x128xf32>
    %63 = tpu.matmul %61, %62, %cst_21 {dimension_numbers = #tpu.dot_dimension_numbers<[1], [0], [0], [1], [0, 0, 1, 1], [], []>} : vector<32x128xbf16>, vector<128x128xbf16>, vector<32x128xf32> -> vector<32x128xf32>
    %c0_22 = arith.constant 0 : index
    %c0_23 = arith.constant 0 : index
    %64 = vector.load %arg9[%c0_22, %c0_23] : memref<1x128xf32, #tpu.memory_space<vmem>>, vector<1x128xf32>
    %65 = vector.broadcast %64 : vector<1x128xf32> to vector<32x128xf32>
    %66 = arith.addf %63, %65 : vector<32x128xf32>
    %cst_24 = arith.constant 0.000000e+00 : f32
    %67 = vector.broadcast %cst_24 : f32 to vector<32x128xf32>
    %68 = arith.maximumf %66, %67 : vector<32x128xf32>
    %69 = arith.truncf %68 : vector<32x128xf32> to vector<32x128xbf16>
    %c0_25 = arith.constant 0 : index
    %c0_26 = arith.constant 0 : index
    %70 = vector.load %arg10[%c0_25, %c0_26] : memref<128x128xbf16, #tpu.memory_space<vmem>>, vector<128x128xbf16>
    %cst_27 = arith.constant dense<0.000000e+00> : vector<32x128xf32>
    %71 = tpu.matmul %69, %70, %cst_27 {dimension_numbers = #tpu.dot_dimension_numbers<[1], [0], [0], [1], [0, 0, 1, 1], [], []>} : vector<32x128xbf16>, vector<128x128xbf16>, vector<32x128xf32> -> vector<32x128xf32>
    %c0_28 = arith.constant 0 : index
    %c0_29 = arith.constant 0 : index
    %72 = vector.load %arg11[%c0_28, %c0_29] : memref<1x128xf32, #tpu.memory_space<vmem>>, vector<1x128xf32>
    %73 = vector.broadcast %72 : vector<1x128xf32> to vector<32x128xf32>
    %74 = arith.addf %71, %73 : vector<32x128xf32>
    %c0_30 = arith.constant 0 : index
    %c0_31 = arith.constant 0 : index
    %75 = vector.load %arg12[%c0_30, %c0_31] : memref<32x128xf32, #tpu.memory_space<vmem>>, vector<32x128xf32>
    tpu.vector_store %arg12[%c0_30, %c0_31], %74 {strides = array<i32>} : memref<32x128xf32, #tpu.memory_space<vmem>>, vector<32x128xf32>,
    return
  }
  func.func @transform_0(%arg0: i32) -> (i32, i32, i32) {
    %c0_i32 = arith.constant 0 : i32
    %c0_i32_0 = arith.constant 0 : i32
    %c0_i32_1 = arith.constant 0 : i32
    return %c0_i32, %arg0, %c0_i32_0 : i32, i32, i32
  }
  func.func @transform_1(%arg0: i32) -> (i32, i32) {
    %c0_i32 = arith.constant 0 : i32
    %c0_i32_0 = arith.constant 0 : i32
    %c0_i32_1 = arith.constant 0 : i32
    return %c0_i32, %c0_i32_0 : i32, i32
  }
  func.func @transform_2(%arg0: i32) -> (i32, i32) {
    %c0_i32 = arith.constant 0 : i32
    %c0_i32_0 = arith.constant 0 : i32
    %c0_i32_1 = arith.constant 0 : i32
    return %c0_i32, %c0_i32_0 : i32, i32
  }
  func.func @transform_3(%arg0: i32) -> (i32, i32) {
    %c0_i32 = arith.constant 0 : i32
    %c0_i32_0 = arith.constant 0 : i32
    %c0_i32_1 = arith.constant 0 : i32
    return %c0_i32, %c0_i32_0 : i32, i32
  }
  func.func @transform_4(%arg0: i32) -> (i32, i32) {
    %c0_i32 = arith.constant 0 : i32
    %c0_i32_0 = arith.constant 0 : i32
    %c0_i32_1 = arith.constant 0 : i32
    return %c0_i32, %c0_i32_0 : i32, i32
  }
  func.func @transform_5(%arg0: i32) -> (i32, i32) {
    %c0_i32 = arith.constant 0 : i32
    %c0_i32_0 = arith.constant 0 : i32
    %c0_i32_1 = arith.constant 0 : i32
    return %c0_i32, %c0_i32_0 : i32, i32
  }
  func.func @transform_6(%arg0: i32) -> (i32, i32) {
    %c0_i32 = arith.constant 0 : i32
    %c0_i32_0 = arith.constant 0 : i32
    %c0_i32_1 = arith.constant 0 : i32
    return %c0_i32, %c0_i32_0 : i32, i32
  }
  func.func @transform_7(%arg0: i32) -> (i32, i32) {
    %c0_i32 = arith.constant 0 : i32
    %c0_i32_0 = arith.constant 0 : i32
    %c0_i32_1 = arith.constant 0 : i32
    return %c0_i32, %c0_i32_0 : i32, i32
  }
  func.func @transform_8(%arg0: i32) -> (i32, i32) {
    %c0_i32 = arith.constant 0 : i32
    %c0_i32_0 = arith.constant 0 : i32
    %c0_i32_1 = arith.constant 0 : i32
    return %c0_i32, %c0_i32_0 : i32, i32
  }
  func.func @transform_9(%arg0: i32) -> (i32, i32) {
    %c0_i32 = arith.constant 0 : i32
    %c0_i32_0 = arith.constant 0 : i32
    %c0_i32_1 = arith.constant 0 : i32
    return %c0_i32, %c0_i32_0 : i32, i32
  }
  func.func @transform_10(%arg0: i32) -> (i32, i32) {
    %c0_i32 = arith.constant 0 : i32
    %c0_i32_0 = arith.constant 0 : i32
    %c0_i32_1 = arith.constant 0 : i32
    return %c0_i32, %c0_i32_0 : i32, i32
  }
  func.func @transform_11(%arg0: i32) -> (i32, i32) {
    %c0_i32 = arith.constant 0 : i32
    %c0_i32_0 = arith.constant 0 : i32
    return %arg0, %c0_i32 : i32, i32
  }
}

</mosaic_0001>

<bundles_post_ra>
// kernel: lenet5_forward.1
= control target key start
LH: loop header
LB: loop body
LE: loop exit
PB: predicated region body
PF: predicated region fallthrough
CT: control target
= control target key end

     0   :  { %s7605_s17 = smov 0   ;;  %s7607_s18 = smov 0   ;;  %s11649_s0 = inlined_call_operand.vmem [shape: bf16[28,64,160], index: 0, kind: input, shape index: {}]   ;;  %s11650_s1 = inlined_call_operand.vmem [shape: bf16[160,256], index: 1, kind: input, shape index: {}]   ;;  %s11651_s2 = inlined_call_operand.vmem [shape: f32[1,256], index: 2, kind: input, shape index: {}]   ;;  %s11652_s3 = inlined_call_operand.vmem [shape: bf16[640,256], index: 3, kind: input, shape index: {}]   ;;  %s11653_s4 = inlined_call_operand.vmem [shape: f32[1,256], index: 4, kind: input, shape index: {}]   ;;  %s11654_s5 = inlined_call_operand.vmem [shape: bf16[640,128], index: 5, kind: input, shape index: {}]   ;;  %s11655_s6 = inlined_call_operand.vmem [shape: f32[1,128], index: 6, kind: input, shape index: {}]   ;;  %s11656_s7 = inlined_call_operand.vmem [shape: bf16[128,128], index: 7, kind: input, shape index: {}]   ;;  %s11657_s8 = inlined_call_operand.vmem [shape: f32[1,128], index: 8, kind: input, shape index: {}]   ;;  %s11658_s9 = inlined_call_operand.vmem [shape: bf16[128,128], index: 9, kind: input, shape index: {}]   ;;  %s11659_s10 = inlined_call_operand.vmem [shape: f32[1,128], index: 10, kind: input, shape index: {}]   ;;  %s11660_s11 = inlined_call_operand.vmem [shape: f32[64,128], index: 11, kind: output, shape index: {}]  }
   0x1   :  { %s7609_s19 = smov 0  }
   0x2 LB: > { %s6021_s20 = sadd.s32 4294967295, %s7543_s19   ;;  %s7622_s21 = sadd.s32 1, %s7543_s19   ;;  %s7543_s19 = sphi %s7609_s19, %s12117_s19   ;;  %s7539_s18 = sphi %s7607_s18, %s12116_s18   ;;  %s7535_s17 = sphi %s7605_s17, %s12115_s17  }
   0x3   : > { %s25_s22 = ssub.s32 %s7543_s19, %s7622_s21  ;;  %s28_s23 = sadd.s32 1, %s7539_s18 }
   0x4   : > { %p26_p0 = scmp.eq.s32.totalorder %s25_s22, 0  ;;  %p35_p1 = scmp.ne.s32.totalorder %s7539_s18, %s7535_s17 }
   0x5   : > { %p36_p2 = scmp.eq.s32.totalorder %s7543_s19, 0  ;;  %p6024_p4 = scmp.ge.s32.totalorder %s7543_s19, 2 }
   0x6   : > { %s7631_s24 = scalar_select %p26_p0, %s7539_s18, %s28_s23  }
   0x7   : > { %p37_p3 = por %p36_p2, %p35_p1  ;;  %327 = sbr.rel (%p6024_p4) target bundleno = 128 (0x80), region = 56 }
   0xc   : > { %330 = sbr.rel (!%p37_p3) target bundleno = 128 (0x80), region = 60  ;;  %s332_s25 = sand.u32 (%p37_p3), 1, %s7539_s18  }
   0xd   : > { %s7218_s26 = sshll.u32 (%p37_p3), %s7543_s19, 5  ;;  %s7491_s27 = smul.u32 (%p37_p3), 896, %s332_s25 }
   0xe   : > { %s7639_s30 = scalar_lea.vmem (%p37_p3), %s11649_s0, %s7218_s26 }
   0xf   : > { %v589_v0 = vld [vmem:[%s7639_s30] sm:$0xff] (%p37_p3)  ;;  %v591_v1 = vld [vmem:[%s7639_s30 + $0x8] sm:$0xff] (%p37_p3)  ;;  %v593_v2 = vld [vmem:[%s7639_s30 + $0x10] sm:$0xff] (%p37_p3)  ;;  %s7644_s12 = scalar_lea.vmem (%p37_p3), [#allocation2], %s7491_s27 }
  0x10   : > { %590 = vst [vmem:[%s7644_s12] sm:$0xff] (%p37_p3), %v589_v0  ;;  %v595_v3 = vld [vmem:[%s7639_s30 + $0x18] sm:$0xff] (%p37_p3)  ;;  %v597_v4 = vld [vmem:[%s7639_s30 + $0x40] sm:$0xff] (%p37_p3)  ;;  %v599_v5 = vld [vmem:[%s7639_s30 + $0x48] sm:$0xff] (%p37_p3) }
  0x11   : > { %592 = vst [vmem:[%s7644_s12 + $0x8] sm:$0xff] %v591_v1  ;;  %v601_v6 = vld [vmem:[%s7639_s30 + $0x50] sm:$0xff]  ;;  %v603_v7 = vld [vmem:[%s7639_s30 + $0x58] sm:$0xff]  ;;  %v605_v8 = vld [vmem:[%s7639_s30 + $0x80] sm:$0xff] }
  0x12   : > { %594 = vst [vmem:[%s7644_s12 + $0x10] sm:$0xff] %v593_v2  ;;  %v607_v9 = vld [vmem:[%s7639_s30 + $0x88] sm:$0xff]  ;;  %v609_v10 = vld [vmem:[%s7639_s30 + $0x90] sm:$0xff]  ;;  %v611_v11 = vld [vmem:[%s7639_s30 + $0x98] sm:$0xff] }
  0x13   : > { %596 = vst [vmem:[%s7644_s12 + $0x18] sm:$0xff] %v595_v3  ;;  %v613_v12 = vld [vmem:[%s7639_s30 + $0xc0] sm:$0xff]  ;;  %v615_v13 = vld [vmem:[%s7639_s30 + $0xc8] sm:$0xff]  ;;  %v617_v14 = vld [vmem:[%s7639_s30 + $0xd0] sm:$0xff] }
  0x14   : > { %598 = vst [vmem:[%s7644_s12 + $0x20] sm:$0xff] %v597_v4  ;;  %v619_v15 = vld [vmem:[%s7639_s30 + $0xd8] sm:$0xff]  ;;  %v621_v16 = vld [vmem:[%s7639_s30 + $0x100] sm:$0xff]  ;;  %v623_v17 = vld [vmem:[%s7639_s30 + $0x108] sm:$0xff] }
  0x15   : > { %600 = vst [vmem:[%s7644_s12 + $0x28] sm:$0xff] %v599_v5  ;;  %v625_v18 = vld [vmem:[%s7639_s30 + $0x110] sm:$0xff]  ;;  %v627_v19 = vld [vmem:[%s7639_s30 + $0x118] sm:$0xff]  ;;  %v629_v20 = vld [vmem:[%s7639_s30 + $0x140] sm:$0xff] }
  0x16   : > { %602 = vst [vmem:[%s7644_s12 + $0x30] sm:$0xff] %v601_v6  ;;  %v631_v21 = vld [vmem:[%s7639_s30 + $0x148] sm:$0xff]  ;;  %v633_v22 = vld [vmem:[%s7639_s30 + $0x150] sm:$0xff]  ;;  %v635_v23 = vld [vmem:[%s7639_s30 + $0x158] sm:$0xff] }
  0x17   : > { %604 = vst [vmem:[%s7644_s12 + $0x38] sm:$0xff] %v603_v7  ;;  %v637_v24 = vld [vmem:[%s7639_s30 + $0x180] sm:$0xff]  ;;  %v639_v25 = vld [vmem:[%s7639_s30 + $0x188] sm:$0xff]  ;;  %v641_v26 = vld [vmem:[%s7639_s30 + $0x190] sm:$0xff] }
  0x18   : > { %606 = vst [vmem:[%s7644_s12 + $0x40] sm:$0xff] %v605_v8  ;;  %v643_v27 = vld [vmem:[%s7639_s30 + $0x198] sm:$0xff]  ;;  %v645_v28 = vld [vmem:[%s7639_s30 + $0x1c0] sm:$0xff]  ;;  %v647_v29 = vld [vmem:[%s7639_s30 + $0x1c8] sm:$0xff] }
  0x19   : > { %608 = vst [vmem:[%s7644_s12 + $0x48] sm:$0xff] %v607_v9  ;;  %v649_v30 = vld [vmem:[%s7639_s30 + $0x1d0] sm:$0xff]  ;;  %v651_v31 = vld [vmem:[%s7639_s30 + $0x1d8] sm:$0xff]  ;;  %v653_v32 = vld [vmem:[%s7639_s30 + $0x200] sm:$0xff] }
  0x1a   : > { %610 = vst [vmem:[%s7644_s12 + $0x50] sm:$0xff] %v609_v10  ;;  %v655_v33 = vld [vmem:[%s7639_s30 + $0x208] sm:$0xff]  ;;  %v657_v34 = vld [vmem:[%s7639_s30 + $0x210] sm:$0xff]  ;;  %v659_v35 = vld [vmem:[%s7639_s30 + $0x218] sm:$0xff] }
  0x1b   : > { %612 = vst [vmem:[%s7644_s12 + $0x58] sm:$0xff] %v611_v11  ;;  %v661_v36 = vld [vmem:[%s7639_s30 + $0x240] sm:$0xff]  ;;  %v663_v37 = vld [vmem:[%s7639_s30 + $0x248] sm:$0xff]  ;;  %v665_v38 = vld [vmem:[%s7639_s30 + $0x250] sm:$0xff] }
  0x1c   : > { %614 = vst [vmem:[%s7644_s12 + $0x60] sm:$0xff] %v613_v12  ;;  %v667_v39 = vld [vmem:[%s7639_s30 + $0x258] sm:$0xff]  ;;  %v669_v40 = vld [vmem:[%s7639_s30 + $0x280] sm:$0xff]  ;;  %v671_v41 = vld [vmem:[%s7639_s30 + $0x288] sm:$0xff] }
  0x1d   : > { %616 = vst [vmem:[%s7644_s12 + $0x68] sm:$0xff] %v615_v13  ;;  %v673_v42 = vld [vmem:[%s7639_s30 + $0x290] sm:$0xff]  ;;  %v675_v43 = vld [vmem:[%s7639_s30 + $0x298] sm:$0xff]  ;;  %v677_v44 = vld [vmem:[%s7639_s30 + $0x2c0] sm:$0xff] }
  0x1e   : > { %618 = vst [vmem:[%s7644_s12 + $0x70] sm:$0xff] %v617_v14  ;;  %v679_v45 = vld [vmem:[%s7639_s30 + $0x2c8] sm:$0xff]  ;;  %v681_v46 = vld [vmem:[%s7639_s30 + $0x2d0] sm:$0xff]  ;;  %v683_v47 = vld [vmem:[%s7639_s30 + $0x2d8] sm:$0xff] }
  0x1f   : > { %620 = vst [vmem:[%s7644_s12 + $0x78] sm:$0xff] %v619_v15  ;;  %v685_v48 = vld [vmem:[%s7639_s30 + $0x300] sm:$0xff]  ;;  %v687_v49 = vld [vmem:[%s7639_s30 + $0x308] sm:$0xff]  ;;  %v689_v50 = vld [vmem:[%s7639_s30 + $0x310] sm:$0xff] }
  0x20   : > { %622 = vst [vmem:[%s7644_s12 + $0x80] sm:$0xff] %v621_v16  ;;  %v691_v51 = vld [vmem:[%s7639_s30 + $0x318] sm:$0xff]  ;;  %v693_v52 = vld [vmem:[%s7639_s30 + $0x340] sm:$0xff]  ;;  %v695_v53 = vld [vmem:[%s7639_s30 + $0x348] sm:$0xff] }
  0x21   : > { %624 = vst [vmem:[%s7644_s12 + $0x88] sm:$0xff] %v623_v17  ;;  %v697_v54 = vld [vmem:[%s7639_s30 + $0x350] sm:$0xff]  ;;  %v699_v55 = vld [vmem:[%s7639_s30 + $0x358] sm:$0xff]  ;;  %v701_v56 = vld [vmem:[%s7639_s30 + $0x380] sm:$0xff] }
  0x22   : > { %626 = vst [vmem:[%s7644_s12 + $0x90] sm:$0xff] %v625_v18  ;;  %v703_v57 = vld [vmem:[%s7639_s30 + $0x388] sm:$0xff]  ;;  %v705_v58 = vld [vmem:[%s7639_s30 + $0x390] sm:$0xff]  ;;  %v707_v59 = vld [vmem:[%s7639_s30 + $0x398] sm:$0xff] }
  0x23   : > { %628 = vst [vmem:[%s7644_s12 + $0x98] sm:$0xff] %v627_v19  ;;  %v709_v60 = vld [vmem:[%s7639_s30 + $0x3c0] sm:$0xff]  ;;  %v711_v61 = vld [vmem:[%s7639_s30 + $0x3c8] sm:$0xff]  ;;  %v713_v62 = vld [vmem:[%s7639_s30 + $0x3d0] sm:$0xff] }
  0x24   : > { %630 = vst [vmem:[%s7644_s12 + $0xa0] sm:$0xff] %v629_v20  ;;  %v715_v63 = vld [vmem:[%s7639_s30 + $0x3d8] sm:$0xff]  ;;  %v717_v0 = vld [vmem:[%s7639_s30 + $0x400] sm:$0xff]  ;;  %v719_v1 = vld [vmem:[%s7639_s30 + $0x408] sm:$0xff] }
  0x25   : > { %632 = vst [vmem:[%s7644_s12 + $0xa8] sm:$0xff] %v631_v21  ;;  %v721_v2 = vld [vmem:[%s7639_s30 + $0x410] sm:$0xff]  ;;  %v723_v3 = vld [vmem:[%s7639_s30 + $0x418] sm:$0xff]  ;;  %v725_v4 = vld [vmem:[%s7639_s30 + $0x440] sm:$0xff] }
  0x26   : > { %634 = vst [vmem:[%s7644_s12 + $0xb0] sm:$0xff] %v633_v22  ;;  %v727_v5 = vld [vmem:[%s7639_s30 + $0x448] sm:$0xff]  ;;  %v729_v6 = vld [vmem:[%s7639_s30 + $0x450] sm:$0xff]  ;;  %v731_v7 = vld [vmem:[%s7639_s30 + $0x458] sm:$0xff] }
  0x27   : > { %636 = vst [vmem:[%s7644_s12 + $0xb8] sm:$0xff] %v635_v23  ;;  %v733_v8 = vld [vmem:[%s7639_s30 + $0x480] sm:$0xff]  ;;  %v735_v9 = vld [vmem:[%s7639_s30 + $0x488] sm:$0xff]  ;;  %v737_v10 = vld [vmem:[%s7639_s30 + $0x490] sm:$0xff] }
  0x28   : > { %638 = vst [vmem:[%s7644_s12 + $0xc0] sm:$0xff] %v637_v24  ;;  %v739_v11 = vld [vmem:[%s7639_s30 + $0x498] sm:$0xff]  ;;  %v741_v12 = vld [vmem:[%s7639_s30 + $0x4c0] sm:$0xff]  ;;  %v743_v13 = vld [vmem:[%s7639_s30 + $0x4c8] sm:$0xff] }
  0x29   : > { %640 = vst [vmem:[%s7644_s12 + $0xc8] sm:$0xff] %v639_v25  ;;  %v745_v14 = vld [vmem:[%s7639_s30 + $0x4d0] sm:$0xff]  ;;  %v747_v15 = vld [vmem:[%s7639_s30 + $0x4d8] sm:$0xff]  ;;  %v749_v16 = vld [vmem:[%s7639_s30 + $0x500] sm:$0xff] }
  0x2a   : > { %642 = vst [vmem:[%s7644_s12 + $0xd0] sm:$0xff] %v641_v26  ;;  %v751_v17 = vld [vmem:[%s7639_s30 + $0x508] sm:$0xff]  ;;  %v753_v18 = vld [vmem:[%s7639_s30 + $0x510] sm:$0xff]  ;;  %v755_v19 = vld [vmem:[%s7639_s30 + $0x518] sm:$0xff] }
  0x2b   : > { %644 = vst [vmem:[%s7644_s12 + $0xd8] sm:$0xff] %v643_v27  ;;  %v757_v20 = vld [vmem:[%s7639_s30 + $0x540] sm:$0xff]  ;;  %v759_v21 = vld [vmem:[%s7639_s30 + $0x548] sm:$0xff]  ;;  %v761_v22 = vld [vmem:[%s7639_s30 + $0x550] sm:$0xff] }
  0x2c   : > { %646 = vst [vmem:[%s7644_s12 + $0xe0] sm:$0xff] %v645_v28  ;;  %v763_v23 = vld [vmem:[%s7639_s30 + $0x558] sm:$0xff]  ;;  %v765_v24 = vld [vmem:[%s7639_s30 + $0x580] sm:$0xff]  ;;  %v767_v25 = vld [vmem:[%s7639_s30 + $0x588] sm:$0xff] }
  0x2d   : > { %648 = vst [vmem:[%s7644_s12 + $0xe8] sm:$0xff] %v647_v29  ;;  %v769_v26 = vld [vmem:[%s7639_s30 + $0x590] sm:$0xff]  ;;  %v771_v27 = vld [vmem:[%s7639_s30 + $0x598] sm:$0xff]  ;;  %v773_v28 = vld [vmem:[%s7639_s30 + $0x5c0] sm:$0xff] }
  0x2e   : > { %650 = vst [vmem:[%s7644_s12 + $0xf0] sm:$0xff] %v649_v30  ;;  %v775_v29 = vld [vmem:[%s7639_s30 + $0x5c8] sm:$0xff]  ;;  %v777_v30 = vld [vmem:[%s7639_s30 + $0x5d0] sm:$0xff] }
  0x2f   : > { %652 = vst [vmem:[%s7644_s12 + $0xf8] sm:$0xff] %v651_v31  ;;  %v779_v31 = vld [vmem:[%s7639_s30 + $0x5d8] sm:$0xff] }
  0x30   : > { %654 = vst [vmem:[%s7644_s12 + $0x100] sm:$0xff] %v653_v32  ;;  %v781_v32 = vld [vmem:[%s7639_s30 + $0x600] sm:$0xff] }
  0x31   : > { %656 = vst [vmem:[%s7644_s12 + $0x108] sm:$0xff] %v655_v33  ;;  %v783_v33 = vld [vmem:[%s7639_s30 + $0x608] sm:$0xff] }
  0x32   : > { %658 = vst [vmem:[%s7644_s12 + $0x110] sm:$0xff] %v657_v34  ;;  %v785_v34 = vld [vmem:[%s7639_s30 + $0x610] sm:$0xff] }
  0x33   : > { %660 = vst [vmem:[%s7644_s12 + $0x118] sm:$0xff] %v659_v35  ;;  %v787_v35 = vld [vmem:[%s7639_s30 + $0x618] sm:$0xff] }
  0x34   : > { %662 = vst [vmem:[%s7644_s12 + $0x120] sm:$0xff] %v661_v36  ;;  %v789_v36 = vld [vmem:[%s7639_s30 + $0x640] sm:$0xff] }
  0x35   : > { %664 = vst [vmem:[%s7644_s12 + $0x128] sm:$0xff] %v663_v37  ;;  %v791_v37 = vld [vmem:[%s7639_s30 + $0x648] sm:$0xff] }
  0x36   : > { %666 = vst [vmem:[%s7644_s12 + $0x130] sm:$0xff] %v665_v38  ;;  %v793_v38 = vld [vmem:[%s7639_s30 + $0x650] sm:$0xff] }
  0x37   : > { %668 = vst [vmem:[%s7644_s12 + $0x138] sm:$0xff] %v667_v39  ;;  %v795_v39 = vld [vmem:[%s7639_s30 + $0x658] sm:$0xff] }
  0x38   : > { %670 = vst [vmem:[%s7644_s12 + $0x140] sm:$0xff] %v669_v40  ;;  %v797_v40 = vld [vmem:[%s7639_s30 + $0x680] sm:$0xff] }
  0x39   : > { %672 = vst [vmem:[%s7644_s12 + $0x148] sm:$0xff] %v671_v41  ;;  %v799_v41 = vld [vmem:[%s7639_s30 + $0x688] sm:$0xff] }
  0x3a   : > { %674 = vst [vmem:[%s7644_s12 + $0x150] sm:$0xff] %v673_v42  ;;  %v801_v42 = vld [vmem:[%s7639_s30 + $0x690] sm:$0xff] }
  0x3b   : > { %676 = vst [vmem:[%s7644_s12 + $0x158] sm:$0xff] %v675_v43  ;;  %v803_v43 = vld [vmem:[%s7639_s30 + $0x698] sm:$0xff] }
  0x3c   : > { %678 = vst [vmem:[%s7644_s12 + $0x160] sm:$0xff] %v677_v44  ;;  %v805_v44 = vld [vmem:[%s7639_s30 + $0x6c0] sm:$0xff] }
  0x3d   : > { %680 = vst [vmem:[%s7644_s12 + $0x168] sm:$0xff] %v679_v45  ;;  %v807_v45 = vld [vmem:[%s7639_s30 + $0x6c8] sm:$0xff] }
  0x3e   : > { %682 = vst [vmem:[%s7644_s12 + $0x170] sm:$0xff] %v681_v46  ;;  %v809_v46 = vld [vmem:[%s7639_s30 + $0x6d0] sm:$0xff] }
  0x3f   : > { %684 = vst [vmem:[%s7644_s12 + $0x178] sm:$0xff] %v683_v47  ;;  %v811_v47 = vld [vmem:[%s7639_s30 + $0x6d8] sm:$0xff] }
  0x40   : > { %686 = vst [vmem:[%s7644_s12 + $0x180] sm:$0xff] %v685_v48 }
  0x41   : > { %688 = vst [vmem:[%s7644_s12 + $0x188] sm:$0xff] %v687_v49 }
  0x42   : > { %690 = vst [vmem:[%s7644_s12 + $0x190] sm:$0xff] %v689_v50 }
  0x43   : > { %692 = vst [vmem:[%s7644_s12 + $0x198] sm:$0xff] %v691_v51 }
  0x44   : > { %694 = vst [vmem:[%s7644_s12 + $0x1a0] sm:$0xff] %v693_v52 }
  0x45   : > { %696 = vst [vmem:[%s7644_s12 + $0x1a8] sm:$0xff] %v695_v53 }
  0x46   : > { %698 = vst [vmem:[%s7644_s12 + $0x1b0] sm:$0xff] %v697_v54 }
  0x47   : > { %700 = vst [vmem:[%s7644_s12 + $0x1b8] sm:$0xff] %v699_v55 }
  0x48   : > { %702 = vst [vmem:[%s7644_s12 + $0x1c0] sm:$0xff] %v701_v56 }
  0x49   : > { %704 = vst [vmem:[%s7644_s12 + $0x1c8] sm:$0xff] %v703_v57 }
  0x4a   : > { %706 = vst [vmem:[%s7644_s12 + $0x1d0] sm:$0xff] %v705_v58 }
  0x4b   : > { %708 = vst [vmem:[%s7644_s12 + $0x1d8] sm:$0xff] %v707_v59 }
  0x4c   : > { %710 = vst [vmem:[%s7644_s12 + $0x1e0] sm:$0xff] %v709_v60 }
  0x4d   : > { %712 = vst [vmem:[%s7644_s12 + $0x1e8] sm:$0xff] %v711_v61 }
  0x4e   : > { %714 = vst [vmem:[%s7644_s12 + $0x1f0] sm:$0xff] %v713_v62 }
  0x4f   : > { %716 = vst [vmem:[%s7644_s12 + $0x1f8] sm:$0xff] %v715_v63 }
  0x50   : > { %718 = vst [vmem:[%s7644_s12 + $0x200] sm:$0xff] %v717_v0 }
  0x51   : > { %720 = vst [vmem:[%s7644_s12 + $0x208] sm:$0xff] %v719_v1 }
  0x52   : > { %722 = vst [vmem:[%s7644_s12 + $0x210] sm:$0xff] %v721_v2 }
  0x53   : > { %724 = vst [vmem:[%s7644_s12 + $0x218] sm:$0xff] %v723_v3 }
  0x54   : > { %726 = vst [vmem:[%s7644_s12 + $0x220] sm:$0xff] %v725_v4 }
  0x55   : > { %728 = vst [vmem:[%s7644_s12 + $0x228] sm:$0xff] %v727_v5 }
  0x56   : > { %730 = vst [vmem:[%s7644_s12 + $0x230] sm:$0xff] %v729_v6 }
  0x57   : > { %732 = vst [vmem:[%s7644_s12 + $0x238] sm:$0xff] %v731_v7 }
  0x58   : > { %734 = vst [vmem:[%s7644_s12 + $0x240] sm:$0xff] %v733_v8 }
  0x59   : > { %736 = vst [vmem:[%s7644_s12 + $0x248] sm:$0xff] %v735_v9 }
  0x5a   : > { %738 = vst [vmem:[%s7644_s12 + $0x250] sm:$0xff] %v737_v10 }
  0x5b   : > { %740 = vst [vmem:[%s7644_s12 + $0x258] sm:$0xff] %v739_v11 }
  0x5c   : > { %742 = vst [vmem:[%s7644_s12 + $0x260] sm:$0xff] %v741_v12 }
  0x5d   : > { %744 = vst [vmem:[%s7644_s12 + $0x268] sm:$0xff] %v743_v13 }
  0x5e   : > { %746 = vst [vmem:[%s7644_s12 + $0x270] sm:$0xff] %v745_v14 }
  0x5f   : > { %748 = vst [vmem:[%s7644_s12 + $0x278] sm:$0xff] %v747_v15 }
  0x60   : > { %750 = vst [vmem:[%s7644_s12 + $0x280] sm:$0xff] %v749_v16 }
  0x61   : > { %752 = vst [vmem:[%s7644_s12 + $0x288] sm:$0xff] %v751_v17 }
  0x62   : > { %754 = vst [vmem:[%s7644_s12 + $0x290] sm:$0xff] %v753_v18 }
  0x63   : > { %756 = vst [vmem:[%s7644_s12 + $0x298] sm:$0xff] %v755_v19 }
  0x64   : > { %758 = vst [vmem:[%s7644_s12 + $0x2a0] sm:$0xff] %v757_v20 }
  0x65   : > { %760 = vst [vmem:[%s7644_s12 + $0x2a8] sm:$0xff] %v759_v21 }
  0x66   : > { %762 = vst [vmem:[%s7644_s12 + $0x2b0] sm:$0xff] %v761_v22 }
  0x67   : > { %764 = vst [vmem:[%s7644_s12 + $0x2b8] sm:$0xff] %v763_v23 }
  0x68   : > { %766 = vst [vmem:[%s7644_s12 + $0x2c0] sm:$0xff] %v765_v24 }
  0x69   : > { %768 = vst [vmem:[%s7644_s12 + $0x2c8] sm:$0xff] %v767_v25 }
  0x6a   : > { %770 = vst [vmem:[%s7644_s12 + $0x2d0] sm:$0xff] %v769_v26 }
  0x6b   : > { %772 = vst [vmem:[%s7644_s12 + $0x2d8] sm:$0xff] %v771_v27 }
  0x6c   : > { %774 = vst [vmem:[%s7644_s12 + $0x2e0] sm:$0xff] %v773_v28 }
  0x6d   : > { %776 = vst [vmem:[%s7644_s12 + $0x2e8] sm:$0xff] %v775_v29 }
  0x6e   : > { %778 = vst [vmem:[%s7644_s12 + $0x2f0] sm:$0xff] %v777_v30 }
  0x6f   : > { %780 = vst [vmem:[%s7644_s12 + $0x2f8] sm:$0xff] %v779_v31 }
  0x70   : > { %782 = vst [vmem:[%s7644_s12 + $0x300] sm:$0xff] %v781_v32 }
  0x71   : > { %784 = vst [vmem:[%s7644_s12 + $0x308] sm:$0xff] %v783_v33 }
  0x72   : > { %786 = vst [vmem:[%s7644_s12 + $0x310] sm:$0xff] %v785_v34 }
  0x73   : > { %788 = vst [vmem:[%s7644_s12 + $0x318] sm:$0xff] %v787_v35 }
  0x74   : > { %790 = vst [vmem:[%s7644_s12 + $0x320] sm:$0xff] %v789_v36 }
  0x75   : > { %792 = vst [vmem:[%s7644_s12 + $0x328] sm:$0xff] %v791_v37 }
  0x76   : > { %794 = vst [vmem:[%s7644_s12 + $0x330] sm:$0xff] %v793_v38 }
  0x77   : > { %796 = vst [vmem:[%s7644_s12 + $0x338] sm:$0xff] %v795_v39 }
  0x78   : > { %798 = vst [vmem:[%s7644_s12 + $0x340] sm:$0xff] %v797_v40 }
  0x79   : > { %800 = vst [vmem:[%s7644_s12 + $0x348] sm:$0xff] %v799_v41 }
  0x7a   : > { %802 = vst [vmem:[%s7644_s12 + $0x350] sm:$0xff] %v801_v42 }
  0x7b   : > { %804 = vst [vmem:[%s7644_s12 + $0x358] sm:$0xff] %v803_v43 }
  0x7c   : > { %806 = vst [vmem:[%s7644_s12 + $0x360] sm:$0xff] %v805_v44 }
  0x7d   : > { %808 = vst [vmem:[%s7644_s12 + $0x368] sm:$0xff] %v807_v45 }
  0x7e   : > { %810 = vst [vmem:[%s7644_s12 + $0x370] sm:$0xff] %v809_v46 }
  0x7f   : > { %812 = vst [vmem:[%s7644_s12 + $0x378] sm:$0xff] %v811_v47 }
  0x80 PF: > { %p6028_p5 = scmp.ge.s32.totalorder %s7543_s19, 1  ;;  %p817_p6 = scmp.lt.s32.totalorder %s7543_s19, 3 }
  0x82   : > { %p818_p7 = pnand %p6028_p5, %p817_p6 }
  0x84   : > { %821 = sbr.rel (%p818_p7) target bundleno = 2800 (0xaf0), region = 98 }
  0x89   : > { %v6537_v48 = vld [vmem:[%s11650_s1 + $0x70] sm:$0xf]  ;;  %v7346_v49 = vld [vmem:[%s11650_s1 + $0x74] sm:$0xf0]  ;;  %v6529_v53 = vld [vmem:[%s11650_s1 + $0x60] sm:$0xf] }
  0x8a   : > { %v6553_v50 = vld [vmem:[%s11650_s1 + $0x90] sm:$0xf]  ;;  %v6538_v51 = vor.u32 %v7346_v49, %v6537_v48  ;;  %v7350_v52 = vld [vmem:[%s11650_s1 + $0x94] sm:$0xf0]  ;;  %v7344_v54 = vld [vmem:[%s11650_s1 + $0x64] sm:$0xf0] }
  0x8b   : > { %v6554_v55 = vor.u32 %v7350_v52, %v6553_v50  ;;  %v6545_v56 = vld [vmem:[%s11650_s1 + $0x80] sm:$0xf]  ;;  %v7348_v57 = vld [vmem:[%s11650_s1 + $0x84] sm:$0xf0]  ;;  %s824_s16 = sand.u32 1, %s7535_s17   ;;  %v6530_v58 = vor.u32 %v7344_v54, %v6529_v53  ;;  %vm1613_vm0 = vcmask 261120  }
  0x8c   : > { %1782 = vmatpush.bf16.msra.mxu0 %v6538_v51  ;;  %s7492_s22 = smul.u32 896, %s824_s16  ;;  %v6546_v59 = vor.u32 %v7348_v57, %v6545_v56  ;;  %v6521_v60 = vld [vmem:[%s11650_s1 + $0x50] sm:$0xf]  ;;  %v7342_v61 = vld [vmem:[%s11650_s1 + $0x54] sm:$0xf0]  ;;  %s6029_s16 = sshll.u32 %s6021_s20, 2 }
  0x8d   : > { %7487 = vmatpush.bf16.msra.mxu2 %v6554_v55  ;;  %2077 = vmatpush.bf16.msra.mxu1 %v6554_v55  ;;  %v6522_v1 = vor.u32 %v7342_v61, %v6521_v60  ;;  %v6513_v2 = vld [vmem:[%s11650_s1 + $0x40] sm:$0xf]  ;;  %v7340_v3 = vld [vmem:[%s11650_s1 + $0x44] sm:$0xf0]  ;;  %v7349_v4 = vld [vmem:[%s11650_s1 + $0x94] sm:$0xf] }
  0x8e   : > { %s7900_s28 = scalar_lea.vmem [#allocation2], %s7492_s22  ;;  %v6555_v5 = vld [vmem:[%s11650_s1 + $0x98] sm:$0xf0]  ;;  %v6514_v8 = vor.u32 %v7340_v3, %v6513_v2  ;;  %v6505_v9 = vld [vmem:[%s11650_s1 + $0x30] sm:$0xf]  ;;  %p865_p8 = scmp.lt.s32.totalorder %s6029_s16, 7 }
  0x8f   : > { %v7319_v62 = vld [vmem:[%s7900_s28 + $0x324] sm:$0xf]  ;;  %v6435_v63 = vld [vmem:[%s7900_s28 + $0x328] sm:$0xf0]  ;;  %v6558_v10 = vor.u32 %v7349_v4, %v6555_v5  ;;  %v7338_v12 = vld [vmem:[%s11650_s1 + $0x34] sm:$0xf0] }
  0x90   : > { %1783 = vmatpush.bf16.msra.mxu0 %v6530_v58  ;;  %v7904_v0 = vor.u32 %v7319_v62, %v6435_v63  ;;  %v7219_v6 = vld [vmem:[%s7900_s28 + $0x4] sm:$0xf]  ;;  %v6035_v7 = vld [vmem:[%s7900_s28 + $0x8] sm:$0xf0]  ;;  %v6506_v13 = vor.u32 %v7338_v12, %v6505_v9  ;;  %v6497_v14 = vld [vmem:[%s11650_s1 + $0x20] sm:$0xf] }
  0x91   : > { %7488 = vmatpush.bf16.msra.mxu2 %v6546_v59  ;;  %2078 = vmatpush.bf16.msra.mxu1 %v6546_v59  ;;  %v7925_v11 = vor.u32 %v7219_v6, %v6035_v7  ;;  %v7336_v15 = vld [vmem:[%s11650_s1 + $0x24] sm:$0xf0]  ;;  %v7321_v17 = vld [vmem:[%s7900_s28 + $0x334] sm:$0xf]  ;;  %v6443_v18 = vld [vmem:[%s7900_s28 + $0x338] sm:$0xf0] }
  0x92   : > { %7489 = vmatpush.bf16.msra.mxu3 %v6558_v10  ;;  %v6498_v16 = vor.u32 %v7336_v15, %v6497_v14  ;;  %v6489_v19 = vld [vmem:[%s11650_s1 + $0x10] sm:$0xf]  ;;  %v7334_v20 = vld [vmem:[%s11650_s1 + $0x14] sm:$0xf0]  ;;  %v7221_v21 = vld [vmem:[%s7900_s28 + $0x14] sm:$0xf]  ;;  %v7948_v23 = vor.u32 %v7321_v17, %v6443_v18 }
  0x93   : > { %v6043_v22 = vld [vmem:[%s7900_s28 + $0x18] sm:$0xf0]  ;;  %v6490_v24 = vor.u32 %v7334_v20, %v6489_v19  ;;  %v6481_v25 = vld [vmem:[%s11650_s1] sm:$0xf]  ;;  %v7332_v26 = vld [vmem:[%s11650_s1 + $0x4] sm:$0xf0] }
  0x94   : > { %6609 = vmatmul.msk.bf16.vlgmr.msra.gmra.mxu2 %vm1613_vm0, %v7904_v0  ;;  %1784 = vmatpush.bf16.msra.mxu0 %v6522_v1  ;;  %v7956_v27 = vor.u32 %v7221_v21, %v6043_v22  ;;  %v6482_v28 = vor.u32 %v7332_v26, %v6481_v25  ;;  %v6033_v29 = vld [vmem:[%s7900_s28] sm:$0xf]  ;;  %v7220_v30 = vld [vmem:[%s7900_s28 + $0x4] sm:$0xf0]  ;;  %v7323_v32 = vld [vmem:[%s7900_s28 + $0x344] sm:$0xf] }
  0x95   : > { %6559 = vmatmul.msk.bf16.vlgmr.msra.gmra.mxu1 %vm1613_vm0, %v7925_v11  ;;  %v7964_v31 = vor.u32 %v7220_v30, %v6033_v29  ;;  %v6451_v33 = vld [vmem:[%s7900_s28 + $0x348] sm:$0xf0]  ;;  %v7223_v34 = vld [vmem:[%s7900_s28 + $0x24] sm:$0xf]  ;;  %v7345_v38 = vld [vmem:[%s11650_s1 + $0x74] sm:$0xf] }
  0x96   : > { %v6051_v35 = vld [vmem:[%s7900_s28 + $0x28] sm:$0xf0]  ;;  %v7971_v36 = vor.u32 %v7323_v32, %v6451_v33  ;;  %v6539_v39 = vld [vmem:[%s11650_s1 + $0x78] sm:$0xf0]  ;;  %v6041_v40 = vld [vmem:[%s7900_s28 + $0x10] sm:$0xf] }
  0x97   : > { %v7973_v37 = vor.u32 %v7223_v34, %v6051_v35  ;;  %v6542_v41 = vor.u32 %v7345_v38, %v6539_v39  ;;  %v7222_v42 = vld [vmem:[%s7900_s28 + $0x14] sm:$0xf0]  ;;  %v7343_v43 = vld [vmem:[%s11650_s1 + $0x64] sm:$0xf]  ;;  %v6531_v44 = vld [vmem:[%s11650_s1 + $0x68] sm:$0xf0] }
  0x98   : > { %1785 = vmatpush.bf16.msra.mxu0 %v6514_v8  ;;  %v6534_v45 = vor.u32 %v7343_v43, %v6531_v44  ;;  %v7993_v46 = vor.u32 %v7222_v42, %v6041_v40  ;;  %v7341_v47 = vld [vmem:[%s11650_s1 + $0x54] sm:$0xf]  ;;  %v6523_v48 = vld [vmem:[%s11650_s1 + $0x58] sm:$0xf0]  ;;  %v7339_v50 = vld [vmem:[%s11650_s1 + $0x44] sm:$0xf] }
  0x99   : > { %2360 = vmatpush.bf16.msrb.mxu2 %v6542_v41  ;;  %v6526_v49 = vor.u32 %v7341_v47, %v6523_v48  ;;  %v6515_v51 = vld [vmem:[%s11650_s1 + $0x48] sm:$0xf0]  ;;  %v7325_v52 = vld [vmem:[%s7900_s28 + $0x354] sm:$0xf]  ;;  %v6459_v53 = vld [vmem:[%s7900_s28 + $0x358] sm:$0xf0] }
  0x9a   : > { %v6518_v54 = vor.u32 %v7339_v50, %v6515_v51  ;;  %v7225_v55 = vld [vmem:[%s7900_s28 + $0x34] sm:$0xf]  ;;  %v6059_v56 = vld [vmem:[%s7900_s28 + $0x38] sm:$0xf0]  ;;  %v8012_v57 = vor.u32 %v7325_v52, %v6459_v53  ;;  %v6049_v61 = vld [vmem:[%s7900_s28 + $0x20] sm:$0xf] }
  0x9b   : > { %v8014_v58 = vor.u32 %v7225_v55, %v6059_v56  ;;  %v7337_v59 = vld [vmem:[%s11650_s1 + $0x34] sm:$0xf]  ;;  %v6507_v60 = vld [vmem:[%s11650_s1 + $0x38] sm:$0xf0]  ;;  %v7224_v63 = vld [vmem:[%s7900_s28 + $0x24] sm:$0xf0] }
  0x9c   : > { %1786 = vmatpush.bf16.msra.mxu0 %v6506_v13  ;;  %v6510_v62 = vor.u32 %v7337_v59, %v6507_v60  ;;  %v7335_v1 = vld [vmem:[%s11650_s1 + $0x24] sm:$0xf]  ;;  %v6499_v2 = vld [vmem:[%s11650_s1 + $0x28] sm:$0xf0]  ;;  %v6050_v4 = vor.u32 %v7224_v63, %v6049_v61  ;;  %v7333_v5 = vld [vmem:[%s11650_s1 + $0x14] sm:$0xf] }
  0x9d   : > { %2361 = vmatpush.bf16.msrb.mxu2 %v6534_v45  ;;  %v6502_v3 = vor.u32 %v7335_v1, %v6499_v2  ;;  %v6491_v6 = vld [vmem:[%s11650_s1 + $0x18] sm:$0xf0]  ;;  %v7331_v8 = vld [vmem:[%s11650_s1 + $0x4] sm:$0xf]  ;;  %v6483_v9 = vld [vmem:[%s11650_s1 + $0x8] sm:$0xf0] }
  0x9e   : > { %v6494_v7 = vor.u32 %v7333_v5, %v6491_v6  ;;  %v6467_v12 = vld [vmem:[%s7900_s28 + $0x368] sm:$0xf0]  ;;  %v6486_v13 = vor.u32 %v7331_v8, %v6483_v9  ;;  %v7227_v14 = vld [vmem:[%s7900_s28 + $0x44] sm:$0xf]  ;;  %v6057_v18 = vld [vmem:[%s7900_s28 + $0x30] sm:$0xf] }
  0x9f   : > { %v6067_v15 = vld [vmem:[%s7900_s28 + $0x48] sm:$0xf0]  ;;  %v7226_v19 = vld [vmem:[%s7900_s28 + $0x34] sm:$0xf0]  ;;  %v7329_v21 = vld [vmem:[%s7900_s28 + $0x374] sm:$0xf] }
  0xa0   : > { %1787 = vmatpush.bf16.msra.mxu0 %v6498_v16  ;;  %v8052_v17 = vor.u32 %v7227_v14, %v6067_v15  ;;  %v6058_v20 = vor.u32 %v7226_v19, %v6057_v18  ;;  %v6475_v22 = vld [vmem:[%s7900_s28 + $0x378] sm:$0xf0]  ;;  %v6065_v29 = vld [vmem:[%s7900_s28 + $0x40] sm:$0xf]  ;;  %v7228_v30 = vld [vmem:[%s7900_s28 + $0x44] sm:$0xf0] }
  0xa1   : > { %2362 = vmatpush.bf16.msrb.mxu2 %v6526_v49  ;;  %v6075_v25 = vld [vmem:[%s7900_s28 + $0x58] sm:$0xf0]  ;;  %v8064_v26 = vor.u32 %v7329_v21, %v6475_v22  ;;  %v6066_v32 = vor.u32 %v7228_v30, %v6065_v29  ;;  %v7231_v33 = vld [vmem:[%s7900_s28 + $0x64] sm:$0xf]  ;;  %v6083_v34 = vld [vmem:[%s7900_s28 + $0x68] sm:$0xf0] }
  0xa2   : > { %v8076_v35 = vor.u32 %v7231_v33, %v6083_v34  ;;  %v6073_v38 = vld [vmem:[%s7900_s28 + $0x50] sm:$0xf]  ;;  %v7230_v39 = vld [vmem:[%s7900_s28 + $0x54] sm:$0xf0]  ;;  %v7233_v41 = vld [vmem:[%s7900_s28 + $0x74] sm:$0xf] }
  0xa3   : > { %v8083_v40 = vor.u32 %v7230_v39, %v6073_v38  ;;  %v6091_v42 = vld [vmem:[%s7900_s28 + $0x78] sm:$0xf0]  ;;  %v6081_v44 = vld [vmem:[%s7900_s28 + $0x60] sm:$0xf]  ;;  %v7235_v47 = vld [vmem:[%s7900_s28 + $0x84] sm:$0xf] }
  0xa4   : > { %6610 = vmatmul.msk.bf16.gmra.mxu2 %vm1613_vm0, %v7948_v23  ;;  %1788 = vmatpush.bf16.msra.mxu0 %v6490_v24  ;;  %v7229_v24 = vld [vmem:[%s7900_s28 + $0x54] sm:$0xf]  ;;  %v8088_v43 = vor.u32 %v7233_v41, %v6091_v42  ;;  %v6099_v48 = vld [vmem:[%s7900_s28 + $0x88] sm:$0xf0]  ;;  %v7234_v51 = vld [vmem:[%s7900_s28 + $0x74] sm:$0xf0] }
  0xa5   : > { %6560 = vmatmul.msk.bf16.gmra.mxu1 %vm1613_vm0, %v7956_v27  ;;  %2363 = vmatpush.bf16.msrb.mxu2 %v6518_v54  ;;  %v8100_v49 = vor.u32 %v7235_v47, %v6099_v48  ;;  %v7237_v56 = vld [vmem:[%s7900_s28 + $0x94] sm:$0xf]  ;;  %v6107_v59 = vld [vmem:[%s7900_s28 + $0x98] sm:$0xf0]  ;;  %v8118_v60 = vld [vmem:[%s11651_s2] sm:$0x3] }
  0xa6   : > { %v8120_v61 = vor.u32 %v7237_v56, %v6107_v59  ;;  %v6097_v63 = vld [vmem:[%s7900_s28 + $0x80] sm:$0xf]  ;;  %v7236_v1 = vld [vmem:[%s7900_s28 + $0x84] sm:$0xf0]  ;;  %v8125_v2 = vperm.slane %v8118_v60, 0  ;;  %s12119_s16 = smov (!%p865_p8, %s6029_s16), 7 }
  0xa7   : > { %v7347_v14 = vld [vmem:[%s11650_s1 + $0x84] sm:$0xf]  ;;  %v6547_v15 = vld [vmem:[%s11650_s1 + $0x88] sm:$0xf0]  ;;  %v7241_v41 = vld [vmem:[%s7900_s28 + $0xb4] sm:$0xf] }
  0xa8   : > { %1789 = vmatpush.bf16.msra.mxu0 %v6482_v28  ;;  %v8066_v28 = vor.u32 %v7229_v24, %v6075_v25  ;;  %v6550_v19 = vor.u32 %v7347_v14, %v6547_v15  ;;  %v6105_v24 = vld [vmem:[%s7900_s28 + $0x90] sm:$0xf]  ;;  %v7238_v25 = vld [vmem:[%s7900_s28 + $0x94] sm:$0xf0]  ;;  %v6123_v42 = vld [vmem:[%s7900_s28 + $0xb8] sm:$0xf0] }
  0xa9   : > { %2364 = vmatpush.bf16.msrb.mxu2 %v6510_v62  ;;  %v8160_v30 = vor.u32 %v7238_v25, %v6105_v24  ;;  %v7242_v14 = vld [vmem:[%s7900_s28 + $0xb4] sm:$0xf0]  ;;  %s6030_s22 = sshll.u32 %s12119_s16, 3 }
  0xaa   : > { %7490 = vmatpush.bf16.msra.mxu3 %v6550_v19  ;;  %s868_s27 = scalar_lea.vmem %s11660_s11, %s6030_s22 }
  0xab   : > { %1790 = vmatmul.bf16.vlgmr.msra.gmra.mxu0 %v7964_v31 }
  0xac   : > { %2655 = vmatpush.bf16.msrb.mxu0 %v6558_v10  ;;  %v7327_v10 = vld [vmem:[%s7900_s28 + $0x364] sm:$0xf] }
  0xad   : > { %2365 = vmatpush.bf16.msrb.mxu2 %v6502_v3  ;;  %v8050_v16 = vor.u32 %v7327_v10, %v6467_v12  ;;  %v7239_v10 = vld [vmem:[%s7900_s28 + $0xa4] sm:$0xf]  ;;  %v6115_v12 = vld [vmem:[%s7900_s28 + $0xa8] sm:$0xf0]  ;;  %6621 = vmatmul.msk.bf16.vlgmr.msra.gmra.mxu3 %vm1613_vm0, %v8076_v35 }
  0xb0   : > { %2656 = vmatpush.bf16.msrb.mxu0 %v6550_v19 }
  0xb1   : > { %2366 = vmatpush.bf16.msrb.mxu2 %v6494_v7 }
  0xb4   : > { %6611 = vmatmul.msk.bf16.gmra.mxu2 %vm1613_vm0, %v7971_v36 }
  0xb5   : > { %6561 = vmatmul.msk.bf16.gmra.mxu1 %vm1613_vm0, %v7973_v37  ;;  %2367 = vmatpush.bf16.msrb.mxu2 %v6486_v13 }
  0xbb   : > { %1795 = vmatmul.bf16.gmra.mxu0 %v7993_v46 }
  0xbd   : > { %6622 = vmatmul.msk.bf16.gmra.mxu3 %vm1613_vm0, %v8088_v43 }
  0xc4   : > { %6612 = vmatmul.msk.bf16.gmra.mxu2 %vm1613_vm0, %v8012_v57 }
  0xc5   : > { %6562 = vmatmul.msk.bf16.gmra.mxu1 %vm1613_vm0, %v8014_v58 }
  0xcb   : > { %1800 = vmatmul.bf16.gmra.mxu0 %v6050_v4 }
  0xcd   : > { %6623 = vmatmul.msk.bf16.gmra.mxu3 %vm1613_vm0, %v8100_v49 }
  0xd4   : > { %6613 = vmatmul.msk.bf16.gmra.mxu2 %vm1613_vm0, %v8050_v16 }
  0xd5   : > { %6563 = vmatmul.msk.bf16.gmra.mxu1 %vm1613_vm0, %v8052_v17 }
  0xdb   : > { %1805 = vmatmul.bf16.gmra.mxu0 %v6058_v20 }
  0xdd   : > { %6624 = vmatmul.msk.bf16.gmra.mxu3 %vm1613_vm0, %v8120_v61 }
  0xe4   : > { %6614 = vmatmul.msk.bf16.gmra.mxu2 %vm1613_vm0, %v8064_v26 }
  0xe5   : > { %6564 = vmatmul.msk.bf16.gmra.mxu1 %vm1613_vm0, %v8066_v28 }
  0xeb   : > { %1810 = vmatmul.bf16.gmra.mxu0 %v6066_v32 }
  0xf4   : > { %2368 = vmatmul.bf16.vlgmr.msrb.gmra.mxu2 %v7964_v31  ;;  %v7232_v31 = vld [vmem:[%s7900_s28 + $0x64] sm:$0xf0] }
  0xf5   : > { %6565 = vmatmul.msk.bf16.gmra.mxu1 %vm1613_vm0, %v8076_v35  ;;  %v8095_v45 = vor.u32 %v7232_v31, %v6081_v44  ;;  %v8171_v31 = vor.u32 %v7241_v41, %v6123_v42 }
  0xfb   : > { %1815 = vmatmul.bf16.gmra.mxu0 %v8083_v40 }
 0x104   : > { %2373 = vmatmul.bf16.gmra.mxu2 %v7993_v46  ;;  %v6089_v46 = vld [vmem:[%s7900_s28 + $0x70] sm:$0xf] }
 0x105   : > { %6566 = vmatmul.msk.bf16.gmra.mxu1 %vm1613_vm0, %v8088_v43  ;;  %v8108_v53 = vor.u32 %v7234_v51, %v6089_v46  ;;  %v7240_v46 = vld [vmem:[%s7900_s28 + $0xa4] sm:$0xf0] }
 0x10b   : > { %1820 = vmatmul.bf16.gmra.mxu0 %v8095_v45 }
 0x112   : > { %v2080_v50 = vpop.f32.mrf.mxu1 }
 0x114   : > { %2378 = vmatmul.bf16.gmra.mxu2 %v6050_v4  ;;  %v8131_v4 = vor.u32 %v7236_v1, %v6097_v63  ;;  %v7243_v1 = vld [vmem:[%s7900_s28 + $0xc4] sm:$0xf] }
 0x115   : > { %6567 = vmatmul.msk.bf16.gmra.mxu1 %vm1613_vm0, %v8100_v49 }
 0x117   : > { %v8106_v52 = vpop.f32.mrf.mxu2 }
 0x118   : > { %11686 = vst [vmem:[#allocation3_spill] sm:$0xff] %v8106_v52  ;;  %v7294_v52 = vld [vmem:[%s7900_s28 + $0x254] sm:$0xf0] }
 0x11a   : > { %v2082_v54 = vpop.f32.mrf.mxu1 }
 0x11b   : > { %1825 = vmatmul.bf16.gmra.mxu0 %v8108_v53 }
 0x11f   : > { %v8111_v55 = vpop.f32.mrf.mxu2 }
 0x120   : > { %11687 = vst [vmem:[#allocation4_spill] sm:$0xff] %v8111_v55 }
 0x122   : > { %v2085_v62 = vpop.f32.mrf.mxu1 }
 0x124   : > { %2383 = vmatmul.bf16.gmra.mxu2 %v6058_v20  ;;  %v8148_v20 = vor.u32 %v7239_v10, %v6115_v12 }
 0x125   : > { %6568 = vmatmul.msk.bf16.gmra.mxu1 %vm1613_vm0, %v8120_v61 }
 0x126   : > { %6625 = vmatmul.msk.bf16.gmra.mxu3 %vm1613_vm0, %v8148_v20 }
 0x127   : > { %v8129_v3 = vpop.f32.mrf.mxu2 }
 0x128   : > { %11688 = vst [vmem:[#allocation5_spill] sm:$0xff] %v8129_v3  ;;  %v1791_v5 = vpop.f32.mrf.mxu0 }
 0x129   : > { %v1792_v6 = vadd.f32 %v1791_v5, %v8125_v2  ;;  %v6131_v5 = vld [vmem:[%s7900_s28 + $0xc8] sm:$0xf0] }
 0x12a   : > { %v2087_v8 = vpop.f32.mrf.mxu1 }
 0x12b   : > { %v8134_v7 = vadd.f32 %v2080_v50, %v1792_v6  ;;  %1830 = vmatmul.bf16.gmra.mxu0 %v8131_v4  ;;  %v6113_v50 = vld [vmem:[%s7900_s28 + $0xa0] sm:$0xf] }
 0x12d   : > { %11689 = vst [vmem:[#allocation6_spill] sm:$0xff] %v8134_v7  ;;  %v6243_v7 = vld [vmem:[%s7900_s28 + $0x1a8] sm:$0xf0] }
 0x12f   : > { %v8137_v9 = vpop.f32.mrf.mxu2 }
 0x130   : > { %11690 = vst [vmem:[#allocation7_spill] sm:$0xff] %v8137_v9  ;;  %v1793_v13 = vpop.f32.mrf.mxu0  ;;  %v7266_v9 = vld [vmem:[%s7900_s28 + $0x174] sm:$0xf0] }
 0x131   : > { %v1794_v18 = vadd.f32 %v1793_v13, %v8125_v2  ;;  %v6121_v13 = vld [vmem:[%s7900_s28 + $0xb0] sm:$0xf] }
 0x132   : > { %v2090_v22 = vpop.f32.mrf.mxu1 }
 0x133   : > { %v8150_v21 = vadd.f32 %v2082_v54, %v1794_v18  ;;  %v8184_v54 = vor.u32 %v7240_v46, %v6113_v50  ;;  %v8208_v18 = vor.u32 %v7242_v14, %v6121_v13 }
 0x134   : > { %2388 = vmatmul.bf16.gmra.mxu2 %v6066_v32 }
 0x135   : > { %11691 = vst [vmem:[#allocation8_spill] sm:$0xff] %v8150_v21  ;;  %6569 = vmatmul.msk.bf16.gmra.mxu1 %vm1613_vm0, %v8148_v20  ;;  %v6217_v21 = vld [vmem:[%s7900_s28 + $0x170] sm:$0xf] }
 0x136   : > { %6626 = vmatmul.msk.bf16.gmra.mxu3 %vm1613_vm0, %v8171_v31 }
 0x137   : > { %v8158_v29 = vpop.f32.mrf.mxu2 }
 0x138   : > { %11692 = vst [vmem:[#allocation9_spill] sm:$0xff] %v8158_v29  ;;  %v1796_v33 = vpop.f32.mrf.mxu0 }
 0x139   : > { %v1797_v34 = vadd.f32 %v1796_v33, %v8125_v2  ;;  %v7245_v33 = vld [vmem:[%s7900_s28 + $0xd4] sm:$0xf] }
 0x13a   : > { %v2092_v32 = vpop.f32.mrf.mxu1 }
 0x13b   : > { %v8163_v38 = vadd.f32 %v2085_v62, %v1797_v34  ;;  %1835 = vmatmul.bf16.gmra.mxu0 %v8160_v30  ;;  %v6139_v34 = vld [vmem:[%s7900_s28 + $0xd8] sm:$0xf0] }
 0x13c   : > { %v8219_v41 = vor.u32 %v7245_v33, %v6139_v34 }
 0x13d   : > { %11693 = vst [vmem:[#allocation10_spill] sm:$0xff] %v8163_v38 }
 0x13f   : > { %v8166_v39 = vpop.f32.mrf.mxu2 }
 0x140   : > { %11694 = vst [vmem:[#allocation11_spill] sm:$0xff] %v8166_v39  ;;  %v1798_v44 = vpop.f32.mrf.mxu0 }
 0x141   : > { %v1799_v35 = vadd.f32 %v1798_v44, %v8125_v2 }
 0x142   : > { %v2095_v48 = vpop.f32.mrf.mxu1 }
 0x143   : > { %v8173_v47 = vadd.f32 %v2087_v8, %v1799_v35  ;;  %v8195_v8 = vor.u32 %v7243_v1, %v6131_v5  ;;  %v6129_v35 = vld [vmem:[%s7900_s28 + $0xc0] sm:$0xf]  ;;  %v7247_v5 = vld [vmem:[%s7900_s28 + $0xe4] sm:$0xf] }
 0x144   : > { %2393 = vmatmul.bf16.gmra.mxu2 %v8083_v40 }
 0x145   : > { %11695 = vst [vmem:[#allocation12_spill] sm:$0xff] %v8173_v47  ;;  %6570 = vmatmul.msk.bf16.gmra.mxu1 %vm1613_vm0, %v8171_v31 }
 0x146   : > { %6627 = vmatmul.msk.bf16.gmra.mxu3 %vm1613_vm0, %v8195_v8 }
 0x147   : > { %v8182_v51 = vpop.f32.mrf.mxu2 }
 0x148   : > { %11696 = vst [vmem:[#allocation13_spill] sm:$0xff] %v8182_v51  ;;  %v1801_v56 = vpop.f32.mrf.mxu0 }
 0x149   : > { %v1802_v59 = vadd.f32 %v1801_v56, %v8125_v2 }
 0x14a   : > { %v2097_v40 = vpop.f32.mrf.mxu1 }
 0x14b   : > { %v8187_v62 = vadd.f32 %v2090_v22, %v1802_v59  ;;  %1840 = vmatmul.bf16.gmra.mxu0 %v8184_v54 }
 0x14d   : > { %11697 = vst [vmem:[#allocation14_spill] sm:$0xff] %v8187_v62 }
 0x14f   : > { %v8190_v63 = vpop.f32.mrf.mxu2 }
 0x150   : > { %11698 = vst [vmem:[#allocation15_spill] sm:$0xff] %v8190_v63  ;;  %v1803_v6 = vpop.f32.mrf.mxu0  ;;  %v6177_v63 = vld [vmem:[%s7900_s28 + $0x120] sm:$0xf] }
 0x151   : > { %v1804_v43 = vadd.f32 %v1803_v6, %v8125_v2  ;;  %v6147_v6 = vld [vmem:[%s7900_s28 + $0xe8] sm:$0xf0] }
 0x152   : > { %v2100_v12 = vpop.f32.mrf.mxu1  ;;  %v8243_v13 = vor.u32 %v7247_v5, %v6147_v6 }
 0x153   : > { %v8197_v10 = vadd.f32 %v2092_v32, %v1804_v43 }
 0x154   : > { %2398 = vmatmul.bf16.gmra.mxu2 %v8095_v45 }
 0x155   : > { %11699 = vst [vmem:[#allocation16_spill] sm:$0xff] %v8197_v10  ;;  %6571 = vmatmul.msk.bf16.gmra.mxu1 %vm1613_vm0, %v8195_v8 }
 0x156   : > { %6628 = vmatmul.msk.bf16.gmra.mxu3 %vm1613_vm0, %v8219_v41 }
 0x157   : > { %v8206_v15 = vpop.f32.mrf.mxu2 }
 0x158   : > { %11700 = vst [vmem:[#allocation17_spill] sm:$0xff] %v8206_v15  ;;  %v1806_v19 = vpop.f32.mrf.mxu0  ;;  %v7257_v15 = vld [vmem:[%s7900_s28 + $0x134] sm:$0xf] }
 0x159   : > { %v1807_v22 = vadd.f32 %v1806_v19, %v8125_v2 }
 0x15a   : > { %v2102_v45 = vpop.f32.mrf.mxu1 }
 0x15b   : > { %v8211_v24 = vadd.f32 %v2095_v48, %v1807_v22  ;;  %1845 = vmatmul.bf16.gmra.mxu0 %v8208_v18  ;;  %v7244_v48 = vld [vmem:[%s7900_s28 + $0xc4] sm:$0xf0]  ;;  %v7246_v22 = vld [vmem:[%s7900_s28 + $0xd4] sm:$0xf0] }
 0x15c   : > { %v8232_v46 = vor.u32 %v7244_v48, %v6129_v35  ;;  %v7249_v48 = vld [vmem:[%s7900_s28 + $0xf4] sm:$0xf] }
 0x15d   : > { %11701 = vst [vmem:[#allocation18_spill] sm:$0xff] %v8211_v24 }
 0x15f   : > { %v8214_v25 = vpop.f32.mrf.mxu2 }
 0x160   : > { %11702 = vst [vmem:[#allocation19_spill] sm:$0xff] %v8214_v25  ;;  %v1808_v32 = vpop.f32.mrf.mxu0 }
 0x161   : > { %v1809_v49 = vadd.f32 %v1808_v32, %v8125_v2 }
 0x162   : > { %v2105_v44 = vpop.f32.mrf.mxu1 }
 0x163   : > { %v8221_v42 = vadd.f32 %v2097_v40, %v1809_v49 }
 0x164   : > { %2403 = vmatmul.bf16.gmra.mxu2 %v8108_v53 }
 0x165   : > { %11703 = vst [vmem:[#allocation20_spill] sm:$0xff] %v8221_v42  ;;  %6572 = vmatmul.msk.bf16.gmra.mxu1 %vm1613_vm0, %v8219_v41  ;;  %v6179_v42 = vld [vmem:[%s7900_s28 + $0x128] sm:$0xf0] }
 0x166   : > { %6629 = vmatmul.msk.bf16.gmra.mxu3 %vm1613_vm0, %v8243_v13 }
 0x167   : > { %v8230_v50 = vpop.f32.mrf.mxu2 }
 0x168   : > { %11704 = vst [vmem:[#allocation21_spill] sm:$0xff] %v8230_v50  ;;  %v1811_v56 = vpop.f32.mrf.mxu0  ;;  %v7255_v50 = vld [vmem:[%s7900_s28 + $0x124] sm:$0xf] }
 0x169   : > { %v1812_v59 = vadd.f32 %v1811_v56, %v8125_v2  ;;  %v6155_v56 = vld [vmem:[%s7900_s28 + $0xf8] sm:$0xf0]  ;;  %v8339_v24 = vor.u32 %v7255_v50, %v6179_v42 }
 0x16a   : > { %v2107_v53 = vpop.f32.mrf.mxu1  ;;  %v8267_v5 = vor.u32 %v7249_v48, %v6155_v56  ;;  %v7251_v56 = vld [vmem:[%s7900_s28 + $0x104] sm:$0xf] }
 0x16b   : > { %v8235_v40 = vadd.f32 %v2100_v12, %v1812_v59  ;;  %1850 = vmatmul.bf16.gmra.mxu0 %v8232_v46  ;;  %v6137_v12 = vld [vmem:[%s7900_s28 + $0xd0] sm:$0xf] }
 0x16c   : > { %v8256_v34 = vor.u32 %v7246_v22, %v6137_v12 }
 0x16d   : > { %11705 = vst [vmem:[#allocation22_spill] sm:$0xff] %v8235_v40 }
 0x16f   : > { %v8238_v1 = vpop.f32.mrf.mxu2 }
 0x170   : > { %11706 = vst [vmem:[#allocation23_spill] sm:$0xff] %v8238_v1  ;;  %v1813_v43 = vpop.f32.mrf.mxu0 }
 0x171   : > { %v1814_v61 = vadd.f32 %v1813_v43, %v8125_v2 }
 0x172   : > { %v2110_v19 = vpop.f32.mrf.mxu1 }
 0x173   : > { %v8245_v14 = vadd.f32 %v2102_v45, %v1814_v61  ;;  %v7248_v61 = vld [vmem:[%s7900_s28 + $0xe4] sm:$0xf0] }
 0x174   : > { %2408 = vmatmul.bf16.gmra.mxu2 %v8131_v4 }
 0x175   : > { %11707 = vst [vmem:[#allocation24_spill] sm:$0xff] %v8245_v14  ;;  %6573 = vmatmul.msk.bf16.gmra.mxu1 %vm1613_vm0, %v8243_v13  ;;  %v6171_v14 = vld [vmem:[%s7900_s28 + $0x118] sm:$0xf0] }
 0x176   : > { %6630 = vmatmul.msk.bf16.gmra.mxu3 %vm1613_vm0, %v8267_v5 }
 0x177   : > { %v8254_v33 = vpop.f32.mrf.mxu2 }
 0x178   : > { %11708 = vst [vmem:[#allocation25_spill] sm:$0xff] %v8254_v33  ;;  %v1816_v45 = vpop.f32.mrf.mxu0 }
 0x179   : > { %v1817_v32 = vadd.f32 %v1816_v45, %v8125_v2 }
 0x17a   : > { %v2112_v4 = vpop.f32.mrf.mxu1 }
 0x17b   : > { %v8259_v49 = vadd.f32 %v2105_v44, %v1817_v32  ;;  %1855 = vmatmul.bf16.gmra.mxu0 %v8256_v34  ;;  %v6145_v44 = vld [vmem:[%s7900_s28 + $0xe0] sm:$0xf] }
 0x17c   : > { %v8280_v22 = vor.u32 %v7248_v61, %v6145_v44 }
 0x17d   : > { %11709 = vst [vmem:[#allocation26_spill] sm:$0xff] %v8259_v49  ;;  %v7253_v49 = vld [vmem:[%s7900_s28 + $0x114] sm:$0xf] }
 0x17e   : > { %v8315_v40 = vor.u32 %v7253_v49, %v6171_v14 }
 0x17f   : > { %v8262_v35 = vpop.f32.mrf.mxu2 }
 0x180   : > { %11710 = vst [vmem:[#allocation27_spill] sm:$0xff] %v8262_v35  ;;  %v1818_v59 = vpop.f32.mrf.mxu0 }
 0x181   : > { %v1819_v20 = vadd.f32 %v1818_v59, %v8125_v2  ;;  %v6163_v59 = vld [vmem:[%s7900_s28 + $0x108] sm:$0xf0] }
 0x182   : > { %v2115_v43 = vpop.f32.mrf.mxu1 }
 0x183   : > { %v8269_v6 = vadd.f32 %v2107_v53, %v1819_v20 }
 0x184   : > { %2413 = vmatmul.bf16.gmra.mxu2 %v8160_v30 }
 0x185   : > { %11711 = vst [vmem:[#allocation28_spill] sm:$0xff] %v8269_v6  ;;  %6574 = vmatmul.msk.bf16.gmra.mxu1 %vm1613_vm0, %v8267_v5  ;;  %v8291_v6 = vor.u32 %v7251_v56, %v6163_v59  ;;  %v7259_v5 = vld [vmem:[%s7900_s28 + $0x144] sm:$0xf] }
 0x187   : > { %v8278_v12 = vpop.f32.mrf.mxu2  ;;  %6631 = vmatmul.msk.bf16.gmra.mxu3 %vm1613_vm0, %v8291_v6 }
 0x188   : > { %11712 = vst [vmem:[#allocation29_spill] sm:$0xff] %v8278_v12  ;;  %v1821_v53 = vpop.f32.mrf.mxu0 }
 0x189   : > { %v1822_v45 = vadd.f32 %v1821_v53, %v8125_v2  ;;  %v7250_v53 = vld [vmem:[%s7900_s28 + $0xf4] sm:$0xf0] }
 0x18a   : > { %v2117_v30 = vpop.f32.mrf.mxu1 }
 0x18b   : > { %v8283_v32 = vadd.f32 %v2110_v19, %v1822_v45  ;;  %1860 = vmatmul.bf16.gmra.mxu0 %v8280_v22  ;;  %v6153_v19 = vld [vmem:[%s7900_s28 + $0xf0] sm:$0xf] }
 0x18c   : > { %v8304_v56 = vor.u32 %v7250_v53, %v6153_v19 }
 0x18d   : > { %v2962_v39 = vmax.f32 %v8283_v32, 0.0 }
 0x18f   : > { %v8286_v48 = vpop.f32.mrf.mxu2 }
 0x190   : > { %11713 = vst [vmem:[#allocation30_spill] sm:$0xff] %v8286_v48  ;;  %v1823_v20 = vpop.f32.mrf.mxu0 }
 0x191   : > { %v1824_v31 = vadd.f32 %v1823_v20, %v8125_v2 }
 0x192   : > { %v2120_v61 = vpop.f32.mrf.mxu1 }
 0x193   : > { %v8293_v44 = vadd.f32 %v2112_v4, %v1824_v31 }
 0x194   : > { %2418 = vmatmul.bf16.gmra.mxu2 %v8184_v54 }
 0x195   : > { %6575 = vmatmul.msk.bf16.gmra.mxu1 %vm1613_vm0, %v8291_v6 }
 0x197   : > { %v8302_v45 = vpop.f32.mrf.mxu2  ;;  %6632 = vmatmul.msk.bf16.gmra.mxu3 %vm1613_vm0, %v8315_v40 }
 0x198   : > { %11714 = vst [vmem:[#allocation31_spill] sm:$0xff] %v8302_v45  ;;  %v1826_v4 = vpop.f32.mrf.mxu0  ;;  %v6195_v45 = vld [vmem:[%s7900_s28 + $0x148] sm:$0xf0] }
 0x199   : > { %v1827_v59 = vadd.f32 %v1826_v4, %v8125_v2  ;;  %v7252_v4 = vld [vmem:[%s7900_s28 + $0x104] sm:$0xf0] }
 0x19a   : > { %v2122_v54 = vpop.f32.mrf.mxu1 }
 0x19b   : > { %v8307_v20 = vadd.f32 %v2115_v43, %v1827_v59  ;;  %1865 = vmatmul.bf16.gmra.mxu0 %v8304_v56  ;;  %v6161_v43 = vld [vmem:[%s7900_s28 + $0x100] sm:$0xf] }
 0x19f   : > { %v8310_v31 = vpop.f32.mrf.mxu2 }
 0x1a0   : > { %11715 = vst [vmem:[#allocation32_spill] sm:$0xff] %v8310_v31  ;;  %v1828_v1 = vpop.f32.mrf.mxu0  ;;  %v7256_v31 = vld [vmem:[%s7900_s28 + $0x124] sm:$0xf0] }
 0x1a1   : > { %v1829_v8 = vadd.f32 %v1828_v1, %v8125_v2  ;;  %v8328_v1 = vor.u32 %v7252_v4, %v6161_v43 }
 0x1a2   : > { %v2125_v53 = vpop.f32.mrf.mxu1 }
 0x1a3   : > { %v8317_v19 = vadd.f32 %v2117_v30, %v1829_v8 }
 0x1a4   : > { %2423 = vmatmul.bf16.gmra.mxu2 %v8208_v18 }
 0x1a5   : > { %6576 = vmatmul.msk.bf16.gmra.mxu1 %vm1613_vm0, %v8315_v40 }
 0x1a7   : > { %v8326_v59 = vpop.f32.mrf.mxu2 }
 0x1a8   : > { %11716 = vst [vmem:[#allocation33_spill] sm:$0xff] %v8326_v59  ;;  %v1831_v14 = vpop.f32.mrf.mxu0  ;;  %v6187_v59 = vld [vmem:[%s7900_s28 + $0x138] sm:$0xf0] }
 0x1a9   : > { %v1832_v49 = vadd.f32 %v1831_v14, %v8125_v2  ;;  %v7254_v14 = vld [vmem:[%s7900_s28 + $0x114] sm:$0xf0] }
 0x1aa   : > { %v2127_v18 = vpop.f32.mrf.mxu1 }
 0x1ab   : > { %v8331_v30 = vadd.f32 %v2120_v61, %v1832_v49  ;;  %1870 = vmatmul.bf16.gmra.mxu0 %v8328_v1  ;;  %v6169_v61 = vld [vmem:[%s7900_s28 + $0x110] sm:$0xf] }
 0x1af   : > { %v8334_v8 = vpop.f32.mrf.mxu2 }
 0x1b0   : > { %11717 = vst [vmem:[#allocation34_spill] sm:$0xff] %v8334_v8  ;;  %v1833_v25 = vpop.f32.mrf.mxu0 }
 0x1b1   : > { %v1834_v41 = vadd.f32 %v1833_v25, %v8125_v2  ;;  %v8352_v25 = vor.u32 %v7254_v14, %v6169_v61  ;;  %v6793_v61 = vld [vmem:[%s11652_s3 + $0xf0] sm:$0xf]  ;;  %v7382_v14 = vld [vmem:[%s11652_s3 + $0xf4] sm:$0xf0] }
 0x1b2   : > { %v2130_v4 = vpop.f32.mrf.mxu1 }
 0x1b3   : > { %v8341_v43 = vadd.f32 %v2122_v54, %v1834_v41  ;;  %v2688_v54 = vpop.f32.mrf.mxu3 }
 0x1b4   : > { %2428 = vmatmul.bf16.gmra.mxu2 %v8232_v46 }
 0x1b5   : > { %6577 = vmatmul.msk.bf16.gmra.mxu1 %vm1613_vm0, %v8339_v24 }
 0x1b7   : > { %v8350_v49 = vpop.f32.mrf.mxu2 }
 0x1b8   : > { %11718 = vst [vmem:[#allocation35_spill] sm:$0xff] %v8350_v49  ;;  %v1836_v42 = vpop.f32.mrf.mxu0  ;;  %v8369_v49 = vor.u32 %v7257_v15, %v6187_v59  ;;  %v7366_v15 = vld [vmem:[%s11652_s3 + $0x74] sm:$0xf0] }
 0x1b9   : > { %v1837_v50 = vadd.f32 %v1836_v42, %v8125_v2  ;;  %v6794_v42 = vor.u32 %v7382_v14, %v6793_v61 }
 0x1ba   : > { %v2132_v46 = vpop.f32.mrf.mxu1 }
 0x1bb   : > { %v8355_v41 = vadd.f32 %v2125_v53, %v1837_v50  ;;  %1875 = vmatmul.bf16.gmra.mxu0 %v8352_v25  ;;  %v2690_v50 = vpop.f32.mrf.mxu3  ;;  %4149 = vmatpush.bf16.msrb.mxu3 %v6794_v42 }
 0x1bc   : > { %6633 = vmatmul.msk.bf16.gmra.mxu3 %vm1613_vm0, %v8339_v24  ;;  %v2970_v24 = vmax.f32 %v8331_v30, 0.0 }
 0x1bf   : > { %v8358_v8 = vpop.f32.mrf.mxu2 }
 0x1c0   : > { %11719 = vst [vmem:[#allocation36_spill] sm:$0xff] %v8358_v8  ;;  %v1838_v13 = vpop.f32.mrf.mxu0 }
 0x1c1   : > { %v1839_v53 = vadd.f32 %v1838_v13, %v8125_v2  ;;  %v6729_v13 = vld [vmem:[%s11652_s3 + $0x70] sm:$0xf] }
 0x1c2   : > { %v2135_v8 = vpop.f32.mrf.mxu1 }
 0x1c3   : > { %v8371_v10 = vadd.f32 %v2127_v18, %v1839_v53  ;;  %v6730_v18 = vor.u32 %v7366_v15, %v6729_v13  ;;  %v2693_v53 = vpop.f32.mrf.mxu3  ;;  %v8399_v13 = vor.u32 %v7259_v5, %v6195_v45 }
 0x1c4   : > { %2433 = vmatmul.bf16.gmra.mxu2 %v8256_v34  ;;  %v8388_v34 = vor.u32 %v7256_v31, %v6177_v63 }
 0x1c5   : > { %6578 = vmatmul.msk.bf16.gmra.mxu1 %vm1613_vm0, %v8369_v49 }
 0x1c6   : > { %4040 = vmatpush.bf16.msrb.mxu1 %v6730_v18 }
 0x1c7   : > { %v8386_v59 = vpop.f32.mrf.mxu2 }
 0x1c8   : > { %11720 = vst [vmem:[#allocation37_spill] sm:$0xff] %v8386_v59  ;;  %v1841_v61 = vpop.f32.mrf.mxu0 }
 0x1c9   : > { %v1842_v14 = vadd.f32 %v1841_v61, %v8125_v2  ;;  %v8404_v61 = vperm.slane %v8118_v60, 1 }
 0x1ca   : > { %v2137_v62 = vpop.f32.mrf.mxu1 }
 0x1cb   : > { %v8391_v42 = vadd.f32 %v2130_v4, %v1842_v14  ;;  %1880 = vmatmul.bf16.gmra.mxu0 %v8388_v34  ;;  %v2695_v31 = vpop.f32.mrf.mxu3  ;;  %v6185_v4 = vld [vmem:[%s7900_s28 + $0x130] sm:$0xf]  ;;  %v7258_v14 = vld [vmem:[%s7900_s28 + $0x134] sm:$0xf0] }
 0x1cc   : > { %6634 = vmatmul.msk.bf16.gmra.mxu3 %vm1613_vm0, %v8369_v49  ;;  %v2974_v49 = vmax.f32 %v8355_v41, 0.0 }
 0x1cf   : > { %v8394_v51 = vpop.f32.mrf.mxu2 }
 0x1d0   : > { %11721 = vst [vmem:[#allocation38_spill] sm:$0xff] %v8394_v51  ;;  %v1843_v59 = vpop.f32.mrf.mxu0 }
 0x1d1   : > { %v1844_v63 = vadd.f32 %v1843_v59, %v8125_v2  ;;  %v8413_v59 = vor.u32 %v7258_v14, %v6185_v4  ;;  %v7261_v14 = vld [vmem:[%s7900_s28 + $0x154] sm:$0xf] }
 0x1d2   : > { %v2140_v18 = vpop.f32.mrf.mxu1 }
 0x1d3   : > { %v8401_v15 = vadd.f32 %v2132_v46, %v1844_v63  ;;  %v8417_v63 = vpop.f32.mrf.mxu3 }
 0x1d4   : > { %2438 = vmatmul.bf16.gmra.mxu2 %v8280_v22 }
 0x1d5   : > { %6579 = vmatmul.msk.bf16.gmra.mxu1 %vm1613_vm0, %v8399_v13 }
 0x1d7   : > { %v2399_v45 = vpop.f32.mrf.mxu2 }
 0x1d8   : > { %v2400_v46 = vadd.f32 %v2399_v45, %v8404_v61  ;;  %v1846_v5 = vpop.f32.mrf.mxu0  ;;  %v6203_v45 = vld [vmem:[%s7900_s28 + $0x158] sm:$0xf0] }
 0x1d9   : > { %v1847_v60 = vadd.f32 %v1846_v5, %v8125_v2 }
 0x1da   : > { %v2689_v22 = vadd.f32 %v2688_v54, %v2400_v46  ;;  %v2142_v47 = vpop.f32.mrf.mxu1 }
 0x1db   : > { %v8419_v51 = vadd.f32 %v2135_v8, %v1847_v60  ;;  %1885 = vmatmul.bf16.gmra.mxu0 %v8413_v59  ;;  %v8429_v8 = vpop.f32.mrf.mxu3  ;;  %v8431_v60 = vor.u32 %v7261_v14, %v6203_v45 }
 0x1dc   : > { %v2963_v6 = vmax.f32 %v2689_v22, 0.0  ;;  %6635 = vmatmul.msk.bf16.gmra.mxu3 %vm1613_vm0, %v8399_v13  ;;  %v2978_v13 = vmax.f32 %v8391_v42, 0.0 }
 0x1de   : > { %v8423_v48 = vmax.f32 %v2962_v39, %v2963_v6  ;;  %v2964_v39 = vmax.f32 %v8293_v44, 0.0  ;;  %v6193_v6 = vld [vmem:[%s7900_s28 + $0x140] sm:$0xf] }
 0x1df   : > { %v2401_v4 = vpop.f32.mrf.mxu2 }
 0x1e0   : > { %11722 = vst [vmem:[#allocation39_spill] sm:$0xff] %v8423_v48  ;;  %v2402_v5 = vadd.f32 %v2401_v4, %v8404_v61  ;;  %v1848_v38 = vpop.f32.mrf.mxu0  ;;  %v7260_v48 = vld [vmem:[%s7900_s28 + $0x144] sm:$0xf0] }
 0x1e1   : > { %v1849_v54 = vadd.f32 %v1848_v38, %v8125_v2 }
 0x1e2   : > { %v2691_v46 = vadd.f32 %v2690_v50, %v2402_v5  ;;  %v2145_v32 = vpop.f32.mrf.mxu1 }
 0x1e3   : > { %v8433_v29 = vadd.f32 %v2137_v62, %v1849_v54  ;;  %v8445_v62 = vor.u32 %v7260_v48, %v6193_v6  ;;  %v8449_v4 = vpop.f32.mrf.mxu3  ;;  %v2966_v54 = vmax.f32 %v8307_v20, 0.0 }
 0x1e4   : > { %v2965_v22 = vmax.f32 %v2691_v46, 0.0  ;;  %2443 = vmatmul.bf16.gmra.mxu2 %v8304_v56 }
 0x1e5   : > { %6580 = vmatmul.msk.bf16.gmra.mxu1 %vm1613_vm0, %v8431_v60 }
 0x1e6   : > { %v8439_v12 = vmax.f32 %v2964_v39, %v2965_v22  ;;  %v7263_v39 = vld [vmem:[%s7900_s28 + $0x164] sm:$0xf]  ;;  %v6211_v22 = vld [vmem:[%s7900_s28 + $0x168] sm:$0xf0] }
 0x1e7   : > { %v2404_v38 = vpop.f32.mrf.mxu2 }
 0x1e8   : > { %11723 = vst [vmem:[#allocation40_spill] sm:$0xff] %v8439_v12  ;;  %v2405_v44 = vadd.f32 %v2404_v38, %v8404_v61  ;;  %v1851_v50 = vpop.f32.mrf.mxu0 }
 0x1e9   : > { %v1852_v56 = vadd.f32 %v1851_v50, %v8125_v2  ;;  %v8463_v50 = vor.u32 %v7263_v39, %v6211_v22 }
 0x1ea   : > { %v2694_v14 = vadd.f32 %v2693_v53, %v2405_v44  ;;  %v2147_v5 = vpop.f32.mrf.mxu1 }
 0x1eb   : > { %v8451_v45 = vadd.f32 %v2140_v18, %v1852_v56  ;;  %1890 = vmatmul.bf16.gmra.mxu0 %v8445_v62  ;;  %v8461_v18 = vpop.f32.mrf.mxu3 }
 0x1ec   : > { %v2967_v40 = vmax.f32 %v2694_v14, 0.0  ;;  %v2968_v14 = vmax.f32 %v8317_v19, 0.0  ;;  %6636 = vmatmul.msk.bf16.gmra.mxu3 %vm1613_vm0, %v8431_v60 }
 0x1ee   : > { %v8455_v46 = vmax.f32 %v2966_v54, %v2967_v40  ;;  %v6201_v40 = vld [vmem:[%s7900_s28 + $0x150] sm:$0xf] }
 0x1ef   : > { %v2406_v48 = vpop.f32.mrf.mxu2 }
 0x1f0   : > { %11724 = vst [vmem:[#allocation41_spill] sm:$0xff] %v8455_v46  ;;  %v2407_v6 = vadd.f32 %v2406_v48, %v8404_v61  ;;  %v1853_v38 = vpop.f32.mrf.mxu0  ;;  %v7262_v46 = vld [vmem:[%s7900_s28 + $0x154] sm:$0xf0] }
 0x1f1   : > { %v1854_v53 = vadd.f32 %v1853_v38, %v8125_v2 }
 0x1f2   : > { %v2696_v44 = vadd.f32 %v2695_v31, %v2407_v6  ;;  %v2150_v20 = vpop.f32.mrf.mxu1  ;;  %v8477_v31 = vor.u32 %v7262_v46, %v6201_v40 }
 0x1f3   : > { %v8465_v56 = vadd.f32 %v2142_v47, %v1854_v53  ;;  %v8481_v39 = vpop.f32.mrf.mxu3 }
 0x1f4   : > { %v2969_v54 = vmax.f32 %v2696_v44, 0.0  ;;  %2448 = vmatmul.bf16.gmra.mxu2 %v8328_v1 }
 0x1f5   : > { %6581 = vmatmul.msk.bf16.gmra.mxu1 %vm1613_vm0, %v8463_v50 }
 0x1f6   : > { %v8471_v12 = vmax.f32 %v2968_v14, %v2969_v54  ;;  %v7265_v14 = vld [vmem:[%s7900_s28 + $0x174] sm:$0xf]  ;;  %v6219_v54 = vld [vmem:[%s7900_s28 + $0x178] sm:$0xf0] }
 0x1f7   : > { %v2409_v47 = vpop.f32.mrf.mxu2 }
 0x1f8   : > { %11725 = vst [vmem:[#allocation42_spill] sm:$0xff] %v8471_v12  ;;  %v2410_v19 = vadd.f32 %v2409_v47, %v8404_v61  ;;  %v1856_v48 = vpop.f32.mrf.mxu0  ;;  %v7264_v12 = vld [vmem:[%s7900_s28 + $0x164] sm:$0xf0] }
 0x1f9   : > { %v1857_v1 = vadd.f32 %v1856_v48, %v8125_v2  ;;  %v8497_v48 = vor.u32 %v7265_v14, %v6219_v54 }
 0x1fa   : > { %v2699_v22 = vadd.f32 %v8417_v63, %v2410_v19  ;;  %v2152_v38 = vpop.f32.mrf.mxu1 }
 0x1fb   : > { %v8484_v6 = vadd.f32 %v2145_v32, %v1857_v1  ;;  %1895 = vmatmul.bf16.gmra.mxu0 %v8477_v31  ;;  %v8494_v32 = vpop.f32.mrf.mxu3 }
 0x1fc   : > { %v2971_v53 = vmax.f32 %v2699_v22, 0.0  ;;  %v2972_v22 = vmax.f32 %v8341_v43, 0.0  ;;  %6637 = vmatmul.msk.bf16.gmra.mxu3 %vm1613_vm0, %v8463_v50 }
 0x1fe   : > { %v8488_v46 = vmax.f32 %v2970_v24, %v2971_v53  ;;  %v6209_v53 = vld [vmem:[%s7900_s28 + $0x160] sm:$0xf] }
 0x1ff   : > { %v2411_v44 = vpop.f32.mrf.mxu2 }
 0x200   : > { %v2412_v40 = vadd.f32 %v2411_v44, %v8404_v61  ;;  %v1858_v47 = vpop.f32.mrf.mxu0 }
 0x201   : > { %v1859_v63 = vadd.f32 %v1858_v47, %v8125_v2 }
 0x202   : > { %v2701_v19 = vadd.f32 %v8429_v8, %v2412_v40  ;;  %v2155_v1 = vpop.f32.mrf.mxu1 }
 0x203   : > { %v8499_v30 = vadd.f32 %v2147_v5, %v1859_v63  ;;  %v8511_v5 = vor.u32 %v7264_v12, %v6209_v53  ;;  %v8515_v54 = vpop.f32.mrf.mxu3  ;;  %v6227_v53 = vld [vmem:[%s7900_s28 + $0x188] sm:$0xf0] }
 0x204   : > { %v2973_v24 = vmax.f32 %v2701_v19, 0.0  ;;  %2453 = vmatmul.bf16.gmra.mxu2 %v8352_v25 }
 0x205   : > { %6582 = vmatmul.msk.bf16.gmra.mxu1 %vm1613_vm0, %v8497_v48 }
 0x206   : > { %v8505_v44 = vmax.f32 %v2972_v22, %v2973_v24  ;;  %v7267_v24 = vld [vmem:[%s7900_s28 + $0x184] sm:$0xf] }
 0x207   : > { %v2414_v8 = vpop.f32.mrf.mxu2 }
 0x208   : > { %v2415_v43 = vadd.f32 %v2414_v8, %v8404_v61  ;;  %v1861_v14 = vpop.f32.mrf.mxu0 }
 0x209   : > { %v1862_v25 = vadd.f32 %v1861_v14, %v8125_v2 }
 0x20a   : > { %v2704_v40 = vadd.f32 %v8449_v4, %v2415_v43  ;;  %v2157_v63 = vpop.f32.mrf.mxu1 }
 0x20b   : > { %v8518_v47 = vadd.f32 %v2150_v20, %v1862_v25  ;;  %1900 = vmatmul.bf16.gmra.mxu0 %v8511_v5  ;;  %v8528_v20 = vpop.f32.mrf.mxu3  ;;  %v8531_v25 = vor.u32 %v7267_v24, %v6227_v53 }
 0x20c   : > { %v2975_v19 = vmax.f32 %v2704_v40, 0.0  ;;  %6638 = vmatmul.msk.bf16.gmra.mxu3 %vm1613_vm0, %v8497_v48  ;;  %v2990_v48 = vmax.f32 %v8484_v6, 0.0 }
 0x20e   : > { %v8522_v12 = vmax.f32 %v2974_v49, %v2975_v19  ;;  %v2976_v49 = vmax.f32 %v8371_v10, 0.0 }
 0x20f   : > { %v2416_v22 = vpop.f32.mrf.mxu2 }
 0x210   : > { %v2417_v8 = vadd.f32 %v2416_v22, %v8404_v61  ;;  %v1863_v14 = vpop.f32.mrf.mxu0 }
 0x211   : > { %v1864_v4 = vadd.f32 %v1863_v14, %v8125_v2 }
 0x212   : > { %v2706_v43 = vadd.f32 %v8461_v18, %v2417_v8  ;;  %v2160_v40 = vpop.f32.mrf.mxu1 }
 0x213   : > { %v8533_v41 = vadd.f32 %v2152_v38, %v1864_v4  ;;  %v8545_v38 = vor.u32 %v7266_v9, %v6217_v21  ;;  %v8549_v53 = vpop.f32.mrf.mxu3  ;;  %v7269_v21 = vld [vmem:[%s7900_s28 + $0x194] sm:$0xf] }
 0x214   : > { %v2977_v19 = vmax.f32 %v2706_v43, 0.0  ;;  %2458 = vmatmul.bf16.gmra.mxu2 %v8388_v34 }
 0x215   : > { %6583 = vmatmul.msk.bf16.gmra.mxu1 %vm1613_vm0, %v8531_v25 }
 0x216   : > { %v8539_v22 = vmax.f32 %v2976_v49, %v2977_v19  ;;  %v6235_v19 = vld [vmem:[%s7900_s28 + $0x198] sm:$0xf0] }
 0x217   : > { %v2419_v18 = vpop.f32.mrf.mxu2 }
 0x218   : > { %v2420_v10 = vadd.f32 %v2419_v18, %v8404_v61  ;;  %v1866_v24 = vpop.f32.mrf.mxu0 }
 0x219   : > { %v1867_v34 = vadd.f32 %v1866_v24, %v8125_v2 }
 0x21a   : > { %v2709_v8 = vadd.f32 %v8481_v39, %v2420_v10  ;;  %v2162_v4 = vpop.f32.mrf.mxu1 }
 0x21b   : > { %v8552_v14 = vadd.f32 %v2155_v1, %v1867_v34  ;;  %1905 = vmatmul.bf16.gmra.mxu0 %v8545_v38  ;;  %v8561_v1 = vpop.f32.mrf.mxu3  ;;  %v8564_v34 = vor.u32 %v7269_v21, %v6235_v19 }
 0x21c   : > { %v2979_v43 = vmax.f32 %v2709_v8, 0.0  ;;  %6639 = vmatmul.msk.bf16.gmra.mxu3 %vm1613_vm0, %v8531_v25  ;;  %v2994_v25 = vmax.f32 %v8518_v47, 0.0 }
 0x21e   : > { %v3182_v49 = vmax.f32 %v2978_v13, %v2979_v43  ;;  %v2980_v13 = vmax.f32 %v8401_v15, 0.0 }
 0x21f   : > { %v2421_v9 = vpop.f32.mrf.mxu2 }
 0x220   : > { %v3282_v18 = vmax.f32 %v8488_v46, %v3182_v49  ;;  %v2422_v24 = vadd.f32 %v2421_v9, %v8404_v61  ;;  %v1868_v35 = vpop.f32.mrf.mxu0  ;;  %v6225_v46 = vld [vmem:[%s7900_s28 + $0x180] sm:$0xf]  ;;  %v7268_v49 = vld [vmem:[%s7900_s28 + $0x184] sm:$0xf0] }
 0x221   : > { %v1869_v39 = vadd.f32 %v1868_v35, %v8125_v2  ;;  %v6785_v35 = vld [vmem:[%s11652_s3 + $0xe0] sm:$0xf] }
 0x222   : > { %v2711_v10 = vadd.f32 %v8494_v32, %v2422_v24  ;;  %v8568_v8 = vpop.f32.mrf.mxu1  ;;  %v7380_v32 = vld [vmem:[%s11652_s3 + $0xe4] sm:$0xf0]  ;;  %v3338_v21 = vpack.c.bf16 %v3282_v18, %v3282_v18 }
 0x223   : > { %v8566_v42 = vadd.f32 %v2157_v63, %v1869_v39  ;;  %v8584_v63 = vor.u32 %v7268_v49, %v6225_v46  ;;  %v8595_v18 = vpop.f32.mrf.mxu3 }
 0x224   : > { %v2981_v43 = vmax.f32 %v2711_v10, 0.0  ;;  %2463 = vmatmul.bf16.gmra.mxu2 %v8413_v59  ;;  %v6786_v59 = vor.u32 %v7380_v32, %v6785_v35  ;;  %v6721_v10 = vld [vmem:[%s11652_s3 + $0x60] sm:$0xf]  ;;  %v2982_v35 = vmax.f32 %v8419_v51, 0.0  ;;  %v3434_v32 = vunpack.c.l.b16 %v3338_v21 }
 0x225   : > { %6584 = vmatmul.msk.bf16.gmra.mxu1 %vm1613_vm0, %v8564_v34 }
 0x226   : > { %v3183_v9 = vmax.f32 %v2980_v13, %v2981_v43  ;;  %v7364_v13 = vld [vmem:[%s11652_s3 + $0x64] sm:$0xf0]  ;;  %4150 = vmatpush.bf16.msrb.mxu3 %v6786_v59 }
 0x227   : > { %v2424_v15 = vpop.f32.mrf.mxu2  ;;  %v6722_v43 = vor.u32 %v7364_v13, %v6721_v10 }
 0x228   : > { %v3283_v19 = vmax.f32 %v8505_v44, %v3183_v9  ;;  %v2425_v24 = vadd.f32 %v2424_v15, %v8404_v61  ;;  %v1871_v39 = vpop.f32.mrf.mxu0 }
 0x229   : > { %v1872_v60 = vadd.f32 %v1871_v39, %v8125_v2  ;;  %4041 = vmatpush.bf16.msrb.mxu1 %v6722_v43 }
 0x22a   : > { %v3339_v44 = vpack.c.bf16 %v3283_v19, %v3283_v19  ;;  %v2714_v46 = vadd.f32 %v8515_v54, %v2425_v24  ;;  %v2167_v9 = vpop.f32.mrf.mxu1  ;;  %v7271_v19 = vld [vmem:[%s7900_s28 + $0x1a4] sm:$0xf] }
 0x22b   : > { %v8598_v49 = vadd.f32 %v2160_v40, %v1872_v60  ;;  %1910 = vmatmul.bf16.gmra.mxu0 %v8584_v63  ;;  %v8609_v43 = vpop.f32.mrf.mxu3  ;;  %v8612_v21 = vor.u32 %v7271_v19, %v6243_v7 }
 0x22c   : > { %v3435_v15 = vunpack.c.l.b16 %v3339_v44  ;;  %v2983_v39 = vmax.f32 %v2714_v46, 0.0  ;;  %6640 = vmatmul.msk.bf16.gmra.mxu3 %vm1613_vm0, %v8564_v34 }
 0x22e   : > { %v8602_v59 = vpack.c.b16 %v3435_v15, %v3434_v32  ;;  %v3184_v10 = vmax.f32 %v2982_v35, %v2983_v39  ;;  %v2984_v35 = vmax.f32 %v8433_v29, 0.0  ;;  %v7270_v15 = vld [vmem:[%s7900_s28 + $0x194] sm:$0xf0] }
 0x22f   : > { %v2426_v13 = vpop.f32.mrf.mxu2 }
 0x230   : > { %v3284_v54 = vmax.f32 %v8522_v12, %v3184_v10  ;;  %v2427_v40 = vadd.f32 %v2426_v13, %v8404_v61  ;;  %v1873_v24 = vpop.f32.mrf.mxu0  ;;  %v6233_v12 = vld [vmem:[%s7900_s28 + $0x190] sm:$0xf] }
 0x231   : > { %v1874_v60 = vadd.f32 %v1873_v24, %v8125_v2  ;;  %v8624_v7 = vor.u32 %v7270_v15, %v6233_v12 }
 0x232   : > { %v2716_v51 = vadd.f32 %v8528_v20, %v2427_v40  ;;  %v2170_v46 = vpop.f32.mrf.mxu1 }
 0x233   : > { %v8614_v44 = vadd.f32 %v2162_v4, %v1874_v60  ;;  %v3340_v4 = vpack.c.bf16 %v3284_v54, %v3284_v54  ;;  %v8629_v19 = vpop.f32.mrf.mxu3 }
 0x234   : > { %v2985_v32 = vmax.f32 %v2716_v51, 0.0  ;;  %2468 = vmatmul.bf16.gmra.mxu2 %v8445_v62 }
 0x235   : > { %6585 = vmatmul.msk.bf16.gmra.mxu1 %vm1613_vm0, %v8612_v21  ;;  %v3436_v60 = vunpack.c.l.b16 %v3340_v4 }
 0x236   : > { %v3185_v39 = vmax.f32 %v2984_v35, %v2985_v32 }
 0x237   : > { %v2429_v20 = vpop.f32.mrf.mxu2 }
 0x238   : > { %v3285_v10 = vmax.f32 %v8539_v22, %v3185_v39  ;;  %v2430_v29 = vadd.f32 %v2429_v20, %v8404_v61  ;;  %v1876_v13 = vpop.f32.mrf.mxu0  ;;  %v2986_v22 = vmax.f32 %v8451_v45, 0.0  ;;  %v7273_v39 = vld [vmem:[%s7900_s28 + $0x1b4] sm:$0xf] }
 0x239   : > { %v1877_v62 = vadd.f32 %v1876_v13, %v8125_v2 }
 0x23a   : > { %v3341_v40 = vpack.c.bf16 %v3285_v10, %v3285_v10  ;;  %v2719_v24 = vadd.f32 %v8549_v53, %v2430_v29  ;;  %v2172_v54 = vpop.f32.mrf.mxu1  ;;  %v6251_v53 = vld [vmem:[%s7900_s28 + $0x1b8] sm:$0xf0] }
 0x23b   : > { %v8633_v50 = vadd.f32 %v8568_v8, %v1877_v62  ;;  %1915 = vmatmul.bf16.gmra.mxu0 %v8624_v7  ;;  %v8645_v29 = vpop.f32.mrf.mxu3  ;;  %v8648_v4 = vor.u32 %v7273_v39, %v6251_v53 }
 0x23c   : > { %v3437_v51 = vunpack.c.l.b16 %v3341_v40  ;;  %v2987_v35 = vmax.f32 %v2719_v24, 0.0  ;;  %v2988_v40 = vmax.f32 %v8465_v56, 0.0  ;;  %6641 = vmatmul.msk.bf16.gmra.mxu3 %vm1613_vm0, %v8612_v21 }
 0x23e   : > { %v8637_v32 = vpack.c.b16 %v3437_v51, %v3436_v60  ;;  %v8639_v12 = vmax.f32 %v2986_v22, %v2987_v35  ;;  %v6241_v22 = vld [vmem:[%s7900_s28 + $0x1a0] sm:$0xf]  ;;  %v7272_v60 = vld [vmem:[%s7900_s28 + $0x1a4] sm:$0xf0] }
 0x23f   : > { %v2431_v15 = vpop.f32.mrf.mxu2 }
 0x240   : > { %11726 = vst [vmem:[#allocation43_spill] sm:$0xff] %v8637_v32  ;;  %v2432_v8 = vadd.f32 %v2431_v15, %v8404_v61  ;;  %v1878_v20 = vpop.f32.mrf.mxu0 }
 0x241   : > { %v1879_v10 = vadd.f32 %v1878_v20, %v8125_v2 }
 0x242   : > { %v2721_v45 = vadd.f32 %v8561_v1, %v2432_v8  ;;  %v2175_v62 = vpop.f32.mrf.mxu1 }
 0x243   : > { %v8650_v13 = vadd.f32 %v2167_v9, %v1879_v10  ;;  %v8662_v9 = vor.u32 %v7272_v60, %v6241_v22  ;;  %v8666_v15 = vpop.f32.mrf.mxu3 }
 0x244   : > { %v2989_v24 = vmax.f32 %v2721_v45, 0.0  ;;  %2473 = vmatmul.bf16.gmra.mxu2 %v8477_v31 }
 0x245   : > { %6586 = vmatmul.msk.bf16.gmra.mxu1 %vm1613_vm0, %v8648_v4 }
 0x246   : > { %v8656_v51 = vmax.f32 %v2988_v40, %v2989_v24  ;;  %v7275_v40 = vld [vmem:[%s7900_s28 + $0x1c4] sm:$0xf]  ;;  %v6259_v24 = vld [vmem:[%s7900_s28 + $0x1c8] sm:$0xf0] }
 0x247   : > { %v2434_v1 = vpop.f32.mrf.mxu2 }
 0x248   : > { %v2435_v56 = vadd.f32 %v2434_v1, %v8404_v61  ;;  %v1881_v35 = vpop.f32.mrf.mxu0 }
 0x249   : > { %v1882_v31 = vadd.f32 %v1881_v35, %v8125_v2 }
 0x24a   : > { %v2724_v39 = vadd.f32 %v8595_v18, %v2435_v56  ;;  %v2177_v8 = vpop.f32.mrf.mxu1  ;;  %v8682_v56 = vor.u32 %v7275_v40, %v6259_v24 }
 0x24b   : > { %v8669_v53 = vadd.f32 %v2170_v46, %v1882_v31  ;;  %1920 = vmatmul.bf16.gmra.mxu0 %v8662_v9  ;;  %v8679_v46 = vpop.f32.mrf.mxu3  ;;  %v2992_v31 = vmax.f32 %v8499_v30, 0.0 }
 0x24c   : > { %v2991_v20 = vmax.f32 %v2724_v39, 0.0  ;;  %6642 = vmatmul.msk.bf16.gmra.mxu3 %vm1613_vm0, %v8648_v4  ;;  %v3006_v4 = vmax.f32 %v8633_v50, 0.0 }
 0x24e   : > { %v8673_v10 = vmax.f32 %v2990_v48, %v2991_v20  ;;  %v6249_v48 = vld [vmem:[%s7900_s28 + $0x1b0] sm:$0xf]  ;;  %v7274_v20 = vld [vmem:[%s7900_s28 + $0x1b4] sm:$0xf0] }
 0x24f   : > { %v2436_v45 = vpop.f32.mrf.mxu2 }
 0x250   : > { %v2437_v22 = vadd.f32 %v2436_v45, %v8404_v61  ;;  %v1883_v60 = vpop.f32.mrf.mxu0 }
 0x251   : > { %v1884_v18 = vadd.f32 %v1883_v60, %v8125_v2 }
 0x252   : > { %v2726_v1 = vadd.f32 %v8609_v43, %v2437_v22  ;;  %v2180_v35 = vpop.f32.mrf.mxu1 }
 0x253   : > { %v8684_v6 = vadd.f32 %v2172_v54, %v1884_v18  ;;  %v8696_v54 = vor.u32 %v7274_v20, %v6249_v48  ;;  %v8700_v24 = vpop.f32.mrf.mxu3  ;;  %v7277_v48 = vld [vmem:[%s7900_s28 + $0x1d4] sm:$0xf]  ;;  %v6267_v20 = vld [vmem:[%s7900_s28 + $0x1d8] sm:$0xf0] }
 0x254   : > { %v2993_v39 = vmax.f32 %v2726_v1, 0.0  ;;  %2478 = vmatmul.bf16.gmra.mxu2 %v8511_v5 }
 0x255   : > { %6587 = vmatmul.msk.bf16.gmra.mxu1 %vm1613_vm0, %v8682_v56 }
 0x256   : > { %v8690_v45 = vmax.f32 %v2992_v31, %v2993_v39 }
 0x257   : > { %v2439_v43 = vpop.f32.mrf.mxu2 }
 0x258   : > { %v2440_v30 = vadd.f32 %v2439_v43, %v8404_v61  ;;  %v1886_v40 = vpop.f32.mrf.mxu0 }
 0x259   : > { %v1887_v5 = vadd.f32 %v1886_v40, %v8125_v2 }
 0x25a   : > { %v2729_v22 = vadd.f32 %v8629_v19, %v2440_v30  ;;  %v2182_v18 = vpop.f32.mrf.mxu1 }
 0x25b   : > { %v8703_v60 = vadd.f32 %v2175_v62, %v1887_v5  ;;  %1925 = vmatmul.bf16.gmra.mxu0 %v8696_v54  ;;  %v8712_v62 = vpop.f32.mrf.mxu3  ;;  %v8715_v5 = vor.u32 %v7277_v48, %v6267_v20 }
 0x25c   : > { %v2995_v1 = vmax.f32 %v2729_v22, 0.0  ;;  %6643 = vmatmul.msk.bf16.gmra.mxu3 %vm1613_vm0, %v8682_v56 }
 0x25e   : > { %v3190_v31 = vmax.f32 %v2994_v25, %v2995_v1  ;;  %v2996_v25 = vmax.f32 %v8533_v41, 0.0 }
 0x25f   : > { %v2441_v39 = vpop.f32.mrf.mxu2 }
 0x260   : > { %v3286_v43 = vmax.f32 %v8639_v12, %v3190_v31  ;;  %v2442_v40 = vadd.f32 %v2441_v39, %v8404_v61  ;;  %v1888_v3 = vpop.f32.mrf.mxu0  ;;  %v6257_v12 = vld [vmem:[%s7900_s28 + $0x1c0] sm:$0xf]  ;;  %v7276_v31 = vld [vmem:[%s7900_s28 + $0x1c4] sm:$0xf0] }
 0x261   : > { %v1889_v19 = vadd.f32 %v1888_v3, %v8125_v2 }
 0x262   : > { %v2731_v30 = vadd.f32 %v8645_v29, %v2442_v40  ;;  %v2185_v22 = vpop.f32.mrf.mxu1  ;;  %v8727_v29 = vor.u32 %v7276_v31, %v6257_v12 }
 0x263   : > { %v8717_v47 = vadd.f32 %v2177_v8, %v1889_v19  ;;  %v3342_v8 = vpack.c.bf16 %v3286_v43, %v3286_v43  ;;  %v8732_v40 = vpop.f32.mrf.mxu3  ;;  %v2998_v43 = vmax.f32 %v8552_v14, 0.0 }
 0x264   : > { %v2997_v1 = vmax.f32 %v2731_v30, 0.0  ;;  %2483 = vmatmul.bf16.gmra.mxu2 %v8545_v38 }
 0x265   : > { %6588 = vmatmul.msk.bf16.gmra.mxu1 %vm1613_vm0, %v8715_v5 }
 0x266   : > { %v3191_v39 = vmax.f32 %v2996_v25, %v2997_v1 }
 0x267   : > { %v2444_v3 = vpop.f32.mrf.mxu2 }
 0x268   : > { %v3287_v48 = vmax.f32 %v8656_v51, %v3191_v39  ;;  %v2445_v41 = vadd.f32 %v2444_v3, %v8404_v61  ;;  %v1891_v20 = vpop.f32.mrf.mxu0  ;;  %v3438_v51 = vunpack.c.l.b16 %v3342_v8 }
 0x269   : > { %v1892_v38 = vadd.f32 %v1891_v20, %v8125_v2  ;;  %v7279_v20 = vld [vmem:[%s7900_s28 + $0x1e4] sm:$0xf] }
 0x26a   : > { %v3343_v19 = vpack.c.bf16 %v3287_v48, %v3287_v48  ;;  %v2734_v30 = vadd.f32 %v8666_v15, %v2445_v41  ;;  %v2187_v34 = vpop.f32.mrf.mxu1  ;;  %v6275_v48 = vld [vmem:[%s7900_s28 + $0x1e8] sm:$0xf0] }
 0x26b   : > { %v8735_v25 = vadd.f32 %v2180_v35, %v1892_v38  ;;  %1930 = vmatmul.bf16.gmra.mxu0 %v8727_v29  ;;  %v8746_v33 = vpop.f32.mrf.mxu3  ;;  %v8749_v8 = vor.u32 %v7279_v20, %v6275_v48 }
 0x26c   : > { %v3439_v1 = vunpack.c.l.b16 %v3343_v19  ;;  %v2999_v12 = vmax.f32 %v2734_v30, 0.0  ;;  %6644 = vmatmul.msk.bf16.gmra.mxu3 %vm1613_vm0, %v8715_v5 }
 0x26e   : > { %v8739_v31 = vpack.c.b16 %v3439_v1, %v3438_v51  ;;  %v3192_v39 = vmax.f32 %v2998_v43, %v2999_v12  ;;  %v3000_v43 = vmax.f32 %v8566_v42, 0.0  ;;  %v7278_v1 = vld [vmem:[%s7900_s28 + $0x1d4] sm:$0xf0] }
 0x26f   : > { %v2446_v3 = vpop.f32.mrf.mxu2 }
 0x270   : > { %v3288_v15 = vmax.f32 %v8673_v10, %v3192_v39  ;;  %v2447_v35 = vadd.f32 %v2446_v3, %v8404_v61  ;;  %v1893_v41 = vpop.f32.mrf.mxu0  ;;  %v6265_v10 = vld [vmem:[%s7900_s28 + $0x1d0] sm:$0xf] }
 0x271   : > { %v1894_v38 = vadd.f32 %v1893_v41, %v8125_v2  ;;  %v8761_v39 = vor.u32 %v7278_v1, %v6265_v10 }
 0x272   : > { %v2736_v14 = vadd.f32 %v8679_v46, %v2447_v35  ;;  %v2190_v30 = vpop.f32.mrf.mxu1 }
 0x273   : > { %v8751_v19 = vadd.f32 %v2182_v18, %v1894_v38  ;;  %v3344_v18 = vpack.c.bf16 %v3288_v15, %v3288_v15  ;;  %v8766_v48 = vpop.f32.mrf.mxu3  ;;  %v3002_v15 = vmax.f32 %v8598_v49, 0.0 }
 0x274   : > { %v3001_v51 = vmax.f32 %v2736_v14, 0.0  ;;  %2488 = vmatmul.bf16.gmra.mxu2 %v8584_v63 }
 0x275   : > { %6589 = vmatmul.msk.bf16.gmra.mxu1 %vm1613_vm0, %v8749_v8 }
 0x276   : > { %v3193_v12 = vmax.f32 %v3000_v43, %v3001_v51 }
 0x277   : > { %v2449_v46 = vpop.f32.mrf.mxu2 }
 0x278   : > { %v3289_v3 = vmax.f32 %v8690_v45, %v3193_v12  ;;  %v2450_v42 = vadd.f32 %v2449_v46, %v8404_v61  ;;  %v1896_v20 = vpop.f32.mrf.mxu0  ;;  %v3440_v45 = vunpack.c.l.b16 %v3344_v18  ;;  %v7281_v12 = vld [vmem:[%s7900_s28 + $0x1f4] sm:$0xf]  ;;  %v6283_v46 = vld [vmem:[%s7900_s28 + $0x1f8] sm:$0xf0] }
 0x279   : > { %v1897_v63 = vadd.f32 %v1896_v20, %v8125_v2  ;;  %v8784_v18 = vor.u32 %v7281_v12, %v6283_v46 }
 0x27a   : > { %v3345_v35 = vpack.c.bf16 %v3289_v3, %v3289_v3  ;;  %v2739_v41 = vadd.f32 %v8700_v24, %v2450_v42  ;;  %v2192_v21 = vpop.f32.mrf.mxu1 }
 0x27b   : > { %v8769_v38 = vadd.f32 %v2185_v22, %v1897_v63  ;;  %1935 = vmatmul.bf16.gmra.mxu0 %v8761_v39  ;;  %v8781_v42 = vpop.f32.mrf.mxu3 }
 0x27c   : > { %v3441_v14 = vunpack.c.l.b16 %v3345_v35  ;;  %v3003_v43 = vmax.f32 %v2739_v41, 0.0  ;;  %v3004_v35 = vmax.f32 %v8614_v44, 0.0  ;;  %6645 = vmatmul.msk.bf16.gmra.mxu3 %vm1613_vm0, %v8749_v8 }
 0x27e   : > { %v8773_v51 = vpack.c.b16 %v3441_v14, %v3440_v45  ;;  %v8775_v10 = vmax.f32 %v3002_v15, %v3003_v43  ;;  %v6273_v15 = vld [vmem:[%s7900_s28 + $0x1e0] sm:$0xf]  ;;  %v7280_v45 = vld [vmem:[%s7900_s28 + $0x1e4] sm:$0xf0] }
 0x27f   : > { %v2451_v1 = vpop.f32.mrf.mxu2  ;;  %v8798_v43 = vor.u32 %v7280_v45, %v6273_v15  ;;  %v6291_v15 = vld [vmem:[%s7900_s28 + $0x208] sm:$0xf0] }
 0x280   : > { %v2452_v24 = vadd.f32 %v2451_v1, %v8404_v61  ;;  %v1898_v22 = vpop.f32.mrf.mxu0 }
 0x281   : > { %v1899_v3 = vadd.f32 %v1898_v22, %v8125_v2 }
 0x282   : > { %v2741_v49 = vadd.f32 %v8712_v62, %v2452_v24  ;;  %v2195_v63 = vpop.f32.mrf.mxu1 }
 0x283   : > { %v8786_v20 = vadd.f32 %v2187_v34, %v1899_v3  ;;  %v8802_v1 = vpop.f32.mrf.mxu3 }
 0x284   : > { %v3005_v41 = vmax.f32 %v2741_v49, 0.0  ;;  %2493 = vmatmul.bf16.gmra.mxu2 %v8624_v7  ;;  %v6777_v49 = vld [vmem:[%s11652_s3 + $0xd0] sm:$0xf] }
 0x285   : > { %6590 = vmatmul.msk.bf16.gmra.mxu1 %vm1613_vm0, %v8784_v18 }
 0x286   : > { %v8792_v14 = vmax.f32 %v3004_v35, %v3005_v41  ;;  %v7283_v41 = vld [vmem:[%s7900_s28 + $0x204] sm:$0xf] }
 0x287   : > { %v2454_v62 = vpop.f32.mrf.mxu2 }
 0x288   : > { %v2455_v34 = vadd.f32 %v2454_v62, %v8404_v61  ;;  %v1901_v44 = vpop.f32.mrf.mxu0 }
 0x289   : > { %v1902_v7 = vadd.f32 %v1901_v44, %v8125_v2 }
 0x28a   : > { %v2744_v12 = vadd.f32 %v8732_v40, %v2455_v34  ;;  %v2197_v24 = vpop.f32.mrf.mxu1  ;;  %v7378_v40 = vld [vmem:[%s11652_s3 + $0xd4] sm:$0xf0] }
 0x28b   : > { %v8805_v46 = vadd.f32 %v2190_v30, %v1902_v7  ;;  %1940 = vmatmul.bf16.gmra.mxu0 %v8798_v43  ;;  %v6778_v35 = vor.u32 %v7378_v40, %v6777_v49  ;;  %v8821_v34 = vpop.f32.mrf.mxu3  ;;  %v8824_v7 = vor.u32 %v7283_v41, %v6291_v15  ;;  %v3008_v49 = vmax.f32 %v8650_v13, 0.0 }
 0x28c   : > { %v3007_v22 = vmax.f32 %v2744_v12, 0.0  ;;  %6646 = vmatmul.msk.bf16.gmra.mxu3 %vm1613_vm0, %v8784_v18  ;;  %v3022_v18 = vmax.f32 %v8769_v38, 0.0 }
 0x28d   : > { %4151 = vmatpush.bf16.msrb.mxu3 %v6778_v35 }
 0x28e   : > { %v8809_v3 = vmax.f32 %v3006_v4, %v3007_v22  ;;  %v6281_v4 = vld [vmem:[%s7900_s28 + $0x1f0] sm:$0xf]  ;;  %v7282_v22 = vld [vmem:[%s7900_s28 + $0x1f4] sm:$0xf0] }
 0x28f   : > { %v2456_v30 = vpop.f32.mrf.mxu2 }
 0x290   : > { %v2457_v45 = vadd.f32 %v2456_v30, %v8404_v61  ;;  %v1903_v50 = vpop.f32.mrf.mxu0  ;;  %v6713_v30 = vld [vmem:[%s11652_s3 + $0x50] sm:$0xf] }
 0x291   : > { %v1904_v62 = vadd.f32 %v1903_v50, %v8125_v2 }
 0x292   : > { %v2746_v44 = vadd.f32 %v8746_v33, %v2457_v45  ;;  %v2200_v55 = vpop.f32.mrf.mxu1  ;;  %v7362_v33 = vld [vmem:[%s11652_s3 + $0x54] sm:$0xf0] }
 0x293   : > { %v8826_v12 = vadd.f32 %v2192_v21, %v1904_v62  ;;  %v6714_v35 = vor.u32 %v7362_v33, %v6713_v30  ;;  %v8844_v21 = vor.u32 %v7282_v22, %v6281_v4  ;;  %v8848_v50 = vpop.f32.mrf.mxu3  ;;  %v3010_v4 = vmax.f32 %v8669_v53, 0.0  ;;  %v7414_v30 = vld [vmem:[%s11652_s3 + $0x1f4] sm:$0xf0] }
 0x294   : > { %v3009_v40 = vmax.f32 %v2746_v44, 0.0  ;;  %2498 = vmatmul.bf16.gmra.mxu2 %v8662_v9 }
 0x295   : > { %6591 = vmatmul.msk.bf16.gmra.mxu1 %vm1613_vm0, %v8824_v7 }
 0x296   : > { %v8838_v41 = vmax.f32 %v3008_v49, %v3009_v40  ;;  %4042 = vmatpush.bf16.msrb.mxu1 %v6714_v35  ;;  %v6921_v40 = vld [vmem:[%s11652_s3 + $0x1f0] sm:$0xf] }
 0x297   : > { %v2459_v13 = vpop.f32.mrf.mxu2  ;;  %v6922_v35 = vor.u32 %v7414_v30, %v6921_v40  ;;  %v3012_v30 = vmax.f32 %v8684_v6, 0.0 }
 0x298   : > { %v2460_v9 = vadd.f32 %v2459_v13, %v8404_v61  ;;  %v1906_v15 = vpop.f32.mrf.mxu0 }
 0x299   : > { %v1907_v45 = vadd.f32 %v1906_v15, %v8125_v2  ;;  %4367 = vmatpush.bf16.msra.mxu2 %v6922_v35 }
 0x29a   : > { %v2749_v62 = vadd.f32 %v8766_v48, %v2460_v9  ;;  %v2202_v56 = vpop.f32.mrf.mxu1  ;;  %v7285_v48 = vld [vmem:[%s7900_s28 + $0x214] sm:$0xf] }
 0x29b   : > { %v8851_v44 = vadd.f32 %v2195_v63, %v1907_v45  ;;  %1945 = vmatmul.bf16.gmra.mxu0 %v8844_v21  ;;  %v6299_v63 = vld [vmem:[%s7900_s28 + $0x218] sm:$0xf0]  ;;  %v8866_v45 = vpop.f32.mrf.mxu3 }
 0x29c   : > { %v3011_v22 = vmax.f32 %v2749_v62, 0.0  ;;  %6647 = vmatmul.msk.bf16.gmra.mxu3 %vm1613_vm0, %v8824_v7  ;;  %v3026_v7 = vmax.f32 %v8805_v46, 0.0 }
 0x29e   : > { %v3198_v49 = vmax.f32 %v3010_v4, %v3011_v22  ;;  %v8869_v4 = vor.u32 %v7285_v48, %v6299_v63 }
 0x29f   : > { %v2461_v33 = vpop.f32.mrf.mxu2 }
 0x2a0   : > { %v3290_v13 = vmax.f32 %v8775_v10, %v3198_v49  ;;  %v2462_v53 = vadd.f32 %v2461_v33, %v8404_v61  ;;  %v1908_v9 = vpop.f32.mrf.mxu0  ;;  %v6289_v10 = vld [vmem:[%s7900_s28 + $0x200] sm:$0xf]  ;;  %v7284_v49 = vld [vmem:[%s7900_s28 + $0x204] sm:$0xf0] }
 0x2a1   : > { %v1909_v15 = vadd.f32 %v1908_v9, %v8125_v2  ;;  %v8881_v35 = vor.u32 %v7284_v49, %v6289_v10 }
 0x2a2   : > { %v2751_v62 = vadd.f32 %v8781_v42, %v2462_v53  ;;  %v2205_v40 = vpop.f32.mrf.mxu1 }
 0x2a3   : > { %v8871_v22 = vadd.f32 %v2197_v24, %v1909_v15  ;;  %v3346_v24 = vpack.c.bf16 %v3290_v13, %v3290_v13  ;;  %v3014_v13 = vmax.f32 %v8703_v60, 0.0 }
 0x2a4   : > { %v3013_v32 = vmax.f32 %v2751_v62, 0.0  ;;  %2503 = vmatmul.bf16.gmra.mxu2 %v8696_v54 }
 0x2a5   : > { %6592 = vmatmul.msk.bf16.gmra.mxu1 %vm1613_vm0, %v8869_v4 }
 0x2a6   : > { %v3199_v33 = vmax.f32 %v3012_v30, %v3013_v32  ;;  %v8886_v32 = vpop.f32.mrf.mxu3 }
 0x2a7   : > { %v2464_v42 = vpop.f32.mrf.mxu2 }
 0x2a8   : > { %v3291_v48 = vmax.f32 %v8792_v14, %v3199_v33  ;;  %v2465_v6 = vadd.f32 %v2464_v42, %v8404_v61  ;;  %v1911_v63 = vpop.f32.mrf.mxu0  ;;  %v3442_v14 = vunpack.c.l.b16 %v3346_v24  ;;  %v7287_v42 = vld [vmem:[%s7900_s28 + $0x224] sm:$0xf] }
 0x2a9   : > { %v1912_v54 = vadd.f32 %v1911_v63, %v8125_v2 }
 0x2aa   : > { %v3347_v53 = vpack.c.bf16 %v3291_v48, %v3291_v48  ;;  %v2754_v9 = vadd.f32 %v8802_v1, %v2465_v6  ;;  %v2207_v5 = vpop.f32.mrf.mxu1  ;;  %v6307_v48 = vld [vmem:[%s7900_s28 + $0x228] sm:$0xf0] }
 0x2ab   : > { %v8889_v15 = vadd.f32 %v2200_v55, %v1912_v54  ;;  %1950 = vmatmul.bf16.gmra.mxu0 %v8881_v35  ;;  %v8903_v24 = vor.u32 %v7287_v42, %v6307_v48 }
 0x2ac   : > { %v3443_v62 = vunpack.c.l.b16 %v3347_v53  ;;  %v3015_v30 = vmax.f32 %v2754_v9, 0.0 }
 0x2ae   : > { %v8893_v10 = vpack.c.b16 %v3443_v62, %v3442_v14  ;;  %v3200_v49 = vmax.f32 %v3014_v13, %v3015_v30  ;;  %v8900_v54 = vpop.f32.mrf.mxu3  ;;  %v3016_v13 = vmax.f32 %v8717_v47, 0.0  ;;  %v7286_v62 = vld [vmem:[%s7900_s28 + $0x214] sm:$0xf0]  ;;  %6648 = vmatmul.msk.bf16.gmra.mxu3 %vm1613_vm0, %v8869_v4 }
 0x2af   : > { %v2466_v33 = vpop.f32.mrf.mxu2 }
 0x2b0   : > { %v3292_v1 = vmax.f32 %v8809_v3, %v3200_v49  ;;  %v2467_v55 = vadd.f32 %v2466_v33, %v8404_v61  ;;  %v1913_v6 = vpop.f32.mrf.mxu0  ;;  %v6297_v3 = vld [vmem:[%s7900_s28 + $0x210] sm:$0xf] }
 0x2b1   : > { %v1914_v63 = vadd.f32 %v1913_v6, %v8125_v2  ;;  %v8915_v49 = vor.u32 %v7286_v62, %v6297_v3 }
 0x2b2   : > { %v2756_v60 = vadd.f32 %v8821_v34, %v2467_v55  ;;  %v2210_v9 = vpop.f32.mrf.mxu1 }
 0x2b3   : > { %v8905_v53 = vadd.f32 %v2202_v56, %v1914_v63  ;;  %v3348_v56 = vpack.c.bf16 %v3292_v1, %v3292_v1  ;;  %v3018_v1 = vmax.f32 %v8735_v25, 0.0 }
 0x2b4   : > { %v3017_v14 = vmax.f32 %v2756_v60, 0.0  ;;  %2508 = vmatmul.bf16.gmra.mxu2 %v8727_v29 }
 0x2b5   : > { %6593 = vmatmul.msk.bf16.gmra.mxu1 %vm1613_vm0, %v8903_v24 }
 0x2b6   : > { %v3201_v30 = vmax.f32 %v3016_v13, %v3017_v14  ;;  %v8920_v48 = vpop.f32.mrf.mxu3 }
 0x2b7   : > { %v2469_v34 = vpop.f32.mrf.mxu2 }
 0x2b8   : > { %v3293_v33 = vmax.f32 %v8838_v41, %v3201_v30  ;;  %v2470_v47 = vadd.f32 %v2469_v34, %v8404_v61  ;;  %v1916_v42 = vpop.f32.mrf.mxu0  ;;  %v3444_v41 = vunpack.c.l.b16 %v3348_v56  ;;  %v7289_v30 = vld [vmem:[%s7900_s28 + $0x234] sm:$0xf]  ;;  %v6315_v34 = vld [vmem:[%s7900_s28 + $0x238] sm:$0xf0] }
 0x2b9   : > { %v1917_v29 = vadd.f32 %v1916_v42, %v8125_v2  ;;  %v8938_v56 = vor.u32 %v7289_v30, %v6315_v34 }
 0x2ba   : > { %v3349_v55 = vpack.c.bf16 %v3293_v33, %v3293_v33  ;;  %v2759_v6 = vadd.f32 %v8848_v50, %v2470_v47  ;;  %v2212_v8 = vpop.f32.mrf.mxu1 }
 0x2bb   : > { %v8923_v63 = vadd.f32 %v2205_v40, %v1917_v29  ;;  %1955 = vmatmul.bf16.gmra.mxu0 %v8915_v49 }
 0x2bc   : > { %v3445_v60 = vunpack.c.l.b16 %v3349_v55  ;;  %v3019_v13 = vmax.f32 %v2759_v6, 0.0  ;;  %v3020_v55 = vmax.f32 %v8751_v19, 0.0 }
 0x2be   : > { %v8927_v14 = vpack.c.b16 %v3445_v60, %v3444_v41  ;;  %v8929_v3 = vmax.f32 %v3018_v1, %v3019_v13  ;;  %v8935_v47 = vpop.f32.mrf.mxu3  ;;  %v6305_v1 = vld [vmem:[%s7900_s28 + $0x220] sm:$0xf]  ;;  %v7288_v41 = vld [vmem:[%s7900_s28 + $0x224] sm:$0xf0]  ;;  %6649 = vmatmul.msk.bf16.gmra.mxu3 %vm1613_vm0, %v8903_v24 }
 0x2bf   : > { %v2471_v62 = vpop.f32.mrf.mxu2 }
 0x2c0   : > { %11727 = vst [vmem:[#allocation44_spill] sm:$0xff] %v8927_v14  ;;  %v2472_v50 = vadd.f32 %v2471_v62, %v8404_v61  ;;  %v1918_v40 = vpop.f32.mrf.mxu0 }
 0x2c1   : > { %v1919_v33 = vadd.f32 %v1918_v40, %v8125_v2 }
 0x2c2   : > { %v2761_v25 = vadd.f32 %v8866_v45, %v2472_v50  ;;  %v2215_v29 = vpop.f32.mrf.mxu1 }
 0x2c3   : > { %v8940_v42 = vadd.f32 %v2207_v5, %v1919_v33  ;;  %v8952_v5 = vor.u32 %v7288_v41, %v6305_v1 }
 0x2c4   : > { %v3021_v6 = vmax.f32 %v2761_v25, 0.0  ;;  %2513 = vmatmul.bf16.gmra.mxu2 %v8761_v39 }
 0x2c5   : > { %6594 = vmatmul.msk.bf16.gmra.mxu1 %vm1613_vm0, %v8938_v56 }
 0x2c6   : > { %v8946_v60 = vmax.f32 %v3020_v55, %v3021_v6  ;;  %v8956_v62 = vpop.f32.mrf.mxu3  ;;  %v7291_v55 = vld [vmem:[%s7900_s28 + $0x244] sm:$0xf]  ;;  %v6323_v6 = vld [vmem:[%s7900_s28 + $0x248] sm:$0xf0] }
 0x2c7   : > { %v2474_v45 = vpop.f32.mrf.mxu2 }
 0x2c8   : > { %v2475_v19 = vadd.f32 %v2474_v45, %v8404_v61  ;;  %v1921_v13 = vpop.f32.mrf.mxu0 }
 0x2c9   : > { %v1922_v39 = vadd.f32 %v1921_v13, %v8125_v2 }
 0x2ca   : > { %v2764_v30 = vadd.f32 %v8886_v32, %v2475_v19  ;;  %v2217_v50 = vpop.f32.mrf.mxu1  ;;  %v8972_v19 = vor.u32 %v7291_v55, %v6323_v6 }
 0x2cb   : > { %v8959_v34 = vadd.f32 %v2210_v9, %v1922_v39  ;;  %1960 = vmatmul.bf16.gmra.mxu0 %v8952_v5  ;;  %v3024_v39 = vmax.f32 %v8786_v20, 0.0 }
 0x2cc   : > { %v3023_v40 = vmax.f32 %v2764_v30, 0.0 }
 0x2ce   : > { %v8963_v33 = vmax.f32 %v3022_v18, %v3023_v40  ;;  %v8969_v9 = vpop.f32.mrf.mxu3  ;;  %v6313_v18 = vld [vmem:[%s7900_s28 + $0x230] sm:$0xf]  ;;  %v7290_v40 = vld [vmem:[%s7900_s28 + $0x234] sm:$0xf0]  ;;  %6650 = vmatmul.msk.bf16.gmra.mxu3 %vm1613_vm0, %v8938_v56 }
 0x2cf   : > { %v2476_v25 = vpop.f32.mrf.mxu2 }
 0x2d0   : > { %v2477_v1 = vadd.f32 %v2476_v25, %v8404_v61  ;;  %v1923_v41 = vpop.f32.mrf.mxu0 }
 0x2d1   : > { %v1924_v32 = vadd.f32 %v1923_v41, %v8125_v2 }
 0x2d2   : > { %v2766_v45 = vadd.f32 %v8900_v54, %v2477_v1  ;;  %v2220_v13 = vpop.f32.mrf.mxu1 }
 0x2d3   : > { %v8974_v38 = vadd.f32 %v2212_v8, %v1924_v32  ;;  %v8986_v8 = vor.u32 %v7290_v40, %v6313_v18  ;;  %v7293_v18 = vld [vmem:[%s7900_s28 + $0x254] sm:$0xf]  ;;  %v6331_v40 = vld [vmem:[%s7900_s28 + $0x258] sm:$0xf0] }
 0x2d4   : > { %v3025_v30 = vmax.f32 %v2766_v45, 0.0  ;;  %2518 = vmatmul.bf16.gmra.mxu2 %v8798_v43 }
 0x2d5   : > { %6595 = vmatmul.msk.bf16.gmra.mxu1 %vm1613_vm0, %v8972_v19 }
 0x2d6   : > { %v8980_v25 = vmax.f32 %v3024_v39, %v3025_v30  ;;  %v8990_v6 = vpop.f32.mrf.mxu3 }
 0x2d7   : > { %v2479_v54 = vpop.f32.mrf.mxu2 }
 0x2d8   : > { %v2480_v20 = vadd.f32 %v2479_v54, %v8404_v61  ;;  %v1926_v55 = vpop.f32.mrf.mxu0 }
 0x2d9   : > { %v1927_v43 = vadd.f32 %v1926_v55, %v8125_v2 }
 0x2da   : > { %v2769_v1 = vadd.f32 %v8920_v48, %v2480_v20  ;;  %v2222_v32 = vpop.f32.mrf.mxu1 }
 0x2db   : > { %v8993_v41 = vadd.f32 %v2215_v29, %v1927_v43  ;;  %1965 = vmatmul.bf16.gmra.mxu0 %v8986_v8  ;;  %v9005_v43 = vor.u32 %v7293_v18, %v6331_v40 }
 0x2dc   : > { %v3027_v45 = vmax.f32 %v2769_v1, 0.0 }
 0x2de   : > { %v3206_v39 = vmax.f32 %v3026_v7, %v3027_v45  ;;  %v9002_v29 = vpop.f32.mrf.mxu3  ;;  %v3028_v7 = vmax.f32 %v8826_v12, 0.0  ;;  %6651 = vmatmul.msk.bf16.gmra.mxu3 %vm1613_vm0, %v8972_v19 }
 0x2df   : > { %v2481_v30 = vpop.f32.mrf.mxu2 }
 0x2e0   : > { %v3294_v54 = vmax.f32 %v8929_v3, %v3206_v39  ;;  %v2482_v55 = vadd.f32 %v2481_v30, %v8404_v61  ;;  %v1928_v14 = vpop.f32.mrf.mxu0  ;;  %v6321_v3 = vld [vmem:[%s7900_s28 + $0x240] sm:$0xf]  ;;  %v7292_v39 = vld [vmem:[%s7900_s28 + $0x244] sm:$0xf0] }
 0x2e1   : > { %v1929_v48 = vadd.f32 %v1928_v14, %v8125_v2 }
 0x2e2   : > { %v2771_v20 = vadd.f32 %v8935_v47, %v2482_v55  ;;  %v9009_v1 = vpop.f32.mrf.mxu1  ;;  %v9019_v47 = vor.u32 %v7292_v39, %v6321_v3 }
 0x2e3   : > { %v9007_v46 = vadd.f32 %v2217_v50, %v1929_v48  ;;  %v3350_v50 = vpack.c.bf16 %v3294_v54, %v3294_v54 }
 0x2e4   : > { %v3029_v45 = vmax.f32 %v2771_v20, 0.0  ;;  %2523 = vmatmul.bf16.gmra.mxu2 %v8844_v21 }
 0x2e5   : > { %6596 = vmatmul.msk.bf16.gmra.mxu1 %vm1613_vm0, %v9005_v43  ;;  %v3446_v54 = vunpack.c.l.b16 %v3350_v50 }
 0x2e6   : > { %v3207_v30 = vmax.f32 %v3028_v7, %v3029_v45  ;;  %v9024_v55 = vpop.f32.mrf.mxu3 }
 0x2e7   : > { %v2484_v14 = vpop.f32.mrf.mxu2 }
 0x2e8   : > { %v3295_v18 = vmax.f32 %v8946_v60, %v3207_v30  ;;  %v2485_v12 = vadd.f32 %v2484_v14, %v8404_v61  ;;  %v1931_v40 = vpop.f32.mrf.mxu0  ;;  %v3030_v60 = vmax.f32 %v8851_v44, 0.0  ;;  %v6769_v14 = vld [vmem:[%s11652_s3 + $0xc0] sm:$0xf] }
 0x2e9   : > { %v1932_v21 = vadd.f32 %v1931_v40, %v8125_v2  ;;  %v6339_v40 = vld [vmem:[%s7900_s28 + $0x268] sm:$0xf0] }
 0x2ea   : > { %v3351_v48 = vpack.c.bf16 %v3295_v18, %v3295_v18  ;;  %v2774_v20 = vadd.f32 %v8956_v62, %v2485_v12  ;;  %v9030_v4 = vpop.f32.mrf.mxu1  ;;  %v7376_v62 = vld [vmem:[%s11652_s3 + $0xc4] sm:$0xf0]  ;;  %v7295_v12 = vld [vmem:[%s7900_s28 + $0x264] sm:$0xf] }
 0x2eb   : > { %v9027_v7 = vadd.f32 %v2220_v13, %v1932_v21  ;;  %1970 = vmatmul.bf16.gmra.mxu0 %v9019_v47  ;;  %v6770_v18 = vor.u32 %v7376_v62, %v6769_v14  ;;  %v3032_v62 = vmax.f32 %v8871_v22, 0.0 }
 0x2ec   : > { %v3447_v45 = vunpack.c.l.b16 %v3351_v48  ;;  %v3031_v3 = vmax.f32 %v2774_v20, 0.0  ;;  %v6705_v48 = vld [vmem:[%s11652_s3 + $0x40] sm:$0xf]  ;;  %v7360_v20 = vld [vmem:[%s11652_s3 + $0x44] sm:$0xf0] }
 0x2ed   : > { %4152 = vmatpush.bf16.msrb.mxu3 %v6770_v18 }
 0x2ee   : > { %v9033_v39 = vpack.c.b16 %v3447_v45, %v3446_v54  ;;  %v3208_v30 = vmax.f32 %v3030_v60, %v3031_v3  ;;  %v6706_v54 = vor.u32 %v7360_v20, %v6705_v48  ;;  %v9052_v45 = vpop.f32.mrf.mxu3  ;;  %v9055_v3 = vor.u32 %v7295_v12, %v6339_v40  ;;  %6652 = vmatmul.msk.bf16.gmra.mxu3 %vm1613_vm0, %v9005_v43 }
 0x2ef   : > { %v2486_v13 = vpop.f32.mrf.mxu2 }
 0x2f0   : > { %11728 = vst [vmem:[#allocation45_spill] sm:$0xff] %v9033_v39  ;;  %v3296_v44 = vmax.f32 %v8963_v33, %v3208_v30  ;;  %v2487_v50 = vadd.f32 %v2486_v13, %v8404_v61  ;;  %v1933_v21 = vpop.f32.mrf.mxu0  ;;  %4043 = vmatpush.bf16.msrb.mxu1 %v6706_v54  ;;  %v6329_v39 = vld [vmem:[%s7900_s28 + $0x250] sm:$0xf] }
 0x2f1   : > { %v1934_v60 = vadd.f32 %v1933_v21, %v8125_v2  ;;  %v9067_v18 = vor.u32 %v7294_v52, %v6329_v39 }
 0x2f2   : > { %v2776_v33 = vadd.f32 %v8969_v9, %v2487_v50  ;;  %v2230_v14 = vpop.f32.mrf.mxu1 }
 0x2f3   : > { %v9057_v30 = vadd.f32 %v2222_v32, %v1934_v60  ;;  %v3352_v32 = vpack.c.bf16 %v3296_v44, %v3296_v44 }
 0x2f4   : > { %v3033_v13 = vmax.f32 %v2776_v33, 0.0  ;;  %2528 = vmatmul.bf16.gmra.mxu2 %v8881_v35 }
 0x2f5   : > { %6597 = vmatmul.msk.bf16.gmra.mxu1 %vm1613_vm0, %v9055_v3  ;;  %v3448_v39 = vunpack.c.l.b16 %v3352_v32 }
 0x2f6   : > { %v3209_v21 = vmax.f32 %v3032_v62, %v3033_v13  ;;  %v9072_v50 = vpop.f32.mrf.mxu3  ;;  %v7297_v13 = vld [vmem:[%s7900_s28 + $0x274] sm:$0xf] }
 0x2f7   : > { %v2489_v9 = vpop.f32.mrf.mxu2 }
 0x2f8   : > { %v3297_v12 = vmax.f32 %v8980_v25, %v3209_v21  ;;  %v2490_v22 = vadd.f32 %v2489_v9, %v8404_v61  ;;  %v1936_v40 = vpop.f32.mrf.mxu0  ;;  %v3034_v25 = vmax.f32 %v8889_v15, 0.0 }
 0x2f9   : > { %v1937_v35 = vadd.f32 %v1936_v40, %v8125_v2 }
 0x2fa   : > { %v3353_v48 = vpack.c.bf16 %v3297_v12, %v3297_v12  ;;  %v2779_v20 = vadd.f32 %v8990_v6, %v2490_v22  ;;  %v2232_v52 = vpop.f32.mrf.mxu1  ;;  %v6347_v6 = vld [vmem:[%s7900_s28 + $0x278] sm:$0xf0] }
 0x2fb   : > { %v9076_v24 = vadd.f32 %v9009_v1, %v1937_v35  ;;  %1975 = vmatmul.bf16.gmra.mxu0 %v9067_v18  ;;  %v9091_v32 = vor.u32 %v7297_v13, %v6347_v6  ;;  %v3036_v35 = vmax.f32 %v8905_v53, 0.0  ;;  %v3038_v6 = vmax.f32 %v8923_v63, 0.0  ;;  %v6345_v63 = vld [vmem:[%s7900_s28 + $0x270] sm:$0xf] }
 0x2fc   : > { %v3449_v44 = vunpack.c.l.b16 %v3353_v48  ;;  %v3035_v60 = vmax.f32 %v2779_v20, 0.0  ;;  %v6337_v20 = vld [vmem:[%s7900_s28 + $0x260] sm:$0xf] }
 0x2fe   : > { %v9080_v54 = vpack.c.b16 %v3449_v44, %v3448_v39  ;;  %v9082_v33 = vmax.f32 %v3034_v25, %v3035_v60  ;;  %v9088_v12 = vpop.f32.mrf.mxu3  ;;  %v7296_v25 = vld [vmem:[%s7900_s28 + $0x264] sm:$0xf0]  ;;  %6653 = vmatmul.msk.bf16.gmra.mxu3 %vm1613_vm0, %v9055_v3 }
 0x2ff   : > { %v2491_v62 = vpop.f32.mrf.mxu2 }
 0x300   : > { %11729 = vst [vmem:[#allocation46_spill] sm:$0xff] %v9080_v54  ;;  %v2492_v1 = vadd.f32 %v2491_v62, %v8404_v61  ;;  %v1938_v21 = vpop.f32.mrf.mxu0 }
 0x301   : > { %v1939_v9 = vadd.f32 %v1938_v21, %v8125_v2 }
 0x302   : > { %v2781_v15 = vadd.f32 %v9002_v29, %v2492_v1  ;;  %v2235_v40 = vpop.f32.mrf.mxu1 }
 0x303   : > { %v9094_v22 = vadd.f32 %v9030_v4, %v1939_v9  ;;  %v9106_v4 = vor.u32 %v7296_v25, %v6337_v20 }
 0x304   : > { %v3037_v48 = vmax.f32 %v2781_v15, 0.0  ;;  %2533 = vmatmul.bf16.gmra.mxu2 %v8915_v49  ;;  %v7299_v15 = vld [vmem:[%s7900_s28 + $0x284] sm:$0xf] }
 0x305   : > { %6598 = vmatmul.msk.bf16.gmra.mxu1 %vm1613_vm0, %v9091_v32 }
 0x306   : > { %v9100_v39 = vmax.f32 %v3036_v35, %v3037_v48  ;;  %v9110_v60 = vpop.f32.mrf.mxu3  ;;  %v6355_v35 = vld [vmem:[%s7900_s28 + $0x288] sm:$0xf0] }
 0x307   : > { %v2494_v29 = vpop.f32.mrf.mxu2 }
 0x308   : > { %v2495_v53 = vadd.f32 %v2494_v29, %v8404_v61  ;;  %v1941_v44 = vpop.f32.mrf.mxu0  ;;  %v9126_v29 = vor.u32 %v7299_v15, %v6355_v35 }
 0x309   : > { %v1942_v49 = vadd.f32 %v1941_v44, %v8125_v2  ;;  %v7298_v44 = vld [vmem:[%s7900_s28 + $0x274] sm:$0xf0] }
 0x30a   : > { %v2784_v62 = vadd.f32 %v9024_v55, %v2495_v53  ;;  %v2237_v56 = vpop.f32.mrf.mxu1 }
 0x30b   : > { %v9113_v13 = vadd.f32 %v2230_v14, %v1942_v49  ;;  %1980 = vmatmul.bf16.gmra.mxu0 %v9106_v4 }
 0x30c   : > { %v3039_v1 = vmax.f32 %v2784_v62, 0.0  ;;  %v3040_v62 = vmax.f32 %v8940_v42, 0.0 }
 0x30e   : > { %v9117_v21 = vmax.f32 %v3038_v6, %v3039_v1  ;;  %v9123_v14 = vpop.f32.mrf.mxu3  ;;  %v6913_v1 = vld [vmem:[%s11652_s3 + $0x1e0] sm:$0xf]  ;;  %6654 = vmatmul.msk.bf16.gmra.mxu3 %vm1613_vm0, %v9091_v32 }
 0x30f   : > { %v2496_v9 = vpop.f32.mrf.mxu2 }
 0x310   : > { %v2497_v48 = vadd.f32 %v2496_v9, %v8404_v61  ;;  %v1943_v20 = vpop.f32.mrf.mxu0 }
 0x311   : > { %v1944_v55 = vadd.f32 %v1943_v20, %v8125_v2 }
 0x312   : > { %v2786_v25 = vadd.f32 %v9052_v45, %v2497_v48  ;;  %v2240_v49 = vpop.f32.mrf.mxu1  ;;  %v7412_v45 = vld [vmem:[%s11652_s3 + $0x1e4] sm:$0xf0] }
 0x313   : > { %v9128_v53 = vadd.f32 %v2232_v52, %v1944_v55  ;;  %v6914_v9 = vor.u32 %v7412_v45, %v6913_v1  ;;  %v7301_v1 = vld [vmem:[%s7900_s28 + $0x294] sm:$0xf]  ;;  %v6363_v45 = vld [vmem:[%s7900_s28 + $0x298] sm:$0xf0] }
 0x314   : > { %v3041_v6 = vmax.f32 %v2786_v25, 0.0  ;;  %2538 = vmatmul.bf16.gmra.mxu2 %v8952_v5  ;;  %v9146_v5 = vor.u32 %v7298_v44, %v6345_v63 }
 0x315   : > { %6599 = vmatmul.msk.bf16.gmra.mxu1 %vm1613_vm0, %v9126_v29  ;;  %4368 = vmatpush.bf16.msra.mxu2 %v6914_v9 }
 0x316   : > { %v9140_v15 = vmax.f32 %v3040_v62, %v3041_v6  ;;  %v9150_v20 = vpop.f32.mrf.mxu3  ;;  %v3042_v62 = vmax.f32 %v8959_v34, 0.0 }
 0x317   : > { %v2499_v42 = vpop.f32.mrf.mxu2 }
 0x318   : > { %v2500_v52 = vadd.f32 %v2499_v42, %v8404_v61  ;;  %v1946_v35 = vpop.f32.mrf.mxu0 }
 0x319   : > { %v1947_v48 = vadd.f32 %v1946_v35, %v8125_v2 }
 0x31a   : > { %v2789_v55 = vadd.f32 %v9072_v50, %v2500_v52  ;;  %v2242_v19 = vpop.f32.mrf.mxu1 }
 0x31b   : > { %v9153_v25 = vadd.f32 %v2235_v40, %v1947_v48  ;;  %1985 = vmatmul.bf16.gmra.mxu0 %v9146_v5  ;;  %v9165_v48 = vor.u32 %v7301_v1, %v6363_v45 }
 0x31c   : > { %v3043_v6 = vmax.f32 %v2789_v55, 0.0 }
 0x31e   : > { %v3214_v63 = vmax.f32 %v3042_v62, %v3043_v6  ;;  %v9162_v40 = vpop.f32.mrf.mxu3  ;;  %v3044_v62 = vmax.f32 %v8974_v38, 0.0  ;;  %6655 = vmatmul.msk.bf16.gmra.mxu3 %vm1613_vm0, %v9126_v29 }
 0x31f   : > { %v2501_v44 = vpop.f32.mrf.mxu2 }
 0x320   : > { %v3298_v9 = vmax.f32 %v9082_v33, %v3214_v63  ;;  %v2502_v42 = vadd.f32 %v2501_v44, %v8404_v61  ;;  %v1948_v35 = vpop.f32.mrf.mxu0  ;;  %v6353_v33 = vld [vmem:[%s7900_s28 + $0x280] sm:$0xf]  ;;  %v7300_v63 = vld [vmem:[%s7900_s28 + $0x284] sm:$0xf0] }
 0x321   : > { %v1949_v50 = vadd.f32 %v1948_v35, %v8125_v2  ;;  %v9177_v1 = vor.u32 %v7300_v63, %v6353_v33 }
 0x322   : > { %v2791_v52 = vadd.f32 %v9088_v12, %v2502_v42  ;;  %v2245_v55 = vpop.f32.mrf.mxu1 }
 0x323   : > { %v9167_v34 = vadd.f32 %v2237_v56, %v1949_v50  ;;  %v3354_v56 = vpack.c.bf16 %v3298_v9, %v3298_v9  ;;  %v3046_v9 = vmax.f32 %v8993_v41, 0.0 }
 0x324   : > { %v3045_v6 = vmax.f32 %v2791_v52, 0.0  ;;  %2543 = vmatmul.bf16.gmra.mxu2 %v8986_v8 }
 0x325   : > { %6600 = vmatmul.msk.bf16.gmra.mxu1 %vm1613_vm0, %v9165_v48 }
 0x326   : > { %v3215_v44 = vmax.f32 %v3044_v62, %v3045_v6  ;;  %v9182_v35 = vpop.f32.mrf.mxu3 }
 0x327   : > { %v2504_v12 = vpop.f32.mrf.mxu2 }
 0x328   : > { %v3299_v45 = vmax.f32 %v9100_v39, %v3215_v44  ;;  %v2505_v38 = vadd.f32 %v2504_v12, %v8404_v61  ;;  %v1951_v42 = vpop.f32.mrf.mxu0  ;;  %v3450_v39 = vunpack.c.l.b16 %v3354_v56 }
 0x329   : > { %v1952_v8 = vadd.f32 %v1951_v42, %v8125_v2  ;;  %v7303_v42 = vld [vmem:[%s7900_s28 + $0x2a4] sm:$0xf] }
 0x32a   : > { %v3355_v50 = vpack.c.bf16 %v3299_v45, %v3299_v45  ;;  %v2794_v52 = vadd.f32 %v9110_v60, %v2505_v38  ;;  %v2247_v43 = vpop.f32.mrf.mxu1  ;;  %v6371_v45 = vld [vmem:[%s7900_s28 + $0x2a8] sm:$0xf0] }
 0x32b   : > { %v9185_v62 = vadd.f32 %v2240_v49, %v1952_v8  ;;  %1990 = vmatmul.bf16.gmra.mxu0 %v9177_v1  ;;  %v9199_v56 = vor.u32 %v7303_v42, %v6371_v45 }
 0x32c   : > { %v3451_v6 = vunpack.c.l.b16 %v3355_v50  ;;  %v3047_v33 = vmax.f32 %v2794_v52, 0.0 }
 0x32e   : > { %v9189_v63 = vpack.c.b16 %v3451_v6, %v3450_v39  ;;  %v3216_v44 = vmax.f32 %v3046_v9, %v3047_v33  ;;  %v9196_v54 = vpop.f32.mrf.mxu3  ;;  %v3048_v9 = vmax.f32 %v9007_v46, 0.0  ;;  %v7302_v6 = vld [vmem:[%s7900_s28 + $0x294] sm:$0xf0]  ;;  %6656 = vmatmul.msk.bf16.gmra.mxu3 %vm1613_vm0, %v9165_v48 }
 0x32f   : > { %v2506_v12 = vpop.f32.mrf.mxu2 }
 0x330   : > { %11730 = vst [vmem:[#allocation47_spill] sm:$0xff] %v9189_v63  ;;  %v3300_v60 = vmax.f32 %v9117_v21, %v3216_v44  ;;  %v2507_v49 = vadd.f32 %v2506_v12, %v8404_v61  ;;  %v1953_v38 = vpop.f32.mrf.mxu0  ;;  %v6361_v21 = vld [vmem:[%s7900_s28 + $0x290] sm:$0xf] }
 0x331   : > { %v1954_v8 = vadd.f32 %v1953_v38, %v8125_v2  ;;  %v9211_v44 = vor.u32 %v7302_v6, %v6361_v21 }
 0x332   : > { %v2796_v41 = vadd.f32 %v9123_v14, %v2507_v49  ;;  %v2250_v52 = vpop.f32.mrf.mxu1 }
 0x333   : > { %v9201_v50 = vadd.f32 %v2242_v19, %v1954_v8  ;;  %v3356_v19 = vpack.c.bf16 %v3300_v60, %v3300_v60  ;;  %v3050_v60 = vmax.f32 %v9027_v7, 0.0 }
 0x334   : > { %v3049_v39 = vmax.f32 %v2796_v41, 0.0  ;;  %2548 = vmatmul.bf16.gmra.mxu2 %v9019_v47 }
 0x335   : > { %6601 = vmatmul.msk.bf16.gmra.mxu1 %vm1613_vm0, %v9199_v56 }
 0x336   : > { %v3217_v33 = vmax.f32 %v3048_v9, %v3049_v39  ;;  %v9216_v45 = vpop.f32.mrf.mxu3 }
 0x337   : > { %v2509_v14 = vpop.f32.mrf.mxu2 }
 0x338   : > { %v3301_v12 = vmax.f32 %v9140_v15, %v3217_v33  ;;  %v2510_v46 = vadd.f32 %v2509_v14, %v8404_v61  ;;  %v1956_v42 = vpop.f32.mrf.mxu0  ;;  %v3452_v15 = vunpack.c.l.b16 %v3356_v19  ;;  %v7305_v33 = vld [vmem:[%s7900_s28 + $0x2b4] sm:$0xf]  ;;  %v6379_v14 = vld [vmem:[%s7900_s28 + $0x2b8] sm:$0xf0] }
 0x339   : > { %v1957_v47 = vadd.f32 %v1956_v42, %v8125_v2  ;;  %v9234_v19 = vor.u32 %v7305_v33, %v6379_v14 }
 0x33a   : > { %v3357_v49 = vpack.c.bf16 %v3301_v12, %v3301_v12  ;;  %v2799_v38 = vadd.f32 %v9150_v20, %v2510_v46  ;;  %v2252_v3 = vpop.f32.mrf.mxu1 }
 0x33b   : > { %v9219_v8 = vadd.f32 %v2245_v55, %v1957_v47  ;;  %1995 = vmatmul.bf16.gmra.mxu0 %v9211_v44 }
 0x33c   : > { %v3453_v41 = vunpack.c.l.b16 %v3357_v49  ;;  %v3051_v9 = vmax.f32 %v2799_v38, 0.0  ;;  %v3052_v49 = vmax.f32 %v9057_v30, 0.0 }
 0x33e   : > { %v9223_v39 = vpack.c.b16 %v3453_v41, %v3452_v15  ;;  %v9225_v21 = vmax.f32 %v3050_v60, %v3051_v9  ;;  %v9231_v46 = vpop.f32.mrf.mxu3  ;;  %v6369_v60 = vld [vmem:[%s7900_s28 + $0x2a0] sm:$0xf]  ;;  %v7304_v15 = vld [vmem:[%s7900_s28 + $0x2a4] sm:$0xf0]  ;;  %6657 = vmatmul.msk.bf16.gmra.mxu3 %vm1613_vm0, %v9199_v56 }
 0x33f   : > { %v2511_v6 = vpop.f32.mrf.mxu2 }
 0x340   : > { %11731 = vst [vmem:[#allocation48_spill] sm:$0xff] %v9223_v39  ;;  %v2512_v20 = vadd.f32 %v2511_v6, %v8404_v61  ;;  %v1958_v55 = vpop.f32.mrf.mxu0 }
 0x341   : > { %v1959_v12 = vadd.f32 %v1958_v55, %v8125_v2 }
 0x342   : > { %v2801_v7 = vadd.f32 %v9162_v40, %v2512_v20  ;;  %v2255_v47 = vpop.f32.mrf.mxu1  ;;  %v3054_v20 = vmax.f32 %v9076_v24, 0.0  ;;  %v6377_v24 = vld [vmem:[%s7900_s28 + $0x2b0] sm:$0xf] }
 0x343   : > { %v9236_v42 = vadd.f32 %v2247_v43, %v1959_v12  ;;  %v9248_v43 = vor.u32 %v7304_v15, %v6369_v60 }
 0x344   : > { %v3053_v38 = vmax.f32 %v2801_v7, 0.0  ;;  %2553 = vmatmul.bf16.gmra.mxu2 %v9067_v18 }
 0x345   : > { %6602 = vmatmul.msk.bf16.gmra.mxu1 %vm1613_vm0, %v9234_v19 }
 0x346   : > { %v9242_v41 = vmax.f32 %v3052_v49, %v3053_v38  ;;  %v9252_v6 = vpop.f32.mrf.mxu3  ;;  %v7307_v49 = vld [vmem:[%s7900_s28 + $0x2c4] sm:$0xf]  ;;  %v6387_v38 = vld [vmem:[%s7900_s28 + $0x2c8] sm:$0xf0] }
 0x347   : > { %v2514_v40 = vpop.f32.mrf.mxu2 }
 0x348   : > { %v2515_v30 = vadd.f32 %v2514_v40, %v8404_v61  ;;  %v1961_v9 = vpop.f32.mrf.mxu0 }
 0x349   : > { %v1962_v18 = vadd.f32 %v1961_v9, %v8125_v2 }
 0x34a   : > { %v2804_v33 = vadd.f32 %v9182_v35, %v2515_v30  ;;  %v2257_v32 = vpop.f32.mrf.mxu1  ;;  %v9268_v30 = vor.u32 %v7307_v49, %v6387_v38 }
 0x34b   : > { %v9255_v14 = vadd.f32 %v2250_v52, %v1962_v18  ;;  %2000 = vmatmul.bf16.gmra.mxu0 %v9248_v43  ;;  %v7306_v18 = vld [vmem:[%s7900_s28 + $0x2b4] sm:$0xf0] }
 0x34c   : > { %v3055_v55 = vmax.f32 %v2804_v33, 0.0 }
 0x34e   : > { %v9259_v12 = vmax.f32 %v3054_v20, %v3055_v55  ;;  %v9265_v52 = vpop.f32.mrf.mxu3  ;;  %v3056_v20 = vmax.f32 %v9094_v22, 0.0  ;;  %6658 = vmatmul.msk.bf16.gmra.mxu3 %vm1613_vm0, %v9234_v19 }
 0x34f   : > { %v2516_v7 = vpop.f32.mrf.mxu2 }
 0x350   : > { %v2517_v60 = vadd.f32 %v2516_v7, %v8404_v61  ;;  %v1963_v15 = vpop.f32.mrf.mxu0  ;;  %v6761_v7 = vld [vmem:[%s11652_s3 + $0xb0] sm:$0xf] }
 0x351   : > { %v1964_v35 = vadd.f32 %v1963_v15, %v8125_v2 }
 0x352   : > { %v2806_v40 = vadd.f32 %v9196_v54, %v2517_v60  ;;  %v2260_v33 = vpop.f32.mrf.mxu1  ;;  %v7374_v54 = vld [vmem:[%s11652_s3 + $0xb4] sm:$0xf0] }
 0x353   : > { %v9270_v9 = vadd.f32 %v2252_v3, %v1964_v35  ;;  %v6762_v49 = vor.u32 %v7374_v54, %v6761_v7  ;;  %v9288_v3 = vor.u32 %v7306_v18, %v6377_v24  ;;  %v3058_v24 = vmax.f32 %v9113_v13, 0.0  ;;  %v6697_v7 = vld [vmem:[%s11652_s3 + $0x30] sm:$0xf]  ;;  %v7358_v54 = vld [vmem:[%s11652_s3 + $0x34] sm:$0xf0] }
 0x354   : > { %v3057_v55 = vmax.f32 %v2806_v40, 0.0  ;;  %2558 = vmatmul.bf16.gmra.mxu2 %v9106_v4 }
 0x355   : > { %6603 = vmatmul.msk.bf16.gmra.mxu1 %vm1613_vm0, %v9268_v30  ;;  %4153 = vmatpush.bf16.msrb.mxu3 %v6762_v49 }
 0x356   : > { %v9282_v38 = vmax.f32 %v3056_v20, %v3057_v55  ;;  %v9292_v35 = vpop.f32.mrf.mxu3 }
 0x357   : > { %v2519_v22 = vpop.f32.mrf.mxu2 }
 0x358   : > { %v2520_v4 = vadd.f32 %v2519_v22, %v8404_v61  ;;  %v1966_v60 = vpop.f32.mrf.mxu0  ;;  %v6698_v22 = vor.u32 %v7358_v54, %v6697_v7  ;;  %v3060_v54 = vmax.f32 %v9128_v53, 0.0 }
 0x359   : > { %v1967_v15 = vadd.f32 %v1966_v60, %v8125_v2 }
 0x35a   : > { %v2809_v40 = vadd.f32 %v9216_v45, %v2520_v4  ;;  %v2262_v29 = vpop.f32.mrf.mxu1  ;;  %v7309_v45 = vld [vmem:[%s7900_s28 + $0x2d4] sm:$0xf]  ;;  %4044 = vmatpush.bf16.msrb.mxu1 %v6698_v22 }
 0x35b   : > { %v9295_v20 = vadd.f32 %v2255_v47, %v1967_v15  ;;  %2005 = vmatmul.bf16.gmra.mxu0 %v9288_v3  ;;  %v6395_v47 = vld [vmem:[%s7900_s28 + $0x2d8] sm:$0xf0] }
 0x35c   : > { %v3059_v18 = vmax.f32 %v2809_v40, 0.0 }
 0x35e   : > { %v3222_v55 = vmax.f32 %v3058_v24, %v3059_v18  ;;  %v9310_v40 = vpop.f32.mrf.mxu3  ;;  %v9313_v18 = vor.u32 %v7309_v45, %v6395_v47  ;;  %6659 = vmatmul.msk.bf16.gmra.mxu3 %vm1613_vm0, %v9268_v30 }
 0x35f   : > { %v2521_v49 = vpop.f32.mrf.mxu2 }
 0x360   : > { %v3302_v4 = vmax.f32 %v9225_v21, %v3222_v55  ;;  %v2522_v13 = vadd.f32 %v2521_v49, %v8404_v61  ;;  %v1968_v60 = vpop.f32.mrf.mxu0  ;;  %v6385_v21 = vld [vmem:[%s7900_s28 + $0x2c0] sm:$0xf]  ;;  %v7308_v55 = vld [vmem:[%s7900_s28 + $0x2c4] sm:$0xf0] }
 0x361   : > { %v1969_v15 = vadd.f32 %v1968_v60, %v8125_v2  ;;  %v9325_v22 = vor.u32 %v7308_v55, %v6385_v21 }
 0x362   : > { %v2811_v24 = vadd.f32 %v9231_v46, %v2522_v13  ;;  %v2265_v7 = vpop.f32.mrf.mxu1 }
 0x363   : > { %v9315_v39 = vadd.f32 %v2257_v32, %v1969_v15  ;;  %v3358_v32 = vpack.c.bf16 %v3302_v4, %v3302_v4  ;;  %v3062_v4 = vmax.f32 %v9153_v25, 0.0 }
 0x364   : > { %v3061_v63 = vmax.f32 %v2811_v24, 0.0  ;;  %2563 = vmatmul.bf16.gmra.mxu2 %v9146_v5 }
 0x365   : > { %6604 = vmatmul.msk.bf16.gmra.mxu1 %vm1613_vm0, %v9313_v18 }
 0x366   : > { %v3223_v49 = vmax.f32 %v3060_v54, %v3061_v63  ;;  %v9330_v63 = vpop.f32.mrf.mxu3 }
 0x367   : > { %v2524_v46 = vpop.f32.mrf.mxu2 }
 0x368   : > { %v3303_v45 = vmax.f32 %v9242_v41, %v3223_v49  ;;  %v2525_v53 = vadd.f32 %v2524_v46, %v8404_v61  ;;  %v1971_v47 = vpop.f32.mrf.mxu0  ;;  %v3454_v41 = vunpack.c.l.b16 %v3358_v32  ;;  %v7311_v46 = vld [vmem:[%s7900_s28 + $0x2e4] sm:$0xf] }
 0x369   : > { %v1972_v5 = vadd.f32 %v1971_v47, %v8125_v2 }
 0x36a   : > { %v3359_v13 = vpack.c.bf16 %v3303_v45, %v3303_v45  ;;  %v2814_v60 = vadd.f32 %v9252_v6, %v2525_v53  ;;  %v2267_v48 = vpop.f32.mrf.mxu1  ;;  %v6403_v45 = vld [vmem:[%s7900_s28 + $0x2e8] sm:$0xf0] }
 0x36b   : > { %v9333_v15 = vadd.f32 %v2260_v33, %v1972_v5  ;;  %2010 = vmatmul.bf16.gmra.mxu0 %v9325_v22  ;;  %v9347_v32 = vor.u32 %v7311_v46, %v6403_v45 }
 0x36c   : > { %v3455_v24 = vunpack.c.l.b16 %v3359_v13  ;;  %v3063_v54 = vmax.f32 %v2814_v60, 0.0 }
 0x36e   : > { %v9337_v21 = vpack.c.b16 %v3455_v24, %v3454_v41  ;;  %v3224_v55 = vmax.f32 %v3062_v4, %v3063_v54  ;;  %v9344_v5 = vpop.f32.mrf.mxu3  ;;  %v3064_v4 = vmax.f32 %v9167_v34, 0.0  ;;  %v7310_v24 = vld [vmem:[%s7900_s28 + $0x2d4] sm:$0xf0]  ;;  %6660 = vmatmul.msk.bf16.gmra.mxu3 %vm1613_vm0, %v9313_v18  ;;  %v3078_v18 = vmax.f32 %v9295_v20, 0.0 }
 0x36f   : > { %v2526_v49 = vpop.f32.mrf.mxu2 }
 0x370   : > { %11732 = vst [vmem:[#allocation49_spill] sm:$0xff] %v9337_v21  ;;  %v3304_v6 = vmax.f32 %v9259_v12, %v3224_v55  ;;  %v2527_v33 = vadd.f32 %v2526_v49, %v8404_v61  ;;  %v1973_v53 = vpop.f32.mrf.mxu0  ;;  %v6393_v12 = vld [vmem:[%s7900_s28 + $0x2d0] sm:$0xf] }
 0x371   : > { %v1974_v47 = vadd.f32 %v1973_v53, %v8125_v2  ;;  %v9359_v55 = vor.u32 %v7310_v24, %v6393_v12 }
 0x372   : > { %v2816_v25 = vadd.f32 %v9265_v52, %v2527_v33  ;;  %v2270_v60 = vpop.f32.mrf.mxu1 }
 0x373   : > { %v9349_v13 = vadd.f32 %v2262_v29, %v1974_v47  ;;  %v3360_v29 = vpack.c.bf16 %v3304_v6, %v3304_v6 }
 0x374   : > { %v3065_v41 = vmax.f32 %v2816_v25, 0.0  ;;  %2568 = vmatmul.bf16.gmra.mxu2 %v9177_v1 }
 0x375   : > { %6605 = vmatmul.msk.bf16.gmra.mxu1 %vm1613_vm0, %v9347_v32  ;;  %v3456_v6 = vunpack.c.l.b16 %v3360_v29 }
 0x376   : > { %v3225_v54 = vmax.f32 %v3064_v4, %v3065_v41  ;;  %v9364_v45 = vpop.f32.mrf.mxu3 }
 0x377   : > { %v2529_v52 = vpop.f32.mrf.mxu2 }
 0x378   : > { %v3305_v49 = vmax.f32 %v9282_v38, %v3225_v54  ;;  %v2530_v34 = vadd.f32 %v2529_v52, %v8404_v61  ;;  %v1976_v46 = vpop.f32.mrf.mxu0  ;;  %v3066_v38 = vmax.f32 %v9185_v62, 0.0  ;;  %v7313_v54 = vld [vmem:[%s7900_s28 + $0x2f4] sm:$0xf] }
 0x379   : > { %v1977_v1 = vadd.f32 %v1976_v46, %v8125_v2 }
 0x37a   : > { %v3361_v33 = vpack.c.bf16 %v3305_v49, %v3305_v49  ;;  %v2819_v53 = vadd.f32 %v9292_v35, %v2530_v34  ;;  %v9370_v56 = vpop.f32.mrf.mxu1  ;;  %v6411_v35 = vld [vmem:[%s7900_s28 + $0x2f8] sm:$0xf0] }
 0x37b   : > { %v9367_v47 = vadd.f32 %v2265_v7, %v1977_v1  ;;  %2015 = vmatmul.bf16.gmra.mxu0 %v9359_v55  ;;  %v9384_v29 = vor.u32 %v7313_v54, %v6411_v35  ;;  %v6401_v1 = vld [vmem:[%s7900_s28 + $0x2e0] sm:$0xf] }
 0x37c   : > { %v3457_v25 = vunpack.c.l.b16 %v3361_v33  ;;  %v3067_v4 = vmax.f32 %v2819_v53, 0.0  ;;  %v7312_v33 = vld [vmem:[%s7900_s28 + $0x2e4] sm:$0xf0] }
 0x37e   : > { %v9373_v41 = vpack.c.b16 %v3457_v25, %v3456_v6  ;;  %v9375_v12 = vmax.f32 %v3066_v38, %v3067_v4  ;;  %v9381_v34 = vpop.f32.mrf.mxu3  ;;  %v3068_v38 = vmax.f32 %v9201_v50, 0.0  ;;  %v6905_v25 = vld [vmem:[%s11652_s3 + $0x1d0] sm:$0xf]  ;;  %6661 = vmatmul.msk.bf16.gmra.mxu3 %vm1613_vm0, %v9347_v32 }
 0x37f   : > { %v2531_v24 = vpop.f32.mrf.mxu2 }
 0x380   : > { %11733 = vst [vmem:[#allocation50_spill] sm:$0xff] %v9373_v41  ;;  %v2532_v7 = vadd.f32 %v2531_v24, %v8404_v61  ;;  %v1978_v52 = vpop.f32.mrf.mxu0 }
 0x381   : > { %v1979_v49 = vadd.f32 %v1978_v52, %v8125_v2 }
 0x382   : > { %v2821_v62 = vadd.f32 %v9310_v40, %v2532_v7  ;;  %v2275_v53 = vpop.f32.mrf.mxu1  ;;  %v7410_v40 = vld [vmem:[%s11652_s3 + $0x1d4] sm:$0xf0] }
 0x383   : > { %v9386_v46 = vadd.f32 %v2267_v48, %v1979_v49  ;;  %v6906_v4 = vor.u32 %v7410_v40, %v6905_v25  ;;  %v6419_v25 = vld [vmem:[%s7900_s28 + $0x308] sm:$0xf0] }
 0x384   : > { %v3069_v6 = vmax.f32 %v2821_v62, 0.0  ;;  %2573 = vmatmul.bf16.gmra.mxu2 %v9211_v44  ;;  %v9404_v44 = vor.u32 %v7312_v33, %v6401_v1  ;;  %v3070_v62 = vmax.f32 %v9219_v8, 0.0  ;;  %v6409_v8 = vld [vmem:[%s7900_s28 + $0x2f0] sm:$0xf] }
 0x385   : > { %6606 = vmatmul.msk.bf16.gmra.mxu1 %vm1613_vm0, %v9384_v29  ;;  %4369 = vmatpush.bf16.msra.mxu2 %v6906_v4 }
 0x386   : > { %v9398_v24 = vmax.f32 %v3068_v38, %v3069_v6  ;;  %v9408_v7 = vpop.f32.mrf.mxu3  ;;  %v7315_v6 = vld [vmem:[%s7900_s28 + $0x304] sm:$0xf] }
 0x387   : > { %v2534_v50 = vpop.f32.mrf.mxu2 }
 0x388   : > { %v2535_v48 = vadd.f32 %v2534_v50, %v8404_v61  ;;  %v1981_v54 = vpop.f32.mrf.mxu0  ;;  %v9427_v50 = vor.u32 %v7315_v6, %v6419_v25 }
 0x389   : > { %v1982_v35 = vadd.f32 %v1981_v54, %v8125_v2 }
 0x38a   : > { %v2824_v52 = vadd.f32 %v9330_v63, %v2535_v48  ;;  %v9414_v19 = vpop.f32.mrf.mxu1  ;;  %v3072_v48 = vmax.f32 %v9236_v42, 0.0 }
 0x38b   : > { %v9411_v49 = vadd.f32 %v2270_v60, %v1982_v35  ;;  %2020 = vmatmul.bf16.gmra.mxu0 %v9404_v44  ;;  %v7314_v35 = vld [vmem:[%s7900_s28 + $0x2f4] sm:$0xf0] }
 0x38c   : > { %v3071_v1 = vmax.f32 %v2824_v52, 0.0 }
 0x38e   : > { %v9417_v33 = vmax.f32 %v3070_v62, %v3071_v1  ;;  %v9424_v63 = vpop.f32.mrf.mxu3  ;;  %v9439_v1 = vor.u32 %v7314_v35, %v6409_v8  ;;  %v7317_v35 = vld [vmem:[%s7900_s28 + $0x314] sm:$0xf]  ;;  %6662 = vmatmul.msk.bf16.gmra.mxu3 %vm1613_vm0, %v9384_v29 }
 0x38f   : > { %v2536_v38 = vpop.f32.mrf.mxu2 }
 0x390   : > { %v2537_v40 = vadd.f32 %v2536_v38, %v8404_v61  ;;  %v9422_v4 = vpop.f32.mrf.mxu0 }
 0x392   : > { %v2826_v60 = vadd.f32 %v9344_v5, %v2537_v40  ;;  %v2280_v52 = vpop.f32.mrf.mxu1 }
 0x394   : > { %v3073_v54 = vmax.f32 %v2826_v60, 0.0  ;;  %2578 = vmatmul.bf16.gmra.mxu2 %v9248_v43  ;;  %v3074_v60 = vmax.f32 %v9255_v14, 0.0 }
 0x395   : > { %6607 = vmatmul.msk.bf16.gmra.mxu1 %vm1613_vm0, %v9427_v50 }
 0x396   : > { %v9433_v62 = vmax.f32 %v3072_v48, %v3073_v54  ;;  %v9443_v6 = vpop.f32.mrf.mxu3 }
 0x397   : > { %v2539_v5 = vpop.f32.mrf.mxu2 }
 0x398   : > { %v2540_v42 = vadd.f32 %v2539_v5, %v8404_v61  ;;  %v1986_v38 = vpop.f32.mrf.mxu0  ;;  %v6427_v5 = vld [vmem:[%s7900_s28 + $0x318] sm:$0xf0] }
 0x399   : > { %v1987_v43 = vadd.f32 %v1986_v38, %v8125_v2  ;;  %v9461_v14 = vor.u32 %v7317_v35, %v6427_v5 }
 0x39a   : > { %v2829_v25 = vadd.f32 %v9364_v45, %v2540_v42  ;;  %v9450_v54 = vpop.f32.mrf.mxu1 }
 0x39b   : > { %v9446_v40 = vadd.f32 %v2275_v53, %v1987_v43  ;;  %2025 = vmatmul.bf16.gmra.mxu0 %v9439_v1  ;;  %v3076_v43 = vmax.f32 %v9270_v9, 0.0 }
 0x39c   : > { %v3075_v30 = vmax.f32 %v2829_v25, 0.0 }
 0x39e   : > { %v3230_v48 = vmax.f32 %v3074_v60, %v3075_v30  ;;  %v9458_v53 = vpop.f32.mrf.mxu3  ;;  %v6417_v60 = vld [vmem:[%s7900_s28 + $0x300] sm:$0xf]  ;;  %v7316_v30 = vld [vmem:[%s7900_s28 + $0x304] sm:$0xf0]  ;;  %6663 = vmatmul.msk.bf16.gmra.mxu3 %vm1613_vm0, %v9427_v50  ;;  %v3090_v50 = vmax.f32 %v9411_v49, 0.0 }
 0x39f   : > { %v2541_v8 = vpop.f32.mrf.mxu2 }
 0x3a0   : > { %v3306_v38 = vmax.f32 %v9375_v12, %v3230_v48  ;;  %v2542_v41 = vadd.f32 %v2541_v8, %v8404_v61  ;;  %v9456_v45 = vpop.f32.mrf.mxu0  ;;  %v9471_v48 = vor.u32 %v7316_v30, %v6417_v60 }
 0x3a2   : > { %v2831_v42 = vadd.f32 %v9381_v34, %v2542_v41  ;;  %v3362_v41 = vpack.c.bf16 %v3306_v38, %v3306_v38  ;;  %v2285_v35 = vpop.f32.mrf.mxu1 }
 0x3a4   : > { %v3077_v25 = vmax.f32 %v2831_v42, 0.0  ;;  %2583 = vmatmul.bf16.gmra.mxu2 %v9288_v3  ;;  %v3458_v38 = vunpack.c.l.b16 %v3362_v41  ;;  %v3080_v41 = vmax.f32 %v9315_v39, 0.0 }
 0x3a5   : > { %6608 = vmatmul.msk.bf16.gmra.mxu1 %vm1613_vm0, %v9461_v14 }
 0x3a6   : > { %v3231_v21 = vmax.f32 %v3076_v43, %v3077_v25  ;;  %v9476_v5 = vpop.f32.mrf.mxu3 }
 0x3a7   : > { %v2544_v12 = vpop.f32.mrf.mxu2 }
 0x3a8   : > { %v3307_v34 = vmax.f32 %v9398_v24, %v3231_v21  ;;  %v2545_v9 = vadd.f32 %v2544_v12, %v8404_v61  ;;  %v1991_v8 = vpop.f32.mrf.mxu0 }
 0x3a9   : > { %v1992_v3 = vadd.f32 %v1991_v8, %v8125_v2 }
 0x3aa   : > { %v3363_v42 = vpack.c.bf16 %v3307_v34, %v3307_v34  ;;  %v2834_v43 = vadd.f32 %v9408_v7, %v2545_v9  ;;  %v9492_v20 = vpop.f32.mrf.mxu1 }
 0x3ab   : > { %v9479_v25 = vadd.f32 %v2280_v52, %v1992_v3  ;;  %2030 = vmatmul.bf16.gmra.mxu0 %v9471_v48 }
 0x3ac   : > { %v3459_v21 = vunpack.c.l.b16 %v3363_v42  ;;  %v3079_v24 = vmax.f32 %v2834_v43, 0.0  ;;  %v6425_v42 = vld [vmem:[%s7900_s28 + $0x310] sm:$0xf]  ;;  %v7318_v43 = vld [vmem:[%s7900_s28 + $0x314] sm:$0xf0] }
 0x3ae   : > { %v9483_v60 = vpack.c.b16 %v3459_v21, %v3458_v38  ;;  %v3232_v30 = vmax.f32 %v3078_v18, %v3079_v24  ;;  %v9489_v52 = vpop.f32.mrf.mxu3  ;;  %v7372_v38 = vld [vmem:[%s11652_s3 + $0xa4] sm:$0xf0]  ;;  %v9506_v21 = vor.u32 %v7318_v43, %v6425_v42  ;;  %v3082_v43 = vmax.f32 %v9333_v15, 0.0  ;;  %v6433_v15 = vld [vmem:[%s7900_s28 + $0x320] sm:$0xf]  ;;  %6664 = vmatmul.msk.bf16.gmra.mxu3 %vm1613_vm0, %v9461_v14 }
 0x3af   : > { %v2546_v12 = vpop.f32.mrf.mxu2  ;;  %v1989_v14 = vadd.f32 %v9456_v45, %v8125_v2 }
 0x3b0   : > { %11734 = vst [vmem:[#allocation51_spill] sm:$0xff] %v9483_v60  ;;  %v3308_v8 = vmax.f32 %v9417_v33, %v3232_v30  ;;  %v2547_v34 = vadd.f32 %v2546_v12, %v8404_v61  ;;  %v9487_v7 = vpop.f32.mrf.mxu0  ;;  %v6753_v33 = vld [vmem:[%s11652_s3 + $0xa0] sm:$0xf] }
 0x3b1   : > { %v6754_v39 = vor.u32 %v7372_v38, %v6753_v33  ;;  %v6449_v60 = vld [vmem:[%s7900_s28 + $0x340] sm:$0xf] }
 0x3b2   : > { %v2836_v9 = vadd.f32 %v9424_v63, %v2547_v34  ;;  %v3364_v24 = vpack.c.bf16 %v3308_v8, %v3308_v8  ;;  %v6689_v34 = vld [vmem:[%s11652_s3 + $0x20] sm:$0xf] }
 0x3b3   : > { %4154 = vmatpush.bf16.msrb.mxu3 %v6754_v39 }
 0x3b4   : > { %v3081_v3 = vmax.f32 %v2836_v9, 0.0  ;;  %2588 = vmatmul.bf16.gmra.mxu2 %v9325_v22  ;;  %v7356_v9 = vld [vmem:[%s11652_s3 + $0x24] sm:$0xf0] }
 0x3b6   : > { %v3233_v18 = vmax.f32 %v3080_v41, %v3081_v3  ;;  %v6690_v41 = vor.u32 %v7356_v9, %v6689_v34  ;;  %v2848_v3 = vpop.f32.mrf.mxu3  ;;  %v3084_v9 = vmax.f32 %v9349_v13, 0.0 }
 0x3b7   : > { %v2549_v63 = vpop.f32.mrf.mxu2 }
 0x3b8   : > { %v3309_v22 = vmax.f32 %v9433_v62, %v3233_v18  ;;  %v2550_v30 = vadd.f32 %v2549_v63, %v8404_v61  ;;  %v1996_v12 = vpop.f32.mrf.mxu0  ;;  %4045 = vmatpush.bf16.msrb.mxu1 %v6690_v41  ;;  %v3460_v18 = vunpack.c.l.b16 %v3364_v24  ;;  %v2290_v63 = vpop.f32.mrf.mxu1  ;;  %v7320_v24 = vld [vmem:[%s7900_s28 + $0x324] sm:$0xf0] }
 0x3b9   : > { %v1997_v32 = vadd.f32 %v1996_v12, %v8125_v2 }
 0x3ba   : > { %v3365_v42 = vpack.c.bf16 %v3309_v22, %v3309_v22  ;;  %v2839_v8 = vadd.f32 %v9443_v6, %v2550_v30 }
 0x3bb   : > { %v9518_v62 = vadd.f32 %v2285_v35, %v1997_v32  ;;  %2035 = vmatmul.bf16.gmra.mxu0 %v9506_v21 }
 0x3bc   : > { %v3461_v33 = vunpack.c.l.b16 %v3365_v42  ;;  %v3083_v38 = vmax.f32 %v2839_v8, 0.0 }
 0x3be   : > { %v9522_v12 = vpack.c.b16 %v3461_v33, %v3460_v18  ;;  %v3234_v39 = vmax.f32 %v3082_v43, %v3083_v38  ;;  %v2850_v35 = vpop.f32.mrf.mxu3  ;;  %v9536_v43 = vor.u32 %v7320_v24, %v6433_v15  ;;  %6665 = vmatmul.msk.bf16.gmra.mxu3 %vm1613_vm0, %v7904_v0  ;;  %v1994_v0 = vadd.f32 %v9487_v7, %v8125_v2  ;;  %v6465_v7 = vld [vmem:[%s7900_s28 + $0x360] sm:$0xf] }
 0x3bf   : > { %v2551_v34 = vpop.f32.mrf.mxu2 }
 0x3c0   : > { %11735 = vst [vmem:[#allocation52_spill] sm:$0xff] %v9522_v12  ;;  %v2552_v22 = vadd.f32 %v2551_v34, %v8404_v61  ;;  %v9525_v6 = vpop.f32.mrf.mxu0  ;;  %v9532_v42 = vpop.f32.mrf.mxu1  ;;  %v3086_v34 = vmax.f32 %v9367_v47, 0.0  ;;  %v7322_v47 = vld [vmem:[%s7900_s28 + $0x334] sm:$0xf0] }
 0x3c2   : > { %v2841_v30 = vadd.f32 %v9458_v53, %v2552_v22 }
 0x3c4   : > { %v3085_v32 = vmax.f32 %v2841_v30, 0.0  ;;  %2593 = vmatmul.bf16.gmra.mxu2 %v9359_v55 }
 0x3c6   : > { %v3235_v41 = vmax.f32 %v3084_v9, %v3085_v32  ;;  %v2853_v13 = vpop.f32.mrf.mxu3 }
 0x3c7   : > { %v2554_v8 = vpop.f32.mrf.mxu2 }
 0x3c8   : > { %v2555_v18 = vadd.f32 %v2554_v8, %v8404_v61  ;;  %v2001_v33 = vpop.f32.mrf.mxu0  ;;  %v2295_v15 = vpop.f32.mrf.mxu1 }
 0x3c9   : > { %v2002_v53 = vadd.f32 %v2001_v33, %v8125_v2 }
 0x3ca   : > { %v2844_v55 = vadd.f32 %v9476_v5, %v2555_v18  ;;  %v6441_v18 = vld [vmem:[%s7900_s28 + $0x330] sm:$0xf] }
 0x3cb   : > { %v9541_v38 = vadd.f32 %v2290_v63, %v2002_v53  ;;  %2040 = vmatmul.bf16.gmra.mxu0 %v9536_v43  ;;  %v3088_v63 = vmax.f32 %v9386_v46, 0.0 }
 0x3cc   : > { %v3087_v29 = vmax.f32 %v2844_v55, 0.0  ;;  %v9561_v55 = vor.u32 %v7322_v47, %v6441_v18 }
 0x3ce   : > { %v9545_v22 = vmax.f32 %v3086_v34, %v3087_v29  ;;  %v9550_v24 = vpop.f32.mrf.mxu3  ;;  %6666 = vmatmul.msk.bf16.gmra.mxu3 %vm1613_vm0, %v7948_v23 }
 0x3cf   : > { %v2556_v30 = vpop.f32.mrf.mxu2 }
 0x3d0   : > { %v2557_v9 = vadd.f32 %v2556_v30, %v8404_v61  ;;  %v9548_v32 = vpop.f32.mrf.mxu0 }
 0x3d2   : > { %v2846_v5 = vadd.f32 %v9489_v52, %v2557_v9  ;;  %v9567_v9 = vpop.f32.mrf.mxu1 }
 0x3d4   : > { %v3089_v8 = vmax.f32 %v2846_v5, 0.0  ;;  %2598 = vmatmul.bf16.gmra.mxu2 %v9404_v44  ;;  %v1984_v5 = vadd.f32 %v9422_v4, %v8125_v2  ;;  %v7324_v4 = vld [vmem:[%s7900_s28 + $0x344] sm:$0xf0] }
 0x3d6   : > { %v9557_v33 = vmax.f32 %v3088_v63, %v3089_v8  ;;  %v9565_v30 = vpop.f32.mrf.mxu3  ;;  %v2273_v47 = vadd.f32 %v9370_v56, %v1984_v5 }
 0x3d7   : > { %v2559_v53 = vpop.f32.mrf.mxu2 }
 0x3d8   : > { %v2560_v34 = vadd.f32 %v2559_v53, %v8404_v61  ;;  %v2006_v29 = vpop.f32.mrf.mxu0 }
 0x3d9   : > { %v2007_v52 = vadd.f32 %v2006_v29, %v8125_v2 }
 0x3da   : > { %v2849_v46 = vadd.f32 %v2848_v3, %v2560_v34  ;;  %v2300_v49 = vpop.f32.mrf.mxu1 }
 0x3db   : > { %v9569_v44 = vadd.f32 %v2295_v15, %v2007_v52  ;;  %2045 = vmatmul.bf16.gmra.mxu0 %v9561_v55  ;;  %v3092_v52 = vmax.f32 %v2273_v47, 0.0 }
 0x3dc   : > { %v3091_v63 = vmax.f32 %v2849_v46, 0.0 }
 0x3de   : > { %v3238_v8 = vmax.f32 %v3090_v50, %v3091_v63  ;;  %v9579_v15 = vpop.f32.mrf.mxu3  ;;  %6667 = vmatmul.msk.bf16.gmra.mxu3 %vm1613_vm0, %v7971_v36  ;;  %v6745_v36 = vld [vmem:[%s11652_s3 + $0x90] sm:$0xf] }
 0x3df   : > { %v2561_v18 = vpop.f32.mrf.mxu2 }
 0x3e0   : > { %v3310_v53 = vmax.f32 %v3234_v39, %v3238_v8  ;;  %v2562_v3 = vadd.f32 %v2561_v18, %v8404_v61  ;;  %v9577_v34 = vpop.f32.mrf.mxu0  ;;  %v9586_v39 = vor.u32 %v7324_v4, %v6449_v60 }
 0x3e2   : > { %v2851_v29 = vadd.f32 %v2850_v35, %v2562_v3  ;;  %v3366_v50 = vpack.c.bf16 %v3310_v53, %v3310_v53  ;;  %v3094_v3 = vmax.f32 %v9446_v40, 0.0  ;;  %v9600_v4 = vpop.f32.mrf.mxu1  ;;  %v6897_v40 = vld [vmem:[%s11652_s3 + $0x1c0] sm:$0xf] }
 0x3e4   : > { %v3093_v12 = vmax.f32 %v2851_v29, 0.0  ;;  %2603 = vmatmul.bf16.gmra.mxu2 %v9439_v1  ;;  %v3462_v60 = vunpack.c.l.b16 %v3366_v50 }
 0x3e6   : > { %v3239_v46 = vmax.f32 %v3092_v52, %v3093_v12  ;;  %v9590_v18 = vpop.f32.mrf.mxu3 }
 0x3e7   : > { %v2564_v56 = vpop.f32.mrf.mxu2 }
 0x3e8   : > { %v3311_v5 = vmax.f32 %v3235_v41, %v3239_v46  ;;  %v2565_v63 = vadd.f32 %v2564_v56, %v8404_v61  ;;  %v2011_v8 = vpop.f32.mrf.mxu0  ;;  %v2278_v46 = vadd.f32 %v9414_v19, %v1989_v14 }
 0x3e9   : > { %v2012_v35 = vadd.f32 %v2011_v8, %v8125_v2 }
 0x3ea   : > { %v3367_v1 = vpack.c.bf16 %v3311_v5, %v3311_v5  ;;  %v2854_v47 = vadd.f32 %v2853_v13, %v2565_v63  ;;  %v7408_v13 = vld [vmem:[%s11652_s3 + $0x1c4] sm:$0xf0] }
 0x3eb   : > { %v9593_v12 = vadd.f32 %v2300_v49, %v2012_v35  ;;  %2050 = vmatmul.bf16.gmra.mxu0 %v9586_v39  ;;  %v6898_v45 = vor.u32 %v7408_v13, %v6897_v40  ;;  %v3096_v35 = vmax.f32 %v2278_v46, 0.0 }
 0x3ec   : > { %v3463_v41 = vunpack.c.l.b16 %v3367_v1  ;;  %v3095_v53 = vmax.f32 %v2854_v47, 0.0  ;;  %v6457_v47 = vld [vmem:[%s7900_s28 + $0x350] sm:$0xf] }
 0x3ed   : > { %4370 = vmatpush.bf16.msra.mxu2 %v6898_v45  ;;  %v3098_v45 = vmax.f32 %v9479_v25, 0.0 }
 0x3ee   : > { %v9598_v29 = vpack.c.b16 %v3463_v41, %v3462_v60  ;;  %v3240_v52 = vmax.f32 %v3094_v3, %v3095_v53  ;;  %v2865_v63 = vpop.f32.mrf.mxu3  ;;  %v7326_v3 = vld [vmem:[%s7900_s28 + $0x354] sm:$0xf0]  ;;  %6668 = vmatmul.msk.bf16.gmra.mxu3 %vm1613_vm0, %v8012_v57 }
 0x3ef   : > { %v2566_v49 = vpop.f32.mrf.mxu2 }
 0x3f0   : > { %v3312_v56 = vmax.f32 %v9545_v22, %v3240_v52  ;;  %v2567_v50 = vadd.f32 %v2566_v49, %v8404_v61  ;;  %v9611_v5 = vpop.f32.mrf.mxu0  ;;  %v9619_v22 = vor.u32 %v7326_v3, %v6457_v47 }
 0x3f2   : > { %v2856_v8 = vadd.f32 %v9550_v24, %v2567_v50  ;;  %v3368_v14 = vpack.c.bf16 %v3312_v56, %v3312_v56  ;;  %v2305_v24 = vpop.f32.mrf.mxu1 }
 0x3f4   : > { %v3097_v1 = vmax.f32 %v2856_v8, 0.0  ;;  %2608 = vmatmul.bf16.gmra.mxu2 %v9471_v48 }
 0x3f6   : > { %v3241_v60 = vmax.f32 %v3096_v35, %v3097_v1  ;;  %v2868_v13 = vpop.f32.mrf.mxu3 }
 0x3f7   : > { %v2569_v19 = vpop.f32.mrf.mxu2 }
 0x3f8   : > { %v3313_v41 = vmax.f32 %v9557_v33, %v3241_v60  ;;  %v2570_v53 = vadd.f32 %v2569_v19, %v8404_v61  ;;  %v2016_v52 = vpop.f32.mrf.mxu0  ;;  %v3464_v33 = vunpack.c.l.b16 %v3368_v14  ;;  %v7328_v14 = vld [vmem:[%s7900_s28 + $0x364] sm:$0xf0] }
 0x3f9   : > { %v2017_v40 = vadd.f32 %v2016_v52, %v8125_v2 }
 0x3fa   : > { %v3369_v48 = vpack.c.bf16 %v3313_v41, %v3313_v41  ;;  %v2859_v49 = vadd.f32 %v9565_v30, %v2570_v53  ;;  %v2283_v30 = vadd.f32 %v9450_v54, %v1994_v0 }
 0x3fb   : > { %v9626_v46 = vadd.f32 %v2305_v24, %v2017_v40  ;;  %2055 = vmatmul.bf16.gmra.mxu0 %v9619_v22  ;;  %v9643_v24 = vor.u32 %v7328_v14, %v6465_v7 }
 0x3fc   : > { %v3465_v56 = vunpack.c.l.b16 %v3369_v48  ;;  %v3099_v50 = vmax.f32 %v2859_v49, 0.0  ;;  %v3100_v19 = vmax.f32 %v2283_v30, 0.0  ;;  %v1999_v49 = vadd.f32 %v9525_v6, %v8125_v2 }
 0x3fe   : > { %v9631_v8 = vpack.c.b16 %v3465_v56, %v3464_v33  ;;  %v3242_v35 = vmax.f32 %v3098_v45, %v3099_v50  ;;  %v2870_v3 = vpop.f32.mrf.mxu3  ;;  %v2288_v33 = vadd.f32 %v9492_v20, %v1999_v49  ;;  %6669 = vmatmul.msk.bf16.gmra.mxu3 %vm1613_vm0, %v8050_v16  ;;  %v2014_v16 = vadd.f32 %v9611_v5, %v8125_v2  ;;  %v6889_v5 = vld [vmem:[%s11652_s3 + $0x1b0] sm:$0xf] }
 0x3ff   : > { %v2571_v1 = vpop.f32.mrf.mxu2 }
 0x400   : > { %v2572_v25 = vadd.f32 %v2571_v1, %v8404_v61  ;;  %v9635_v47 = vpop.f32.mrf.mxu0  ;;  %v3104_v30 = vmax.f32 %v2288_v33, 0.0 }
 0x402   : > { %v2861_v60 = vadd.f32 %v9579_v15, %v2572_v25 }
 0x404   : > { %v3101_v41 = vmax.f32 %v2861_v60, 0.0  ;;  %2613 = vmatmul.bf16.gmra.mxu2 %v9506_v21  ;;  %v3102_v21 = vmax.f32 %v9518_v62, 0.0  ;;  %v6473_v62 = vld [vmem:[%s7900_s28 + $0x370] sm:$0xf]  ;;  %v7330_v60 = vld [vmem:[%s7900_s28 + $0x374] sm:$0xf0] }
 0x406   : > { %v3243_v53 = vmax.f32 %v3100_v19, %v3101_v41  ;;  %v2873_v48 = vpop.f32.mrf.mxu3  ;;  %v9666_v41 = vor.u32 %v7330_v60, %v6473_v62 }
 0x407   : > { %v2574_v52 = vpop.f32.mrf.mxu2 }
 0x408   : > { %v2575_v54 = vadd.f32 %v2574_v52, %v8404_v61  ;;  %v9646_v40 = vpop.f32.mrf.mxu0  ;;  %v2004_v52 = vadd.f32 %v9548_v32, %v8125_v2 }
 0x40a   : > { %v2864_v15 = vadd.f32 %v9590_v18, %v2575_v54  ;;  %v2293_v32 = vadd.f32 %v9532_v42, %v2004_v52 }
 0x40b   : > { %2060 = vmatmul.bf16.gmra.mxu0 %v9643_v24 }
 0x40c   : > { %v3103_v23 = vmax.f32 %v2864_v15, 0.0  ;;  %v3108_v62 = vmax.f32 %v2293_v32, 0.0 }
 0x40e   : > { %v9653_v45 = vmax.f32 %v3102_v21, %v3103_v23  ;;  %v2875_v1 = vpop.f32.mrf.mxu3  ;;  %v7370_v21 = vld [vmem:[%s11652_s3 + $0x94] sm:$0xf0]  ;;  %6670 = vmatmul.msk.bf16.gmra.mxu3 %vm1613_vm0, %v8064_v26 }
 0x40f   : > { %v2576_v0 = vpop.f32.mrf.mxu2  ;;  %v6746_v23 = vor.u32 %v7370_v21, %v6745_v36 }
 0x410   : > { %v2577_v56 = vadd.f32 %v2576_v0, %v8404_v61  ;;  %v9657_v50 = vpop.f32.mrf.mxu0 }
 0x411   : > { %4155 = vmatpush.bf16.msrb.mxu3 %v6746_v23 }
 0x412   : > { %v2866_v18 = vadd.f32 %v2865_v63, %v2577_v56 }
 0x414   : > { %v3105_v25 = vmax.f32 %v2866_v18, 0.0  ;;  %2618 = vmatmul.bf16.gmra.mxu2 %v9536_v43  ;;  %v3106_v43 = vmax.f32 %v9541_v38, 0.0  ;;  %v7354_v38 = vld [vmem:[%s11652_s3 + $0x14] sm:$0xf0] }
 0x416   : > { %v9662_v19 = vmax.f32 %v3104_v30, %v3105_v25  ;;  %v2878_v14 = vpop.f32.mrf.mxu3 }
 0x417   : > { %v2579_v6 = vpop.f32.mrf.mxu2 }
 0x418   : > { %v2580_v20 = vadd.f32 %v2579_v6, %v8404_v61  ;;  %v9669_v7 = vpop.f32.mrf.mxu0 }
 0x41a   : > { %v2869_v63 = vadd.f32 %v2868_v13, %v2580_v20  ;;  %v6681_v13 = vld [vmem:[%s11652_s3 + $0x10] sm:$0xf] }
 0x41b   : > { %2065 = vmatmul.bf16.gmra.mxu0 %v9666_v41  ;;  %v6682_v18 = vor.u32 %v7354_v38, %v6681_v13 }
 0x41c   : > { %v3107_v54 = vmax.f32 %v2869_v63, 0.0 }
 0x41d   : > { %4046 = vmatpush.bf16.msrb.mxu1 %v6682_v18 }
 0x41e   : > { %v3246_v15 = vmax.f32 %v3106_v43, %v3107_v54  ;;  %v2880_v30 = vpop.f32.mrf.mxu3 }
 0x41f   : > { %v2581_v49 = vpop.f32.mrf.mxu2 }
 0x420   : > { %v3314_v0 = vmax.f32 %v3242_v35, %v3246_v15  ;;  %v2582_v33 = vadd.f32 %v2581_v49, %v8404_v61  ;;  %v9689_v56 = vpop.f32.mrf.mxu0  ;;  %v3110_v15 = vmax.f32 %v9569_v44, 0.0 }
 0x422   : > { %v2871_v25 = vadd.f32 %v2870_v3, %v2582_v33  ;;  %v3370_v42 = vpack.c.bf16 %v3314_v0, %v3314_v0 }
 0x424   : > { %v3109_v60 = vmax.f32 %v2871_v25, 0.0  ;;  %2623 = vmatmul.bf16.gmra.mxu2 %v9561_v55  ;;  %v2009_v55 = vadd.f32 %v9577_v34, %v8125_v2  ;;  %v3510_v57 = vunpack.c.l.b16 %v3370_v42 }
 0x426   : > { %v3247_v6 = vmax.f32 %v3108_v62, %v3109_v60  ;;  %v9697_v52 = vpop.f32.mrf.mxu3  ;;  %v2298_v23 = vadd.f32 %v9567_v9, %v2009_v55 }
 0x427   : > { %v2584_v20 = vpop.f32.mrf.mxu2 }
 0x428   : > { %v3315_v35 = vmax.f32 %v3243_v53, %v3247_v6  ;;  %v2585_v63 = vadd.f32 %v2584_v20, %v8404_v61  ;;  %v9695_v43 = vpop.f32.mrf.mxu0  ;;  %v3112_v0 = vmax.f32 %v2298_v23, 0.0  ;;  %v3114_v20 = vmax.f32 %v9593_v12, 0.0 }
 0x42a   : > { %v3371_v54 = vpack.c.bf16 %v3315_v35, %v3315_v35  ;;  %v2874_v3 = vadd.f32 %v2873_v48, %v2585_v63 }
 0x42b   : > { %6615 = vmatmul.msk.bf16.vlgmr.msrb.gmra.mxu0 %vm1613_vm0, %v7925_v11 }
 0x42c   : > { %v3511_v36 = vunpack.c.l.b16 %v3371_v54  ;;  %v3111_v21 = vmax.f32 %v2874_v3, 0.0 }
 0x42e   : > { %v9704_v53 = vpack.c.b16 %v3511_v36, %v3510_v57  ;;  %v3248_v13 = vmax.f32 %v3110_v15, %v3111_v21  ;;  %v9711_v32 = vpop.f32.mrf.mxu3  ;;  %v2303_v15 = vadd.f32 %v9600_v4, %v2014_v16  ;;  %v7406_v57 = vld [vmem:[%s11652_s3 + $0x1b4] sm:$0xf0]  ;;  %v7396_v16 = vld [vmem:[%s11652_s3 + $0x164] sm:$0xf0] }
 0x42f   : > { %v2586_v49 = vpop.f32.mrf.mxu2  ;;  %v6890_v36 = vor.u32 %v7406_v57, %v6889_v5 }
 0x430   : > { %11736 = vst [vmem:[#allocation53_spill] sm:$0xff] %v9704_v53  ;;  %v3316_v38 = vmax.f32 %v9653_v45, %v3248_v13  ;;  %v2587_v48 = vadd.f32 %v2586_v49, %v8404_v61  ;;  %v9709_v44 = vpop.f32.mrf.mxu0  ;;  %v3116_v21 = vmax.f32 %v2303_v15, 0.0  ;;  %v7404_v49 = vld [vmem:[%s11652_s3 + $0x1a4] sm:$0xf0] }
 0x431   : > { %4371 = vmatpush.bf16.msra.mxu2 %v6890_v36  ;;  %v6841_v36 = vld [vmem:[%s11652_s3 + $0x150] sm:$0xf] }
 0x432   : > { %v2876_v11 = vadd.f32 %v2875_v1, %v2587_v48  ;;  %v3372_v25 = vpack.c.bf16 %v3316_v38, %v3316_v38 }
 0x434   : > { %v3113_v34 = vmax.f32 %v2876_v11, 0.0  ;;  %2628 = vmatmul.bf16.gmra.mxu2 %v9586_v39  ;;  %v3512_v39 = vunpack.c.l.b16 %v3372_v25 }
 0x436   : > { %v3249_v33 = vmax.f32 %v3112_v0, %v3113_v34  ;;  %v9720_v60 = vpop.f32.mrf.mxu3  ;;  %v6857_v34 = vld [vmem:[%s11652_s3 + $0x170] sm:$0xf] }
 0x437   : > { %v2589_v18 = vpop.f32.mrf.mxu2 }
 0x438   : > { %v3317_v9 = vmax.f32 %v9662_v19, %v3249_v33  ;;  %v2590_v45 = vadd.f32 %v2589_v18, %v8404_v61  ;;  %v9718_v62 = vpop.f32.mrf.mxu0  ;;  %v2307_v19 = vpop.f32.mrf.mxu1  ;;  %v7398_v33 = vld [vmem:[%s11652_s3 + $0x174] sm:$0xf0]  ;;  %v6873_v18 = vld [vmem:[%s11652_s3 + $0x190] sm:$0xf] }
 0x439   : > { %v6858_v25 = vor.u32 %v7398_v33, %v6857_v34 }
 0x43a   : > { %v3373_v6 = vpack.c.bf16 %v3317_v9, %v3317_v9  ;;  %v2879_v1 = vadd.f32 %v2878_v14, %v2590_v45  ;;  %v3118_v9 = vmax.f32 %v9626_v46, 0.0  ;;  %v2019_v45 = vadd.f32 %v9635_v47, %v8125_v2  ;;  %v6865_v46 = vld [vmem:[%s11652_s3 + $0x180] sm:$0xf] }
 0x43b   : > { %6616 = vmatmul.msk.bf16.gmra.mxu0 %vm1613_vm0, %v7956_v27 }
 0x43c   : > { %v3513_v42 = vunpack.c.l.b16 %v3373_v6  ;;  %v3115_v35 = vmax.f32 %v2879_v1, 0.0  ;;  %4258 = vmatpush.bf16.msra.mxu0 %v6858_v25  ;;  %v6825_v25 = vld [vmem:[%s11652_s3 + $0x130] sm:$0xf] }
 0x43e   : > { %v9727_v63 = vpack.c.b16 %v3513_v42, %v3512_v39  ;;  %v9729_v54 = vmax.f32 %v3114_v20, %v3115_v35  ;;  %v9735_v55 = vpop.f32.mrf.mxu3  ;;  %v7400_v42 = vld [vmem:[%s11652_s3 + $0x184] sm:$0xf0]  ;;  %v2308_v35 = vadd.f32 %v2307_v19, %v2019_v45  ;;  %v7394_v19 = vld [vmem:[%s11652_s3 + $0x154] sm:$0xf0] }
 0x43f   : > { %v2591_v3 = vpop.f32.mrf.mxu2 }
 0x440   : > { %11737 = vst [vmem:[#allocation54_spill] sm:$0xff] %v9727_v63  ;;  %v2592_v14 = vadd.f32 %v2591_v3, %v8404_v61  ;;  %v9733_v12 = vpop.f32.mrf.mxu0  ;;  %v2310_v23 = vpop.f32.mrf.mxu1 }
 0x442   : > { %v2881_v27 = vadd.f32 %v2880_v30, %v2592_v14  ;;  %v6881_v30 = vld [vmem:[%s11652_s3 + $0x1a0] sm:$0xf]  ;;  %v6866_v14 = vor.u32 %v7400_v42, %v6865_v46 }
 0x443   : > { %v6882_v48 = vor.u32 %v7404_v49, %v6881_v30  ;;  %v2022_v30 = vadd.f32 %v9646_v40, %v8125_v2 }
 0x444   : > { %v3117_v13 = vmax.f32 %v2881_v27, 0.0  ;;  %2633 = vmatmul.bf16.gmra.mxu2 %v9619_v22 }
 0x445   : > { %4372 = vmatpush.bf16.msra.mxu2 %v6882_v48  ;;  %v7392_v48 = vld [vmem:[%s11652_s3 + $0x144] sm:$0xf0]  ;;  %v2311_v34 = vadd.f32 %v2310_v23, %v2022_v30 }
 0x446   : > { %v9744_v4 = vmax.f32 %v3116_v21, %v3117_v13  ;;  %v9757_v0 = vpop.f32.mrf.mxu3  ;;  %v6842_v21 = vor.u32 %v7394_v19, %v6841_v36  ;;  %v3120_v13 = vmax.f32 %v2308_v35, 0.0  ;;  %v7384_v30 = vld [vmem:[%s11652_s3 + $0x104] sm:$0xf0] }
 0x447   : > { %v2594_v38 = vpop.f32.mrf.mxu2  ;;  %v3122_v45 = vmax.f32 %v2311_v34, 0.0 }
 0x448   : > { %v2595_v11 = vadd.f32 %v2594_v38, %v8404_v61  ;;  %v9755_v22 = vpop.f32.mrf.mxu0  ;;  %v2312_v27 = vpop.f32.mrf.mxu1 }
 0x44a   : > { %v2884_v26 = vadd.f32 %v9697_v52, %v2595_v11  ;;  %v7402_v52 = vld [vmem:[%s11652_s3 + $0x194] sm:$0xf0] }
 0x44b   : > { %6617 = vmatmul.msk.bf16.gmra.mxu0 %vm1613_vm0, %v7973_v37  ;;  %v6874_v1 = vor.u32 %v7402_v52, %v6873_v18  ;;  %v6849_v37 = vld [vmem:[%s11652_s3 + $0x160] sm:$0xf]  ;;  %v7390_v52 = vld [vmem:[%s11652_s3 + $0x134] sm:$0xf0] }
 0x44c   : > { %v3119_v6 = vmax.f32 %v2884_v26, 0.0  ;;  %v6850_v47 = vor.u32 %v7396_v16, %v6849_v37  ;;  %v6826_v23 = vor.u32 %v7390_v52, %v6825_v25  ;;  %v6817_v37 = vld [vmem:[%s11652_s3 + $0x120] sm:$0xf]  ;;  %v7388_v16 = vld [vmem:[%s11652_s3 + $0x124] sm:$0xf0]  ;;  %v2029_v25 = vadd.f32 %v9689_v56, %v8125_v2 }
 0x44d   : > { %4373 = vmatpush.bf16.msra.mxu2 %v6874_v1  ;;  %v2032_v56 = vadd.f32 %v9695_v43, %v8125_v2 }
 0x44e   : > { %v9777_v20 = vmax.f32 %v3118_v9, %v3119_v6  ;;  %v9794_v5 = vpop.f32.mrf.mxu3  ;;  %4259 = vmatpush.bf16.msra.mxu0 %v6850_v47  ;;  %v2024_v6 = vadd.f32 %v9657_v50, %v8125_v2 }
 0x44f   : > { %v2596_v39 = vpop.f32.mrf.mxu2 }
 0x450   : > { %v2597_v3 = vadd.f32 %v2596_v39, %v8404_v61  ;;  %v9792_v15 = vpop.f32.mrf.mxu0  ;;  %v2315_v9 = vpop.f32.mrf.mxu1  ;;  %v6818_v39 = vor.u32 %v7388_v16, %v6817_v37  ;;  %v2313_v47 = vadd.f32 %v2312_v27, %v2024_v6  ;;  %v2027_v27 = vadd.f32 %v9669_v7, %v8125_v2 }
 0x451   : > { %4374 = vmatpush.bf16.msra.mxu2 %v6866_v14  ;;  %v7386_v14 = vld [vmem:[%s11652_s3 + $0x114] sm:$0xf0] }
 0x452   : > { %v2886_v57 = vadd.f32 %v9711_v32, %v2597_v3  ;;  %4260 = vmatpush.bf16.msra.mxu0 %v6842_v21  ;;  %v6833_v32 = vld [vmem:[%s11652_s3 + $0x140] sm:$0xf]  ;;  %v6809_v3 = vld [vmem:[%s11652_s3 + $0x110] sm:$0xf]  ;;  %v3124_v36 = vmax.f32 %v2313_v47, 0.0 }
 0x453   : > { %v6834_v26 = vor.u32 %v7392_v48, %v6833_v32 }
 0x454   : > { %v3121_v49 = vmax.f32 %v2886_v57, 0.0  ;;  %2638 = vmatmul.bf16.gmra.mxu2 %v9643_v24 }
 0x456   : > { %v9806_v38 = vmax.f32 %v3120_v13, %v3121_v49  ;;  %v9817_v18 = vpop.f32.mrf.mxu3  ;;  %4261 = vmatpush.bf16.msra.mxu0 %v6834_v26  ;;  %v6801_v13 = vld [vmem:[%s11652_s3 + $0x100] sm:$0xf]  ;;  %v2316_v49 = vadd.f32 %v2315_v9, %v2027_v27 }
 0x457   : > { %v2599_v11 = vpop.f32.mrf.mxu2  ;;  %v6802_v32 = vor.u32 %v7384_v30, %v6801_v13 }
 0x458   : > { %v2600_v33 = vadd.f32 %v2599_v11, %v8404_v61  ;;  %v9815_v40 = vpop.f32.mrf.mxu0  ;;  %v2317_v21 = vpop.f32.mrf.mxu1 }
 0x459   : > { %v2318_v37 = vadd.f32 %v2317_v21, %v2029_v25  ;;  %v2034_v21 = vadd.f32 %v9709_v44, %v8125_v2  ;;  %v2037_v44 = vadd.f32 %v9718_v62, %v8125_v2  ;;  %v7368_v25 = vld [vmem:[%s11652_s3 + $0x84] sm:$0xf0] }
 0x45a   : > { %v2889_v24 = vadd.f32 %v9720_v60, %v2600_v33  ;;  %4262 = vmatpush.bf16.msra.mxu0 %v6826_v23  ;;  %v7352_v62 = vld [vmem:[%s11652_s3 + $0x4] sm:$0xf0] }
 0x45b   : > { %6618 = vmatmul.msk.bf16.gmra.mxu0 %vm1613_vm0, %v8014_v58 }
 0x45c   : > { %v3123_v1 = vmax.f32 %v2889_v24, 0.0  ;;  %v3126_v24 = vmax.f32 %v2316_v49, 0.0 }
 0x45e   : > { %v3254_v60 = vmax.f32 %v3122_v45, %v3123_v1  ;;  %4263 = vmatpush.bf16.msra.mxu0 %v6818_v39  ;;  %v9849_v57 = vpop.f32.mrf.mxu3  ;;  %v3128_v39 = vmax.f32 %v2318_v37, 0.0 }
 0x45f   : > { %v2601_v46 = vpop.f32.mrf.mxu2 }
 0x460   : > { %v3318_v58 = vmax.f32 %v9729_v54, %v3254_v60  ;;  %v2602_v42 = vadd.f32 %v2601_v46, %v8404_v61  ;;  %v9838_v35 = vpop.f32.mrf.mxu0  ;;  %v6810_v54 = vor.u32 %v7386_v14, %v6809_v3  ;;  %v2320_v1 = vpop.f32.mrf.mxu1 }
 0x462   : > { %v2891_v50 = vadd.f32 %v9735_v55, %v2602_v42  ;;  %4264 = vmatpush.bf16.msra.mxu0 %v6810_v54  ;;  %v3374_v48 = vpack.c.bf16 %v3318_v58, %v3318_v58  ;;  %v2321_v42 = vadd.f32 %v2320_v1, %v2032_v56  ;;  %v2039_v56 = vadd.f32 %v9733_v12, %v8125_v2 }
 0x464   : > { %v3125_v19 = vmax.f32 %v2891_v50, 0.0  ;;  %2643 = vmatmul.bf16.gmra.mxu2 %v9666_v41  ;;  %v3522_v52 = vunpack.c.l.b16 %v3374_v48  ;;  %v3130_v43 = vmax.f32 %v2321_v42, 0.0 }
 0x466   : > { %v3255_v55 = vmax.f32 %v3124_v36, %v3125_v19  ;;  %4265 = vmatpush.bf16.msra.mxu0 %v6802_v32  ;;  %v2903_v45 = vpop.f32.mrf.mxu3 }
 0x467   : > { %v2604_v7 = vpop.f32.mrf.mxu2 }
 0x468   : > { %v3319_v11 = vmax.f32 %v9744_v4, %v3255_v55  ;;  %v2605_v26 = vadd.f32 %v2604_v7, %v8404_v61  ;;  %v9860_v41 = vpop.f32.mrf.mxu0  ;;  %v2322_v36 = vpop.f32.mrf.mxu1 }
 0x469   : > { %v2323_v32 = vadd.f32 %v2322_v36, %v2034_v21  ;;  %v11740_v21 = vld [vmem:[#allocation3_spill] sm:$0xff] }
 0x46a   : > { %v3375_v34 = vpack.c.bf16 %v3319_v11, %v3319_v11  ;;  %v2894_v33 = vadd.f32 %v9757_v0, %v2605_v26 }
 0x46b   : > { %6619 = vmatmul.msk.bf16.gmra.mxu0 %vm1613_vm0, %v8052_v17 }
 0x46c   : > { %v3523_v9 = vunpack.c.l.b16 %v3375_v34  ;;  %v3127_v23 = vmax.f32 %v2894_v33, 0.0 }
 0x46e   : > { %v9867_v4 = vpack.c.b16 %v3523_v9, %v3522_v52  ;;  %v3256_v6 = vmax.f32 %v3126_v24, %v3127_v23  ;;  %v2905_v3 = vpop.f32.mrf.mxu3  ;;  %v6737_v24 = vld [vmem:[%s11652_s3 + $0x80] sm:$0xf] }
 0x46f   : > { %v2606_v60 = vpop.f32.mrf.mxu2  ;;  %v6738_v52 = vor.u32 %v7368_v25, %v6737_v24 }
 0x470   : > { %11738 = vst [vmem:[#allocation55_spill] sm:$0xff] %v9867_v4  ;;  %v3320_v16 = vmax.f32 %v9777_v20, %v3256_v6  ;;  %v2607_v0 = vadd.f32 %v2606_v60, %v8404_v61  ;;  %v9871_v46 = vpop.f32.mrf.mxu0  ;;  %v2325_v34 = vpop.f32.mrf.mxu1 }
 0x471   : > { %4156 = vmatpush.bf16.msrb.mxu3 %v6738_v52  ;;  %v2326_v1 = vadd.f32 %v2325_v34, %v2037_v44  ;;  %v11742_v44 = vld [vmem:[#allocation4_spill] sm:$0xff] }
 0x472   : > { %v2896_v17 = vadd.f32 %v9794_v5, %v2607_v0  ;;  %v3376_v14 = vpack.c.bf16 %v3320_v16, %v3320_v16 }
 0x474   : > { %v3129_v47 = vmax.f32 %v2896_v17, 0.0  ;;  %4375 = vmatmul.bf16.vlgmr.msra.gmra.mxu2 %v8739_v31  ;;  %v3524_v55 = vunpack.c.l.b16 %v3376_v14  ;;  %v3134_v17 = vmax.f32 %v2326_v1, 0.0  ;;  %v11744_v1 = vld [vmem:[#allocation25_spill] sm:$0xff] }
 0x476   : > { %v3257_v58 = vmax.f32 %v3128_v39, %v3129_v47 }
 0x477   : > { %v2609_v50 = vpop.f32.mrf.mxu2 }
 0x478   : > { %v3321_v20 = vmax.f32 %v9806_v38, %v3257_v58  ;;  %v2610_v27 = vadd.f32 %v2609_v50, %v8404_v61  ;;  %v9879_v54 = vpop.f32.mrf.mxu0  ;;  %v2327_v47 = vpop.f32.mrf.mxu1 }
 0x479   : > { %v2328_v50 = vadd.f32 %v2327_v47, %v2039_v56 }
 0x47a   : > { %v3377_v5 = vpack.c.bf16 %v3321_v20, %v3321_v20  ;;  %v2899_v19 = vadd.f32 %v9817_v18, %v2610_v27  ;;  %v2908_v18 = vpop.f32.mrf.mxu3 }
 0x47b   : > { %6620 = vmatmul.msk.bf16.gmra.mxu0 %vm1613_vm0, %v8066_v28  ;;  %v3132_v28 = vmax.f32 %v2323_v32, 0.0  ;;  %v3136_v36 = vmax.f32 %v2328_v50, 0.0  ;;  %v11741_v32 = vld [vmem:[#allocation43_spill] sm:$0xff] }
 0x47c   : > { %v3525_v13 = vunpack.c.l.b16 %v3377_v5  ;;  %v3131_v30 = vmax.f32 %v2899_v19, 0.0 }
 0x47e   : > { %v9886_v49 = vpack.c.b16 %v3525_v13, %v3524_v55  ;;  %v3258_v38 = vmax.f32 %v3130_v43, %v3131_v30 }
 0x47f   : > { %v2611_v7 = vpop.f32.mrf.mxu2 }
 0x480   : > { %11739 = vst [vmem:[#allocation56_spill] sm:$0xff] %v9886_v49  ;;  %v2612_v48 = vadd.f32 %v2611_v7, %v8404_v61  ;;  %v9889_v11 = vpop.f32.mrf.mxu0 }
 0x482   : > { %v2901_v26 = vadd.f32 %v9849_v57, %v2612_v48  ;;  %v6673_v57 = vld [vmem:[%s11652_s3] sm:$0xf]  ;;  %v2910_v0 = vpop.f32.mrf.mxu3 }
 0x483   : > { %v6674_v23 = vor.u32 %v7352_v62, %v6673_v57 }
 0x484   : > { %v3133_v33 = vmax.f32 %v2901_v26, 0.0  ;;  %4380 = vmatmul.bf16.gmra.mxu2 %v8773_v51 }
 0x485   : > { %4047 = vmatpush.bf16.msrb.mxu1 %v6674_v23 }
 0x486   : > { %v3259_v9 = vmax.f32 %v3132_v28, %v3133_v33 }
 0x487   : > { %v2614_v6 = vpop.f32.mrf.mxu2 }
 0x488   : > { %v2615_v60 = vadd.f32 %v2614_v6, %v8404_v61  ;;  %v9908_v37 = vpop.f32.mrf.mxu0  ;;  %v11743_v6 = vld [vmem:[#allocation44_spill] sm:$0xff] }
 0x48a   : > { %v2904_v16 = vadd.f32 %v2903_v45, %v2615_v60  ;;  %v2042_v45 = vadd.f32 %v9755_v22, %v8125_v2  ;;  %v2913_v19 = vpop.f32.mrf.mxu3  ;;  %v2044_v22 = vadd.f32 %v9792_v15, %v8125_v2  ;;  %v2370_v60 = vadd.f32 %v11744_v1, %v8404_v61 }
 0x48b   : > { %4266 = vmatmul.bf16.vlgmr.msra.gmra.mxu0 %v8602_v59 }
 0x48c   : > { %v3135_v39 = vmax.f32 %v2904_v16, 0.0  ;;  %v2331_v55 = vadd.f32 %v11740_v21, %v2042_v45  ;;  %v2333_v33 = vadd.f32 %v11742_v44, %v2044_v22  ;;  %v11745_v16 = vld [vmem:[#allocation5_spill] sm:$0xff]  ;;  %v11748_v22 = vld [vmem:[#allocation27_spill] sm:$0xff] }
 0x48e   : > { %v3260_v58 = vmax.f32 %v3134_v17, %v3135_v39  ;;  %v3140_v62 = vmax.f32 %v2333_v33, 0.0 }
 0x48f   : > { %v2616_v42 = vpop.f32.mrf.mxu2 }
 0x490   : > { %v2617_v14 = vadd.f32 %v2616_v42, %v8404_v61  ;;  %v9914_v20 = vpop.f32.mrf.mxu0 }
 0x492   : > { %v2906_v27 = vadd.f32 %v2905_v3, %v2617_v14  ;;  %v3138_v3 = vmax.f32 %v2331_v55, 0.0  ;;  %v2915_v28 = vpop.f32.mrf.mxu3 }
 0x494   : > { %v3137_v5 = vmax.f32 %v2906_v27, 0.0  ;;  %4385 = vmatmul.bf16.gmra.mxu2 %v8893_v10  ;;  %v11746_v27 = vld [vmem:[#allocation6_spill] sm:$0xff] }
 0x496   : > { %v9919_v43 = vmax.f32 %v3136_v36, %v3137_v5  ;;  %v2938_v36 = vmax.f32 %v11746_v27, 0.0 }
 0x497   : > { %v2619_v12 = vpop.f32.mrf.mxu2 }
 0x498   : > { %v2620_v13 = vadd.f32 %v2619_v12, %v8404_v61  ;;  %v9923_v30 = vpop.f32.mrf.mxu0  ;;  %v2049_v12 = vadd.f32 %v9838_v35, %v8125_v2 }
 0x49a   : > { %v2909_v7 = vadd.f32 %v2908_v18, %v2620_v13  ;;  %v2047_v18 = vadd.f32 %v9815_v40, %v8125_v2  ;;  %v2918_v50 = vpop.f32.mrf.mxu3 }
 0x49b   : > { %4271 = vmatmul.bf16.gmra.mxu0 %v11741_v32 }
 0x49c   : > { %v3139_v48 = vmax.f32 %v2909_v7, 0.0  ;;  %v2336_v17 = vadd.f32 %v11745_v16, %v2047_v18  ;;  %v11751_v16 = vld [vmem:[#allocation45_spill] sm:$0xff] }
 0x49e   : > { %v3262_v26 = vmax.f32 %v3138_v3, %v3139_v48  ;;  %v3142_v45 = vmax.f32 %v2336_v17, 0.0 }
 0x49f   : > { %v2621_v34 = vpop.f32.mrf.mxu2 }
 0x4a0   : > { %v3322_v24 = vmax.f32 %v3258_v38, %v3262_v26  ;;  %v2622_v25 = vadd.f32 %v2621_v34, %v8404_v61  ;;  %v9930_v52 = vpop.f32.mrf.mxu0  ;;  %v11749_v26 = vld [vmem:[#allocation7_spill] sm:$0xff] }
 0x4a1   : > { %v2338_v34 = vadd.f32 %v11749_v26, %v2049_v12 }
 0x4a2   : > { %v2911_v57 = vadd.f32 %v2910_v0, %v2622_v25  ;;  %v3378_v38 = vpack.c.bf16 %v3322_v24, %v3322_v24 }
 0x4a3   : > { %v3144_v1 = vmax.f32 %v2338_v34, 0.0 }
 0x4a4   : > { %v3141_v23 = vmax.f32 %v2911_v57, 0.0  ;;  %4390 = vmatmul.bf16.gmra.mxu2 %v11743_v6  ;;  %v3534_v21 = vunpack.c.l.b16 %v3378_v38  ;;  %v11750_v57 = vld [vmem:[#allocation8_spill] sm:$0xff] }
 0x4a5   : > { %v2940_v18 = vmax.f32 %v11750_v57, 0.0 }
 0x4a6   : > { %v3263_v15 = vmax.f32 %v3140_v62, %v3141_v23  ;;  %v2052_v62 = vadd.f32 %v9860_v41, %v8125_v2 }
 0x4a7   : > { %v2624_v56 = vpop.f32.mrf.mxu2 }
 0x4a8   : > { %v3323_v39 = vmax.f32 %v3259_v9, %v3263_v15  ;;  %v2625_v47 = vadd.f32 %v2624_v56, %v8404_v61  ;;  %v2658_v42 = vpop.f32.mrf.mxu0  ;;  %v2920_v15 = vpop.f32.mrf.mxu3 }
 0x4a9   : > { %v2659_v0 = vadd.f32 %v2658_v42, %v2370_v60 }
 0x4aa   : > { %v3379_v14 = vpack.c.bf16 %v3323_v39, %v3323_v39  ;;  %v2914_v40 = vadd.f32 %v2913_v19, %v2625_v47  ;;  %v2372_v19 = vadd.f32 %v11748_v22, %v8404_v61  ;;  %v11753_v39 = vld [vmem:[#allocation9_spill] sm:$0xff] }
 0x4ab   : > { %v2939_v5 = vmax.f32 %v2659_v0, 0.0  ;;  %4276 = vmatmul.bf16.gmra.mxu0 %v8739_v31  ;;  %v2341_v47 = vadd.f32 %v11753_v39, %v2052_v62 }
 0x4ac   : > { %v3535_v55 = vunpack.c.l.b16 %v3379_v14  ;;  %v3143_v13 = vmax.f32 %v2914_v40, 0.0 }
 0x4ad   : > { %v9943_v9 = vmax.f32 %v2938_v36, %v2939_v5  ;;  %v3146_v12 = vmax.f32 %v2341_v47, 0.0  ;;  %v11760_v47 = vld [vmem:[#allocation31_spill] sm:$0xff] }
 0x4ae   : > { %v3264_v7 = vmax.f32 %v3142_v45, %v3143_v13  ;;  %v9945_v3 = vpack.c.b16 %v3535_v55, %v3534_v21  ;;  %v11754_v45 = vld [vmem:[#allocation10_spill] sm:$0xff]  ;;  %v2054_v55 = vadd.f32 %v9871_v46, %v8125_v2 }
 0x4af   : > { %v2626_v48 = vpop.f32.mrf.mxu2  ;;  %v2942_v5 = vmax.f32 %v11754_v45, 0.0 }
 0x4b0   : > { %11747 = vst [vmem:[#allocation3_spill] sm:$0xff] %v9945_v3  ;;  %v3324_v44 = vmax.f32 %v3260_v58, %v3264_v7  ;;  %v2627_v33 = vadd.f32 %v2626_v48, %v8404_v61  ;;  %v2660_v24 = vpop.f32.mrf.mxu0  ;;  %v11752_v58 = vld [vmem:[#allocation29_spill] sm:$0xff] }
 0x4b1   : > { %v2661_v25 = vadd.f32 %v2660_v24, %v2372_v19  ;;  %v2375_v38 = vadd.f32 %v11752_v58, %v8404_v61  ;;  %v11759_v58 = vld [vmem:[#allocation46_spill] sm:$0xff] }
 0x4b2   : > { %v2916_v35 = vadd.f32 %v2915_v28, %v2627_v33  ;;  %v3380_v42 = vpack.c.bf16 %v3324_v44, %v3324_v44  ;;  %v11757_v33 = vld [vmem:[#allocation11_spill] sm:$0xff] }
 0x4b3   : > { %v2941_v23 = vmax.f32 %v2661_v25, 0.0  ;;  %v2343_v24 = vadd.f32 %v11757_v33, %v2054_v55 }
 0x4b4   : > { %v3145_v60 = vmax.f32 %v2916_v35, 0.0  ;;  %4395 = vmatmul.bf16.gmra.mxu2 %v11751_v16  ;;  %v3536_v13 = vunpack.c.l.b16 %v3380_v42 }
 0x4b5   : > { %v9955_v17 = vmax.f32 %v2940_v18, %v2941_v23  ;;  %v11758_v18 = vld [vmem:[#allocation12_spill] sm:$0xff] }
 0x4b6   : > { %v3265_v56 = vmax.f32 %v3144_v1, %v3145_v60  ;;  %v2944_v62 = vmax.f32 %v11758_v18, 0.0  ;;  %v3148_v1 = vmax.f32 %v2343_v24, 0.0  ;;  %v2057_v60 = vadd.f32 %v9879_v54, %v8125_v2  ;;  %v11762_v54 = vld [vmem:[#allocation14_spill] sm:$0xff]  ;;  %v11765_v18 = vld [vmem:[#allocation16_spill] sm:$0xff] }
 0x4b7   : > { %v2629_v28 = vpop.f32.mrf.mxu2  ;;  %v2946_v45 = vmax.f32 %v11762_v54, 0.0 }
 0x4b8   : > { %v3325_v0 = vmax.f32 %v9919_v43, %v3265_v56  ;;  %v2630_v41 = vadd.f32 %v2629_v28, %v8404_v61  ;;  %v2663_v14 = vpop.f32.mrf.mxu0  ;;  %v2923_v43 = vpop.f32.mrf.mxu3  ;;  %v2380_v28 = vadd.f32 %v11760_v47, %v8404_v61 }
 0x4b9   : > { %v2664_v40 = vadd.f32 %v2663_v14, %v2375_v38 }
 0x4ba   : > { %v3381_v27 = vpack.c.bf16 %v3325_v0, %v3325_v0  ;;  %v2919_v36 = vadd.f32 %v2918_v50, %v2630_v41  ;;  %v11756_v50 = vld [vmem:[#allocation30_spill] sm:$0xff] }
 0x4bb   : > { %v2943_v21 = vmax.f32 %v2664_v40, 0.0  ;;  %4281 = vmatmul.bf16.gmra.mxu0 %v8773_v51  ;;  %v2377_v34 = vadd.f32 %v11756_v50, %v8404_v61 }
 0x4bc   : > { %v3537_v7 = vunpack.c.l.b16 %v3381_v27  ;;  %v3147_v22 = vmax.f32 %v2919_v36, 0.0 }
 0x4bd   : > { %v9966_v19 = vmax.f32 %v2942_v5, %v2943_v21  ;;  %v2059_v21 = vadd.f32 %v9889_v11, %v8125_v2  ;;  %v2948_v11 = vmax.f32 %v11765_v18, 0.0 }
 0x4be   : > { %v9968_v48 = vmax.f32 %v3146_v12, %v3147_v22  ;;  %v9970_v26 = vpack.c.b16 %v3537_v7, %v3536_v13  ;;  %v11763_v22 = vld [vmem:[#allocation32_spill] sm:$0xff] }
 0x4bf   : > { %v2631_v44 = vpop.f32.mrf.mxu2  ;;  %v2382_v50 = vadd.f32 %v11763_v22, %v8404_v61 }
 0x4c0   : > { %11755 = vst [vmem:[#allocation43_spill] sm:$0xff] %v9970_v26  ;;  %v2632_v25 = vadd.f32 %v2631_v44, %v8404_v61  ;;  %v2665_v35 = vpop.f32.mrf.mxu0  ;;  %v2925_v0 = vpop.f32.mrf.mxu3 }
 0x4c1   : > { %v2666_v46 = vadd.f32 %v2665_v35, %v2377_v34 }
 0x4c2   : > { %v2921_v57 = vadd.f32 %v2920_v15, %v2632_v25  ;;  %v11761_v15 = vld [vmem:[#allocation13_spill] sm:$0xff] }
 0x4c3   : > { %v2945_v23 = vmax.f32 %v2666_v46, 0.0  ;;  %v2346_v41 = vadd.f32 %v11761_v15, %v2057_v60 }
 0x4c4   : > { %v3149_v56 = vmax.f32 %v2921_v57, 0.0  ;;  %4400 = vmatmul.bf16.gmra.mxu2 %v11759_v58 }
 0x4c5   : > { %v9980_v38 = vmax.f32 %v2944_v62, %v2945_v23  ;;  %v3150_v12 = vmax.f32 %v2346_v41, 0.0 }
 0x4c6   : > { %v9982_v39 = vmax.f32 %v3148_v1, %v3149_v56  ;;  %v2062_v1 = vadd.f32 %v9908_v37, %v8125_v2  ;;  %v11766_v56 = vld [vmem:[#allocation47_spill] sm:$0xff] }
 0x4c7   : > { %v2634_v42 = vpop.f32.mrf.mxu2 }
 0x4c8   : > { %v2635_v14 = vadd.f32 %v2634_v42, %v8404_v61  ;;  %v2668_v40 = vpop.f32.mrf.mxu0  ;;  %v2928_v46 = vpop.f32.mrf.mxu3 }
 0x4c9   : > { %v2669_v27 = vadd.f32 %v2668_v40, %v2380_v28  ;;  %v11767_v28 = vld [vmem:[#allocation33_spill] sm:$0xff] }
 0x4ca   : > { %v2924_v36 = vadd.f32 %v2923_v43, %v2635_v14  ;;  %v11764_v43 = vld [vmem:[#allocation15_spill] sm:$0xff]  ;;  %v2385_v42 = vadd.f32 %v11767_v28, %v8404_v61  ;;  %v11768_v14 = vld [vmem:[#allocation17_spill] sm:$0xff] }
 0x4cb   : > { %v2947_v5 = vmax.f32 %v2669_v27, 0.0  ;;  %4286 = vmatmul.bf16.gmra.mxu0 %v8893_v10  ;;  %v2348_v33 = vadd.f32 %v11764_v43, %v2059_v21  ;;  %v2351_v40 = vadd.f32 %v11768_v14, %v2062_v1  ;;  %v2067_v1 = vadd.f32 %v9923_v30, %v8125_v2  ;;  %v11774_v30 = vld [vmem:[#allocation21_spill] sm:$0xff] }
 0x4cc   : > { %v3151_v55 = vmax.f32 %v2924_v36, 0.0 }
 0x4cd   : > { %v3166_v13 = vmax.f32 %v2946_v45, %v2947_v5  ;;  %v3152_v23 = vmax.f32 %v2348_v33, 0.0  ;;  %v11769_v5 = vld [vmem:[#allocation18_spill] sm:$0xff] }
 0x4ce   : > { %v9992_v7 = vmax.f32 %v3150_v12, %v3151_v55  ;;  %v2950_v12 = vmax.f32 %v11769_v5, 0.0 }
 0x4cf   : > { %v3274_v34 = vmax.f32 %v9943_v9, %v3166_v13  ;;  %v2636_v44 = vpop.f32.mrf.mxu2 }
 0x4d0   : > { %v2637_v24 = vadd.f32 %v2636_v44, %v8404_v61  ;;  %v2670_v25 = vpop.f32.mrf.mxu0  ;;  %v2930_v22 = vpop.f32.mrf.mxu3 }
 0x4d1   : > { %v2671_v35 = vadd.f32 %v2670_v25, %v2382_v50  ;;  %v3330_v15 = vpack.c.bf16 %v3274_v34, %v3274_v34  ;;  %v3154_v50 = vmax.f32 %v2351_v40, 0.0 }
 0x4d2   : > { %v2926_v57 = vadd.f32 %v2925_v0, %v2637_v24  ;;  %v11770_v24 = vld [vmem:[#allocation34_spill] sm:$0xff] }
 0x4d3   : > { %v2949_v62 = vmax.f32 %v2671_v35, 0.0  ;;  %v3426_v21 = vunpack.c.l.b16 %v3330_v15  ;;  %v2387_v25 = vadd.f32 %v11770_v24, %v8404_v61  ;;  %v6731_v15 = vld [vmem:[%s11652_s3 + $0x78] sm:$0xf0] }
 0x4d4   : > { %v3153_v60 = vmax.f32 %v2926_v57, 0.0  ;;  %4405 = vmatmul.bf16.gmra.mxu2 %v11766_v56  ;;  %v11771_v57 = vld [vmem:[#allocation19_spill] sm:$0xff] }
 0x4d5   : > { %v3167_v9 = vmax.f32 %v2948_v11, %v2949_v62 }
 0x4d6   : > { %v10003_v47 = vmax.f32 %v3152_v23, %v3153_v60 }
 0x4d7   : > { %v3275_v41 = vmax.f32 %v9955_v17, %v3167_v9  ;;  %v2639_v0 = vpop.f32.mrf.mxu2  ;;  %v2064_v17 = vadd.f32 %v9914_v20, %v8125_v2  ;;  %v11772_v9 = vld [vmem:[#allocation20_spill] sm:$0xff] }
 0x4d8   : > { %v2640_v27 = vadd.f32 %v2639_v0, %v8404_v61  ;;  %v2673_v36 = vpop.f32.mrf.mxu0  ;;  %v2952_v28 = vmax.f32 %v11772_v9, 0.0  ;;  %v11773_v0 = vld [vmem:[#allocation48_spill] sm:$0xff] }
 0x4d9   : > { %v3331_v54 = vpack.c.bf16 %v3275_v41, %v3275_v41  ;;  %v2674_v37 = vadd.f32 %v2673_v36, %v2385_v42  ;;  %v2353_v18 = vadd.f32 %v11771_v57, %v2064_v17  ;;  %v2356_v36 = vadd.f32 %v11774_v30, %v2067_v1 }
 0x4da   : > { %v2929_v45 = vadd.f32 %v2928_v46, %v2640_v27  ;;  %v2933_v27 = vpop.f32.mrf.mxu3  ;;  %v2069_v57 = vadd.f32 %v9930_v52, %v8125_v2 }
 0x4db   : > { %v3427_v55 = vunpack.c.l.b16 %v3331_v54  ;;  %v2951_v13 = vmax.f32 %v2674_v37, 0.0  ;;  %4291 = vmatmul.bf16.gmra.mxu0 %v11743_v6  ;;  %v11775_v37 = vld [vmem:[#allocation35_spill] sm:$0xff]  ;;  %v3158_v24 = vmax.f32 %v2356_v36, 0.0 }
 0x4dc   : > { %v3155_v34 = vmax.f32 %v2929_v45, 0.0  ;;  %v2390_v45 = vadd.f32 %v11775_v37, %v8404_v61 }
 0x4dd   : > { %v3168_v44 = vmax.f32 %v2950_v12, %v2951_v13  ;;  %v10014_v43 = vpack.c.b16 %v3427_v55, %v3426_v21 }
 0x4de   : > { %v3270_v33 = vmax.f32 %v3154_v50, %v3155_v34 }
 0x4df   : > { %v3276_v35 = vmax.f32 %v9966_v19, %v3168_v44  ;;  %v2641_v46 = vpop.f32.mrf.mxu2  ;;  %4048 = vmatmul.bf16.vlgmr.msrb.gmra.mxu1 %v10014_v43  ;;  %v7365_v19 = vld [vmem:[%s11652_s3 + $0x74] sm:$0xf]  ;;  %v11776_v44 = vld [vmem:[#allocation22_spill] sm:$0xff] }
 0x4e0   : > { %v3326_v11 = vmax.f32 %v9968_v48, %v3270_v33  ;;  %v2642_v62 = vadd.f32 %v2641_v46, %v8404_v61  ;;  %v2675_v20 = vpop.f32.mrf.mxu0  ;;  %v3156_v48 = vmax.f32 %v2353_v18, 0.0  ;;  %v6734_v14 = vor.u32 %v7365_v19, %v6731_v15  ;;  %v11779_v19 = vld [vmem:[#allocation39_spill] sm:$0xff] }
 0x4e1   : > { %v2676_v23 = vadd.f32 %v2675_v20, %v2387_v25  ;;  %v3332_v5 = vpack.c.bf16 %v3276_v35, %v3276_v35  ;;  %v2954_v33 = vmax.f32 %v11776_v44, 0.0 }
 0x4e2   : > { %v2931_v60 = vadd.f32 %v2930_v22, %v2642_v62  ;;  %4585 = vmatpush.bf16.msra.mxu3 %v6734_v14  ;;  %v3382_v55 = vpack.c.bf16 %v3326_v11, %v3326_v11  ;;  %v7430_v11 = vld [vmem:[%s11652_s3 + $0x274] sm:$0xf0]  ;;  %v11780_v14 = vld [vmem:[#allocation23_spill] sm:$0xff] }
 0x4e3   : > { %v2953_v42 = vmax.f32 %v2676_v23, 0.0 }
 0x4e4   : > { %v3157_v41 = vmax.f32 %v2931_v60, 0.0  ;;  %4410 = vmatmul.bf16.gmra.mxu2 %v11773_v0  ;;  %v3546_v23 = vunpack.c.l.b16 %v3382_v55 }
 0x4e5   : > { %v3169_v40 = vmax.f32 %v2952_v28, %v2953_v42  ;;  %v11778_v28 = vld [vmem:[#allocation36_spill] sm:$0xff] }
 0x4e6   : > { %v3271_v54 = vmax.f32 %v3156_v48, %v3157_v41  ;;  %v2392_v42 = vadd.f32 %v11778_v28, %v8404_v61  ;;  %v2935_v41 = vpop.f32.mrf.mxu3 }
 0x4e7   : > { %v3277_v12 = vmax.f32 %v9980_v38, %v3169_v40  ;;  %v2644_v21 = vpop.f32.mrf.mxu2  ;;  %v3428_v38 = vunpack.c.l.b16 %v3332_v5  ;;  %v2358_v40 = vadd.f32 %v11780_v14, %v2069_v57 }
 0x4e8   : > { %v3327_v13 = vmax.f32 %v9982_v39, %v3271_v54  ;;  %v2645_v22 = vadd.f32 %v2644_v21, %v8404_v61  ;;  %v2678_v50 = vpop.f32.mrf.mxu0  ;;  %v6985_v39 = vld [vmem:[%s11652_s3 + $0x270] sm:$0xf] }
 0x4e9   : > { %v2679_v17 = vadd.f32 %v2678_v50, %v2390_v45  ;;  %v3333_v34 = vpack.c.bf16 %v3277_v12, %v3277_v12  ;;  %v6986_v20 = vor.u32 %v7430_v11, %v6985_v39  ;;  %v11781_v45 = vld [vmem:[#allocation24_spill] sm:$0xff]  ;;  %v3160_v21 = vmax.f32 %v2358_v40, 0.0  ;;  %v11785_v39 = vld [vmem:[#allocation26_spill] sm:$0xff] }
 0x4ea   : > { %v2934_v25 = vadd.f32 %v2933_v27, %v2645_v22  ;;  %v3383_v46 = vpack.c.bf16 %v3327_v13, %v3327_v13  ;;  %v2956_v5 = vmax.f32 %v11781_v45, 0.0  ;;  %v11782_v13 = vld [vmem:[#allocation49_spill] sm:$0xff]  ;;  %v2958_v11 = vmax.f32 %v11785_v39, 0.0 }
 0x4eb   : > { %v2955_v35 = vmax.f32 %v2679_v17, 0.0  ;;  %4296 = vmatmul.bf16.gmra.mxu0 %v11751_v16  ;;  %v3429_v18 = vunpack.c.l.b16 %v3333_v34  ;;  %4476 = vmatpush.bf16.msra.mxu1 %v6986_v20  ;;  %v11783_v17 = vld [vmem:[#allocation37_spill] sm:$0xff] }
 0x4ec   : > { %v3159_v62 = vmax.f32 %v2934_v25, 0.0  ;;  %v3547_v1 = vunpack.c.l.b16 %v3383_v46  ;;  %v2395_v34 = vadd.f32 %v11783_v17, %v8404_v61 }
 0x4ed   : > { %v3170_v60 = vmax.f32 %v2954_v33, %v2955_v35  ;;  %v10049_v9 = vpack.c.b16 %v3429_v18, %v3428_v38  ;;  %v11784_v33 = vld [vmem:[#allocation40_spill] sm:$0xff] }
 0x4ee   : > { %v3272_v2 = vmax.f32 %v3158_v24, %v3159_v62  ;;  %v10051_v52 = vpack.c.b16 %v3547_v1, %v3546_v23 }
 0x4ef   : > { %v3278_v15 = vmax.f32 %v3170_v60, %v11779_v19  ;;  %v2646_v48 = vpop.f32.mrf.mxu2  ;;  %4053 = vmatmul.bf16.gmra.mxu1 %v10049_v9 }
 0x4f0   : > { %11777 = vst [vmem:[#allocation4_spill] sm:$0xff] %v10051_v52  ;;  %v3328_v27 = vmax.f32 %v9992_v7, %v3272_v2  ;;  %v2647_v30 = vadd.f32 %v2646_v48, %v8404_v61  ;;  %v2680_v36 = vpop.f32.mrf.mxu0  ;;  %v7395_v52 = vld [vmem:[%s11652_s3 + $0x164] sm:$0xf] }
 0x4f1   : > { %v2681_v54 = vadd.f32 %v2680_v36, %v2392_v42  ;;  %v3334_v44 = vpack.c.bf16 %v3278_v15, %v3278_v15  ;;  %v11788_v15 = vld [vmem:[#allocation41_spill] sm:$0xff] }
 0x4f2   : > { %v2936_v37 = vadd.f32 %v2935_v41, %v2647_v30  ;;  %v3384_v25 = vpack.c.bf16 %v3328_v27, %v3328_v27  ;;  %v11789_v27 = vld [vmem:[#allocation28_spill] sm:$0xff] }
 0x4f3   : > { %v2957_v12 = vmax.f32 %v2681_v54, 0.0  ;;  %v3430_v62 = vunpack.c.l.b16 %v3334_v44  ;;  %v2960_v30 = vmax.f32 %v11789_v27, 0.0  ;;  %v11790_v54 = vld [vmem:[#allocation50_spill] sm:$0xff] }
 0x4f4   : > { %v3161_v55 = vmax.f32 %v2936_v37, 0.0  ;;  %4415 = vmatmul.bf16.gmra.mxu2 %v11782_v13  ;;  %v3548_v1 = vunpack.c.l.b16 %v3384_v25 }
 0x4f5   : > { %v3171_v22 = vmax.f32 %v2956_v5, %v2957_v12  ;;  %v11791_v5 = vld [vmem:[#allocation42_spill] sm:$0xff] }
 0x4f6   : > { %v3273_v50 = vmax.f32 %v3160_v21, %v3161_v55  ;;  %v7363_v21 = vld [vmem:[%s11652_s3 + $0x64] sm:$0xf]  ;;  %v6723_v55 = vld [vmem:[%s11652_s3 + $0x68] sm:$0xf0] }
 0x4f7   : > { %v3279_v7 = vmax.f32 %v3171_v22, %v11784_v33  ;;  %v10065_v24 = vpop.f32.mrf.mxu2  ;;  %v6977_v33 = vld [vmem:[%s11652_s3 + $0x260] sm:$0xf] }
 0x4f8   : > { %v3329_v46 = vmax.f32 %v10003_v47, %v3273_v50  ;;  %v2683_v57 = vpop.f32.mrf.mxu0  ;;  %v11787_v47 = vld [vmem:[#allocation38_spill] sm:$0xff]  ;;  %v6726_v50 = vor.u32 %v7363_v21, %v6723_v55 }
 0x4f9   : > { %v3335_v35 = vpack.c.bf16 %v3279_v7, %v3279_v7  ;;  %v2684_v38 = vadd.f32 %v2683_v57, %v2395_v34  ;;  %v2397_v19 = vadd.f32 %v11787_v47, %v8404_v61  ;;  %v7428_v7 = vld [vmem:[%s11652_s3 + $0x264] sm:$0xf0]  ;;  %v6715_v47 = vld [vmem:[%s11652_s3 + $0x58] sm:$0xf0] }
 0x4fa   : > { %v3385_v18 = vpack.c.bf16 %v3329_v46, %v3329_v46  ;;  %4586 = vmatpush.bf16.msra.mxu3 %v6726_v50  ;;  %v6978_v25 = vor.u32 %v7428_v7, %v6977_v33  ;;  %v7359_v50 = vld [vmem:[%s11652_s3 + $0x44] sm:$0xf]  ;;  %v6961_v33 = vld [vmem:[%s11652_s3 + $0x240] sm:$0xf]  ;;  %v7424_v7 = vld [vmem:[%s11652_s3 + $0x244] sm:$0xf0] }
 0x4fb   : > { %v3431_v20 = vunpack.c.l.b16 %v3335_v35  ;;  %v2959_v23 = vmax.f32 %v2684_v38, 0.0  ;;  %4301 = vmatmul.bf16.gmra.mxu0 %v11759_v58  ;;  %v11792_v38 = vld [vmem:[#allocation51_spill] sm:$0xff] }
 0x4fc   : > { %v3549_v60 = vunpack.c.l.b16 %v3385_v18  ;;  %4477 = vmatpush.bf16.msra.mxu1 %v6978_v25 }
 0x4fd   : > { %v3172_v2 = vmax.f32 %v2958_v11, %v2959_v23  ;;  %v10070_v28 = vpack.c.b16 %v3431_v20, %v3430_v62  ;;  %v11793_v20 = vld [vmem:[#allocation52_spill] sm:$0xff] }
 0x4fe   : > { %v10072_v42 = vpack.c.b16 %v3549_v60, %v3548_v1 }
 0x4ff   : > { %v3280_v48 = vmax.f32 %v3172_v2, %v11788_v15  ;;  %v10077_v41 = vpop.f32.mrf.mxu2  ;;  %4058 = vmatmul.bf16.gmra.mxu1 %v10070_v28  ;;  %4157 = vmatmul.bf16.vlgmr.msrb.gmra.mxu3 %v10070_v28  ;;  %v7361_v2 = vld [vmem:[%s11652_s3 + $0x54] sm:$0xf] }
 0x500   : > { %11786 = vst [vmem:[#allocation44_spill] sm:$0xff] %v10072_v42  ;;  %v2685_v14 = vpop.f32.mrf.mxu0  ;;  %v6718_v15 = vor.u32 %v7361_v2, %v6715_v47  ;;  %v6962_v2 = vor.u32 %v7424_v7, %v6961_v33  ;;  %v7397_v33 = vld [vmem:[%s11652_s3 + $0x174] sm:$0xf]  ;;  %v6859_v7 = vld [vmem:[%s11652_s3 + $0x178] sm:$0xf0] }
 0x501   : > { %v2686_v40 = vadd.f32 %v2685_v14, %v2397_v19  ;;  %v3336_v45 = vpack.c.bf16 %v3280_v48, %v3280_v48  ;;  %v6969_v48 = vld [vmem:[%s11652_s3 + $0x250] sm:$0xf]  ;;  %v7426_v14 = vld [vmem:[%s11652_s3 + $0x254] sm:$0xf0] }
 0x502   : > { %4587 = vmatpush.bf16.msra.mxu3 %v6718_v15 }
 0x503   : > { %v2961_v36 = vmax.f32 %v2686_v40, 0.0  ;;  %v3432_v34 = vunpack.c.l.b16 %v3336_v45  ;;  %v6970_v40 = vor.u32 %v7426_v14, %v6969_v48 }
 0x504   : > { %4420 = vmatmul.bf16.gmra.mxu2 %v11790_v54 }
 0x505   : > { %v3173_v37 = vmax.f32 %v2960_v30, %v2961_v36  ;;  %4478 = vmatpush.bf16.msra.mxu1 %v6970_v40 }
 0x507   : > { %v3281_v12 = vmax.f32 %v3173_v37, %v11791_v5  ;;  %v10084_v61 = vpop.f32.mrf.mxu2 }
 0x508   : > { %v10092_v22 = vpop.f32.mrf.mxu0 }
 0x509   : > { %v3337_v17 = vpack.c.bf16 %v3281_v12, %v3281_v12  ;;  %4479 = vmatpush.bf16.msra.mxu1 %v6962_v2  ;;  %v6862_v2 = vor.u32 %v7397_v33, %v6859_v7  ;;  %v3634_v33 = vld [vmem:[%s11653_s4] sm:$0x3]  ;;  %v7393_v7 = vld [vmem:[%s11652_s3 + $0x154] sm:$0xf] }
 0x50b   : > { %v3433_v44 = vunpack.c.l.b16 %v3337_v17  ;;  %4306 = vmatmul.bf16.gmra.mxu0 %v11766_v56  ;;  %v6707_v17 = vld [vmem:[%s11652_s3 + $0x48] sm:$0xf0]  ;;  %4803 = vmatpush.bf16.msrb.mxu2 %v6862_v2  ;;  %v6843_v2 = vld [vmem:[%s11652_s3 + $0x158] sm:$0xf0] }
 0x50d   : > { %v10101_v46 = vpack.c.b16 %v3433_v44, %v3432_v34  ;;  %v6710_v44 = vor.u32 %v7359_v50, %v6707_v17 }
 0x50f   : > { %v10103_v57 = vpop.f32.mrf.mxu2  ;;  %4063 = vmatmul.bf16.gmra.mxu1 %v10101_v46  ;;  %4162 = vmatmul.bf16.gmra.mxu3 %v10101_v46 }
 0x510   : > { %v10107_v35 = vpop.f32.mrf.mxu0  ;;  %4588 = vmatpush.bf16.msra.mxu3 %v6710_v44 }
 0x514   : > { %4425 = vmatmul.bf16.gmra.mxu2 %v11792_v38 }
 0x517   : > { %v10110_v18 = vpop.f32.mrf.mxu2 }
 0x518   : > { %v10112_v39 = vpop.f32.mrf.mxu0 }
 0x51b   : > { %4311 = vmatmul.bf16.gmra.mxu0 %v11773_v0 }
 0x51f   : > { %v10115_v11 = vpop.f32.mrf.mxu2  ;;  %4068 = vmatmul.bf16.gmra.mxu1 %v8602_v59  ;;  %4167 = vmatmul.bf16.gmra.mxu3 %v8602_v59 }
 0x520   : > { %v10119_v62 = vpop.f32.mrf.mxu0 }
 0x524   : > { %4430 = vmatmul.bf16.gmra.mxu2 %v11793_v20 }
 0x527   : > { %v10122_v23 = vpop.f32.mrf.mxu2 }
 0x528   : > { %v10124_v1 = vpop.f32.mrf.mxu0 }
 0x52b   : > { %4316 = vmatmul.bf16.gmra.mxu0 %v11782_v13 }
 0x52f   : > { %v10127_v60 = vpop.f32.mrf.mxu2  ;;  %4073 = vmatmul.bf16.gmra.mxu1 %v11741_v32  ;;  %4172 = vmatmul.bf16.gmra.mxu3 %v11741_v32 }
 0x530   : > { %v10137_v19 = vpop.f32.mrf.mxu0 }
 0x534   : > { %4435 = vmatmul.bf16.gmra.mxu2 %v9598_v29 }
 0x537   : > { %v10146_v27 = vpop.f32.mrf.mxu2 }
 0x538   : > { %11794 = vst [vmem:[#allocation25_spill] sm:$0xff] %v10146_v27  ;;  %v10148_v30 = vpop.f32.mrf.mxu0  ;;  %v6945_v27 = vld [vmem:[%s11652_s3 + $0x220] sm:$0xf] }
 0x53b   : > { %4321 = vmatmul.bf16.gmra.mxu0 %v11790_v54 }
 0x53f   : > { %v10151_v36 = vpop.f32.mrf.mxu2  ;;  %4078 = vmatmul.bf16.gmra.mxu1 %v8739_v31  ;;  %4177 = vmatmul.bf16.gmra.mxu3 %v8739_v31 }
 0x540   : > { %11795 = vst [vmem:[#allocation5_spill] sm:$0xff] %v10151_v36  ;;  %v10155_v37 = vpop.f32.mrf.mxu0 }
 0x544   : > { %4440 = vmatmul.bf16.gmra.mxu2 %v9631_v8 }
 0x547   : > { %v10158_v45 = vpop.f32.mrf.mxu2 }
 0x548   : > { %11796 = vst [vmem:[#allocation6_spill] sm:$0xff] %v10158_v45  ;;  %v10160_v5 = vpop.f32.mrf.mxu0  ;;  %v6827_v45 = vld [vmem:[%s11652_s3 + $0x138] sm:$0xf0] }
 0x549   : > { %11797 = vst [vmem:[#allocation27_spill] sm:$0xff] %v10160_v5 }
 0x54b   : > { %4326 = vmatmul.bf16.gmra.mxu0 %v11792_v38 }
 0x54f   : > { %v10163_v12 = vpop.f32.mrf.mxu2  ;;  %4083 = vmatmul.bf16.gmra.mxu1 %v8773_v51  ;;  %4182 = vmatmul.bf16.gmra.mxu3 %v8773_v51 }
 0x550   : > { %11798 = vst [vmem:[#allocation7_spill] sm:$0xff] %v10163_v12  ;;  %v10167_v21 = vpop.f32.mrf.mxu0 }
 0x551   : > { %11799 = vst [vmem:[#allocation8_spill] sm:$0xff] %v10167_v21 }
 0x554   : > { %4445 = vmatmul.bf16.gmra.mxu2 %v9704_v53 }
 0x557   : > { %v10170_v55 = vpop.f32.mrf.mxu2 }
 0x558   : > { %11800 = vst [vmem:[#allocation45_spill] sm:$0xff] %v10170_v55  ;;  %v10178_v34 = vpop.f32.mrf.mxu0  ;;  %v6846_v55 = vor.u32 %v7393_v7, %v6843_v2 }
 0x559   : > { %11801 = vst [vmem:[#allocation29_spill] sm:$0xff] %v10178_v34 }
 0x55b   : > { %4331 = vmatmul.bf16.gmra.mxu0 %v11793_v20 }
 0x55c   : > { %v4049_v25 = vpop.f32.mrf.mxu1 }
 0x55f   : > { %v10187_v47 = vpop.f32.mrf.mxu2  ;;  %4088 = vmatmul.bf16.gmra.mxu1 %v8893_v10  ;;  %4187 = vmatmul.bf16.gmra.mxu3 %v8893_v10 }
 0x560   : > { %11802 = vst [vmem:[#allocation9_spill] sm:$0xff] %v10187_v47  ;;  %v10191_v15 = vpop.f32.mrf.mxu0 }
 0x561   : > { %11803 = vst [vmem:[#allocation10_spill] sm:$0xff] %v10191_v15  ;;  %v7389_v15 = vld [vmem:[%s11652_s3 + $0x134] sm:$0xf] }
 0x562   : > { %v6830_v36 = vor.u32 %v7389_v15, %v6827_v45  ;;  %v6819_v45 = vld [vmem:[%s11652_s3 + $0x128] sm:$0xf0] }
 0x564   : > { %4450 = vmatmul.bf16.gmra.mxu2 %v9727_v63  ;;  %v4051_v48 = vpop.f32.mrf.mxu1 }
 0x567   : > { %v10194_v14 = vpop.f32.mrf.mxu2 }
 0x568   : > { %11804 = vst [vmem:[#allocation30_spill] sm:$0xff] %v10194_v14  ;;  %v10196_v40 = vpop.f32.mrf.mxu0 }
 0x569   : > { %11805 = vst [vmem:[#allocation11_spill] sm:$0xff] %v10196_v40 }
 0x56b   : > { %4336 = vmatmul.bf16.gmra.mxu0 %v9598_v29 }
 0x56c   : > { %v10199_v50 = vpop.f32.mrf.mxu1 }
 0x56f   : > { %v10201_v17 = vpop.f32.mrf.mxu2  ;;  %4093 = vmatmul.bf16.gmra.mxu1 %v11743_v6  ;;  %4192 = vmatmul.bf16.gmra.mxu3 %v11743_v6 }
 0x570   : > { %11806 = vst [vmem:[#allocation12_spill] sm:$0xff] %v10201_v17  ;;  %v10205_v44 = vpop.f32.mrf.mxu0  ;;  %v6851_v17 = vld [vmem:[%s11652_s3 + $0x168] sm:$0xf0] }
 0x571   : > { %11807 = vst [vmem:[#allocation46_spill] sm:$0xff] %v10205_v44  ;;  %v6854_v47 = vor.u32 %v7395_v52, %v6851_v17  ;;  %v10238_v52 = vperm.slane %v3634_v33, 0  ;;  %v6835_v17 = vld [vmem:[%s11652_s3 + $0x148] sm:$0xf0]  ;;  %v7357_v33 = vld [vmem:[%s11652_s3 + $0x34] sm:$0xf] }
 0x573   : > { %4804 = vmatpush.bf16.msrb.mxu2 %v6854_v47  ;;  %v7391_v47 = vld [vmem:[%s11652_s3 + $0x144] sm:$0xf]  ;;  %v4050_v12 = vadd.f32 %v4049_v25, %v10238_v52  ;;  %v6953_v25 = vld [vmem:[%s11652_s3 + $0x230] sm:$0xf] }
 0x574   : > { %4455 = vmatmul.bf16.gmra.mxu2 %v9867_v4  ;;  %v10214_v42 = vpop.f32.mrf.mxu1  ;;  %v6838_v7 = vor.u32 %v7391_v47, %v6835_v17 }
 0x577   : > { %v10222_v14 = vpop.f32.mrf.mxu2  ;;  %4805 = vmatpush.bf16.msrb.mxu2 %v6846_v55  ;;  %v6699_v55 = vld [vmem:[%s11652_s3 + $0x38] sm:$0xf0] }
 0x578   : > { %11808 = vst [vmem:[#allocation31_spill] sm:$0xff] %v10222_v14  ;;  %v10224_v44 = vpop.f32.mrf.mxu0  ;;  %v6702_v40 = vor.u32 %v7357_v33, %v6699_v55  ;;  %v4052_v55 = vadd.f32 %v4051_v48, %v10238_v52  ;;  %v6811_v48 = vld [vmem:[%s11652_s3 + $0x118] sm:$0xf0] }
 0x579   : > { %11809 = vst [vmem:[#allocation13_spill] sm:$0xff] %v10224_v44 }
 0x57a   : > { %4589 = vmatpush.bf16.msra.mxu3 %v6702_v40  ;;  %v7422_v40 = vld [vmem:[%s11652_s3 + $0x234] sm:$0xf0] }
 0x57b   : > { %4341 = vmatmul.bf16.gmra.mxu0 %v9631_v8  ;;  %4806 = vmatpush.bf16.msrb.mxu2 %v6838_v7  ;;  %v6954_v17 = vor.u32 %v7422_v40, %v6953_v25  ;;  %v6795_v25 = vld [vmem:[%s11652_s3 + $0xf8] sm:$0xf0]  ;;  %v7385_v40 = vld [vmem:[%s11652_s3 + $0x114] sm:$0xf] }
 0x57c   : > { %v10236_v14 = vpop.f32.mrf.mxu1 }
 0x57d   : > { %4480 = vmatpush.bf16.msra.mxu1 %v6954_v17 }
 0x57f   : > { %v10246_v44 = vpop.f32.mrf.mxu2  ;;  %4098 = vmatmul.bf16.gmra.mxu1 %v11751_v16  ;;  %4197 = vmatmul.bf16.gmra.mxu3 %v11751_v16 }
 0x580   : > { %11810 = vst [vmem:[#allocation14_spill] sm:$0xff] %v10246_v44  ;;  %v10256_v2 = vpop.f32.mrf.mxu0  ;;  %4807 = vmatpush.bf16.msrb.mxu2 %v6830_v36  ;;  %v7381_v36 = vld [vmem:[%s11652_s3 + $0xf4] sm:$0xf] }
 0x581   : > { %11811 = vst [vmem:[#allocation32_spill] sm:$0xff] %v10256_v2  ;;  %v6798_v17 = vor.u32 %v7381_v36, %v6795_v25 }
 0x582   : > { %v4158_v44 = vpop.f32.mrf.mxu3 }
 0x583   : > { %v10265_v34 = vadd.f32 %v4158_v44, %v4050_v12  ;;  %v7387_v12 = vld [vmem:[%s11652_s3 + $0x124] sm:$0xf]  ;;  %4694 = vmatpush.bf16.msrb.mxu0 %v6798_v17 }
 0x584   : > { %4460 = vmatmul.bf16.gmra.mxu2 %v9886_v49  ;;  %v10268_v47 = vpop.f32.mrf.mxu1  ;;  %v6822_v44 = vor.u32 %v7387_v12, %v6819_v45 }
 0x586   : > { %4808 = vmatpush.bf16.msrb.mxu2 %v6822_v44  ;;  %v6814_v44 = vor.u32 %v7385_v40, %v6811_v48  ;;  %v6803_v40 = vld [vmem:[%s11652_s3 + $0x108] sm:$0xf0] }
 0x587   : > { %v10282_v15 = vpop.f32.mrf.mxu2 }
 0x588   : > { %11812 = vst [vmem:[#allocation15_spill] sm:$0xff] %v10282_v15  ;;  %v10284_v33 = vpop.f32.mrf.mxu0  ;;  %v7379_v15 = vld [vmem:[%s11652_s3 + $0xe4] sm:$0xf] }
 0x589   : > { %11813 = vst [vmem:[#allocation16_spill] sm:$0xff] %v10284_v33 }
 0x58a   : > { %v4160_v7 = vpop.f32.mrf.mxu3  ;;  %4809 = vmatpush.bf16.msrb.mxu2 %v6814_v44  ;;  %v4055_v44 = vadd.f32 %v10199_v50, %v10238_v52  ;;  %v7375_v50 = vld [vmem:[%s11652_s3 + $0xc4] sm:$0xf] }
 0x58b   : > { %v10296_v12 = vadd.f32 %v4160_v7, %v4052_v55  ;;  %4346 = vmatmul.bf16.gmra.mxu0 %v9704_v53  ;;  %v6787_v55 = vld [vmem:[%s11652_s3 + $0xe8] sm:$0xf0]  ;;  %v7383_v7 = vld [vmem:[%s11652_s3 + $0x104] sm:$0xf] }
 0x58c   : > { %v10302_v45 = vpop.f32.mrf.mxu1  ;;  %v6790_v25 = vor.u32 %v7379_v15, %v6787_v55  ;;  %v6806_v48 = vor.u32 %v7383_v7, %v6803_v40  ;;  %v6779_v15 = vld [vmem:[%s11652_s3 + $0xd8] sm:$0xf0] }
 0x58e   : > { %4695 = vmatpush.bf16.msrb.mxu0 %v6790_v25  ;;  %4810 = vmatpush.bf16.msrb.mxu2 %v6806_v48  ;;  %v6771_v25 = vld [vmem:[%s11652_s3 + $0xc8] sm:$0xf0] }
 0x58f   : > { %v10313_v36 = vpop.f32.mrf.mxu2  ;;  %4103 = vmatmul.bf16.gmra.mxu1 %v11759_v58  ;;  %4202 = vmatmul.bf16.gmra.mxu3 %v11759_v58  ;;  %v6774_v48 = vor.u32 %v7375_v50, %v6771_v25 }
 0x590   : > { %11814 = vst [vmem:[#allocation47_spill] sm:$0xff] %v10313_v36  ;;  %v10320_v17 = vpop.f32.mrf.mxu0  ;;  %v7377_v36 = vld [vmem:[%s11652_s3 + $0xd4] sm:$0xf] }
 0x591   : > { %11815 = vst [vmem:[#allocation33_spill] sm:$0xff] %v10320_v17  ;;  %v6782_v2 = vor.u32 %v7377_v36, %v6779_v15 }
 0x592   : > { %v4163_v33 = vpop.f32.mrf.mxu3 }
 0x593   : > { %v10330_v55 = vadd.f32 %v4163_v33, %v4055_v44  ;;  %4696 = vmatpush.bf16.msrb.mxu0 %v6782_v2  ;;  %v4057_v33 = vadd.f32 %v10214_v42, %v10238_v52  ;;  %v7373_v2 = vld [vmem:[%s11652_s3 + $0xb4] sm:$0xf]  ;;  %v6763_v44 = vld [vmem:[%s11652_s3 + $0xb8] sm:$0xf0]  ;;  %v7371_v42 = vld [vmem:[%s11652_s3 + $0xa4] sm:$0xf] }
 0x594   : > { %4465 = vmatmul.bf16.gmra.mxu2 %v9945_v3  ;;  %v10333_v7 = vpop.f32.mrf.mxu1  ;;  %v6766_v50 = vor.u32 %v7373_v2, %v6763_v44  ;;  %v4060_v2 = vadd.f32 %v10236_v14, %v10238_v52  ;;  %v7367_v14 = vld [vmem:[%s11652_s3 + $0x84] sm:$0xf] }
 0x597   : > { %v10341_v40 = vpop.f32.mrf.mxu2  ;;  %4697 = vmatpush.bf16.msrb.mxu0 %v6774_v48  ;;  %v6755_v48 = vld [vmem:[%s11652_s3 + $0xa8] sm:$0xf0] }
 0x598   : > { %11816 = vst [vmem:[#allocation17_spill] sm:$0xff] %v10341_v40  ;;  %v10343_v17 = vpop.f32.mrf.mxu0 }
 0x599   : > { %11817 = vst [vmem:[#allocation18_spill] sm:$0xff] %v10343_v17 }
 0x59a   : > { %v4165_v36 = vpop.f32.mrf.mxu3 }
 0x59b   : > { %v10353_v15 = vadd.f32 %v4165_v36, %v4057_v33  ;;  %4351 = vmatmul.bf16.gmra.mxu0 %v9727_v63  ;;  %v6758_v33 = vor.u32 %v7371_v42, %v6755_v48  ;;  %v6739_v48 = vld [vmem:[%s11652_s3 + $0x88] sm:$0xf0] }
 0x59c   : > { %v4069_v25 = vpop.f32.mrf.mxu1  ;;  %4698 = vmatpush.bf16.msrb.mxu0 %v6766_v50  ;;  %v7369_v50 = vld [vmem:[%s11652_s3 + $0x94] sm:$0xf] }
 0x59f   : > { %v10362_v40 = vpop.f32.mrf.mxu2  ;;  %4108 = vmatmul.bf16.gmra.mxu1 %v11766_v56  ;;  %4207 = vmatmul.bf16.gmra.mxu3 %v11766_v56 }
 0x5a0   : > { %11818 = vst [vmem:[#allocation34_spill] sm:$0xff] %v10362_v40  ;;  %v10366_v36 = vpop.f32.mrf.mxu0  ;;  %4699 = vmatpush.bf16.msrb.mxu0 %v6758_v33  ;;  %v6747_v40 = vld [vmem:[%s11652_s3 + $0x98] sm:$0xf0] }
 0x5a1   : > { %11819 = vst [vmem:[#allocation19_spill] sm:$0xff] %v10366_v36  ;;  %v6750_v3 = vor.u32 %v7369_v50, %v6747_v40  ;;  %v6691_v40 = vld [vmem:[%s11652_s3 + $0x28] sm:$0xf0] }
 0x5a2   : > { %v4168_v44 = vpop.f32.mrf.mxu3 }
 0x5a3   : > { %v10376_v17 = vadd.f32 %v4168_v44, %v4060_v2  ;;  %v7355_v2 = vld [vmem:[%s11652_s3 + $0x24] sm:$0xf]  ;;  %v6742_v44 = vor.u32 %v7367_v14, %v6739_v48  ;;  %v7420_v14 = vld [vmem:[%s11652_s3 + $0x224] sm:$0xf0] }
 0x5a4   : > { %4470 = vmatmul.bf16.gmra.mxu2 %v9970_v26  ;;  %v4071_v42 = vpop.f32.mrf.mxu1  ;;  %4700 = vmatpush.bf16.msrb.mxu0 %v6750_v3  ;;  %v6694_v50 = vor.u32 %v7355_v2, %v6691_v40  ;;  %v4062_v26 = vadd.f32 %v10268_v47, %v10238_v52  ;;  %v6946_v48 = vor.u32 %v7420_v14, %v6945_v27 }
 0x5a5   : > { %v4065_v47 = vadd.f32 %v10302_v45, %v10238_v52  ;;  %v4067_v14 = vadd.f32 %v10333_v7, %v10238_v52 }
 0x5a6   : > { %4590 = vmatpush.bf16.msra.mxu3 %v6694_v50  ;;  %4481 = vmatpush.bf16.msra.mxu1 %v6946_v48 }
 0x5a7   : > { %v10385_v33 = vpop.f32.mrf.mxu2 }
 0x5a8   : > { %11820 = vst [vmem:[#allocation20_spill] sm:$0xff] %v10385_v33  ;;  %v10393_v3 = vpop.f32.mrf.mxu0  ;;  %4701 = vmatpush.bf16.msrb.mxu0 %v6742_v44 }
 0x5a9   : > { %11821 = vst [vmem:[#allocation48_spill] sm:$0xff] %v10393_v3 }
 0x5aa   : > { %v4170_v36 = vpop.f32.mrf.mxu3 }
 0x5ab   : > { %v10397_v21 = vadd.f32 %v4170_v36, %v4062_v26  ;;  %4356 = vmatmul.bf16.gmra.mxu0 %v9867_v4 }
 0x5ac   : > { %v4074_v33 = vpop.f32.mrf.mxu1 }
 0x5af   : > { %v10406_v2 = vpop.f32.mrf.mxu2  ;;  %4113 = vmatmul.bf16.gmra.mxu1 %v11773_v0  ;;  %4212 = vmatmul.bf16.gmra.mxu3 %v11773_v0 }
 0x5b0   : > { %11822 = vst [vmem:[#allocation21_spill] sm:$0xff] %v10406_v2  ;;  %v10410_v26 = vpop.f32.mrf.mxu0 }
 0x5b1   : > { %11823 = vst [vmem:[#allocation35_spill] sm:$0xff] %v10410_v26 }
 0x5b2   : > { %v4173_v36 = vpop.f32.mrf.mxu3 }
 0x5b3   : > { %v10414_v40 = vadd.f32 %v4173_v36, %v4065_v47  ;;  %v4070_v36 = vadd.f32 %v4069_v25, %v10238_v52  ;;  %v7353_v25 = vld [vmem:[%s11652_s3 + $0x14] sm:$0xf] }
 0x5b4   : > { %4811 = vmatmul.bf16.vlgmr.msrb.gmra.mxu2 %v8602_v59  ;;  %v4076_v44 = vpop.f32.mrf.mxu1 }
 0x5b7   : > { %v10417_v50 = vpop.f32.mrf.mxu2 }
 0x5b8   : > { %11824 = vst [vmem:[#allocation22_spill] sm:$0xff] %v10417_v50  ;;  %v10419_v27 = vpop.f32.mrf.mxu0 }
 0x5b9   : > { %11825 = vst [vmem:[#allocation36_spill] sm:$0xff] %v10419_v27 }
 0x5ba   : > { %v4175_v2 = vpop.f32.mrf.mxu3 }
 0x5bb   : > { %v10423_v3 = vadd.f32 %v4175_v2, %v4067_v14  ;;  %4361 = vmatmul.bf16.gmra.mxu0 %v9886_v49 }
 0x5bc   : > { %v4079_v48 = vpop.f32.mrf.mxu1 }
 0x5bf   : > { %v10426_v45 = vpop.f32.mrf.mxu2  ;;  %4118 = vmatmul.bf16.gmra.mxu1 %v11782_v13  ;;  %4217 = vmatmul.bf16.gmra.mxu3 %v11782_v13 }
 0x5c0   : > { %11826 = vst [vmem:[#allocation39_spill] sm:$0xff] %v10426_v45  ;;  %v10430_v47 = vpop.f32.mrf.mxu0  ;;  %v4072_v45 = vadd.f32 %v4071_v42, %v10238_v52  ;;  %v6683_v42 = vld [vmem:[%s11652_s3 + $0x18] sm:$0xf0] }
 0x5c1   : > { %11827 = vst [vmem:[#allocation23_spill] sm:$0xff] %v10430_v47 }
 0x5c2   : > { %v4178_v50 = vpop.f32.mrf.mxu3 }
 0x5c3   : > { %v10433_v27 = vadd.f32 %v4178_v50, %v4070_v36 }
 0x5c4   : > { %4816 = vmatmul.bf16.gmra.mxu2 %v11741_v32  ;;  %v4081_v7 = vpop.f32.mrf.mxu1 }
 0x5c5   : > { %11828 = vst [vmem:[#allocation24_spill] sm:$0xff] %v10433_v27 }
 0x5c7   : > { %v10436_v2 = vpop.f32.mrf.mxu2 }
 0x5c8   : > { %11829 = vst [vmem:[#allocation49_spill] sm:$0xff] %v10436_v2  ;;  %v10438_v14 = vpop.f32.mrf.mxu0 }
 0x5c9   : > { %11830 = vst [vmem:[#allocation37_spill] sm:$0xff] %v10438_v14  ;;  %v6937_v14 = vld [vmem:[%s11652_s3 + $0x210] sm:$0xf] }
 0x5ca   : > { %v4180_v26 = vpop.f32.mrf.mxu3 }
 0x5cb   : > { %v10441_v49 = vadd.f32 %v4180_v26, %v4072_v45  ;;  %4702 = vmatmul.bf16.vlgmr.msrb.gmra.mxu0 %v10070_v28  ;;  %v6686_v26 = vor.u32 %v7353_v25, %v6683_v42  ;;  %v4075_v45 = vadd.f32 %v4074_v33, %v10238_v52  ;;  %v4077_v33 = vadd.f32 %v4076_v44, %v10238_v52 }
 0x5cc   : > { %v4084_v47 = vpop.f32.mrf.mxu1 }
 0x5cd   : > { %11831 = vst [vmem:[#allocation40_spill] sm:$0xff] %v10441_v49  ;;  %4591 = vmatpush.bf16.msra.mxu3 %v6686_v26  ;;  %v7418_v49 = vld [vmem:[%s11652_s3 + $0x214] sm:$0xf0] }
 0x5ce   : > { %v6938_v27 = vor.u32 %v7418_v49, %v6937_v14  ;;  %v4080_v49 = vadd.f32 %v4079_v48, %v10238_v52  ;;  %v4085_v48 = vadd.f32 %v4084_v47, %v10238_v52 }
 0x5cf   : > { %v10444_v5 = vpop.f32.mrf.mxu2  ;;  %4123 = vmatmul.bf16.gmra.mxu1 %v11790_v54  ;;  %4222 = vmatmul.bf16.gmra.mxu3 %v11790_v54 }
 0x5d0   : > { %11832 = vst [vmem:[#allocation26_spill] sm:$0xff] %v10444_v5  ;;  %v10454_v50 = vpop.f32.mrf.mxu0  ;;  %4482 = vmatpush.bf16.msra.mxu1 %v6938_v27 }
 0x5d1   : > { %11833 = vst [vmem:[#allocation38_spill] sm:$0xff] %v10454_v50 }
 0x5d2   : > { %v4183_v36 = vpop.f32.mrf.mxu3 }
 0x5d3   : > { %v10457_v5 = vadd.f32 %v4183_v36, %v4075_v45 }
 0x5d4   : > { %4821 = vmatmul.bf16.gmra.mxu2 %v8739_v31  ;;  %v4086_v2 = vpop.f32.mrf.mxu1 }
 0x5d5   : > { %11834 = vst [vmem:[#allocation41_spill] sm:$0xff] %v10457_v5  ;;  %v4087_v47 = vadd.f32 %v4086_v2, %v10238_v52 }
 0x5d7   : > { %v10466_v50 = vpop.f32.mrf.mxu2 }
 0x5d8   : > { %11835 = vst [vmem:[#allocation28_spill] sm:$0xff] %v10466_v50  ;;  %v10469_v25 = vpop.f32.mrf.mxu0 }
 0x5d9   : > { %11836 = vst [vmem:[#allocation50_spill] sm:$0xff] %v10469_v25 }
 0x5da   : > { %v4185_v42 = vpop.f32.mrf.mxu3 }
 0x5db   : > { %v10471_v26 = vadd.f32 %v4185_v42, %v4077_v33  ;;  %4707 = vmatmul.bf16.gmra.mxu0 %v10101_v46  ;;  %v4082_v42 = vadd.f32 %v4081_v7, %v10238_v52 }
 0x5dc   : > { %v4089_v45 = vpop.f32.mrf.mxu1 }
 0x5dd   : > { %11837 = vst [vmem:[#allocation42_spill] sm:$0xff] %v10471_v26  ;;  %v4090_v2 = vadd.f32 %v4089_v45, %v10238_v52 }
 0x5df   : > { %4128 = vmatmul.bf16.gmra.mxu1 %v11792_v38  ;;  %4227 = vmatmul.bf16.gmra.mxu3 %v11792_v38  ;;  %v10476_v36 = vpop.f32.mrf.mxu2 }
 0x5e0   : > { %11838 = vst [vmem:[#allocation51_spill] sm:$0xff] %v10476_v36  ;;  %v10479_v27 = vpop.f32.mrf.mxu0 }
 0x5e1   : > { %11839 = vst [vmem:[#allocation52_spill] sm:$0xff] %v10479_v27 }
 0x5e2   : > { %v4188_v14 = vpop.f32.mrf.mxu3 }
 0x5e3   : > { %v10481_v44 = vadd.f32 %v4188_v14, %v4080_v49 }
 0x5e4   : > { %4826 = vmatmul.bf16.gmra.mxu2 %v8773_v51  ;;  %v4091_v33 = vpop.f32.mrf.mxu1 }
 0x5e5   : > { %11840 = vst [vmem:[#allocation57_spill] sm:$0xff] %v10481_v44 }
 0x5e7   : > { %v10485_v50 = vpop.f32.mrf.mxu2 }
 0x5e8   : > { %11841 = vst [vmem:[#allocation58_spill] sm:$0xff] %v10485_v50  ;;  %v10490_v5 = vpop.f32.mrf.mxu0  ;;  %v7351_v50 = vld [vmem:[%s11652_s3 + $0x4] sm:$0xf] }
 0x5e9   : > { %11843 = vst [vmem:[#allocation60_spill] sm:$0xff] %v10490_v5  ;;  %v6675_v5 = vld [vmem:[%s11652_s3 + $0x8] sm:$0xf0] }
 0x5ea   : > { %v4190_v25 = vpop.f32.mrf.mxu3  ;;  %v6678_v27 = vor.u32 %v7351_v50, %v6675_v5 }
 0x5eb   : > { %v10487_v26 = vadd.f32 %v4190_v25, %v4082_v42  ;;  %4712 = vmatmul.bf16.gmra.mxu0 %v8602_v59 }
 0x5ec   : > { %v4094_v36 = vpop.f32.mrf.mxu1  ;;  %4592 = vmatpush.bf16.msra.mxu3 %v6678_v27 }
 0x5ed   : > { %11842 = vst [vmem:[#allocation59_spill] sm:$0xff] %v10487_v26 }
 0x5ef   : > { %4133 = vmatmul.bf16.gmra.mxu1 %v11793_v20  ;;  %4232 = vmatmul.bf16.gmra.mxu3 %v11793_v20  ;;  %v10497_v7 = vpop.f32.mrf.mxu2 }
 0x5f0   : > { %11845 = vst [vmem:[#allocation62_spill] sm:$0xff] %v10497_v7  ;;  %v10500_v42 = vpop.f32.mrf.mxu0  ;;  %v7416_v7 = vld [vmem:[%s11652_s3 + $0x204] sm:$0xf0] }
 0x5f1   : > { %11846 = vst [vmem:[#allocation63_spill] sm:$0xff] %v10500_v42 }
 0x5f2   : > { %v4193_v49 = vpop.f32.mrf.mxu3 }
 0x5f3   : > { %v10495_v14 = vadd.f32 %v4193_v49, %v4085_v48  ;;  %v6929_v49 = vld [vmem:[%s11652_s3 + $0x200] sm:$0xf] }
 0x5f4   : > { %4831 = vmatmul.bf16.gmra.mxu2 %v8893_v10  ;;  %v4096_v25 = vpop.f32.mrf.mxu1 }
 0x5f5   : > { %11844 = vst [vmem:[#allocation61_spill] sm:$0xff] %v10495_v14  ;;  %v6930_v14 = vor.u32 %v7416_v7, %v6929_v49 }
 0x5f7   : > { %4483 = vmatpush.bf16.msra.mxu1 %v6930_v14  ;;  %v10518_v5 = vpop.f32.mrf.mxu2  ;;  %v4092_v14 = vadd.f32 %v4091_v33, %v10238_v52 }
 0x5f8   : > { %11848 = vst [vmem:[#allocation65_spill] sm:$0xff] %v10518_v5  ;;  %v10523_v50 = vpop.f32.mrf.mxu0 }
 0x5f9   : > { %11849 = vst [vmem:[#allocation66_spill] sm:$0xff] %v10523_v50 }
 0x5fa   : > { %v4195_v48 = vpop.f32.mrf.mxu3 }
 0x5fb   : > { %v10515_v42 = vadd.f32 %v4195_v48, %v4087_v47  ;;  %4717 = vmatmul.bf16.gmra.mxu0 %v11741_v32 }
 0x5fc   : > { %v4099_v26 = vpop.f32.mrf.mxu1 }
 0x5fd   : > { %11847 = vst [vmem:[#allocation64_spill] sm:$0xff] %v10515_v42 }
 0x5ff   : > { %4138 = vmatmul.bf16.gmra.mxu1 %v9598_v29  ;;  %4237 = vmatmul.bf16.gmra.mxu3 %v9598_v29  ;;  %v10528_v48 = vpop.f32.mrf.mxu2 }
 0x600   : > { %11851 = vst [vmem:[#allocation68_spill] sm:$0xff] %v10528_v48  ;;  %v10531_v49 = vpop.f32.mrf.mxu0 }
 0x601   : > { %11852 = vst [vmem:[#allocation69_spill] sm:$0xff] %v10531_v49 }
 0x602   : > { %v4198_v27 = vpop.f32.mrf.mxu3 }
 0x603   : > { %v10525_v44 = vadd.f32 %v4198_v27, %v4090_v2  ;;  %v4095_v2 = vadd.f32 %v4094_v36, %v10238_v52 }
 0x604   : > { %4836 = vmatmul.bf16.gmra.mxu2 %v11743_v6  ;;  %v4101_v47 = vpop.f32.mrf.mxu1 }
 0x605   : > { %11850 = vst [vmem:[#allocation67_spill] sm:$0xff] %v10525_v44 }
 0x607   : > { %v10539_v27 = vpop.f32.mrf.mxu2 }
 0x608   : > { %11854 = vst [vmem:[#allocation71_spill] sm:$0xff] %v10539_v27  ;;  %v10544_v49 = vpop.f32.mrf.mxu0 }
 0x609   : > { %11856 = vst [vmem:[#allocation73_spill] sm:$0xff] %v10544_v49  ;;  %v6923_v49 = vld [vmem:[%s11652_s3 + $0x1f8] sm:$0xf0] }
 0x60a   : > { %v4200_v7 = vpop.f32.mrf.mxu3 }
 0x60b   : > { %v10533_v5 = vadd.f32 %v4200_v7, %v4092_v14  ;;  %4722 = vmatmul.bf16.gmra.mxu0 %v8739_v31  ;;  %v4097_v14 = vadd.f32 %v4096_v25, %v10238_v52  ;;  %v6987_v25 = vld [vmem:[%s11652_s3 + $0x278] sm:$0xf0] }
 0x60c   : > { %v4104_v45 = vpop.f32.mrf.mxu1 }
 0x60d   : > { %11853 = vst [vmem:[#allocation70_spill] sm:$0xff] %v10533_v5 }
 0x60f   : > { %4143 = vmatmul.bf16.gmra.mxu1 %v9631_v8  ;;  %4242 = vmatmul.bf16.gmra.mxu3 %v9631_v8  ;;  %v10550_v44 = vpop.f32.mrf.mxu2 }
 0x610   : > { %11858 = vst [vmem:[#allocation75_spill] sm:$0xff] %v10550_v44  ;;  %v10552_v42 = vpop.f32.mrf.mxu0 }
 0x611   : > { %11859 = vst [vmem:[#allocation76_spill] sm:$0xff] %v10552_v42  ;;  %v7413_v42 = vld [vmem:[%s11652_s3 + $0x1f4] sm:$0xf] }
 0x612   : > { %v4203_v50 = vpop.f32.mrf.mxu3 }
 0x613   : > { %v10541_v48 = vadd.f32 %v4203_v50, %v4095_v2  ;;  %v7429_v50 = vld [vmem:[%s11652_s3 + $0x274] sm:$0xf] }
 0x614   : > { %4841 = vmatmul.bf16.gmra.mxu2 %v11751_v16  ;;  %v4106_v33 = vpop.f32.mrf.mxu1  ;;  %v6990_v2 = vor.u32 %v7429_v50, %v6987_v25  ;;  %v6926_v50 = vor.u32 %v7413_v42, %v6923_v49 }
 0x615   : > { %11855 = vst [vmem:[#allocation72_spill] sm:$0xff] %v10541_v48 }
 0x616   : > { %5021 = vmatpush.bf16.msrb.mxu3 %v6990_v2  ;;  %4912 = vmatpush.bf16.msrb.mxu1 %v6926_v50 }
 0x618   : > { %v10575_v25 = vpop.f32.mrf.mxu0 }
 0x619   : > { %11862 = vst [vmem:[#allocation79_spill] sm:$0xff] %v10575_v25 }
 0x61a   : > { %v4205_v7 = vpop.f32.mrf.mxu3 }
 0x61b   : > { %v10547_v5 = vadd.f32 %v4205_v7, %v4097_v14  ;;  %4727 = vmatmul.bf16.gmra.mxu0 %v8773_v51  ;;  %v4100_v14 = vadd.f32 %v4099_v26, %v10238_v52  ;;  %v4102_v26 = vadd.f32 %v4101_v47, %v10238_v52 }
 0x61c   : > { %v4109_v36 = vpop.f32.mrf.mxu1 }
 0x61d   : > { %11857 = vst [vmem:[#allocation74_spill] sm:$0xff] %v10547_v5  ;;  %v10572_v5 = vpop.f32.mrf.mxu2 }
 0x61e   : > { %11861 = vst [vmem:[#allocation78_spill] sm:$0xff] %v10572_v5  ;;  %v4105_v5 = vadd.f32 %v4104_v45, %v10238_v52 }
 0x61f   : > { %4247 = vmatmul.bf16.gmra.mxu3 %v9704_v53  ;;  %4484 = vmatmul.bf16.vlgmr.msra.gmra.mxu1 %v8893_v10 }
 0x620   : > { %v10585_v49 = vpop.f32.mrf.mxu0 }
 0x621   : > { %11865 = vst [vmem:[#allocation82_spill] sm:$0xff] %v10585_v49  ;;  %v6915_v49 = vld [vmem:[%s11652_s3 + $0x1e8] sm:$0xf0] }
 0x622   : > { %v4208_v7 = vpop.f32.mrf.mxu3 }
 0x623   : > { %v10563_v44 = vadd.f32 %v4208_v7, %v4100_v14 }
 0x624   : > { %4846 = vmatmul.bf16.gmra.mxu2 %v11759_v58  ;;  %v4111_v27 = vpop.f32.mrf.mxu1 }
 0x625   : > { %11860 = vst [vmem:[#allocation77_spill] sm:$0xff] %v10563_v44  ;;  %v10582_v44 = vpop.f32.mrf.mxu2 }
 0x626   : > { %11864 = vst [vmem:[#allocation81_spill] sm:$0xff] %v10582_v44 }
 0x628   : > { %v10596_v48 = vpop.f32.mrf.mxu0 }
 0x629   : > { %11868 = vst [vmem:[#allocation85_spill] sm:$0xff] %v10596_v48 }
 0x62a   : > { %v4210_v2 = vpop.f32.mrf.mxu3 }
 0x62b   : > { %v10577_v14 = vadd.f32 %v4210_v2, %v4102_v26  ;;  %4732 = vmatmul.bf16.gmra.mxu0 %v8893_v10  ;;  %v4107_v26 = vadd.f32 %v4106_v33, %v10238_v52 }
 0x62c   : > { %v4114_v7 = vpop.f32.mrf.mxu1 }
 0x62d   : > { %11863 = vst [vmem:[#allocation80_spill] sm:$0xff] %v10577_v14  ;;  %v10591_v2 = vpop.f32.mrf.mxu2 }
 0x62e   : > { %11866 = vst [vmem:[#allocation83_spill] sm:$0xff] %v10591_v2  ;;  %v7427_v2 = vld [vmem:[%s11652_s3 + $0x264] sm:$0xf] }
 0x62f   : > { %4252 = vmatmul.bf16.gmra.mxu3 %v9727_v63  ;;  %4489 = vmatmul.bf16.gmra.mxu1 %v11743_v6 }
 0x632   : > { %v4213_v42 = vpop.f32.mrf.mxu3 }
 0x633   : > { %v10587_v47 = vadd.f32 %v4213_v42, %v4105_v5  ;;  %v4110_v5 = vadd.f32 %v4109_v36, %v10238_v52  ;;  %v4112_v36 = vadd.f32 %v4111_v27, %v10238_v52 }
 0x634   : > { %4851 = vmatmul.bf16.gmra.mxu2 %v11766_v56  ;;  %v4116_v50 = vpop.f32.mrf.mxu1 }
 0x635   : > { %v10603_v33 = vpop.f32.mrf.mxu2 }
 0x636   : > { %11870 = vst [vmem:[#allocation87_spill] sm:$0xff] %v10603_v33 }
 0x63a   : > { %v4215_v25 = vpop.f32.mrf.mxu3 }
 0x63b   : > { %v10593_v14 = vadd.f32 %v4215_v25, %v4107_v26  ;;  %4737 = vmatmul.bf16.gmra.mxu0 %v11743_v6  ;;  %v10606_v26 = vpop.f32.mrf.mxu0 }
 0x63c   : > { %v4119_v44 = vpop.f32.mrf.mxu1  ;;  %11871 = vst [vmem:[#allocation88_spill] sm:$0xff] %v10606_v26  ;;  %v7411_v26 = vld [vmem:[%s11652_s3 + $0x1e4] sm:$0xf] }
 0x63d   : > { %11867 = vst [vmem:[#allocation84_spill] sm:$0xff] %v10593_v14 }
 0x63f   : > { %4494 = vmatmul.bf16.gmra.mxu1 %v11751_v16  ;;  %4593 = vmatmul.bf16.vlgmr.msra.gmra.mxu3 %v10014_v43  ;;  %v6979_v43 = vld [vmem:[%s11652_s3 + $0x268] sm:$0xf0] }
 0x640   : > { %v6982_v48 = vor.u32 %v7427_v2, %v6979_v43  ;;  %v6918_v2 = vor.u32 %v7411_v26, %v6915_v49 }
 0x642   : > { %v4218_v45 = vpop.f32.mrf.mxu3  ;;  %5022 = vmatpush.bf16.msrb.mxu3 %v6982_v48  ;;  %4913 = vmatpush.bf16.msrb.mxu1 %v6918_v2  ;;  %v4115_v48 = vadd.f32 %v4114_v7, %v10238_v52  ;;  %v4120_v7 = vadd.f32 %v4119_v44, %v10238_v52 }
 0x643   : > { %v10601_v42 = vadd.f32 %v4218_v45, %v4110_v5  ;;  %v10629_v27 = vpop.f32.mrf.mxu0 }
 0x644   : > { %4856 = vmatmul.bf16.gmra.mxu2 %v11773_v0  ;;  %v4121_v25 = vpop.f32.mrf.mxu1  ;;  %11874 = vst [vmem:[#allocation91_spill] sm:$0xff] %v10629_v27 }
 0x645   : > { %11869 = vst [vmem:[#allocation86_spill] sm:$0xff] %v10601_v42  ;;  %v10624_v42 = vpop.f32.mrf.mxu2 }
 0x646   : > { %11873 = vst [vmem:[#allocation90_spill] sm:$0xff] %v10624_v42  ;;  %v4117_v42 = vadd.f32 %v4116_v50, %v10238_v52 }
 0x64a   : > { %v4220_v5 = vpop.f32.mrf.mxu3 }
 0x64b   : > { %v10615_v45 = vadd.f32 %v4220_v5, %v4112_v36  ;;  %4742 = vmatmul.bf16.gmra.mxu0 %v11751_v16  ;;  %v10637_v26 = vpop.f32.mrf.mxu0 }
 0x64c   : > { %v4124_v33 = vpop.f32.mrf.mxu1  ;;  %11876 = vst [vmem:[#allocation93_spill] sm:$0xff] %v10637_v26 }
 0x64d   : > { %11872 = vst [vmem:[#allocation89_spill] sm:$0xff] %v10615_v45  ;;  %v10634_v45 = vpop.f32.mrf.mxu2 }
 0x64e   : > { %11875 = vst [vmem:[#allocation92_spill] sm:$0xff] %v10634_v45 }
 0x64f   : > { %4499 = vmatmul.bf16.gmra.mxu1 %v11759_v58  ;;  %4598 = vmatmul.bf16.gmra.mxu3 %v10049_v9 }
 0x652   : > { %v4223_v43 = vpop.f32.mrf.mxu3 }
 0x653   : > { %v10631_v36 = vadd.f32 %v4223_v43, %v4115_v48  ;;  %v10650_v45 = vpop.f32.mrf.mxu0 }
 0x654   : > { %4861 = vmatmul.bf16.gmra.mxu2 %v11782_v13  ;;  %v4126_v5 = vpop.f32.mrf.mxu1  ;;  %11878 = vst [vmem:[#allocation95_spill] sm:$0xff] %v10650_v45 }
 0x655   : > { %v10645_v2 = vpop.f32.mrf.mxu2 }
 0x656   : > { %11877 = vst [vmem:[#allocation94_spill] sm:$0xff] %v10645_v2 }
 0x65a   : > { %v4225_v49 = vpop.f32.mrf.mxu3 }
 0x65b   : > { %v10639_v14 = vadd.f32 %v4225_v49, %v4117_v42  ;;  %4747 = vmatmul.bf16.gmra.mxu0 %v11759_v58  ;;  %v4122_v42 = vadd.f32 %v4121_v25, %v10238_v52  ;;  %v10658_v27 = vpop.f32.mrf.mxu0  ;;  %v6971_v25 = vld [vmem:[%s11652_s3 + $0x258] sm:$0xf0] }
 0x65c   : > { %v4129_v9 = vpop.f32.mrf.mxu1  ;;  %11880 = vst [vmem:[#allocation97_spill] sm:$0xff] %v10658_v27  ;;  %v6907_v27 = vld [vmem:[%s11652_s3 + $0x1d8] sm:$0xf0] }
 0x65f   : > { %4504 = vmatmul.bf16.gmra.mxu1 %v11766_v56  ;;  %4603 = vmatmul.bf16.gmra.mxu3 %v10070_v28  ;;  %v10656_v28 = vpop.f32.mrf.mxu2 }
 0x660   : > { %11879 = vst [vmem:[#allocation96_spill] sm:$0xff] %v10656_v28 }
 0x662   : > { %v4228_v48 = vpop.f32.mrf.mxu3 }
 0x663   : > { %v10647_v43 = vadd.f32 %v4228_v48, %v4120_v7  ;;  %v7425_v7 = vld [vmem:[%s11652_s3 + $0x254] sm:$0xf] }
 0x664   : > { %4866 = vmatmul.bf16.gmra.mxu2 %v11790_v54  ;;  %v4131_v50 = vpop.f32.mrf.mxu1  ;;  %v6974_v48 = vor.u32 %v7425_v7, %v6971_v25  ;;  %v10681_v25 = vpop.f32.mrf.mxu0 }
 0x665   : > { %11883 = vst [vmem:[#allocation100_spill] sm:$0xff] %v10681_v25 }
 0x666   : > { %5023 = vmatpush.bf16.msrb.mxu3 %v6974_v48 }
 0x667   : > { %v10678_v45 = vpop.f32.mrf.mxu2 }
 0x668   : > { %11882 = vst [vmem:[#allocation99_spill] sm:$0xff] %v10678_v45  ;;  %v4130_v45 = vadd.f32 %v4129_v9, %v10238_v52 }
 0x66a   : > { %v4230_v49 = vpop.f32.mrf.mxu3 }
 0x66b   : > { %v10653_v26 = vadd.f32 %v4230_v49, %v4122_v42  ;;  %4752 = vmatmul.bf16.gmra.mxu0 %v11766_v56  ;;  %v4125_v42 = vadd.f32 %v4124_v33, %v10238_v52  ;;  %v4127_v33 = vadd.f32 %v4126_v5, %v10238_v52 }
 0x66c   : > { %v4134_v44 = vpop.f32.mrf.mxu1 }
 0x66f   : > { %4509 = vmatmul.bf16.gmra.mxu1 %v11773_v0  ;;  %4608 = vmatmul.bf16.gmra.mxu3 %v10101_v46  ;;  %v7409_v46 = vld [vmem:[%s11652_s3 + $0x1d4] sm:$0xf] }
 0x670   : > { %v6910_v7 = vor.u32 %v7409_v46, %v6907_v27  ;;  %v10691_v46 = vpop.f32.mrf.mxu0 }
 0x671   : > { %11886 = vst [vmem:[#allocation103_spill] sm:$0xff] %v10691_v46  ;;  %v7407_v46 = vld [vmem:[%s11652_s3 + $0x1c4] sm:$0xf] }
 0x672   : > { %v4233_v49 = vpop.f32.mrf.mxu3  ;;  %4914 = vmatpush.bf16.msrb.mxu1 %v6910_v7 }
 0x673   : > { %v10669_v28 = vadd.f32 %v4233_v49, %v4125_v42 }
 0x674   : > { %4871 = vmatmul.bf16.gmra.mxu2 %v11792_v38  ;;  %v4136_v2 = vpop.f32.mrf.mxu1 }
 0x675   : > { %11881 = vst [vmem:[#allocation98_spill] sm:$0xff] %v10669_v28  ;;  %v10688_v28 = vpop.f32.mrf.mxu2 }
 0x676   : > { %11885 = vst [vmem:[#allocation102_spill] sm:$0xff] %v10688_v28 }
 0x678   : > { %v10702_v28 = vpop.f32.mrf.mxu0 }
 0x679   : > { %11888 = vst [vmem:[#allocation105_spill] sm:$0xff] %v10702_v28  ;;  %v7423_v28 = vld [vmem:[%s11652_s3 + $0x244] sm:$0xf] }
 0x67a   : > { %v4235_v48 = vpop.f32.mrf.mxu3 }
 0x67b   : > { %v10683_v42 = vadd.f32 %v4235_v48, %v4127_v33  ;;  %4757 = vmatmul.bf16.gmra.mxu0 %v11773_v0  ;;  %v4132_v33 = vadd.f32 %v4131_v50, %v10238_v52 }
 0x67c   : > { %v4139_v49 = vpop.f32.mrf.mxu1 }
 0x67d   : > { %11884 = vst [vmem:[#allocation101_spill] sm:$0xff] %v10683_v42  ;;  %v10697_v48 = vpop.f32.mrf.mxu2 }
 0x67e   : > { %11887 = vst [vmem:[#allocation104_spill] sm:$0xff] %v10697_v48 }
 0x67f   : > { %4514 = vmatmul.bf16.gmra.mxu1 %v11782_v13  ;;  %4613 = vmatmul.bf16.gmra.mxu3 %v8602_v59 }
 0x680   : > { %v10714_v48 = vpop.f32.mrf.mxu0 }
 0x681   : > { %11890 = vst [vmem:[#allocation107_spill] sm:$0xff] %v10714_v48 }
 0x682   : > { %v4238_v27 = vpop.f32.mrf.mxu3 }
 0x683   : > { %v10693_v5 = vadd.f32 %v4238_v27, %v4130_v45  ;;  %v4135_v45 = vadd.f32 %v4134_v44, %v10238_v52 }
 0x684   : > { %4876 = vmatmul.bf16.gmra.mxu2 %v11793_v20  ;;  %v4141_v7 = vpop.f32.mrf.mxu1 }
 0x685   : > { %v10709_v50 = vpop.f32.mrf.mxu2 }
 0x686   : > { %11889 = vst [vmem:[#allocation106_spill] sm:$0xff] %v10709_v50 }
 0x68a   : > { %v4240_v25 = vpop.f32.mrf.mxu3 }
 0x68b   : > { %v10699_v42 = vadd.f32 %v4240_v25, %v4132_v33  ;;  %4762 = vmatmul.bf16.gmra.mxu0 %v11782_v13  ;;  %v4268_v33 = vadd.f32 %v10092_v22, %v10265_v34 }
 0x68c   : > { %v4144_v59 = vpop.f32.mrf.mxu1 }
 0x68d   : > { %v4377_v22 = vadd.f32 %v10065_v24, %v4268_v33  ;;  %v10741_v24 = vpop.f32.mrf.mxu0  ;;  %v4140_v33 = vadd.f32 %v4139_v49, %v10238_v52 }
 0x68f   : > { %4519 = vmatmul.bf16.gmra.mxu1 %v11790_v54  ;;  %4618 = vmatmul.bf16.gmra.mxu3 %v11741_v32  ;;  %v6963_v32 = vld [vmem:[%s11652_s3 + $0x248] sm:$0xf0] }
 0x690   : > { %v6966_v44 = vor.u32 %v7423_v28, %v6963_v32  ;;  %v6899_v28 = vld [vmem:[%s11652_s3 + $0x1c8] sm:$0xf0] }
 0x691   : > { %v6902_v32 = vor.u32 %v7407_v46, %v6899_v28  ;;  %v4142_v28 = vadd.f32 %v4141_v7, %v10238_v52 }
 0x692   : > { %v4243_v9 = vpop.f32.mrf.mxu3  ;;  %5024 = vmatpush.bf16.msrb.mxu3 %v6966_v44  ;;  %v4270_v44 = vadd.f32 %v10107_v35, %v10296_v12  ;;  %v4273_v35 = vadd.f32 %v10112_v39, %v10330_v55  ;;  %v4145_v39 = vadd.f32 %v4144_v59, %v10238_v52 }
 0x693   : > { %v10707_v27 = vadd.f32 %v4243_v9, %v4135_v45  ;;  %v4137_v45 = vadd.f32 %v4136_v2, %v10238_v52  ;;  %v10735_v2 = vpop.f32.mrf.mxu2  ;;  %4915 = vmatpush.bf16.msrb.mxu1 %v6902_v32 }
 0x694   : > { %4881 = vmatmul.bf16.gmra.mxu2 %v9598_v29  ;;  %v4146_v25 = vpop.f32.mrf.mxu1  ;;  %11891 = vst [vmem:[#allocation108_spill] sm:$0xff] %v10735_v2 }
 0x695   : > { %v10755_v2 = vpop.f32.mrf.mxu0 }
 0x69a   : > { %v4245_v9 = vpop.f32.mrf.mxu3 }
 0x69b   : > { %v10723_v50 = vadd.f32 %v4245_v9, %v4137_v45  ;;  %4767 = vmatmul.bf16.gmra.mxu0 %v11790_v54  ;;  %v10752_v12 = vpop.f32.mrf.mxu2 }
 0x69c   : > { %v4485_v34 = vpop.f32.mrf.mxu1  ;;  %11892 = vst [vmem:[#allocation109_spill] sm:$0xff] %v10752_v12  ;;  %v11924_v12 = vld [vmem:[#allocation11_spill] sm:$0xff] }
 0x69d   : > { %v10727_v48 = vadd.f32 %v4485_v34, %v4377_v22  ;;  %v4379_v22 = vadd.f32 %v10077_v41, %v4270_v44  ;;  %v4382_v41 = vadd.f32 %v10084_v61, %v4273_v35  ;;  %v10774_v35 = vpop.f32.mrf.mxu0 }
 0x69f   : > { %4524 = vmatmul.bf16.gmra.mxu1 %v11792_v38  ;;  %4623 = vmatmul.bf16.gmra.mxu3 %v8739_v31 }
 0x6a2   : > { %v4248_v45 = vpop.f32.mrf.mxu3 }
 0x6a3   : > { %v10744_v9 = vadd.f32 %v4248_v45, %v4140_v33  ;;  %v4275_v45 = vadd.f32 %v10119_v62, %v10353_v15  ;;  %v10768_v55 = vpop.f32.mrf.mxu2  ;;  %v4278_v62 = vadd.f32 %v10124_v1, %v10376_v17  ;;  %v4147_v15 = vadd.f32 %v4146_v25, %v10238_v52  ;;  %v7421_v1 = vld [vmem:[%s11652_s3 + $0x234] sm:$0xf] }
 0x6a4   : > { %4886 = vmatmul.bf16.gmra.mxu2 %v9631_v8  ;;  %v4487_v46 = vpop.f32.mrf.mxu1  ;;  %11893 = vst [vmem:[#allocation110_spill] sm:$0xff] %v10768_v55 }
 0x6a5   : > { %v10748_v34 = vadd.f32 %v4487_v46, %v4379_v22  ;;  %v4384_v46 = vadd.f32 %v10103_v57, %v4275_v45 }
 0x6aa   : > { %v4250_v32 = vpop.f32.mrf.mxu3 }
 0x6ab   : > { %v10757_v49 = vadd.f32 %v4250_v32, %v4142_v28  ;;  %4772 = vmatmul.bf16.gmra.mxu0 %v11792_v38  ;;  %v10785_v57 = vpop.f32.mrf.mxu2 }
 0x6ac   : > { %v4490_v44 = vpop.f32.mrf.mxu1  ;;  %11894 = vst [vmem:[#allocation111_spill] sm:$0xff] %v10785_v57  ;;  %v11911_v57 = vld [vmem:[#allocation56_spill] sm:$0xff] }
 0x6ad   : > { %v10761_v33 = vadd.f32 %v4490_v44, %v4382_v41  ;;  %v4387_v41 = vadd.f32 %v10110_v18, %v4278_v62  ;;  %v6955_v18 = vld [vmem:[%s11652_s3 + $0x238] sm:$0xf0] }
 0x6ae   : > { %v6958_v52 = vor.u32 %v7421_v1, %v6955_v18  ;;  %v4285_v18 = vadd.f32 %v10155_v37, %v10423_v3 }
 0x6af   : > { %4529 = vmatmul.bf16.gmra.mxu1 %v11793_v20  ;;  %4628 = vmatmul.bf16.gmra.mxu3 %v8773_v51 }
 0x6b0   : > { %5025 = vmatpush.bf16.msrb.mxu3 %v6958_v52 }
 0x6b2   : > { %v4253_v7 = vpop.f32.mrf.mxu3 }
 0x6b3   : > { %v10770_v22 = vadd.f32 %v4253_v7, %v4145_v39  ;;  %v4280_v39 = vadd.f32 %v10137_v19, %v10397_v21  ;;  %v10791_v7 = vpop.f32.mrf.mxu0  ;;  %v10813_v62 = vpop.f32.mrf.mxu2 }
 0x6b4   : > { %4891 = vmatmul.bf16.gmra.mxu2 %v9704_v53  ;;  %v4492_v61 = vpop.f32.mrf.mxu1  ;;  %11895 = vst [vmem:[#allocation112_spill] sm:$0xff] %v10791_v7  ;;  %v11928_v7 = vld [vmem:[#allocation59_spill] sm:$0xff] }
 0x6b5   : > { %v10776_v28 = vadd.f32 %v4492_v61, %v4384_v46  ;;  %v4389_v19 = vadd.f32 %v10115_v11, %v4280_v39  ;;  %v7405_v46 = vld [vmem:[%s11652_s3 + $0x1b4] sm:$0xf]  ;;  %v6891_v61 = vld [vmem:[%s11652_s3 + $0x1b8] sm:$0xf0]  ;;  %11896 = vst [vmem:[#allocation113_spill] sm:$0xff] %v10813_v62  ;;  %v11908_v62 = vld [vmem:[#allocation8_spill] sm:$0xff] }
 0x6ba   : > { %v4255_v59 = vpop.f32.mrf.mxu3 }
 0x6bb   : > { %v10781_v32 = vadd.f32 %v4255_v59, %v4147_v15  ;;  %4777 = vmatmul.bf16.gmra.mxu0 %v11793_v20  ;;  %v6894_v15 = vor.u32 %v7405_v46, %v6891_v61  ;;  %v4283_v59 = vadd.f32 %v10148_v30, %v10414_v40  ;;  %v10817_v11 = vpop.f32.mrf.mxu0  ;;  %v10829_v30 = vpop.f32.mrf.mxu2  ;;  %v11901_v46 = vld [vmem:[#allocation24_spill] sm:$0xff]  ;;  %v11902_v61 = vld [vmem:[#allocation27_spill] sm:$0xff] }
 0x6bc   : > { %v4495_v44 = vpop.f32.mrf.mxu1  ;;  %11897 = vst [vmem:[#allocation114_spill] sm:$0xff] %v10817_v11  ;;  %v4288_v37 = vadd.f32 %v11902_v61, %v11901_v46  ;;  %v11909_v46 = vld [vmem:[#allocation5_spill] sm:$0xff] }
 0x6bd   : > { %v10787_v45 = vadd.f32 %v4495_v44, %v4387_v41  ;;  %4916 = vmatpush.bf16.msrb.mxu1 %v6894_v15  ;;  %v4392_v44 = vadd.f32 %v10122_v23, %v4283_v59  ;;  %11898 = vst [vmem:[#allocation115_spill] sm:$0xff] %v10829_v30  ;;  %v11904_v59 = vld [vmem:[#allocation25_spill] sm:$0xff] }
 0x6be   : > { %v11923_v11 = vld [vmem:[#allocation57_spill] sm:$0xff] }
 0x6bf   : > { %4534 = vmatmul.bf16.gmra.mxu1 %v9598_v29  ;;  %4633 = vmatmul.bf16.gmra.mxu3 %v8893_v10 }
 0x6c2   : > { %v10801_v17 = vpop.f32.mrf.mxu3 }
 0x6c3   : > { %v10833_v52 = vpop.f32.mrf.mxu0  ;;  %v10841_v3 = vpop.f32.mrf.mxu2 }
 0x6c4   : > { %4896 = vmatmul.bf16.gmra.mxu2 %v9727_v63  ;;  %v4497_v21 = vpop.f32.mrf.mxu1  ;;  %11899 = vst [vmem:[#allocation116_spill] sm:$0xff] %v10833_v52 }
 0x6c5   : > { %v10805_v25 = vadd.f32 %v4497_v21, %v4389_v19  ;;  %v4394_v19 = vadd.f32 %v10127_v60, %v4285_v18  ;;  %11903 = vst [vmem:[#allocation24_spill] sm:$0xff] %v10841_v3  ;;  %v11907_v18 = vld [vmem:[#allocation40_spill] sm:$0xff] }
 0x6ca   : > { %v10819_v41 = vpop.f32.mrf.mxu3 }
 0x6cb   : > { %4782 = vmatmul.bf16.gmra.mxu0 %v9598_v29  ;;  %v10847_v30 = vpop.f32.mrf.mxu0  ;;  %v10858_v3 = vpop.f32.mrf.mxu2 }
 0x6cc   : > { %v4500_v39 = vpop.f32.mrf.mxu1  ;;  %11905 = vst [vmem:[#allocation27_spill] sm:$0xff] %v10847_v30 }
 0x6cd   : > { %v10823_v1 = vadd.f32 %v4500_v39, %v4392_v44  ;;  %v4397_v44 = vadd.f32 %v11904_v59, %v4288_v37  ;;  %11910 = vst [vmem:[#allocation40_spill] sm:$0xff] %v10858_v3 }
 0x6cf   : > { %4539 = vmatmul.bf16.gmra.mxu1 %v9631_v8  ;;  %4638 = vmatmul.bf16.gmra.mxu3 %v11743_v6 }
 0x6d2   : > { %v10831_v40 = vpop.f32.mrf.mxu3 }
 0x6d3   : > { %v10865_v52 = vpop.f32.mrf.mxu0 }
 0x6d4   : > { %4901 = vmatmul.bf16.gmra.mxu2 %v9867_v4  ;;  %v4502_v23 = vpop.f32.mrf.mxu1  ;;  %11915 = vst [vmem:[#allocation5_spill] sm:$0xff] %v10865_v52  ;;  %v6883_v52 = vld [vmem:[%s11652_s3 + $0x1a8] sm:$0xf0] }
 0x6d5   : > { %v10837_v21 = vadd.f32 %v4502_v23, %v4394_v19  ;;  %v4290_v19 = vadd.f32 %v11908_v62, %v11907_v18  ;;  %v7419_v62 = vld [vmem:[%s11652_s3 + $0x224] sm:$0xf]  ;;  %v6947_v18 = vld [vmem:[%s11652_s3 + $0x228] sm:$0xf0] }
 0x6d7   : > { %11900 = vst [vmem:[#allocation117_spill] sm:$0xff] %v10837_v21  ;;  %v4399_v61 = vadd.f32 %v11909_v46, %v4290_v19  ;;  %v6950_v19 = vor.u32 %v7419_v62, %v6947_v18  ;;  %v11918_v62 = vld [vmem:[#allocation42_spill] sm:$0xff]  ;;  %v11959_v21 = vld [vmem:[#allocation43_spill] sm:$0xff] }
 0x6d8   : > { %v11919_v18 = vld [vmem:[#allocation10_spill] sm:$0xff] }
 0x6d9   : > { %5026 = vmatpush.bf16.msrb.mxu3 %v6950_v19  ;;  %v11921_v19 = vld [vmem:[#allocation7_spill] sm:$0xff] }
 0x6da   : > { %v10843_v15 = vpop.f32.mrf.mxu3 }
 0x6db   : > { %4787 = vmatmul.bf16.gmra.mxu0 %v9631_v8 }
 0x6dc   : > { %v4505_v39 = vpop.f32.mrf.mxu1 }
 0x6dd   : > { %v10849_v60 = vadd.f32 %v4505_v39, %v4397_v44  ;;  %v11913_v44 = vld [vmem:[#allocation41_spill] sm:$0xff] }
 0x6de   : > { %v11914_v39 = vld [vmem:[#allocation29_spill] sm:$0xff] }
 0x6df   : > { %11906 = vst [vmem:[#allocation25_spill] sm:$0xff] %v10849_v60  ;;  %4544 = vmatmul.bf16.gmra.mxu1 %v9704_v53  ;;  %4643 = vmatmul.bf16.gmra.mxu3 %v11751_v16  ;;  %v4293_v30 = vadd.f32 %v11914_v39, %v11913_v44  ;;  %v7403_v39 = vld [vmem:[%s11652_s3 + $0x1a4] sm:$0xf] }
 0x6e0   : > { %v6886_v55 = vor.u32 %v7403_v39, %v6883_v52  ;;  %v4298_v52 = vadd.f32 %v11924_v12, %v11923_v11  ;;  %v11930_v12 = vld [vmem:[#allocation9_spill] sm:$0xff] }
 0x6e2   : > { %v10855_v23 = vpop.f32.mrf.mxu3  ;;  %4917 = vmatpush.bf16.msrb.mxu1 %v6886_v55 }
 0x6e4   : > { %4906 = vmatmul.bf16.gmra.mxu2 %v11911_v57  ;;  %v4507_v37 = vpop.f32.mrf.mxu1 }
 0x6e5   : > { %v10861_v59 = vadd.f32 %v4507_v37, %v4399_v61  ;;  %v11916_v61 = vld [vmem:[#allocation6_spill] sm:$0xff] }
 0x6e6   : > { %v4402_v37 = vadd.f32 %v11916_v61, %v4293_v30  ;;  %v10889_v30 = vpop.f32.mrf.mxu0 }
 0x6e7   : > { %11912 = vst [vmem:[#allocation8_spill] sm:$0xff] %v10861_v59  ;;  %v4295_v59 = vadd.f32 %v11919_v18, %v11918_v62  ;;  %v11926_v18 = vld [vmem:[#allocation45_spill] sm:$0xff] }
 0x6e8   : > { %11920 = vst [vmem:[#allocation29_spill] sm:$0xff] %v10889_v30  ;;  %v4407_v55 = vadd.f32 %v11926_v18, %v4298_v52 }
 0x6e9   : > { %v4404_v61 = vadd.f32 %v11921_v19, %v4295_v59 }
 0x6ea   : > { %v10873_v46 = vpop.f32.mrf.mxu3 }
 0x6eb   : > { %4792 = vmatmul.bf16.gmra.mxu0 %v9704_v53  ;;  %v11929_v53 = vld [vmem:[#allocation46_spill] sm:$0xff] }
 0x6ec   : > { %v4510_v3 = vpop.f32.mrf.mxu1  ;;  %v4300_v59 = vadd.f32 %v11929_v53, %v11928_v7  ;;  %v11937_v7 = vld [vmem:[#allocation64_spill] sm:$0xff] }
 0x6ed   : > { %v10877_v44 = vadd.f32 %v4510_v3, %v4402_v37 }
 0x6ee   : > { %v10900_v62 = vpop.f32.mrf.mxu0  ;;  %v4409_v11 = vadd.f32 %v11930_v12, %v4300_v59  ;;  %v7417_v59 = vld [vmem:[%s11652_s3 + $0x214] sm:$0xf] }
 0x6ef   : > { %11917 = vst [vmem:[#allocation41_spill] sm:$0xff] %v10877_v44  ;;  %4549 = vmatmul.bf16.gmra.mxu1 %v9727_v63  ;;  %4648 = vmatmul.bf16.gmra.mxu3 %v11759_v58 }
 0x6f0   : > { %11925 = vst [vmem:[#allocation42_spill] sm:$0xff] %v10900_v62  ;;  %v11932_v62 = vld [vmem:[#allocation61_spill] sm:$0xff] }
 0x6f2   : > { %v10891_v3 = vpop.f32.mrf.mxu3 }
 0x6f4   : > { %v4512_v37 = vpop.f32.mrf.mxu1 }
 0x6f5   : > { %v10894_v44 = vadd.f32 %v4512_v37, %v4404_v61 }
 0x6f7   : > { %11922 = vst [vmem:[#allocation6_spill] sm:$0xff] %v10894_v44  ;;  %v11933_v44 = vld [vmem:[#allocation13_spill] sm:$0xff] }
 0x6f8   : > { %v4303_v52 = vadd.f32 %v11933_v44, %v11932_v62  ;;  %v6939_v44 = vld [vmem:[%s11652_s3 + $0x218] sm:$0xf0] }
 0x6f9   : > { %v6942_v62 = vor.u32 %v7417_v59, %v6939_v44 }
 0x6fa   : > { %v10898_v39 = vpop.f32.mrf.mxu3 }
 0x6fb   : > { %4797 = vmatmul.bf16.gmra.mxu0 %v9727_v63  ;;  %5027 = vmatpush.bf16.msrb.mxu3 %v6942_v62  ;;  %v11945_v62 = vld [vmem:[#allocation31_spill] sm:$0xff] }
 0x6fc   : > { %v4515_v60 = vpop.f32.mrf.mxu1 }
 0x6fd   : > { %v10904_v30 = vadd.f32 %v4515_v60, %v4407_v55  ;;  %v11935_v60 = vld [vmem:[#allocation30_spill] sm:$0xff] }
 0x6fe   : > { %v4412_v55 = vadd.f32 %v11935_v60, %v4303_v52  ;;  %v7401_v52 = vld [vmem:[%s11652_s3 + $0x194] sm:$0xf]  ;;  %v6875_v60 = vld [vmem:[%s11652_s3 + $0x198] sm:$0xf0] }
 0x6ff   : > { %11927 = vst [vmem:[#allocation10_spill] sm:$0xff] %v10904_v30  ;;  %4554 = vmatmul.bf16.gmra.mxu1 %v9867_v4  ;;  %4653 = vmatmul.bf16.gmra.mxu3 %v11766_v56  ;;  %v11938_v4 = vld [vmem:[#allocation32_spill] sm:$0xff] }
 0x700   : > { %v4305_v63 = vadd.f32 %v11938_v4, %v11937_v7  ;;  %v11942_v7 = vld [vmem:[#allocation67_spill] sm:$0xff] }
 0x702   : > { %v10910_v19 = vpop.f32.mrf.mxu3 }
 0x704   : > { %v4517_v61 = vpop.f32.mrf.mxu1 }
 0x705   : > { %v10913_v37 = vadd.f32 %v4517_v61, %v4409_v11 }
 0x707   : > { %11931 = vst [vmem:[#allocation7_spill] sm:$0xff] %v10913_v37  ;;  %v11949_v37 = vld [vmem:[#allocation3_spill] sm:$0xff] }
 0x70a   : > { %v10917_v18 = vpop.f32.mrf.mxu3 }
 0x70b   : > { %11934 = vst [vmem:[#allocation57_spill] sm:$0xff] %v10917_v18 }
 0x70c   : > { %v4520_v30 = vpop.f32.mrf.mxu1 }
 0x70d   : > { %v10920_v53 = vadd.f32 %v4520_v30, %v4412_v55  ;;  %v11940_v30 = vld [vmem:[#allocation12_spill] sm:$0xff]  ;;  %v6878_v55 = vor.u32 %v7401_v52, %v6875_v60  ;;  %v11950_v52 = vld [vmem:[#allocation14_spill] sm:$0xff] }
 0x70e   : > { %v4414_v11 = vadd.f32 %v11940_v30, %v4305_v63 }
 0x70f   : > { %11936 = vst [vmem:[#allocation11_spill] sm:$0xff] %v10920_v53  ;;  %4559 = vmatmul.bf16.gmra.mxu1 %v11911_v57  ;;  %4658 = vmatmul.bf16.gmra.mxu3 %v11773_v0  ;;  %v11943_v53 = vld [vmem:[#allocation16_spill] sm:$0xff] }
 0x710   : > { %v4308_v59 = vadd.f32 %v11943_v53, %v11942_v7  ;;  %4918 = vmatpush.bf16.msrb.mxu1 %v6878_v55  ;;  %v11952_v7 = vld [vmem:[#allocation72_spill] sm:$0xff] }
 0x712   : > { %v10932_v12 = vpop.f32.mrf.mxu3  ;;  %v4417_v63 = vadd.f32 %v11945_v62, %v4308_v59 }
 0x713   : > { %11939 = vst [vmem:[#allocation45_spill] sm:$0xff] %v10932_v12 }
 0x714   : > { %v4522_v61 = vpop.f32.mrf.mxu1 }
 0x715   : > { %v10935_v4 = vadd.f32 %v4522_v61, %v4414_v11  ;;  %v11947_v61 = vld [vmem:[#allocation70_spill] sm:$0xff] }
 0x717   : > { %11941 = vst [vmem:[#allocation59_spill] sm:$0xff] %v10935_v4  ;;  %v11948_v4 = vld [vmem:[#allocation33_spill] sm:$0xff] }
 0x718   : > { %v4310_v57 = vadd.f32 %v11948_v4, %v11947_v61  ;;  %v11957_v61 = vld [vmem:[#allocation74_spill] sm:$0xff] }
 0x71a   : > { %v10945_v44 = vpop.f32.mrf.mxu3  ;;  %v4419_v60 = vadd.f32 %v11950_v52, %v4310_v57  ;;  %v11961_v52 = vld [vmem:[#allocation47_spill] sm:$0xff] }
 0x71b   : > { %11944 = vst [vmem:[#allocation46_spill] sm:$0xff] %v10945_v44  ;;  %v11953_v44 = vld [vmem:[#allocation18_spill] sm:$0xff] }
 0x71c   : > { %v4525_v30 = vpop.f32.mrf.mxu1  ;;  %v4313_v59 = vadd.f32 %v11953_v44, %v11952_v7  ;;  %v11963_v7 = vld [vmem:[#allocation77_spill] sm:$0xff] }
 0x71d   : > { %v10948_v11 = vadd.f32 %v4525_v30, %v4417_v63  ;;  %v11955_v63 = vld [vmem:[#allocation15_spill] sm:$0xff] }
 0x71e   : > { %v4422_v30 = vadd.f32 %v11955_v63, %v4313_v59 }
 0x71f   : > { %11946 = vst [vmem:[#allocation9_spill] sm:$0xff] %v10948_v11  ;;  %4564 = vmatmul.bf16.gmra.mxu1 %v11949_v37  ;;  %4663 = vmatmul.bf16.gmra.mxu3 %v11782_v13  ;;  %v11958_v37 = vld [vmem:[#allocation19_spill] sm:$0xff] }
 0x720   : > { %v4315_v18 = vadd.f32 %v11958_v37, %v11957_v61  ;;  %v6931_v37 = vld [vmem:[%s11652_s3 + $0x208] sm:$0xf0]  ;;  %v11966_v61 = vld [vmem:[#allocation17_spill] sm:$0xff] }
 0x722   : > { %v10954_v12 = vpop.f32.mrf.mxu3 }
 0x724   : > { %v4527_v53 = vpop.f32.mrf.mxu1 }
 0x725   : > { %v10957_v55 = vadd.f32 %v4527_v53, %v4419_v60  ;;  %v4424_v60 = vadd.f32 %v11961_v52, %v4315_v18  ;;  %v7399_v18 = vld [vmem:[%s11652_s3 + $0x184] sm:$0xf] }
 0x727   : > { %11951 = vst [vmem:[#allocation61_spill] sm:$0xff] %v10957_v55  ;;  %v11964_v55 = vld [vmem:[#allocation48_spill] sm:$0xff] }
 0x728   : > { %v4318_v59 = vadd.f32 %v11964_v55, %v11963_v7  ;;  %v6867_v55 = vld [vmem:[%s11652_s3 + $0x188] sm:$0xf0] }
 0x72a   : > { %v10961_v62 = vpop.f32.mrf.mxu3  ;;  %v4427_v52 = vadd.f32 %v11966_v61, %v4318_v59  ;;  %v11973_v59 = vld [vmem:[#allocation36_spill] sm:$0xff] }
 0x72b   : > { %11954 = vst [vmem:[#allocation13_spill] sm:$0xff] %v10961_v62  ;;  %v11975_v61 = vld [vmem:[#allocation20_spill] sm:$0xff] }
 0x72c   : > { %v4530_v11 = vpop.f32.mrf.mxu1 }
 0x72d   : > { %v10964_v4 = vadd.f32 %v4530_v11, %v4422_v30  ;;  %v7415_v11 = vld [vmem:[%s11652_s3 + $0x204] sm:$0xf] }
 0x72e   : > { %v6934_v63 = vor.u32 %v7415_v11, %v6931_v37  ;;  %v11969_v11 = vld [vmem:[#allocation35_spill] sm:$0xff] }
 0x72f   : > { %11956 = vst [vmem:[#allocation30_spill] sm:$0xff] %v10964_v4  ;;  %4569 = vmatmul.bf16.gmra.mxu1 %v11959_v21  ;;  %4668 = vmatmul.bf16.gmra.mxu3 %v11790_v54  ;;  %v11970_v4 = vld [vmem:[#allocation4_spill] sm:$0xff]  ;;  %v11971_v21 = vld [vmem:[#allocation34_spill] sm:$0xff] }
 0x730   : > { %5028 = vmatpush.bf16.msrb.mxu3 %v6934_v63 }
 0x732   : > { %v10970_v57 = vpop.f32.mrf.mxu3 }
 0x733   : > { %11960 = vst [vmem:[#allocation64_spill] sm:$0xff] %v10970_v57 }
 0x734   : > { %v4532_v53 = vpop.f32.mrf.mxu1 }
 0x735   : > { %v10973_v44 = vadd.f32 %v4532_v53, %v4424_v60  ;;  %v6870_v60 = vor.u32 %v7399_v18, %v6867_v55  ;;  %v4323_v18 = vadd.f32 %v11973_v59, %v10587_v47  ;;  %v11981_v59 = vld [vmem:[#allocation86_spill] sm:$0xff] }
 0x737   : > { %11962 = vst [vmem:[#allocation32_spill] sm:$0xff] %v10973_v44  ;;  %4919 = vmatpush.bf16.msrb.mxu1 %v6870_v60  ;;  %v11968_v44 = vld [vmem:[#allocation80_spill] sm:$0xff] }
 0x738   : > { %v4320_v37 = vadd.f32 %v11969_v11, %v11968_v44  ;;  %v11978_v11 = vld [vmem:[#allocation23_spill] sm:$0xff] }
 0x73a   : > { %v10983_v30 = vpop.f32.mrf.mxu3 }
 0x73b   : > { %11965 = vst [vmem:[#allocation12_spill] sm:$0xff] %v10983_v30  ;;  %v4429_v30 = vadd.f32 %v11971_v21, %v4320_v37 }
 0x73c   : > { %v4535_v53 = vpop.f32.mrf.mxu1 }
 0x73d   : > { %v10992_v7 = vadd.f32 %v4535_v53, %v4427_v52  ;;  %v4432_v52 = vadd.f32 %v11975_v61, %v4323_v18  ;;  %v11977_v53 = vld [vmem:[#allocation84_spill] sm:$0xff] }
 0x73f   : > { %11967 = vst [vmem:[#allocation67_spill] sm:$0xff] %v10992_v7  ;;  %4574 = vmatmul.bf16.gmra.mxu1 %v11970_v4  ;;  %4673 = vmatmul.bf16.gmra.mxu3 %v11792_v38  ;;  %v4325_v7 = vadd.f32 %v11978_v11, %v11977_v53  ;;  %v11979_v4 = vld [vmem:[#allocation44_spill] sm:$0xff]  ;;  %v11985_v11 = vld [vmem:[#allocation89_spill] sm:$0xff] }
 0x742   : > { %v10998_v63 = vpop.f32.mrf.mxu3 }
 0x744   : > { %v4537_v57 = vpop.f32.mrf.mxu1 }
 0x745   : > { %v11001_v62 = vadd.f32 %v4537_v57, %v4429_v30  ;;  %v11980_v57 = vld [vmem:[#allocation21_spill] sm:$0xff] }
 0x746   : > { %v4434_v30 = vadd.f32 %v11980_v57, %v4325_v7  ;;  %v11987_v57 = vld [vmem:[#allocation39_spill] sm:$0xff] }
 0x747   : > { %11972 = vst [vmem:[#allocation16_spill] sm:$0xff] %v11001_v62  ;;  %v11982_v62 = vld [vmem:[#allocation37_spill] sm:$0xff] }
 0x748   : > { %v4328_v18 = vadd.f32 %v11982_v62, %v11981_v59  ;;  %v11989_v59 = vld [vmem:[#allocation50_spill] sm:$0xff] }
 0x74a   : > { %v11005_v55 = vpop.f32.mrf.mxu3 }
 0x74b   : > { %11974 = vst [vmem:[#allocation31_spill] sm:$0xff] %v11005_v55 }
 0x74c   : > { %v4540_v60 = vpop.f32.mrf.mxu1 }
 0x74d   : > { %v11008_v44 = vadd.f32 %v4540_v60, %v4432_v52  ;;  %v11983_v52 = vld [vmem:[#allocation22_spill] sm:$0xff] }
 0x74e   : > { %v4437_v60 = vadd.f32 %v11983_v52, %v4328_v18  ;;  %v4333_v18 = vadd.f32 %v11989_v59, %v10631_v36  ;;  %v11995_v59 = vld [vmem:[#allocation60_spill] sm:$0xff] }
 0x74f   : > { %11976 = vst [vmem:[#allocation70_spill] sm:$0xff] %v11008_v44  ;;  %4579 = vmatmul.bf16.gmra.mxu1 %v11979_v4  ;;  %4678 = vmatmul.bf16.gmra.mxu3 %v11793_v20  ;;  %v11986_v4 = vld [vmem:[#allocation38_spill] sm:$0xff] }
 0x750   : > { %v4330_v55 = vadd.f32 %v11986_v4, %v11985_v11  ;;  %v11992_v11 = vld [vmem:[#allocation52_spill] sm:$0xff] }
 0x752   : > { %v11014_v21 = vpop.f32.mrf.mxu3 }
 0x754   : > { %v4542_v37 = vpop.f32.mrf.mxu1 }
 0x755   : > { %v11017_v47 = vadd.f32 %v4542_v37, %v4434_v30  ;;  %v4439_v30 = vadd.f32 %v11987_v57, %v4330_v55  ;;  %v11993_v57 = vld [vmem:[#allocation26_spill] sm:$0xff] }
 0x75a   : > { %v11021_v61 = vpop.f32.mrf.mxu3 }
 0x75c   : > { %v4545_v44 = vpop.f32.mrf.mxu1 }
 0x75d   : > { %v11024_v53 = vadd.f32 %v4545_v44, %v4437_v60  ;;  %v11990_v44 = vld [vmem:[#allocation49_spill] sm:$0xff] }
 0x75e   : > { %v4442_v60 = vadd.f32 %v11990_v44, %v4333_v18  ;;  %v4338_v18 = vadd.f32 %v11995_v59, %v10647_v43  ;;  %v12000_v59 = vld [vmem:[#allocation98_spill] sm:$0xff] }
 0x75f   : > { %11984 = vst [vmem:[#allocation33_spill] sm:$0xff] %v11024_v53  ;;  %4683 = vmatmul.bf16.gmra.mxu3 %v9598_v29  ;;  %4920 = vmatmul.bf16.vlgmr.msrb.gmra.mxu1 %v8739_v31  ;;  %v4335_v31 = vadd.f32 %v11992_v11, %v10639_v14  ;;  %v11998_v11 = vld [vmem:[#allocation63_spill] sm:$0xff] }
 0x762   : > { %v11030_v7 = vpop.f32.mrf.mxu3 }
 0x764   : > { %v4547_v37 = vpop.f32.mrf.mxu1 }
 0x765   : > { %v11033_v62 = vadd.f32 %v4547_v37, %v4439_v30  ;;  %v4444_v30 = vadd.f32 %v11993_v57, %v4335_v31  ;;  %v11999_v57 = vld [vmem:[#allocation51_spill] sm:$0xff] }
 0x767   : > { %11988 = vst [vmem:[#allocation14_spill] sm:$0xff] %v11033_v62  ;;  %v12005_v62 = vld [vmem:[#allocation69_spill] sm:$0xff] }
 0x76a   : > { %v11037_v52 = vpop.f32.mrf.mxu3 }
 0x76c   : > { %v4550_v53 = vpop.f32.mrf.mxu1 }
 0x76d   : > { %v11040_v4 = vadd.f32 %v4550_v53, %v4442_v60  ;;  %v11996_v53 = vld [vmem:[#allocation28_spill] sm:$0xff] }
 0x76e   : > { %v4447_v60 = vadd.f32 %v11996_v53, %v4338_v18 }
 0x76f   : > { %11991 = vst [vmem:[#allocation72_spill] sm:$0xff] %v11040_v4  ;;  %4688 = vmatmul.bf16.gmra.mxu3 %v9631_v8  ;;  %4925 = vmatmul.bf16.gmra.mxu1 %v8773_v51  ;;  %v4340_v51 = vadd.f32 %v11998_v11, %v10653_v26  ;;  %v12004_v11 = vld [vmem:[#allocation101_spill] sm:$0xff] }
 0x772   : > { %v11046_v55 = vpop.f32.mrf.mxu3 }
 0x774   : > { %v4552_v37 = vpop.f32.mrf.mxu1 }
 0x775   : > { %v11049_v36 = vadd.f32 %v4552_v37, %v4444_v30  ;;  %v4449_v30 = vadd.f32 %v11999_v57, %v4340_v51  ;;  %v7438_v51 = vld [vmem:[%s11654_s5 + $0x38] sm:$0xff] }
 0x776   : > { %5674 = vmatpush.bf16.msra.mxu2 %v7438_v51  ;;  %v12006_v57 = vld [vmem:[#allocation62_spill] sm:$0xff] }
 0x777   : > { %11994 = vst [vmem:[#allocation18_spill] sm:$0xff] %v11049_v36  ;;  %v12001_v36 = vld [vmem:[#allocation66_spill] sm:$0xff] }
 0x778   : > { %v4343_v18 = vadd.f32 %v12001_v36, %v12000_v59 }
 0x77a   : > { %v11053_v44 = vpop.f32.mrf.mxu3 }
 0x77c   : > { %v4555_v4 = vpop.f32.mrf.mxu1 }
 0x77d   : > { %v11056_v14 = vadd.f32 %v4555_v4, %v4447_v60  ;;  %v12002_v4 = vld [vmem:[#allocation58_spill] sm:$0xff] }
 0x77e   : > { %v4452_v60 = vadd.f32 %v12002_v4, %v4343_v18  ;;  %v12008_v4 = vld [vmem:[#allocation65_spill] sm:$0xff] }
 0x77f   : > { %11997 = vst [vmem:[#allocation15_spill] sm:$0xff] %v11056_v14  ;;  %4930 = vmatmul.bf16.gmra.mxu1 %v8893_v10  ;;  %5029 = vmatmul.bf16.vlgmr.msrb.gmra.mxu3 %v8893_v10  ;;  %v4345_v10 = vadd.f32 %v12005_v62, %v12004_v11 }
 0x782   : > { %v11062_v31 = vpop.f32.mrf.mxu3 }
 0x784   : > { %v4557_v37 = vpop.f32.mrf.mxu1 }
 0x785   : > { %v11065_v43 = vadd.f32 %v4557_v37, %v4449_v30  ;;  %v4454_v30 = vadd.f32 %v12006_v57, %v4345_v10  ;;  %v12011_v57 = vld [vmem:[#allocation68_spill] sm:$0xff] }
 0x78a   : > { %v11069_v53 = vpop.f32.mrf.mxu3 }
 0x78c   : > { %v4560_v14 = vpop.f32.mrf.mxu1 }
 0x78d   : > { %v11072_v26 = vadd.f32 %v4560_v14, %v4452_v60  ;;  %v12007_v14 = vld [vmem:[#allocation73_spill] sm:$0xff] }
 0x78e   : > { %v4348_v18 = vadd.f32 %v12007_v14, %v10693_v5  ;;  %v12013_v14 = vld [vmem:[#allocation79_spill] sm:$0xff] }
 0x78f   : > { %12003 = vst [vmem:[#allocation74_spill] sm:$0xff] %v11072_v26  ;;  %4935 = vmatmul.bf16.gmra.mxu1 %v11743_v6  ;;  %5034 = vmatmul.bf16.gmra.mxu3 %v11743_v6  ;;  %v12010_v26 = vld [vmem:[#allocation76_spill] sm:$0xff] }
 0x790   : > { %v4457_v60 = vadd.f32 %v12008_v4, %v4348_v18  ;;  %v4350_v51 = vadd.f32 %v12010_v26, %v10699_v42  ;;  %v4353_v18 = vadd.f32 %v12013_v14, %v10707_v27  ;;  %v12016_v26 = vld [vmem:[#allocation82_spill] sm:$0xff]  ;;  %v12019_v14 = vld [vmem:[#allocation85_spill] sm:$0xff] }
 0x792   : > { %v11081_v36 = vpop.f32.mrf.mxu3 }
 0x794   : > { %v4562_v37 = vpop.f32.mrf.mxu1 }
 0x795   : > { %v11084_v59 = vadd.f32 %v4562_v37, %v4454_v30  ;;  %v4459_v30 = vadd.f32 %v12011_v57, %v4350_v51  ;;  %v12017_v57 = vld [vmem:[#allocation75_spill] sm:$0xff] }
 0x79a   : > { %v11088_v62 = vpop.f32.mrf.mxu3 }
 0x79c   : > { %v4565_v6 = vpop.f32.mrf.mxu1 }
 0x79d   : > { %v11091_v11 = vadd.f32 %v4565_v6, %v4457_v60  ;;  %v12014_v60 = vld [vmem:[#allocation71_spill] sm:$0xff] }
 0x79e   : > { %v4462_v6 = vadd.f32 %v12014_v60, %v4353_v18  ;;  %v4358_v18 = vadd.f32 %v12019_v14, %v10744_v9  ;;  %v12020_v60 = vld [vmem:[#allocation78_spill] sm:$0xff] }
 0x79f   : > { %12009 = vst [vmem:[#allocation19_spill] sm:$0xff] %v11091_v11  ;;  %4940 = vmatmul.bf16.gmra.mxu1 %v11751_v16  ;;  %5039 = vmatmul.bf16.gmra.mxu3 %v11751_v16  ;;  %v4355_v16 = vadd.f32 %v12016_v26, %v10723_v50  ;;  %v7454_v50 = vld [vmem:[%s11654_s5 + $0xb8] sm:$0xff] }
 0x7a0   : > { %5712 = vmatpush.bf16.msra.mxu0 %v7454_v50 }
 0x7a2   : > { %v11097_v10 = vpop.f32.mrf.mxu3 }
 0x7a4   : > { %v4567_v37 = vpop.f32.mrf.mxu1 }
 0x7a5   : > { %v11100_v5 = vadd.f32 %v4567_v37, %v4459_v30  ;;  %v4464_v30 = vadd.f32 %v12017_v57, %v4355_v16  ;;  %v12022_v57 = vld [vmem:[#allocation88_spill] sm:$0xff] }
 0x7a6   : > { %v4360_v9 = vadd.f32 %v12022_v57, %v10757_v49  ;;  %v12028_v57 = vld [vmem:[#allocation93_spill] sm:$0xff] }
 0x7a7   : > { %12012 = vst [vmem:[#allocation47_spill] sm:$0xff] %v11100_v5 }
 0x7aa   : > { %v11104_v4 = vpop.f32.mrf.mxu3 }
 0x7ac   : > { %v4570_v11 = vpop.f32.mrf.mxu1 }
 0x7ad   : > { %v11107_v42 = vadd.f32 %v4570_v11, %v4462_v6  ;;  %v7437_v11 = vld [vmem:[%s11654_s5 + $0x30] sm:$0xff]  ;;  %v4467_v6 = vadd.f32 %v12020_v60, %v4358_v18 }
 0x7ae   : > { %5675 = vmatpush.bf16.msra.mxu2 %v7437_v11 }
 0x7af   : > { %12015 = vst [vmem:[#allocation77_spill] sm:$0xff] %v11107_v42  ;;  %4945 = vmatmul.bf16.gmra.mxu1 %v11759_v58  ;;  %5044 = vmatmul.bf16.gmra.mxu3 %v11759_v58 }
 0x7b2   : > { %v11113_v51 = vpop.f32.mrf.mxu3 }
 0x7b4   : > { %v4572_v37 = vpop.f32.mrf.mxu1 }
 0x7b5   : > { %v11116_v27 = vadd.f32 %v4572_v37, %v4464_v30  ;;  %v12023_v37 = vld [vmem:[#allocation81_spill] sm:$0xff] }
 0x7b6   : > { %v4469_v14 = vadd.f32 %v12023_v37, %v4360_v9  ;;  %v12029_v37 = vld [vmem:[#allocation87_spill] sm:$0xff] }
 0x7b7   : > { %12018 = vst [vmem:[#allocation48_spill] sm:$0xff] %v11116_v27  ;;  %v12025_v27 = vld [vmem:[#allocation91_spill] sm:$0xff] }
 0x7b8   : > { %v4363_v18 = vadd.f32 %v12025_v27, %v10770_v22 }
 0x7ba   : > { %v11126_v58 = vpop.f32.mrf.mxu3 }
 0x7bc   : > { %v4575_v26 = vpop.f32.mrf.mxu1 }
 0x7bd   : > { %v11129_v16 = vadd.f32 %v4575_v26, %v4467_v6  ;;  %v12026_v6 = vld [vmem:[#allocation83_spill] sm:$0xff] }
 0x7be   : > { %v4472_v26 = vadd.f32 %v12026_v6, %v4363_v18 }
 0x7bf   : > { %12021 = vst [vmem:[#allocation17_spill] sm:$0xff] %v11129_v16  ;;  %4950 = vmatmul.bf16.gmra.mxu1 %v11766_v56  ;;  %5049 = vmatmul.bf16.gmra.mxu3 %v11766_v56  ;;  %v4365_v56 = vadd.f32 %v12028_v57, %v10781_v32  ;;  %v7436_v32 = vld [vmem:[%s11654_s5 + $0x28] sm:$0xff] }
 0x7c0   : > { %5676 = vmatpush.bf16.msra.mxu2 %v7436_v32 }
 0x7c2   : > { %v11135_v30 = vpop.f32.mrf.mxu3 }
 0x7c4   : > { %v4577_v11 = vpop.f32.mrf.mxu1 }
 0x7c5   : > { %v11138_v50 = vadd.f32 %v4577_v11, %v4469_v14  ;;  %v4474_v14 = vadd.f32 %v12029_v37, %v4365_v56  ;;  %v7520_v56 = vld [vmem:[%s11653_s4] sm:$0x3] }
 0x7c6   : > { %v11177_v37 = vperm.slane %v7520_v56, 1 }
 0x7c7   : > { %12024 = vst [vmem:[#allocation80_spill] sm:$0xff] %v11138_v50  ;;  %v12037_v50 = vld [vmem:[#allocation90_spill] sm:$0xff] }
 0x7ca   : > { %v11142_v60 = vpop.f32.mrf.mxu3 }
 0x7cc   : > { %v4580_v16 = vpop.f32.mrf.mxu1 }
 0x7cd   : > { %v11145_v49 = vadd.f32 %v4580_v16, %v4472_v26 }
 0x7cf   : > { %12027 = vst [vmem:[#allocation35_spill] sm:$0xff] %v11145_v49  ;;  %4955 = vmatmul.bf16.gmra.mxu1 %v11773_v0  ;;  %5054 = vmatmul.bf16.gmra.mxu3 %v11773_v0  ;;  %v7453_v0 = vld [vmem:[%s11654_s5 + $0xb0] sm:$0xff] }
 0x7d0   : > { %5713 = vmatpush.bf16.msra.mxu0 %v7453_v0  ;;  %v12036_v0 = vld [vmem:[#allocation95_spill] sm:$0xff] }
 0x7d2   : > { %v11151_v9 = vpop.f32.mrf.mxu3 }
 0x7d4   : > { %v4582_v11 = vpop.f32.mrf.mxu1 }
 0x7d5   : > { %v11154_v22 = vadd.f32 %v4582_v11, %v4474_v14  ;;  %v4595_v11 = vadd.f32 %v10801_v17, %v11177_v37 }
 0x7d7   : > { %12030 = vst [vmem:[#allocation34_spill] sm:$0xff] %v11154_v22  ;;  %v4704_v22 = vadd.f32 %v12036_v0, %v4595_v11  ;;  %v7435_v11 = vld [vmem:[%s11654_s5 + $0x20] sm:$0xff] }
 0x7d8   : > { %5677 = vmatpush.bf16.msra.mxu2 %v7435_v11 }
 0x7da   : > { %v11156_v27 = vpop.f32.mrf.mxu3 }
 0x7db   : > { %12031 = vst [vmem:[#allocation36_spill] sm:$0xff] %v11156_v27 }
 0x7dc   : > { %v4921_v18 = vpop.f32.mrf.mxu1 }
 0x7df   : > { %4960 = vmatmul.bf16.gmra.mxu1 %v11782_v13  ;;  %5059 = vmatmul.bf16.gmra.mxu3 %v11782_v13 }
 0x7e2   : > { %v11166_v16 = vpop.f32.mrf.mxu3 }
 0x7e3   : > { %12032 = vst [vmem:[#allocation20_spill] sm:$0xff] %v11166_v16  ;;  %v12038_v16 = vld [vmem:[#allocation97_spill] sm:$0xff] }
 0x7e4   : > { %v4923_v6 = vpop.f32.mrf.mxu1 }
 0x7ea   : > { %v11168_v26 = vpop.f32.mrf.mxu3 }
 0x7eb   : > { %12033 = vst [vmem:[#allocation84_spill] sm:$0xff] %v11168_v26 }
 0x7ec   : > { %v4926_v57 = vpop.f32.mrf.mxu1 }
 0x7ef   : > { %4965 = vmatmul.bf16.gmra.mxu1 %v11790_v54  ;;  %5064 = vmatmul.bf16.gmra.mxu3 %v11790_v54  ;;  %v4597_v54 = vadd.f32 %v10819_v41, %v11177_v37  ;;  %v4600_v41 = vadd.f32 %v10831_v40, %v11177_v37  ;;  %v7452_v40 = vld [vmem:[%s11654_s5 + $0xa8] sm:$0xff] }
 0x7f0   : > { %5714 = vmatpush.bf16.msra.mxu0 %v7452_v40 }
 0x7f1   : > { %v4706_v42 = vadd.f32 %v12038_v16, %v4597_v54  ;;  %v5132_v54 = vmax.f32 %v10748_v34, 0.0 }
 0x7f2   : > { %v11172_v13 = vpop.f32.mrf.mxu3 }
 0x7f3   : > { %12034 = vst [vmem:[#allocation23_spill] sm:$0xff] %v11172_v13  ;;  %v4813_v13 = vadd.f32 %v12037_v50, %v4704_v22  ;;  %v12039_v50 = vld [vmem:[#allocation92_spill] sm:$0xff] }
 0x7f4   : > { %v4928_v14 = vpop.f32.mrf.mxu1  ;;  %v4815_v22 = vadd.f32 %v12039_v50, %v4706_v42  ;;  %v4602_v42 = vadd.f32 %v10843_v15, %v11177_v37  ;;  %v5134_v15 = vmax.f32 %v10761_v33, 0.0  ;;  %v5136_v33 = vmax.f32 %v10776_v28, 0.0 }
 0x7f5   : > { %v4922_v56 = vadd.f32 %v4921_v18, %v4813_v13  ;;  %v7434_v18 = vld [vmem:[%s11654_s5 + $0x18] sm:$0xff]  ;;  %v5138_v28 = vmax.f32 %v10787_v45, 0.0 }
 0x7f6   : > { %5678 = vmatpush.bf16.msra.mxu2 %v7434_v18 }
 0x7fa   : > { %v11181_v32 = vpop.f32.mrf.mxu3 }
 0x7fb   : > { %12035 = vst [vmem:[#allocation21_spill] sm:$0xff] %v11181_v32  ;;  %v5130_v32 = vmax.f32 %v10727_v48, 0.0 }
 0x7fc   : > { %v4931_v49 = vpop.f32.mrf.mxu1 }
 0x7ff   : > { %4970 = vmatmul.bf16.gmra.mxu1 %v11792_v38  ;;  %5069 = vmatmul.bf16.gmra.mxu3 %v11792_v38  ;;  %v4924_v38 = vadd.f32 %v4923_v6, %v4815_v22  ;;  %v12041_v6 = vld [vmem:[#allocation94_spill] sm:$0xff]  ;;  %v12042_v22 = vld [vmem:[#allocation103_spill] sm:$0xff] }
 0x802   : > { %v5030_v26 = vpop.f32.mrf.mxu3 }
 0x803   : > { %v5031_v27 = vadd.f32 %v5030_v26, %v4922_v56  ;;  %v12040_v26 = vld [vmem:[#allocation100_spill] sm:$0xff] }
 0x804   : > { %v4933_v17 = vpop.f32.mrf.mxu1  ;;  %v4709_v48 = vadd.f32 %v12040_v26, %v4600_v41  ;;  %v7432_v41 = vld [vmem:[%s11654_s5 + $0x8] sm:$0xff] }
 0x805   : > { %v5131_v5 = vmax.f32 %v5031_v27, 0.0 }
 0x807   : > { %v5210_v0 = vmax.f32 %v5130_v32, %v5131_v5  ;;  %v7433_v5 = vld [vmem:[%s11654_s5 + $0x10] sm:$0xff]  ;;  %v4818_v32 = vadd.f32 %v12041_v6, %v4709_v48  ;;  %v12043_v48 = vld [vmem:[#allocation96_spill] sm:$0xff] }
 0x808   : > { %5679 = vmatpush.bf16.msra.mxu2 %v7433_v5  ;;  %v12044_v5 = vld [vmem:[#allocation105_spill] sm:$0xff] }
 0x809   : > { %v4927_v34 = vadd.f32 %v4926_v57, %v4818_v32  ;;  %v4605_v57 = vadd.f32 %v10855_v23, %v11177_v37 }
 0x80a   : > { %v5032_v16 = vpop.f32.mrf.mxu3 }
 0x80b   : > { %v5033_v27 = vadd.f32 %v5032_v16, %v4924_v38  ;;  %v4711_v38 = vadd.f32 %v12042_v22, %v4602_v42  ;;  %v4714_v42 = vadd.f32 %v12044_v5, %v4605_v57 }
 0x80c   : > { %v11201_v13 = vpop.f32.mrf.mxu1  ;;  %5680 = vmatpush.bf16.msra.mxu2 %v7432_v41  ;;  %v4607_v41 = vadd.f32 %v10873_v46, %v11177_v37  ;;  %v4610_v46 = vadd.f32 %v10891_v3, %v11177_v37  ;;  %v12048_v3 = vld [vmem:[#allocation104_spill] sm:$0xff] }
 0x80d   : > { %v5133_v56 = vmax.f32 %v5033_v27, 0.0  ;;  %v4820_v27 = vadd.f32 %v12043_v48, %v4711_v38  ;;  %v12047_v48 = vld [vmem:[#allocation102_spill] sm:$0xff] }
 0x80f   : > { %v5211_v11 = vmax.f32 %v5132_v54, %v5133_v56  ;;  %4975 = vmatmul.bf16.gmra.mxu1 %v11793_v20  ;;  %5074 = vmatmul.bf16.gmra.mxu3 %v11793_v20  ;;  %v7431_v20 = vld [vmem:[%s11654_s5] sm:$0xff]  ;;  %v4929_v56 = vadd.f32 %v4928_v14, %v4820_v27 }
 0x810   : > { %5681 = vmatpush.bf16.msra.mxu2 %v7431_v20 }
 0x812   : > { %v5035_v50 = vpop.f32.mrf.mxu3 }
 0x813   : > { %v5036_v18 = vadd.f32 %v5035_v50, %v4927_v34  ;;  %v12045_v50 = vld [vmem:[#allocation99_spill] sm:$0xff] }
 0x814   : > { %v11219_v16 = vpop.f32.mrf.mxu1  ;;  %v4823_v22 = vadd.f32 %v12045_v50, %v4714_v42 }
 0x815   : > { %v5135_v26 = vmax.f32 %v5036_v18, 0.0  ;;  %v12046_v18 = vld [vmem:[#allocation107_spill] sm:$0xff] }
 0x816   : > { %v4932_v14 = vadd.f32 %v4931_v49, %v4823_v22  ;;  %v4719_v49 = vadd.f32 %v10741_v24, %v4610_v46  ;;  %v7451_v24 = vld [vmem:[%s11654_s5 + $0xa0] sm:$0xff] }
 0x817   : > { %v5212_v54 = vmax.f32 %v5134_v15, %v5135_v26  ;;  %v4716_v15 = vadd.f32 %v12046_v18, %v4607_v41  ;;  %v4612_v41 = vadd.f32 %v10898_v39, %v11177_v37  ;;  %5715 = vmatpush.bf16.msra.mxu0 %v7451_v24 }
 0x818   : > { %v4828_v50 = vadd.f32 %v12048_v3, %v4719_v49 }
 0x819   : > { %v4825_v27 = vadd.f32 %v12047_v48, %v4716_v15  ;;  %v12049_v48 = vld [vmem:[#allocation106_spill] sm:$0xff] }
 0x81a   : > { %v5037_v40 = vpop.f32.mrf.mxu3 }
 0x81b   : > { %v5038_v6 = vadd.f32 %v5037_v40, %v4929_v56  ;;  %v4934_v40 = vadd.f32 %v4933_v17, %v4825_v27  ;;  %v4937_v17 = vadd.f32 %v11201_v13, %v4828_v50  ;;  %v4615_v13 = vadd.f32 %v10910_v19, %v11177_v37  ;;  %v12050_v19 = vld [vmem:[#allocation117_spill] sm:$0xff]  ;;  %v12052_v50 = vld [vmem:[#allocation108_spill] sm:$0xff] }
 0x81c   : > { %v11229_v32 = vpop.f32.mrf.mxu1 }
 0x81d   : > { %v5137_v34 = vmax.f32 %v5038_v6, 0.0 }
 0x81f   : > { %v11235_v23 = vmax.f32 %v5136_v33, %v5137_v34  ;;  %4980 = vmatmul.bf16.gmra.mxu1 %v9598_v29  ;;  %5079 = vmatmul.bf16.gmra.mxu3 %v9598_v29  ;;  %v11246_v29 = vpop.f32.mrf.mxu2  ;;  %v5140_v34 = vmax.f32 %v10805_v25, 0.0 }
 0x822   : > { %v5040_v38 = vpop.f32.mrf.mxu3 }
 0x823   : > { %v5041_v26 = vadd.f32 %v5040_v38, %v4932_v14  ;;  %v4721_v38 = vadd.f32 %v10755_v2, %v4612_v41  ;;  %v12051_v41 = vld [vmem:[#allocation57_spill] sm:$0xff] }
 0x824   : > { %v11240_v20 = vpop.f32.mrf.mxu1  ;;  %v4617_v3 = vadd.f32 %v12051_v41, %v11177_v37 }
 0x825   : > { %v5139_v57 = vmax.f32 %v5041_v26, 0.0 }
 0x827   : > { %v5214_v56 = vmax.f32 %v5138_v28, %v5139_v57  ;;  %v11264_v26 = vpop.f32.mrf.mxu2 }
 0x829   : > { %v5250_v5 = vmax.f32 %v5210_v0, %v5214_v56 }
 0x82a   : > { %v5042_v42 = vpop.f32.mrf.mxu3 }
 0x82b   : > { %v5043_v6 = vadd.f32 %v5042_v42, %v4934_v40  ;;  %v5270_v0 = vpack.c.bf16 %v5250_v5, %v5250_v5  ;;  %v7446_v5 = vld [vmem:[%s11654_s5 + $0x78] sm:$0xff] }
 0x82c   : > { %v11249_v33 = vpop.f32.mrf.mxu1  ;;  %5693 = vmatpush.bf16.msrb.mxu2 %v7446_v5 }
 0x82d   : > { %v5141_v45 = vmax.f32 %v5043_v6, 0.0  ;;  %v5294_v28 = vunpack.c.l.b16 %v5270_v0 }
 0x82f   : > { %v5215_v22 = vmax.f32 %v5140_v34, %v5141_v45  ;;  %4985 = vmatmul.bf16.gmra.mxu1 %v9631_v8  ;;  %5084 = vmatmul.bf16.gmra.mxu3 %v9631_v8  ;;  %v5142_v8 = vmax.f32 %v10823_v1, 0.0  ;;  %v4724_v1 = vadd.f32 %v10774_v35, %v4615_v13  ;;  %v5144_v34 = vmax.f32 %v12050_v19, 0.0  ;;  %v12053_v35 = vld [vmem:[#allocation53_spill] sm:$0xff]  ;;  %v7442_v19 = vld [vmem:[%s11654_s5 + $0x58] sm:$0xff] }
 0x831   : > { %v5251_v14 = vmax.f32 %v5211_v11, %v5215_v22  ;;  %v4830_v11 = vadd.f32 %v12049_v48, %v4721_v38  ;;  %v4833_v22 = vadd.f32 %v12052_v50, %v4724_v1 }
 0x832   : > { %v5045_v25 = vpop.f32.mrf.mxu3 }
 0x833   : > { %v5271_v39 = vpack.c.bf16 %v5251_v14, %v5251_v14  ;;  %v5046_v18 = vadd.f32 %v5045_v25, %v4937_v17  ;;  %v4939_v2 = vadd.f32 %v11219_v16, %v4830_v11  ;;  %v7445_v16 = vld [vmem:[%s11654_s5 + $0x70] sm:$0xff]  ;;  %v4942_v17 = vadd.f32 %v11229_v32, %v4833_v22  ;;  %v7444_v25 = vld [vmem:[%s11654_s5 + $0x68] sm:$0xff] }
 0x834   : > { %v11262_v15 = vpop.f32.mrf.mxu1  ;;  %5694 = vmatpush.bf16.msrb.mxu2 %v7445_v16  ;;  %v12059_v22 = vld [vmem:[#allocation8_spill] sm:$0xff] }
 0x835   : > { %v5295_v57 = vunpack.c.l.b16 %v5271_v39  ;;  %v5143_v46 = vmax.f32 %v5046_v18, 0.0  ;;  %v12054_v39 = vld [vmem:[#allocation112_spill] sm:$0xff] }
 0x836   : > { %v4726_v18 = vadd.f32 %v12054_v39, %v4617_v3  ;;  %v11312_v3 = vpop.f32.mrf.mxu0  ;;  %v12062_v39 = vld [vmem:[#allocation54_spill] sm:$0xff] }
 0x837   : > { %v5298_v27 = vpack.c.b16 %v5295_v57, %v5294_v28  ;;  %v5216_v56 = vmax.f32 %v5142_v8, %v5143_v46  ;;  %v12055_v46 = vld [vmem:[#allocation25_spill] sm:$0xff] }
 0x838   : > { %5695 = vmatpush.bf16.msrb.mxu2 %v7444_v25  ;;  %v5146_v13 = vmax.f32 %v12055_v46, 0.0  ;;  %v12063_v46 = vld [vmem:[#allocation116_spill] sm:$0xff] }
 0x839   : > { %v5252_v40 = vmax.f32 %v5212_v54, %v5216_v56  ;;  %5682 = vmatmul.bf16.vlgmr.msra.gmra.mxu2 %v5298_v27  ;;  %v11281_v54 = vpop.f32.mrf.mxu2  ;;  %v12056_v27 = vld [vmem:[#allocation45_spill] sm:$0xff] }
 0x83a   : > { %v5047_v42 = vpop.f32.mrf.mxu3  ;;  %v4620_v56 = vadd.f32 %v12056_v27, %v11177_v37 }
 0x83b   : > { %v5048_v49 = vadd.f32 %v5047_v42, %v4939_v2  ;;  %v5272_v0 = vpack.c.bf16 %v5252_v40, %v5252_v40  ;;  %v12057_v2 = vld [vmem:[#allocation109_spill] sm:$0xff] }
 0x83c   : > { %v11275_v6 = vpop.f32.mrf.mxu1  ;;  %v4835_v40 = vadd.f32 %v12057_v2, %v4726_v18 }
 0x83d   : > { %v5145_v45 = vmax.f32 %v5048_v49, 0.0  ;;  %v5296_v11 = vunpack.c.l.b16 %v5272_v0 }
 0x83e   : > { %v4944_v49 = vadd.f32 %v11240_v20, %v4835_v40  ;;  %v7441_v20 = vld [vmem:[%s11654_s5 + $0x50] sm:$0xff]  ;;  %v11336_v2 = vpop.f32.mrf.mxu0  ;;  %v12065_v40 = vld [vmem:[#allocation111_spill] sm:$0xff] }
 0x83f   : > { %v5217_v24 = vmax.f32 %v5144_v34, %v5145_v45  ;;  %4990 = vmatmul.bf16.gmra.mxu1 %v12053_v35  ;;  %5089 = vmatmul.bf16.gmra.mxu3 %v12053_v35  ;;  %v12058_v45 = vld [vmem:[#allocation114_spill] sm:$0xff] }
 0x840   : > { %v4729_v16 = vadd.f32 %v12058_v45, %v4620_v56  ;;  %v7439_v56 = vld [vmem:[%s11654_s5 + $0x40] sm:$0xff] }
 0x841   : > { %v5253_v14 = vmax.f32 %v11235_v23, %v5217_v24  ;;  %v7443_v23 = vld [vmem:[%s11654_s5 + $0x60] sm:$0xff]  ;;  %v11305_v1 = vpop.f32.mrf.mxu2  ;;  %v5148_v24 = vmax.f32 %v12059_v22, 0.0  ;;  %v7450_v22 = vld [vmem:[%s11654_s5 + $0x98] sm:$0xff] }
 0x842   : > { %v5050_v38 = vpop.f32.mrf.mxu3  ;;  %5696 = vmatpush.bf16.msrb.mxu2 %v7443_v23  ;;  %v12066_v45 = vld [vmem:[#allocation27_spill] sm:$0xff]  ;;  %5716 = vmatpush.bf16.msra.mxu0 %v7450_v22 }
 0x843   : > { %v5051_v8 = vadd.f32 %v5050_v38, %v4942_v17  ;;  %v5273_v28 = vpack.c.bf16 %v5253_v14, %v5253_v14  ;;  %v12060_v17 = vld [vmem:[#allocation46_spill] sm:$0xff] }
 0x844   : > { %v11294_v57 = vpop.f32.mrf.mxu1  ;;  %v4622_v0 = vadd.f32 %v12060_v17, %v11177_v37  ;;  %v12061_v14 = vld [vmem:[#allocation110_spill] sm:$0xff] }
 0x845   : > { %v5147_v48 = vmax.f32 %v5051_v8, 0.0  ;;  %v5297_v32 = vunpack.c.l.b16 %v5273_v28  ;;  %v4838_v25 = vadd.f32 %v12061_v14, %v4729_v16  ;;  %v7440_v8 = vld [vmem:[%s11654_s5 + $0x48] sm:$0xff]  ;;  %v12069_v14 = vld [vmem:[#allocation113_spill] sm:$0xff] }
 0x846   : > { %5697 = vmatpush.bf16.msrb.mxu2 %v7442_v19 }
 0x847   : > { %v11303_v5 = vmax.f32 %v5146_v13, %v5147_v48  ;;  %v5299_v42 = vpack.c.b16 %v5297_v32, %v5296_v11  ;;  %v4947_v18 = vadd.f32 %v11249_v33, %v4838_v25  ;;  %v4731_v13 = vadd.f32 %v12063_v46, %v4622_v0  ;;  %v12064_v32 = vld [vmem:[#allocation41_spill] sm:$0xff] }
 0x848   : > { %v5150_v23 = vmax.f32 %v12064_v32, 0.0  ;;  %v4625_v33 = vadd.f32 %v10954_v12, %v11177_v37  ;;  %v12068_v12 = vld [vmem:[#allocation13_spill] sm:$0xff] }
 0x849   : > { %5687 = vmatmul.bf16.gmra.mxu2 %v5299_v42  ;;  %v4840_v42 = vadd.f32 %v12065_v40, %v4731_v13  ;;  %v4627_v0 = vadd.f32 %v12068_v12, %v11177_v37  ;;  %v12071_v46 = vld [vmem:[#allocation5_spill] sm:$0xff]  ;;  %v11370_v22 = vpop.f32.mrf.mxu2 }
 0x84a   : > { %v5052_v34 = vpop.f32.mrf.mxu3  ;;  %5698 = vmatpush.bf16.msrb.mxu2 %v7441_v20  ;;  %v4734_v16 = vadd.f32 %v12066_v45, %v4625_v33  ;;  %v12073_v33 = vld [vmem:[#allocation64_spill] sm:$0xff] }
 0x84b   : > { %v5053_v41 = vadd.f32 %v5052_v34, %v4944_v49  ;;  %v4949_v19 = vadd.f32 %v11262_v15, %v4840_v42  ;;  %v4736_v13 = vadd.f32 %v12071_v46, %v4627_v0  ;;  %v4630_v40 = vadd.f32 %v12073_v33, %v11177_v37  ;;  %v12074_v42 = vld [vmem:[#allocation115_spill] sm:$0xff] }
 0x84c   : > { %v11314_v50 = vpop.f32.mrf.mxu1  ;;  %v4843_v25 = vadd.f32 %v12069_v14, %v4734_v16  ;;  %v12076_v0 = vld [vmem:[#allocation7_spill] sm:$0xff] }
 0x84d   : > { %v5149_v35 = vmax.f32 %v5053_v41, 0.0  ;;  %v5156_v14 = vmax.f32 %v12076_v0, 0.0 }
 0x84e   : > { %5699 = vmatpush.bf16.msrb.mxu2 %v7440_v8  ;;  %v4952_v8 = vadd.f32 %v11275_v6, %v4843_v25 }
 0x84f   : > { %v5219_v38 = vmax.f32 %v5148_v24, %v5149_v35  ;;  %4995 = vmatmul.bf16.gmra.mxu1 %v12062_v39  ;;  %5094 = vmatmul.bf16.gmra.mxu3 %v12062_v39  ;;  %v12067_v35 = vld [vmem:[#allocation6_spill] sm:$0xff]  ;;  %v12070_v39 = vld [vmem:[#allocation55_spill] sm:$0xff] }
 0x850   : > { %v5152_v20 = vmax.f32 %v12067_v35, 0.0  ;;  %v12075_v35 = vld [vmem:[#allocation29_spill] sm:$0xff] }
 0x852   : > { %v5055_v28 = vpop.f32.mrf.mxu3  ;;  %5700 = vmatpush.bf16.msrb.mxu2 %v7439_v56 }
 0x853   : > { %v5056_v48 = vadd.f32 %v5055_v28, %v4947_v18  ;;  %v11356_v18 = vpop.f32.mrf.mxu0 }
 0x854   : > { %v11330_v11 = vpop.f32.mrf.mxu1 }
 0x855   : > { %v5151_v27 = vmax.f32 %v5056_v48, 0.0 }
 0x857   : > { %v5220_v49 = vmax.f32 %v5150_v23, %v5151_v27  ;;  %v12072_v23 = vld [vmem:[#allocation10_spill] sm:$0xff] }
 0x858   : > { %v5154_v27 = vmax.f32 %v12072_v23, 0.0 }
 0x85a   : > { %v5057_v34 = vpop.f32.mrf.mxu3 }
 0x85b   : > { %v5058_v41 = vadd.f32 %v5057_v34, %v4949_v19  ;;  %v4845_v19 = vadd.f32 %v12074_v42, %v4736_v13  ;;  %v11368_v6 = vpop.f32.mrf.mxu0 }
 0x85c   : > { %v11346_v24 = vpop.f32.mrf.mxu1 }
 0x85d   : > { %v5153_v17 = vmax.f32 %v5058_v41, 0.0  ;;  %v4954_v45 = vadd.f32 %v11294_v57, %v4845_v19 }
 0x85f   : > { %v11352_v15 = vmax.f32 %v5152_v20, %v5153_v17  ;;  %5000 = vmatmul.bf16.gmra.mxu1 %v12070_v39  ;;  %5099 = vmatmul.bf16.gmra.mxu3 %v12070_v39  ;;  %v4739_v20 = vadd.f32 %v12075_v35, %v4630_v40  ;;  %v12077_v39 = vld [vmem:[#allocation12_spill] sm:$0xff] }
 0x862   : > { %v5060_v28 = vpop.f32.mrf.mxu3 }
 0x863   : > { %v5061_v48 = vadd.f32 %v5060_v28, %v4952_v8  ;;  %v4632_v8 = vadd.f32 %v12077_v39, %v11177_v37  ;;  %v12078_v28 = vld [vmem:[#allocation24_spill] sm:$0xff]  ;;  %v11383_v19 = vpop.f32.mrf.mxu0 }
 0x864   : > { %v11360_v32 = vpop.f32.mrf.mxu1  ;;  %v4848_v57 = vadd.f32 %v12078_v28, %v4739_v20 }
 0x865   : > { %v5155_v56 = vmax.f32 %v5061_v48, 0.0 }
 0x866   : > { %v4957_v13 = vadd.f32 %v11314_v50, %v4848_v57  ;;  %v4635_v50 = vadd.f32 %v10998_v63, %v11177_v37 }
 0x867   : > { %v5222_v34 = vmax.f32 %v5154_v27, %v5155_v56  ;;  %v12080_v56 = vld [vmem:[#allocation42_spill] sm:$0xff] }
 0x868   : > { %v4741_v33 = vadd.f32 %v12080_v56, %v4632_v8  ;;  %v4744_v57 = vadd.f32 %v11312_v3, %v4635_v50  ;;  %v12084_v56 = vld [vmem:[#allocation31_spill] sm:$0xff]  ;;  %v7449_v3 = vld [vmem:[%s11654_s5 + $0x90] sm:$0xff] }
 0x869   : > { %v5254_v16 = vmax.f32 %v11303_v5, %v5222_v34  ;;  %v12079_v5 = vld [vmem:[#allocation56_spill] sm:$0xff]  ;;  %5717 = vmatpush.bf16.msra.mxu0 %v7449_v3  ;;  %v12088_v3 = vld [vmem:[#allocation43_spill] sm:$0xff] }
 0x86a   : > { %v5062_v41 = vpop.f32.mrf.mxu3 }
 0x86b   : > { %v5063_v17 = vadd.f32 %v5062_v41, %v4954_v45  ;;  %v5274_v48 = vpack.c.bf16 %v5254_v16, %v5254_v16  ;;  %v11387_v45 = vpop.f32.mrf.mxu2  ;;  %v12081_v41 = vld [vmem:[#allocation11_spill] sm:$0xff] }
 0x86c   : > { %v11373_v12 = vpop.f32.mrf.mxu1  ;;  %v5158_v35 = vmax.f32 %v12081_v41, 0.0 }
 0x86d   : > { %v5157_v25 = vmax.f32 %v5063_v17, 0.0  ;;  %v5306_v20 = vunpack.c.l.b16 %v5274_v48 }
 0x86f   : > { %v5223_v46 = vmax.f32 %v5156_v14, %v5157_v25  ;;  %5005 = vmatmul.bf16.gmra.mxu1 %v12079_v5  ;;  %5104 = vmatmul.bf16.gmra.mxu3 %v12079_v5 }
 0x871   : > { %v5255_v23 = vmax.f32 %v5219_v38, %v5223_v46  ;;  %v12082_v38 = vld [vmem:[#allocation40_spill] sm:$0xff] }
 0x872   : > { %v5065_v27 = vpop.f32.mrf.mxu3  ;;  %v4850_v16 = vadd.f32 %v12082_v38, %v4741_v33  ;;  %v4637_v33 = vadd.f32 %v12084_v56, %v11177_v37  ;;  %v12086_v38 = vld [vmem:[#allocation9_spill] sm:$0xff] }
 0x873   : > { %v5275_v40 = vpack.c.bf16 %v5255_v23, %v5255_v23  ;;  %v5066_v42 = vadd.f32 %v5065_v27, %v4957_v13  ;;  %v12083_v13 = vld [vmem:[#allocation59_spill] sm:$0xff]  ;;  %v11398_v27 = vpop.f32.mrf.mxu0  ;;  %v11400_v63 = vpop.f32.mrf.mxu2 }
 0x874   : > { %v11385_v34 = vpop.f32.mrf.mxu1  ;;  %v4959_v39 = vadd.f32 %v11330_v11, %v4850_v16  ;;  %v5160_v48 = vmax.f32 %v12083_v13, 0.0  ;;  %v4853_v11 = vadd.f32 %v11246_v29, %v4744_v57  ;;  %v5162_v16 = vmax.f32 %v12086_v38, 0.0 }
 0x875   : > { %v5307_v17 = vunpack.c.l.b16 %v5275_v40  ;;  %v5159_v0 = vmax.f32 %v5066_v42, 0.0  ;;  %v12085_v40 = vld [vmem:[#allocation3_spill] sm:$0xff] }
 0x876   : > { %v4962_v42 = vadd.f32 %v11346_v24, %v4853_v11 }
 0x877   : > { %v5310_v14 = vpack.c.b16 %v5307_v17, %v5306_v20  ;;  %v5224_v25 = vmax.f32 %v5158_v35, %v5159_v0  ;;  %v4746_v17 = vadd.f32 %v11336_v2, %v4637_v33  ;;  %v12087_v33 = vld [vmem:[#allocation61_spill] sm:$0xff] }
 0x878   : > { %v5164_v11 = vmax.f32 %v12087_v33, 0.0 }
 0x879   : > { %v5256_v8 = vmax.f32 %v5220_v49, %v5224_v25  ;;  %5701 = vmatmul.bf16.vlgmr.msrb.gmra.mxu2 %v5310_v14  ;;  %v4855_v24 = vadd.f32 %v11264_v26, %v4746_v17 }
 0x87a   : > { %v5067_v28 = vpop.f32.mrf.mxu3 }
 0x87b   : > { %v5068_v46 = vadd.f32 %v5067_v28, %v4959_v39  ;;  %v5276_v41 = vpack.c.bf16 %v5256_v8, %v5256_v8  ;;  %v4640_v28 = vadd.f32 %v11014_v21, %v11177_v37  ;;  %v4758_v57 = vpop.f32.mrf.mxu0  ;;  %v4964_v2 = vadd.f32 %v11360_v32, %v4855_v24  ;;  %v12090_v24 = vld [vmem:[#allocation32_spill] sm:$0xff] }
 0x87c   : > { %v11395_v5 = vpop.f32.mrf.mxu1  ;;  %v4642_v21 = vadd.f32 %v11021_v61, %v11177_v37  ;;  %v12089_v61 = vld [vmem:[#allocation30_spill] sm:$0xff] }
 0x87d   : > { %v5161_v23 = vmax.f32 %v5068_v46, 0.0  ;;  %v5308_v25 = vunpack.c.l.b16 %v5276_v41  ;;  %v11419_v46 = vpop.f32.mrf.mxu2  ;;  %v5166_v17 = vmax.f32 %v12089_v61, 0.0 }
 0x87f   : > { %v5225_v49 = vmax.f32 %v5160_v48, %v5161_v23  ;;  %5010 = vmatmul.bf16.gmra.mxu1 %v12085_v40  ;;  %5109 = vmatmul.bf16.gmra.mxu3 %v12085_v40  ;;  %v4749_v48 = vadd.f32 %v11356_v18, %v4640_v28  ;;  %v7448_v18 = vld [vmem:[%s11654_s5 + $0x88] sm:$0xff] }
 0x880   : > { %5718 = vmatpush.bf16.msra.mxu0 %v7448_v18 }
 0x881   : > { %v5257_v35 = vmax.f32 %v11352_v15, %v5225_v49  ;;  %v4858_v26 = vadd.f32 %v11281_v54, %v4749_v48  ;;  %v4647_v48 = vadd.f32 %v11037_v52, %v11177_v37  ;;  %v4650_v52 = vadd.f32 %v11046_v55, %v11177_v37 }
 0x882   : > { %v5070_v20 = vpop.f32.mrf.mxu3 }
 0x883   : > { %v5071_v0 = vadd.f32 %v5070_v20, %v4962_v42  ;;  %v5277_v29 = vpack.c.bf16 %v5257_v35, %v5257_v35  ;;  %v4967_v32 = vadd.f32 %v11373_v12, %v4858_v26  ;;  %v4760_v42 = vpop.f32.mrf.mxu0  ;;  %v4751_v35 = vadd.f32 %v11368_v6, %v4642_v21  ;;  %v12092_v21 = vld [vmem:[#allocation67_spill] sm:$0xff] }
 0x884   : > { %v11413_v50 = vpop.f32.mrf.mxu1  ;;  %v4645_v12 = vadd.f32 %v11030_v7, %v11177_v37  ;;  %v5170_v26 = vmax.f32 %v12092_v21, 0.0 }
 0x885   : > { %v5163_v14 = vmax.f32 %v5071_v0, 0.0  ;;  %v5309_v39 = vunpack.c.l.b16 %v5277_v29  ;;  %v7447_v0 = vld [vmem:[%s11654_s5 + $0x80] sm:$0xff]  ;;  %v4860_v38 = vadd.f32 %v11305_v1, %v4751_v35  ;;  %v12091_v1 = vld [vmem:[#allocation4_spill] sm:$0xff] }
 0x886   : > { %5719 = vmatpush.bf16.msra.mxu0 %v7447_v0 }
 0x887   : > { %v5226_v8 = vmax.f32 %v5162_v16, %v5163_v14  ;;  %v5311_v15 = vpack.c.b16 %v5309_v39, %v5308_v25  ;;  %v4969_v14 = vadd.f32 %v11385_v34, %v4860_v38  ;;  %v4754_v25 = vadd.f32 %v11383_v19, %v4645_v12 }
 0x888   : > { %v4756_v19 = vadd.f32 %v11398_v27, %v4647_v48  ;;  %v4759_v27 = vadd.f32 %v4758_v57, %v4650_v52  ;;  %v4652_v38 = vadd.f32 %v11053_v44, %v11177_v37 }
 0x889   : > { %5706 = vmatmul.bf16.gmra.mxu2 %v5311_v15  ;;  %v5168_v15 = vmax.f32 %v12090_v24, 0.0  ;;  %v4863_v7 = vadd.f32 %v11370_v22, %v4754_v25 }
 0x88a   : > { %v5072_v13 = vpop.f32.mrf.mxu3  ;;  %v4865_v22 = vadd.f32 %v11387_v45, %v4756_v19  ;;  %v4868_v55 = vadd.f32 %v11400_v63, %v4759_v27  ;;  %v4761_v57 = vadd.f32 %v4760_v42, %v4652_v38  ;;  %v7462_v42 = vld [vmem:[%s11654_s5 + $0xf8] sm:$0xff] }
 0x88b   : > { %v5073_v23 = vadd.f32 %v5072_v13, %v4964_v2  ;;  %v4763_v28 = vpop.f32.mrf.mxu0  ;;  %v4872_v13 = vpop.f32.mrf.mxu2  ;;  %v4972_v34 = vadd.f32 %v11395_v5, %v4863_v7  ;;  %v12095_v7 = vld [vmem:[#allocation70_spill] sm:$0xff]  ;;  %5731 = vmatpush.bf16.msra.mxu2 %v7462_v42 }
 0x88c   : > { %v4976_v56 = vpop.f32.mrf.mxu1  ;;  %v4974_v35 = vadd.f32 %v11413_v50, %v4865_v22 }
 0x88d   : > { %v5165_v49 = vmax.f32 %v5073_v23, 0.0  ;;  %v4977_v25 = vadd.f32 %v4976_v56, %v4868_v55  ;;  %v4870_v56 = vadd.f32 %v11419_v46, %v4761_v57  ;;  %v7461_v46 = vld [vmem:[%s11654_s5 + $0xf0] sm:$0xff] }
 0x88f   : > { %v5227_v40 = vmax.f32 %v5164_v11, %v5165_v49  ;;  %5015 = vmatmul.bf16.gmra.mxu1 %v12088_v3  ;;  %5114 = vmatmul.bf16.gmra.mxu3 %v12088_v3 }
 0x890   : > { %5732 = vmatpush.bf16.msra.mxu2 %v7461_v46 }
 0x892   : > { %v5075_v41 = vpop.f32.mrf.mxu3 }
 0x893   : > { %v5076_v20 = vadd.f32 %v5075_v41, %v4967_v32  ;;  %v4765_v32 = vpop.f32.mrf.mxu0  ;;  %v11456_v41 = vpop.f32.mrf.mxu2 }
 0x894   : > { %v4978_v29 = vpop.f32.mrf.mxu1 }
 0x895   : > { %v5167_v54 = vmax.f32 %v5076_v20, 0.0 }
 0x897   : > { %v5228_v16 = vmax.f32 %v5166_v17, %v5167_v54  ;;  %v12093_v54 = vld [vmem:[#allocation16_spill] sm:$0xff] }
 0x898   : > { %v5172_v0 = vmax.f32 %v12093_v54, 0.0 }
 0x89a   : > { %v5077_v6 = vpop.f32.mrf.mxu3 }
 0x89b   : > { %v5078_v39 = vadd.f32 %v5077_v6, %v4969_v14  ;;  %v12094_v14 = vld [vmem:[#allocation44_spill] sm:$0xff]  ;;  %v4768_v6 = vpop.f32.mrf.mxu0  ;;  %v11466_v24 = vpop.f32.mrf.mxu2 }
 0x89c   : > { %v4981_v33 = vpop.f32.mrf.mxu1 }
 0x89d   : > { %v5169_v2 = vmax.f32 %v5078_v39, 0.0 }
 0x89f   : > { %v11447_v23 = vmax.f32 %v5168_v15, %v5169_v2  ;;  %5119 = vmatmul.bf16.gmra.mxu3 %v12091_v1  ;;  %v5174_v1 = vmax.f32 %v12095_v7, 0.0 }
 0x8a2   : > { %v5080_v11 = vpop.f32.mrf.mxu3 }
 0x8a3   : > { %v5081_v49 = vadd.f32 %v5080_v11, %v4972_v34  ;;  %v4655_v11 = vadd.f32 %v11062_v31, %v11177_v37 }
 0x8a4   : > { %v11459_v5 = vpop.f32.mrf.mxu1 }
 0x8a5   : > { %v5171_v3 = vmax.f32 %v5081_v49, 0.0  ;;  %v4979_v49 = vadd.f32 %v4978_v29, %v4870_v56  ;;  %v4764_v52 = vadd.f32 %v4763_v28, %v4655_v11 }
 0x8a7   : > { %v5230_v18 = vmax.f32 %v5170_v26, %v5171_v3  ;;  %v4770_v26 = vpop.f32.mrf.mxu0 }
 0x8a9   : > { %v5258_v20 = vmax.f32 %v5226_v8, %v5230_v18  ;;  %v4879_v18 = vpop.f32.mrf.mxu2 }
 0x8aa   : > { %v5082_v61 = vpop.f32.mrf.mxu3 }
 0x8ab   : > { %v5083_v17 = vadd.f32 %v5082_v61, %v4974_v35  ;;  %v5278_v50 = vpack.c.bf16 %v5258_v20, %v5258_v20  ;;  %v5176_v35 = vmax.f32 %v11017_v47, 0.0  ;;  %v4873_v20 = vadd.f32 %v4872_v13, %v4764_v52  ;;  %v7460_v47 = vld [vmem:[%s11654_s5 + $0xe8] sm:$0xff] }
 0x8ac   : > { %v11468_v48 = vpop.f32.mrf.mxu1  ;;  %5733 = vmatpush.bf16.msra.mxu2 %v7460_v47  ;;  %v12099_v47 = vld [vmem:[#allocation18_spill] sm:$0xff] }
 0x8ad   : > { %v5173_v12 = vmax.f32 %v5083_v17, 0.0  ;;  %v5318_v44 = vunpack.c.l.b16 %v5278_v50  ;;  %v4982_v27 = vadd.f32 %v4981_v33, %v4873_v20  ;;  %v7459_v33 = vld [vmem:[%s11654_s5 + $0xe0] sm:$0xff]  ;;  %v4660_v50 = vadd.f32 %v11081_v36, %v11177_v37 }
 0x8af   : > { %v5231_v45 = vmax.f32 %v5172_v0, %v5173_v12  ;;  %5124 = vmatmul.bf16.gmra.mxu3 %v12094_v14  ;;  %v4773_v55 = vpop.f32.mrf.mxu0 }
 0x8b0   : > { %5734 = vmatpush.bf16.msra.mxu2 %v7459_v33 }
 0x8b1   : > { %v5259_v8 = vmax.f32 %v5227_v40, %v5231_v45  ;;  %v12096_v45 = vld [vmem:[#allocation33_spill] sm:$0xff] }
 0x8b2   : > { %v5085_v39 = vpop.f32.mrf.mxu3  ;;  %v5178_v14 = vmax.f32 %v12096_v45, 0.0 }
 0x8b3   : > { %v5279_v15 = vpack.c.bf16 %v5259_v8, %v5259_v8  ;;  %v5086_v2 = vadd.f32 %v5085_v39, %v4977_v25 }
 0x8b4   : > { %v4988_v29 = vpop.f32.mrf.mxu1 }
 0x8b5   : > { %v5319_v34 = vunpack.c.l.b16 %v5279_v15  ;;  %v5175_v63 = vmax.f32 %v5086_v2, 0.0  ;;  %v7458_v2 = vld [vmem:[%s11654_s5 + $0xd8] sm:$0xff] }
 0x8b6   : > { %5735 = vmatpush.bf16.msra.mxu2 %v7458_v2 }
 0x8b7   : > { %v5322_v19 = vpack.c.b16 %v5319_v34, %v5318_v44  ;;  %v5232_v40 = vmax.f32 %v5174_v1, %v5175_v63  ;;  %v4769_v1 = vadd.f32 %v4768_v6, %v4660_v50  ;;  %v12097_v34 = vld [vmem:[#allocation14_spill] sm:$0xff]  ;;  %v4775_v11 = vpop.f32.mrf.mxu0 }
 0x8b8   : > { %v5180_v63 = vmax.f32 %v12097_v34, 0.0 }
 0x8b9   : > { %v5260_v21 = vmax.f32 %v5228_v16, %v5232_v40  ;;  %5720 = vmatmul.bf16.vlgmr.msra.gmra.mxu0 %v5322_v19  ;;  %v4657_v16 = vadd.f32 %v11069_v53, %v11177_v37  ;;  %v4878_v56 = vadd.f32 %v11466_v24, %v4769_v1  ;;  %v4665_v24 = vadd.f32 %v11097_v10, %v11177_v37 }
 0x8ba   : > { %v5087_v3 = vpop.f32.mrf.mxu3 }
 0x8bb   : > { %v5088_v22 = vadd.f32 %v5087_v3, %v4979_v49  ;;  %v5280_v17 = vpack.c.bf16 %v5260_v21, %v5260_v21  ;;  %v4766_v0 = vadd.f32 %v4765_v32, %v4657_v16  ;;  %v4987_v6 = vadd.f32 %v11468_v48, %v4878_v56  ;;  %v7456_v49 = vld [vmem:[%s11654_s5 + $0xc8] sm:$0xff] }
 0x8bc   : > { %v4991_v57 = vpop.f32.mrf.mxu1 }
 0x8bd   : > { %v5177_v31 = vmax.f32 %v5088_v22, 0.0  ;;  %v5320_v13 = vunpack.c.l.b16 %v5280_v17  ;;  %v4875_v8 = vadd.f32 %v11456_v41, %v4766_v0  ;;  %v7457_v41 = vld [vmem:[%s11654_s5 + $0xd0] sm:$0xff]  ;;  %v12098_v22 = vld [vmem:[#allocation72_spill] sm:$0xff] }
 0x8be   : > { %5736 = vmatpush.bf16.msra.mxu2 %v7457_v41 }
 0x8bf   : > { %v5233_v61 = vmax.f32 %v5176_v35, %v5177_v31  ;;  %v4984_v15 = vadd.f32 %v11459_v5, %v4875_v8  ;;  %v4662_v5 = vadd.f32 %v11088_v62, %v11177_v37  ;;  %v5182_v35 = vmax.f32 %v12098_v22, 0.0  ;;  %v7455_v62 = vld [vmem:[%s11654_s5 + $0xc0] sm:$0xff]  ;;  %v4778_v16 = vpop.f32.mrf.mxu0 }
 0x8c0   : > { %v4670_v8 = vadd.f32 %v11113_v51, %v11177_v37 }
 0x8c1   : > { %v5261_v28 = vmax.f32 %v11447_v23, %v5233_v61  ;;  %v4882_v23 = vpop.f32.mrf.mxu2  ;;  %v4771_v3 = vadd.f32 %v4770_v26, %v4662_v5  ;;  %v4774_v26 = vadd.f32 %v4773_v55, %v4665_v24 }
 0x8c2   : > { %v5090_v54 = vpop.f32.mrf.mxu3  ;;  %5737 = vmatpush.bf16.msra.mxu2 %v7456_v49 }
 0x8c3   : > { %v5281_v12 = vpack.c.bf16 %v5261_v28, %v5261_v28  ;;  %v5091_v38 = vadd.f32 %v5090_v54, %v4982_v27  ;;  %v4880_v48 = vadd.f32 %v4879_v18, %v4771_v3  ;;  %v5184_v54 = vmax.f32 %v12099_v47, 0.0 }
 0x8c4   : > { %v4993_v21 = vpop.f32.mrf.mxu1 }
 0x8c5   : > { %v5179_v53 = vmax.f32 %v5091_v38, 0.0  ;;  %v5321_v25 = vunpack.c.l.b16 %v5281_v12  ;;  %v4989_v20 = vadd.f32 %v4988_v29, %v4880_v48  ;;  %v4667_v12 = vadd.f32 %v11104_v4, %v11177_v37 }
 0x8c6   : > { %5738 = vmatpush.bf16.msra.mxu2 %v7455_v62  ;;  %v4883_v38 = vadd.f32 %v4882_v23, %v4774_v26 }
 0x8c7   : > { %v5234_v32 = vmax.f32 %v5178_v14, %v5179_v53  ;;  %v5323_v39 = vpack.c.b16 %v5321_v25, %v5320_v13  ;;  %v4780_v18 = vpop.f32.mrf.mxu0  ;;  %v4776_v53 = vadd.f32 %v4775_v11, %v4667_v12  ;;  %v12100_v25 = vld [vmem:[#allocation15_spill] sm:$0xff] }
 0x8c8   : > { %v4992_v10 = vadd.f32 %v4991_v57, %v4883_v38  ;;  %v5186_v33 = vmax.f32 %v12100_v25, 0.0 }
 0x8c9   : > { %5725 = vmatmul.bf16.gmra.mxu0 %v5323_v39  ;;  %v4884_v40 = vpop.f32.mrf.mxu2 }
 0x8ca   : > { %v5092_v7 = vpop.f32.mrf.mxu3  ;;  %v4885_v39 = vadd.f32 %v4884_v40, %v4776_v53 }
 0x8cb   : > { %v5093_v44 = vadd.f32 %v5092_v7, %v4984_v15  ;;  %v4779_v7 = vadd.f32 %v4778_v16, %v4670_v8 }
 0x8cc   : > { %v4996_v28 = vpop.f32.mrf.mxu1  ;;  %v4994_v2 = vadd.f32 %v4993_v21, %v4885_v39 }
 0x8cd   : > { %v5181_v36 = vmax.f32 %v5093_v44, 0.0  ;;  %v5188_v44 = vmax.f32 %v11065_v43, 0.0 }
 0x8cf   : > { %v5235_v19 = vmax.f32 %v5180_v63, %v5181_v36  ;;  %v4783_v57 = vpop.f32.mrf.mxu0  ;;  %v4672_v36 = vadd.f32 %v11126_v58, %v11177_v37 }
 0x8d1   : > { %v4887_v27 = vpop.f32.mrf.mxu2  ;;  %v4781_v49 = vadd.f32 %v4780_v18, %v4672_v36 }
 0x8d2   : > { %v5095_v42 = vpop.f32.mrf.mxu3  ;;  %v4888_v41 = vadd.f32 %v4887_v27, %v4779_v7 }
 0x8d3   : > { %v5096_v52 = vadd.f32 %v5095_v42, %v4987_v6  ;;  %v12101_v42 = vld [vmem:[#allocation74_spill] sm:$0xff] }
 0x8d4   : > { %v4998_v50 = vpop.f32.mrf.mxu1  ;;  %v4997_v56 = vadd.f32 %v4996_v28, %v4888_v41  ;;  %v5190_v3 = vmax.f32 %v12101_v42, 0.0  ;;  %v5192_v28 = vmax.f32 %v11084_v59, 0.0  ;;  %v12103_v41 = vld [vmem:[#allocation47_spill] sm:$0xff] }
 0x8d5   : > { %v5183_v31 = vmax.f32 %v5096_v52, 0.0 }
 0x8d7   : > { %v5236_v46 = vmax.f32 %v5182_v35, %v5183_v31  ;;  %v4785_v35 = vpop.f32.mrf.mxu0  ;;  %v4675_v31 = vadd.f32 %v11135_v30, %v11177_v37  ;;  %v7469_v30 = vld [vmem:[%s11654_s5 + $0x130] sm:$0xff] }
 0x8d9   : > { %v4889_v29 = vpop.f32.mrf.mxu2  ;;  %v4784_v26 = vadd.f32 %v4783_v57, %v4675_v31 }
 0x8da   : > { %v5097_v61 = vpop.f32.mrf.mxu3  ;;  %v4890_v58 = vadd.f32 %v4889_v29, %v4781_v49 }
 0x8db   : > { %v5098_v17 = vadd.f32 %v5097_v61, %v4989_v20 }
 0x8dc   : > { %v5001_v5 = vpop.f32.mrf.mxu1  ;;  %v4999_v16 = vadd.f32 %v4998_v50, %v4890_v58  ;;  %v7463_v58 = vld [vmem:[%s11654_s5 + $0x100] sm:$0xff] }
 0x8dd   : > { %v5185_v0 = vmax.f32 %v5098_v17, 0.0 }
 0x8df   : > { %v11518_v45 = vmax.f32 %v5184_v54, %v5185_v0  ;;  %v4677_v54 = vadd.f32 %v11142_v60, %v11177_v37  ;;  %v4788_v38 = vpop.f32.mrf.mxu0  ;;  %v12102_v60 = vld [vmem:[#allocation19_spill] sm:$0xff] }
 0x8e1   : > { %v4892_v63 = vpop.f32.mrf.mxu2 }
 0x8e2   : > { %v5100_v14 = vpop.f32.mrf.mxu3  ;;  %v4893_v0 = vadd.f32 %v4892_v63, %v4784_v26 }
 0x8e3   : > { %v5101_v13 = vadd.f32 %v5100_v14, %v4992_v10 }
 0x8e4   : > { %v5003_v61 = vpop.f32.mrf.mxu1  ;;  %v5002_v10 = vadd.f32 %v5001_v5, %v4893_v0  ;;  %v12108_v0 = vld [vmem:[#allocation84_spill] sm:$0xff] }
 0x8e5   : > { %v5187_v55 = vmax.f32 %v5101_v13, 0.0  ;;  %v4786_v13 = vadd.f32 %v4785_v35, %v4677_v54 }
 0x8e7   : > { %v5238_v15 = vmax.f32 %v5186_v33, %v5187_v55  ;;  %v5194_v55 = vmax.f32 %v12102_v60, 0.0  ;;  %v4790_v57 = vpop.f32.mrf.mxu0  ;;  %v12110_v60 = vld [vmem:[#allocation23_spill] sm:$0xff] }
 0x8e9   : > { %v5262_v4 = vmax.f32 %v5234_v32, %v5238_v15  ;;  %v4894_v48 = vpop.f32.mrf.mxu2  ;;  %v7467_v15 = vld [vmem:[%s11654_s5 + $0x120] sm:$0xff] }
 0x8ea   : > { %v5102_v23 = vpop.f32.mrf.mxu3 }
 0x8eb   : > { %v5103_v1 = vadd.f32 %v5102_v23, %v4994_v2  ;;  %v5282_v51 = vpack.c.bf16 %v5262_v4, %v5262_v4  ;;  %v4680_v2 = vadd.f32 %v11151_v9, %v11177_v37  ;;  %v7465_v9 = vld [vmem:[%s11654_s5 + $0x110] sm:$0xff] }
 0x8ec   : > { %v5006_v33 = vpop.f32.mrf.mxu1 }
 0x8ed   : > { %v5189_v34 = vmax.f32 %v5103_v1, 0.0  ;;  %v5330_v52 = vunpack.c.l.b16 %v5282_v51  ;;  %v7466_v1 = vld [vmem:[%s11654_s5 + $0x118] sm:$0xff]  ;;  %v12104_v51 = vld [vmem:[#allocation36_spill] sm:$0xff] }
 0x8ef   : > { %v5239_v11 = vmax.f32 %v5188_v44, %v5189_v34  ;;  %v4789_v34 = vadd.f32 %v4788_v38, %v4680_v2 }
 0x8f1   : > { %v5263_v40 = vmax.f32 %v5235_v19, %v5239_v11  ;;  %v7470_v19 = vld [vmem:[%s11654_s5 + $0x138] sm:$0xff]  ;;  %v4897_v53 = vpop.f32.mrf.mxu2  ;;  %v5196_v11 = vmax.f32 %v12103_v41, 0.0 }
 0x8f2   : > { %v5105_v6 = vpop.f32.mrf.mxu3  ;;  %5750 = vmatpush.bf16.msrb.mxu0 %v7470_v19 }
 0x8f3   : > { %v5283_v32 = vpack.c.bf16 %v5263_v40, %v5263_v40  ;;  %v5106_v21 = vadd.f32 %v5105_v6, %v4997_v56  ;;  %v4682_v40 = vadd.f32 %v12104_v51, %v11177_v37  ;;  %v4898_v6 = vadd.f32 %v4897_v53, %v4789_v34 }
 0x8f4   : > { %v5008_v56 = vpop.f32.mrf.mxu1 }
 0x8f5   : > { %v5331_v22 = vunpack.c.l.b16 %v5283_v32  ;;  %v5191_v43 = vmax.f32 %v5106_v21, 0.0  ;;  %v5007_v32 = vadd.f32 %v5006_v33, %v4898_v6  ;;  %v7464_v21 = vld [vmem:[%s11654_s5 + $0x108] sm:$0xff] }
 0x8f6   : > { %5751 = vmatpush.bf16.msrb.mxu0 %v7469_v30 }
 0x8f7   : > { %v5334_v62 = vpack.c.b16 %v5331_v22, %v5330_v52  ;;  %v5240_v24 = vmax.f32 %v5190_v3, %v5191_v43  ;;  %v4791_v3 = vadd.f32 %v4790_v57, %v4682_v40  ;;  %v4793_v22 = vpop.f32.mrf.mxu0  ;;  %v12105_v43 = vld [vmem:[#allocation77_spill] sm:$0xff] }
 0x8f8   : > { %v5198_v35 = vmax.f32 %v12105_v43, 0.0 }
 0x8f9   : > { %v5264_v20 = vmax.f32 %v5236_v46, %v5240_v24  ;;  %5739 = vmatmul.bf16.vlgmr.msra.gmra.mxu2 %v5334_v62  ;;  %v7468_v46 = vld [vmem:[%s11654_s5 + $0x128] sm:$0xff]  ;;  %v4899_v36 = vpop.f32.mrf.mxu2 }
 0x8fa   : > { %v5107_v27 = vpop.f32.mrf.mxu3  ;;  %5752 = vmatpush.bf16.msrb.mxu0 %v7468_v46  ;;  %v12106_v24 = vld [vmem:[#allocation20_spill] sm:$0xff] }
 0x8fb   : > { %v5108_v17 = vadd.f32 %v5107_v27, %v4999_v16  ;;  %v5284_v18 = vpack.c.bf16 %v5264_v20, %v5264_v20  ;;  %v4685_v19 = vadd.f32 %v12106_v24, %v11177_v37 }
 0x8fc   : > { %v5011_v20 = vpop.f32.mrf.mxu1 }
 0x8fd   : > { %v5193_v47 = vmax.f32 %v5108_v17, 0.0  ;;  %v5332_v8 = vunpack.c.l.b16 %v5284_v18  ;;  %v4794_v26 = vadd.f32 %v4793_v22, %v4685_v19 }
 0x8fe   : > { %5753 = vmatpush.bf16.msrb.mxu0 %v7467_v15 }
 0x8ff   : > { %v5241_v12 = vmax.f32 %v5192_v28, %v5193_v47  ;;  %v12107_v28 = vld [vmem:[#allocation48_spill] sm:$0xff]  ;;  %v4795_v54 = vpop.f32.mrf.mxu0 }
 0x900   : > { %v5200_v47 = vmax.f32 %v12107_v28, 0.0 }
 0x901   : > { %v5265_v59 = vmax.f32 %v11518_v45, %v5241_v12  ;;  %v4895_v45 = vadd.f32 %v4894_v48, %v4786_v13  ;;  %v4902_v62 = vpop.f32.mrf.mxu2  ;;  %v4900_v48 = vadd.f32 %v4899_v36, %v4791_v3  ;;  %v4687_v12 = vadd.f32 %v12108_v0, %v11177_v37  ;;  %v12112_v36 = vld [vmem:[#allocation21_spill] sm:$0xff] }
 0x902   : > { %v5110_v14 = vpop.f32.mrf.mxu3  ;;  %5754 = vmatpush.bf16.msrb.mxu0 %v7466_v1  ;;  %v4903_v46 = vadd.f32 %v4902_v62, %v4794_v26  ;;  %v4692_v41 = vadd.f32 %v12112_v36, %v11177_v37  ;;  %v7485_v36 = vld [vmem:[%s11658_s9 + $0x30] sm:$0xff] }
 0x903   : > { %v5285_v29 = vpack.c.bf16 %v5265_v59, %v5265_v59  ;;  %v5111_v25 = vadd.f32 %v5110_v14, %v5002_v10  ;;  %v5004_v7 = vadd.f32 %v5003_v61, %v4895_v45  ;;  %v5009_v61 = vadd.f32 %v5008_v56, %v4900_v48 }
 0x904   : > { %v5012_v18 = vadd.f32 %v5011_v20, %v4903_v46  ;;  %v5013_v59 = vpop.f32.mrf.mxu1  ;;  %v4796_v53 = vadd.f32 %v4795_v54, %v4687_v12  ;;  %v12114_v20 = vld [vmem:[#allocation34_spill] sm:$0xff] }
 0x905   : > { %v5195_v50 = vmax.f32 %v5111_v25, 0.0  ;;  %v5333_v39 = vunpack.c.l.b16 %v5285_v29  ;;  %v12109_v29 = vld [vmem:[#allocation17_spill] sm:$0xff] }
 0x906   : > { %5755 = vmatpush.bf16.msrb.mxu0 %v7465_v9  ;;  %v5202_v25 = vmax.f32 %v12109_v29, 0.0 }
 0x907   : > { %v5242_v4 = vmax.f32 %v5194_v55, %v5195_v50  ;;  %v5335_v23 = vpack.c.b16 %v5333_v39, %v5332_v8  ;;  %v4690_v55 = vadd.f32 %v12110_v60, %v11177_v37  ;;  %v4798_v39 = vpop.f32.mrf.mxu0 }
 0x909   : > { %5744 = vmatmul.bf16.gmra.mxu2 %v5335_v23  ;;  %v4904_v10 = vpop.f32.mrf.mxu2  ;;  %v4799_v23 = vadd.f32 %v4798_v39, %v4690_v55 }
 0x90a   : > { %v5112_v44 = vpop.f32.mrf.mxu3  ;;  %5756 = vmatpush.bf16.msrb.mxu0 %v7464_v21  ;;  %v4905_v50 = vadd.f32 %v4904_v10, %v4796_v53  ;;  %v7474_v53 = vld [vmem:[%s11656_s7 + $0x18] sm:$0xff] }
 0x90b   : > { %v5113_v63 = vadd.f32 %v5112_v44, %v5004_v7  ;;  %v12111_v44 = vld [vmem:[#allocation80_spill] sm:$0xff] }
 0x90c   : > { %v5014_v15 = vadd.f32 %v5013_v59, %v4905_v50  ;;  %v5016_v57 = vpop.f32.mrf.mxu1  ;;  %v5204_v34 = vmax.f32 %v12111_v44, 0.0  ;;  %v7472_v50 = vld [vmem:[%s11656_s7 + $0x8] sm:$0xff] }
 0x90d   : > { %v5197_v5 = vmax.f32 %v5113_v63, 0.0 }
 0x90e   : > { %5757 = vmatpush.bf16.msrb.mxu0 %v7463_v58 }
 0x90f   : > { %v5243_v49 = vmax.f32 %v5196_v11, %v5197_v5  ;;  %v4800_v40 = vpop.f32.mrf.mxu0 }
 0x911   : > { %v4907_v1 = vpop.f32.mrf.mxu2 }
 0x912   : > { %v5115_v42 = vpop.f32.mrf.mxu3  ;;  %v4908_v11 = vadd.f32 %v4907_v1, %v4799_v23  ;;  %v7517_v23 = vld [vmem:[%s11655_s6] ss:$0 sm:$0xff]  ;;  %v7486_v1 = vld [vmem:[%s11658_s9 + $0x38] sm:$0xff] }
 0x913   : > { %v5116_v52 = vadd.f32 %v5115_v42, %v5007_v32  ;;  %v4801_v32 = vadd.f32 %v4800_v40, %v4692_v41  ;;  %v12113_v42 = vld [vmem:[#allocation35_spill] sm:$0xff]  ;;  %5936 = vmatpush.bf16.msra.mxu0 %v7486_v1 }
 0x914   : > { %v5017_v9 = vadd.f32 %v5016_v57, %v4908_v11  ;;  %v5206_v3 = vmax.f32 %v12113_v42, 0.0 }
 0x915   : > { %v5199_v31 = vmax.f32 %v5116_v52, 0.0 }
 0x917   : > { %v5244_v16 = vmax.f32 %v5198_v35, %v5199_v31  ;;  %v5018_v31 = vpop.f32.mrf.mxu1  ;;  %5937 = vmatpush.bf16.msra.mxu0 %v7485_v36 }
 0x919   : > { %v4909_v35 = vpop.f32.mrf.mxu2 }
 0x91a   : > { %v5117_v27 = vpop.f32.mrf.mxu3  ;;  %v4910_v58 = vadd.f32 %v4909_v35, %v4801_v32 }
 0x91b   : > { %v5118_v17 = vadd.f32 %v5117_v27, %v5009_v61  ;;  %v5208_v61 = vmax.f32 %v12114_v20, 0.0 }
 0x91c   : > { %v5019_v24 = vadd.f32 %v5018_v31, %v4910_v58 }
 0x91d   : > { %v5201_v30 = vmax.f32 %v5118_v17, 0.0 }
 0x91f   : > { %v5245_v38 = vmax.f32 %v5200_v47, %v5201_v30 }
 0x921   : > { %v5683_v12 = vpop.f32.mrf.mxu2 }
 0x922   : > { %v5120_v14 = vpop.f32.mrf.mxu3 }
 0x923   : > { %v5121_v13 = vadd.f32 %v5120_v14, %v5012_v18  ;;  %v7477_v18 = vld [vmem:[%s11656_s7 + $0x30] sm:$0xff]  ;;  %v7475_v14 = vld [vmem:[%s11656_s7 + $0x20] sm:$0xff] }
 0x925   : > { %v5203_v33 = vmax.f32 %v5121_v13, 0.0 }
 0x927   : > { %v5246_v8 = vmax.f32 %v5202_v25, %v5203_v33  ;;  %v7473_v33 = vld [vmem:[%s11656_s7 + $0x10] sm:$0xff] }
 0x929   : > { %v5266_v2 = vmax.f32 %v5242_v4, %v5246_v8  ;;  %v5685_v46 = vpop.f32.mrf.mxu2  ;;  %v7471_v8 = vld [vmem:[%s11656_s7] sm:$0xff] }
 0x92a   : > { %v5122_v45 = vpop.f32.mrf.mxu3 }
 0x92b   : > { %v5123_v7 = vadd.f32 %v5122_v45, %v5014_v15  ;;  %v5286_v56 = vpack.c.bf16 %v5266_v2, %v5266_v2 }
 0x92d   : > { %v5205_v63 = vmax.f32 %v5123_v7, 0.0  ;;  %v5342_v52 = vunpack.c.l.b16 %v5286_v56  ;;  %v5684_v7 = vadd.f32 %v7517_v23, %v5683_v12  ;;  %v7484_v56 = vld [vmem:[%s11658_s9 + $0x28] sm:$0xff]  ;;  %v7518_v12 = vld [vmem:[%s11657_s8] ss:$0 sm:$0xff] }
 0x92e   : > { %5938 = vmatpush.bf16.msra.mxu0 %v7484_v56 }
 0x92f   : > { %v5247_v5 = vmax.f32 %v5204_v34, %v5205_v63  ;;  %v5686_v34 = vadd.f32 %v7517_v23, %v5685_v46 }
 0x931   : > { %v5267_v51 = vmax.f32 %v5243_v49, %v5247_v5  ;;  %v5688_v10 = vpop.f32.mrf.mxu2 }
 0x932   : > { %v5125_v6 = vpop.f32.mrf.mxu3 }
 0x933   : > { %v5287_v4 = vpack.c.bf16 %v5267_v51, %v5267_v51  ;;  %v5126_v21 = vadd.f32 %v5125_v6, %v5017_v9 }
 0x935   : > { %v5343_v22 = vunpack.c.l.b16 %v5287_v4  ;;  %v5207_v43 = vmax.f32 %v5126_v21, 0.0  ;;  %v7483_v4 = vld [vmem:[%s11658_s9 + $0x20] sm:$0xff] }
 0x936   : > { %v5721_v25 = vpop.f32.mrf.mxu0  ;;  %5939 = vmatpush.bf16.msra.mxu0 %v7483_v4 }
 0x937   : > { %v5346_v62 = vpack.c.b16 %v5343_v22, %v5342_v52  ;;  %v5248_v37 = vmax.f32 %v5206_v3, %v5207_v43  ;;  %v7482_v22 = vld [vmem:[%s11658_s9 + $0x18] sm:$0xff]  ;;  %v5689_v43 = vadd.f32 %v7517_v23, %v5688_v10 }
 0x939   : > { %v5268_v19 = vmax.f32 %v5244_v16, %v5248_v37  ;;  %5758 = vmatmul.bf16.vlgmr.msrb.gmra.mxu0 %v5346_v62  ;;  %v7478_v16 = vld [vmem:[%s11656_s7 + $0x38] sm:$0xff]  ;;  %v5690_v59 = vpop.f32.mrf.mxu2 }
 0x93a   : > { %v5127_v48 = vpop.f32.mrf.mxu3  ;;  %5843 = vmatpush.bf16.msrb.mxu2 %v7478_v16  ;;  %v5691_v31 = vadd.f32 %v7517_v23, %v5690_v59  ;;  %5940 = vmatpush.bf16.msra.mxu0 %v7482_v22 }
 0x93b   : > { %v5128_v49 = vadd.f32 %v5127_v48, %v5019_v24  ;;  %v5288_v17 = vpack.c.bf16 %v5268_v19, %v5268_v19 }
 0x93d   : > { %v5209_v27 = vmax.f32 %v5128_v49, 0.0  ;;  %v5344_v30 = vunpack.c.l.b16 %v5288_v17 }
 0x93e   : > { %5844 = vmatpush.bf16.msrb.mxu2 %v7477_v18  ;;  %v5723_v55 = vpop.f32.mrf.mxu0 }
 0x93f   : > { %v5249_v26 = vmax.f32 %v5208_v61, %v5209_v27 }
 0x941   : > { %v5269_v28 = vmax.f32 %v5245_v38, %v5249_v26  ;;  %v7476_v38 = vld [vmem:[%s11656_s7 + $0x28] sm:$0xff]  ;;  %v5702_v13 = vpop.f32.mrf.mxu2 }
 0x942   : > { %5845 = vmatpush.bf16.msrb.mxu2 %v7476_v38  ;;  %v5703_v63 = vadd.f32 %v5702_v13, %v5684_v7 }
 0x943   : > { %v5289_v47 = vpack.c.bf16 %v5269_v28, %v5269_v28 }
 0x944   : > { %v5722_v11 = vadd.f32 %v5721_v25, %v5703_v63 }
 0x945   : > { %v5345_v54 = vunpack.c.l.b16 %v5289_v47  ;;  %v7481_v47 = vld [vmem:[%s11658_s9 + $0x10] sm:$0xff] }
 0x946   : > { %5846 = vmatpush.bf16.msrb.mxu2 %v7475_v14  ;;  %v5726_v15 = vpop.f32.mrf.mxu0  ;;  %5941 = vmatpush.bf16.msra.mxu0 %v7481_v47 }
 0x947   : > { %v5347_v0 = vpack.c.b16 %v5345_v54, %v5344_v30  ;;  %v7480_v30 = vld [vmem:[%s11658_s9 + $0x8] sm:$0xff]  ;;  %v7479_v54 = vld [vmem:[%s11658_s9] sm:$0xff] }
 0x949   : > { %5763 = vmatmul.bf16.gmra.mxu0 %v5347_v0  ;;  %v5704_v29 = vpop.f32.mrf.mxu2 }
 0x94a   : > { %5847 = vmatpush.bf16.msrb.mxu2 %v7474_v53  ;;  %v5705_v41 = vadd.f32 %v5704_v29, %v5686_v34  ;;  %5942 = vmatpush.bf16.msra.mxu0 %v7480_v30 }
 0x94c   : > { %v5724_v5 = vadd.f32 %v5723_v55, %v5705_v41  ;;  %v7519_v55 = vld [vmem:[%s11659_s10] ss:$0 sm:$0xff] }
 0x94e   : > { %5848 = vmatpush.bf16.msrb.mxu2 %v7473_v33  ;;  %v5728_v45 = vpop.f32.mrf.mxu0  ;;  %5943 = vmatpush.bf16.msra.mxu0 %v7479_v54 }
 0x951   : > { %v5707_v60 = vpop.f32.mrf.mxu2 }
 0x952   : > { %5849 = vmatpush.bf16.msrb.mxu2 %v7472_v50  ;;  %v5708_v58 = vadd.f32 %v5707_v60, %v5689_v43 }
 0x954   : > { %v5727_v37 = vadd.f32 %v5726_v15, %v5708_v58 }
 0x956   : > { %5850 = vmatpush.bf16.msrb.mxu2 %v7471_v8 }
 0x959   : > { %v5709_v39 = vpop.f32.mrf.mxu2 }
 0x95a   : > { %v5710_v62 = vadd.f32 %v5709_v39, %v5691_v31 }
 0x95c   : > { %v5729_v19 = vadd.f32 %v5728_v45, %v5710_v62 }
 0x97c   : > { %v5740_v2 = vpop.f32.mrf.mxu2 }
 0x97d   : > { %v5741_v9 = vadd.f32 %v5740_v2, %v5722_v11 }
 0x984   : > { %v5742_v57 = vpop.f32.mrf.mxu2 }
 0x985   : > { %v5743_v51 = vadd.f32 %v5742_v57, %v5724_v5 }
 0x98c   : > { %v5745_v21 = vpop.f32.mrf.mxu2 }
 0x98d   : > { %v5746_v48 = vadd.f32 %v5745_v21, %v5727_v37 }
 0x994   : > { %v5747_v24 = vpop.f32.mrf.mxu2 }
 0x995   : > { %v5748_v49 = vadd.f32 %v5747_v24, %v5729_v19 }
 0x9b6   : > { %v5759_v44 = vpop.f32.mrf.mxu0 }
 0x9b7   : > { %v5760_v40 = vadd.f32 %v5759_v44, %v5741_v9 }
 0x9b9   : > { %v5769_v42 = vmax.f32 %v5760_v40, 0.0 }
 0x9be   : > { %v5761_v6 = vpop.f32.mrf.mxu0 }
 0x9bf   : > { %v5762_v32 = vadd.f32 %v5761_v6, %v5743_v51 }
 0x9c1   : > { %v5770_v3 = vmax.f32 %v5762_v32, 0.0 }
 0x9c3   : > { %v5773_v52 = vpack.c.bf16 %v5770_v3, %v5769_v42 }
 0x9c5   : > { %5851 = vmatmul.bf16.vlgmr.msrb.gmra.mxu2 %v5773_v52 }
 0x9c6   : > { %v5764_v35 = vpop.f32.mrf.mxu0 }
 0x9c7   : > { %v5765_v20 = vadd.f32 %v5764_v35, %v5746_v48 }
 0x9c9   : > { %v5771_v26 = vmax.f32 %v5765_v20, 0.0 }
 0x9ce   : > { %v5766_v61 = vpop.f32.mrf.mxu0 }
 0x9cf   : > { %v5767_v27 = vadd.f32 %v5766_v61, %v5748_v49 }
 0x9d1   : > { %v5772_v17 = vmax.f32 %v5767_v27, 0.0 }
 0x9d3   : > { %v5774_v28 = vpack.c.bf16 %v5772_v17, %v5771_v26 }
 0x9d5   : > { %5856 = vmatmul.bf16.gmra.mxu2 %v5774_v28 }
 0xa48   : > { %v5852_v0 = vpop.f32.mrf.mxu2 }
 0xa49   : > { %v5853_v46 = vadd.f32 %v7518_v12, %v5852_v0 }
 0xa4b   : > { %v5862_v18 = vmax.f32 %v5853_v46, 0.0 }
 0xa50   : > { %v5854_v10 = vpop.f32.mrf.mxu2 }
 0xa51   : > { %v5855_v16 = vadd.f32 %v7518_v12, %v5854_v10 }
 0xa53   : > { %v5863_v38 = vmax.f32 %v5855_v16, 0.0 }
 0xa55   : > { %v5866_v59 = vpack.c.bf16 %v5863_v38, %v5862_v18 }
 0xa57   : > { %5944 = vmatmul.bf16.vlgmr.msra.gmra.mxu0 %v5866_v59 }
 0xa58   : > { %v5857_v14 = vpop.f32.mrf.mxu2 }
 0xa59   : > { %v5858_v53 = vadd.f32 %v7518_v12, %v5857_v14 }
 0xa5b   : > { %v5864_v25 = vmax.f32 %v5858_v53, 0.0 }
 0xa60   : > { %v5859_v13 = vpop.f32.mrf.mxu2 }
 0xa61   : > { %v5860_v29 = vadd.f32 %v7518_v12, %v5859_v13 }
 0xa63   : > { %v5865_v33 = vmax.f32 %v5860_v29, 0.0 }
 0xa65   : > { %v5867_v60 = vpack.c.bf16 %v5865_v33, %v5864_v25 }
 0xa67   : > { %5949 = vmatmul.bf16.gmra.mxu0 %v5867_v60 }
 0xad4   : > { %v5945_v50 = vpop.f32.mrf.mxu0 }
 0xad5   : > { %v5946_v8 = vadd.f32 %v7519_v55, %v5945_v50 }
 0xad7   : > { %5955 = vst [vmem:[%s868_s27] sm:$0xff] %v5946_v8 }
 0xadc   : > { %v5947_v39 = vpop.f32.mrf.mxu0 }
 0xadd   : > { %v5948_v15 = vadd.f32 %v7519_v55, %v5947_v39 }
 0xadf   : > { %5956 = vst [vmem:[%s868_s27 + $0x8] sm:$0xff] %v5948_v15 }
 0xae4   : > { %v5950_v2 = vpop.f32.mrf.mxu0 }
 0xae5   : > { %v5951_v45 = vadd.f32 %v7519_v55, %v5950_v2 }
 0xae7   : > { %5957 = vst [vmem:[%s868_s27 + $0x10] sm:$0xff] %v5951_v45 }
 0xaec   : > { %v5952_v23 = vpop.f32.mrf.mxu0 }
 0xaed   : > { %v5953_v7 = vadd.f32 %v7519_v55, %v5952_v23 }
 0xaef   : > { %5958 = vst [vmem:[%s868_s27 + $0x18] sm:$0xff] %v5953_v7 }
 0xaf0 PF: > { %p18_p9 = scmp.ge.s32.totalorder %s7622_s21, 4   ;;  %s12115_s17 = smov %s7539_s18 }
 0xaf1   : > { %s12116_s18 = smov %s7631_s24  ;;  %s12117_s19 = smov %s7622_s21 }
 0xaf2   :  { %20 = sbr.rel (!%p18_p9) target bundleno = 2 (0x2), region = 137 }

</bundles_post_ra>
